<compile_context>
chip_gen: v7x
topology: tpu7x:2x2x1
jax: 0.10.0
libtpu: 0.0.40
codegen_flags: <defaults>
</compile_context>

<pallas_src>
import math

import jax
import jax.numpy as jnp
from jax.experimental import pallas as pl
from jax.experimental.pallas import tpu as pltpu

F32 = jnp.float32
BF16 = jnp.bfloat16

# ----------------------------- small config -----------------------------
B = 2
T_IN = 8            # source frames
IDIM = 80           # espnet encoder idim (fixed to 80 in the module)
D = 128             # adim == ddim == decoder/encoder embed dim (768 -> 128)
AHEADS = 4          # espnet encoder heads
ELAYERS = 2         # espnet encoder blocks
EUNITS = 256        # espnet encoder FFN units
NUM_UNITS = 16      # speech-unit codebook entries (1000 -> 16)
AE_LAYERS = 2       # AV-HuBERT TransformerEncoder layers (4 -> 2)
AE_HEADS = 4
AE_FFN = 256
PC_K = 4            # pos-conv kernel (conv_pos=128 -> 4)
PC_G = 4            # pos-conv groups (conv_pos_groups=16 -> 4)
DLAYERS = 2         # fairseq TransformerDecoder layers (6 -> 2)
DEC_HEADS = 4
DEC_FFN = 256
ODIM = 12           # output vocabulary
OPAD = 128          # vocab padded to one full lane tile (lane-dense stores)
SOS = EOS = ODIM - 1
IGNORE_ID = -1
PAD_IDX = ODIM - 1  # decoder embed padding_idx == odim-1 (== sos/eos, as in the module)
MTLALPHA = 0.3
LSM_WEIGHT = 0.1
CTC_BLANK = 0
NEG_INF = -1e9

# ----------------------------- in-kernel helpers -----------------------------

def _ln2d(x, g, b):
    mu = jnp.mean(x, axis=-1, keepdims=True)
    var = jnp.mean(jnp.square(x - mu), axis=-1, keepdims=True)
    return (x - mu) * jax.lax.rsqrt(var + 1e-5) * g + b


def _bdot(a, w):
    # bf16 MXU operands, f32 accumulation (numerics drift slightly vs f32 torch).
    return jnp.dot(a.astype(BF16), w.astype(BF16), preferred_element_type=F32)


def _softmax_rows(s):
    # exact reciprocal in the attention path (not the bottleneck at these shapes)
    m = jnp.max(s, axis=-1, keepdims=True)
    p = jnp.exp(s - m)
    return p / jnp.sum(p, axis=-1, keepdims=True)


def _attn_fold(q, k, v, bias, wo, nheads, scale):
    """Multi-head attention with the output projection folded into the head loop.

    q:(Tq,Dm) k,v:(Tk,Dm) f32, bias:(1 or Tq, Tk) additive f32, wo:(Dm,Dm).
    Returns sum_h softmax(q_h k_h^T * scale + bias) v_h @ wo[h] : (Tq, Dm).
    """
    dm = q.shape[-1]
    dh = dm // nheads
    acc = jnp.zeros((q.shape[0], wo.shape[-1]), F32)
    for h in range(nheads):
        sl = slice(h * dh, (h + 1) * dh)
        s = jax.lax.dot_general(q[:, sl].astype(BF16), k[:, sl].astype(BF16),
                                (((1,), (1,)), ((), ())),
                                preferred_element_type=F32)
        p = _softmax_rows(s * scale + bias)
        ph = jnp.dot(p.astype(BF16), v[:, sl].astype(BF16),
                     preferred_element_type=F32)
        acc = acc + jnp.dot(ph.astype(BF16), wo[sl, :].astype(BF16),
                            preferred_element_type=F32)
    return acc


def _logsoftmax_rows(logits):
    m = jnp.max(logits, axis=-1, keepdims=True)
    e = jnp.exp(logits - m)
    return logits - m - jnp.log(jnp.sum(e, axis=-1, keepdims=True))


def _key_bias(length):
    # additive key-padding bias (1, T): 0 on valid frames, -1e9 on padded ones
    it = jax.lax.broadcasted_iota(jnp.int32, (1, T_IN), 1)
    return jnp.where(it < length, 0.0, NEG_INF).astype(F32)


def _row_mask(length):
    # (T, 1) 1/0 mask over frames
    it = jax.lax.broadcasted_iota(jnp.int32, (T_IN, 1), 0)
    return (it < length).astype(F32)


# ----------------------------- fused stack kernels -----------------------------

def _enc_stack_kernel(lens_ref, x_ref, pe_ref, ew, eb, eg, elb,
                      ln1g, ln1b, wqkv, bqkv, wo, bo, ln2g, ln2b,
                      w1, b1, w2, b2, afg, afb,
                      o_ref, h_sc):
    # ESPnet encoder: 'linear' front -> ELAYERS pre-LN blocks -> after_norm.
    # grid = (batch, layer); activation lives in h_sc across the layer axis.
    b = pl.program_id(0)
    l = pl.program_id(1)
    length = lens_ref[b]
    kbias = _key_bias(length)

    @pl.when(l == 0)
    def _():
        h0 = _bdot(x_ref[0], ew[...]) + eb[...]                 # Linear(idim -> D)
        h0 = jnp.maximum(_ln2d(h0, eg[...], elb[...]), 0.0)     # LayerNorm + ReLU
        h_sc[...] = h0 * math.sqrt(D) + pe_ref[...]             # x*sqrt(D) + PE

    h = h_sc[...]
    hn = _ln2d(h, ln1g[0], ln1b[0])
    qkv = _bdot(hn, wqkv[0]) + bqkv[0]
    a = _attn_fold(qkv[:, :D], qkv[:, D:2 * D], qkv[:, 2 * D:],
                   kbias, wo[0], AHEADS, 1.0 / math.sqrt(D // AHEADS))
    h = h + a + bo[0]
    hn = _ln2d(h, ln2g[0], ln2b[0])
    f = jnp.maximum(_bdot(hn, w1[0]) + b1[0], 0.0)
    h = h + _bdot(f, w2[0]) + b2[0]
    h_sc[...] = h

    @pl.when(l == pl.num_programs(1) - 1)
    def _():
        o_ref[0] = _ln2d(h, afg[...], afb[...])                 # after_norm


def _av_stack_kernel(lens_ref, h_ref, su_ref,
                     m_wq, m_bq, m_wkv, m_bkv, m_wo, m_bo, ln0g, ln0b,
                     pc_w, pc_b, avlng, avlnb,
                     wqkv, bqkv, wo, bo, ln1g, ln1b, w1, b1, w2, b2, ln2g, ln2b,
                     res_g, res_b, ctc_w, ctc_b,
                     enc_out_ref, ctc_out_ref, z_sc):
    # prologue (l==0): mha0 over speech units + layer_norm0 + masked grouped
    # pos-conv + GELU + residual + LN; body: AV-HuBERT post-LN blocks;
    # epilogue (l==last): residual with espnet output + layer_norm1 + CTC head.
    b = pl.program_id(0)
    l = pl.program_id(1)
    length = lens_ref[b]
    kbias = _key_bias(length)

    @pl.when(l == 0)
    def _():
        h = h_ref[0]                                            # (T, D)
        su = su_ref[...]                                        # (NUM_UNITS, D)
        q = _bdot(h, m_wq[...]) + m_bq[...]
        kv = _bdot(su, m_wkv[...]) + m_bkv[...]
        s = jax.lax.dot_general(q.astype(BF16), kv[:, :D].astype(BF16),
                                (((1,), (1,)), ((), ())),
                                preferred_element_type=F32)
        p = _softmax_rows(s * (1.0 / math.sqrt(D)))             # num_heads=1
        a = jnp.dot(p.astype(BF16), kv[:, D:].astype(BF16),
                    preferred_element_type=F32)
        z = _ln2d(_bdot(a, m_wo[...]) + m_bo[...], ln0g[...], ln0b[...])
        # fairseq TransformerEncoder: zero padded frames before pos-conv
        z = z * _row_mask(length)
        # grouped positional Conv1d (SamePad) as one (T, K*D) x (K*D, D) matmul;
        # taps built with pltpu.roll on the sublane axis + row masks.
        pad = PC_K // 2
        rit = jax.lax.broadcasted_iota(jnp.int32, (T_IN, 1), 0)
        taps = []
        for k in range(PC_K):
            mk = ((rit >= pad - k) & (rit < T_IN + pad - k)).astype(F32)
            taps.append(pltpu.roll(z, shift=(pad - k) % T_IN, axis=0) * mk)
        xs = jnp.concatenate(taps, axis=-1)                     # (T, K*D)
        # TODO(synk): torch/fairseq use exact erf-GELU; tanh approximation here.
        conv = jax.nn.gelu(_bdot(xs, pc_w[...]) + pc_b[...], approximate=True)
        z_sc[...] = _ln2d(z + conv, avlng[...], avlnb[...])

    z = z_sc[...]
    # wav2vec2 TransformerSentenceEncoderLayer, layer_norm_first=False (post-LN)
    qkv = _bdot(z, wqkv[0]) + bqkv[0]
    a = _attn_fold(qkv[:, :D], qkv[:, D:2 * D], qkv[:, 2 * D:],
                   kbias, wo[0], AE_HEADS, 1.0 / math.sqrt(D // AE_HEADS))
    z = _ln2d(z + a + bo[0], ln1g[0], ln1b[0])
    f = jax.nn.gelu(_bdot(z, w1[0]) + b1[0], approximate=True)
    z = _ln2d(z + _bdot(f, w2[0]) + b2[0], ln2g[0], ln2b[0])
    z_sc[...] = z

    @pl.when(l == pl.num_programs(1) - 1)
    def _():
        enc2 = _ln2d(z + h_ref[0], res_g[...], res_b[...])      # layer_norm1
        enc_out_ref[0] = enc2
        # CTC projection + log-softmax, vocab lane-padded to 128 (pad bias -1e9)
        ctc_out_ref[0] = _logsoftmax_rows(_bdot(enc2, ctc_w[...]) + ctc_b[...])


def _dec_stack_kernel(lens_ref, x0_ref, enc_ref, sbias_ref,
                      lnsg, lnsb, wqkv_s, bqkv_s, wos, bos,
                      lncg, lncb, wqc, bqc, wkvc, bkvc, woc, boc,
                      lnfg, lnfb, w1, b1, w2, b2,
                      fing, finb, out_w, out_b,
                      o_ref, x_sc):
    # fairseq TransformerDecoder, normalize_before=True; epilogue fuses final
    # LN + shared-embedding output projection + log-softmax (lane-padded vocab).
    b = pl.program_id(0)
    l = pl.program_id(1)
    length = lens_ref[b]
    cbias = _key_bias(length)                                   # (1, T) enc pad
    sbias = sbias_ref[0]                                        # (U, U) causal+pad
    scale = 1.0 / math.sqrt(D // DEC_HEADS)

    @pl.when(l == 0)
    def _():
        x_sc[...] = x0_ref[0]

    x = x_sc[...]
    enc = enc_ref[0]
    # self-attention
    xn = _ln2d(x, lnsg[0], lnsb[0])
    qkv = _bdot(xn, wqkv_s[0]) + bqkv_s[0]
    a = _attn_fold(qkv[:, :D], qkv[:, D:2 * D], qkv[:, 2 * D:],
                   sbias, wos[0], DEC_HEADS, scale)
    x = x + a + bos[0]
    # cross-attention
    xn = _ln2d(x, lncg[0], lncb[0])
    q = _bdot(xn, wqc[0]) + bqc[0]
    kv = _bdot(enc, wkvc[0]) + bkvc[0]
    a = _attn_fold(q, kv[:, :D], kv[:, D:], cbias, woc[0], DEC_HEADS, scale)
    x = x + a + boc[0]
    # FFN (relu)
    xn = _ln2d(x, lnfg[0], lnfb[0])
    f = jnp.maximum(_bdot(xn, w1[0]) + b1[0], 0.0)
    x = x + _bdot(f, w2[0]) + b2[0]
    x_sc[...] = x

    @pl.when(l == pl.num_programs(1) - 1)
    def _():
        xn = _ln2d(x, fing[...], finb[...])
        o_ref[0] = _logsoftmax_rows(_bdot(xn, out_w[...]) + out_b[...])


# ----------------------------- pallas_call wrappers -----------------------------

def _shared_spec(shape):
    zeros = (0,) * len(shape)
    return pl.BlockSpec(tuple(shape), lambda b, l, lens: zeros)


def _batched_spec(shape):
    tail = (0,) * (len(shape) - 1)
    return pl.BlockSpec((1,) + tuple(shape[1:]), lambda b, l, lens: (b,) + tail)


def _layer_spec(shape):
    tail = (0,) * (len(shape) - 1)
    return pl.BlockSpec((1,) + tuple(shape[1:]), lambda b, l, lens: (l,) + tail)


def _stack_call(kernel, lengths, batched, shared_front, stacked, shared_tail,
                n_layers, out_shapes, out_specs, scratch):
    bsz = batched[0].shape[0]
    in_specs = ([_batched_spec(a.shape) for a in batched]
                + [_shared_spec(a.shape) for a in shared_front]
                + [_layer_spec(a.shape) for a in stacked]
                + [_shared_spec(a.shape) for a in shared_tail])
    return pl.pallas_call(
        kernel,
        out_shape=out_shapes,
        grid_spec=pltpu.PrefetchScalarGridSpec(
            num_scalar_prefetch=1,
            grid=(bsz, n_layers),
            in_specs=in_specs,
            out_specs=out_specs,
            scratch_shapes=scratch),
        compiler_params=pltpu.CompilerParams(
            dimension_semantics=("parallel", "arbitrary")),
    )(lengths, *batched, *shared_front, *stacked, *shared_tail)


# ----------------------------- plain-JAX glue -----------------------------

def sinusoidal_pe(T, d):
    pos = jnp.arange(T, dtype=F32)[:, None]
    div = jnp.exp(jnp.arange(0, d, 2, dtype=F32) * (-math.log(10000.0) / d))
    pe = jnp.zeros((T, d), F32)
    pe = pe.at[:, 0::2].set(jnp.sin(pos * div))
    pe = pe.at[:, 1::2].set(jnp.cos(pos * div))
    return pe


def fairseq_sin_table(n, d, padding_idx):
    half = d // 2
    scale = math.log(10000.0) / (half - 1)
    inv = jnp.exp(jnp.arange(half, dtype=F32) * -scale)
    pos = jnp.arange(n, dtype=F32)[:, None] * inv[None, :]
    tab = jnp.concatenate([jnp.sin(pos), jnp.cos(pos)], axis=1)
    return tab.at[padding_idx].set(0.0)


def add_sos_eos(label):
    bsz = label.shape[0]
    lab_len = jnp.sum(label != IGNORE_ID, axis=1)
    ys_in = jnp.concatenate([jnp.full((bsz, 1), SOS, label.dtype),
                             jnp.where(label == IGNORE_ID, EOS, label)], axis=1)
    ys_out = jnp.concatenate([label, jnp.full((bsz, 1), IGNORE_ID, label.dtype)], axis=1)
    ys_out = ys_out.at[jnp.arange(bsz), lab_len].set(EOS)
    return ys_in, ys_out


def ctc_nll(logp, input_lengths, labels, label_lengths):
    # TODO(synk): CTC forward DP kept in plain JAX (no clean Pallas equivalent);
    # mirrors torch.nn.CTCLoss(blank=0, reduction='sum') per-sample semantics.
    bsz, T, _ = logp.shape
    L = labels.shape[1]
    S = 2 * L + 1
    NEG = -1e30
    labc = jnp.where(labels < 0, 0, labels)
    ext = jnp.zeros((bsz, S), jnp.int32).at[:, 1::2].set(labc)
    same2 = jnp.concatenate([jnp.zeros((bsz, 2), bool), ext[:, 2:] == ext[:, :-2]], axis=1)
    skip_ok = (ext != CTC_BLANK) & (~same2)
    valid_s = jnp.arange(S)[None, :] < (2 * label_lengths[:, None] + 1)
    emit = jnp.take_along_axis(logp, jnp.broadcast_to(ext[:, None, :], (bsz, T, S)), axis=2)

    alpha0 = jnp.full((bsz, S), NEG, F32)
    alpha0 = alpha0.at[:, 0].set(emit[:, 0, 0])
    alpha0 = alpha0.at[:, 1].set(jnp.where(label_lengths > 0, emit[:, 0, 1], NEG))
    alpha0 = jnp.where(valid_s, alpha0, NEG)

    def lse3(a, b, c):
        m = jnp.maximum(jnp.maximum(a, b), c)
        return m + jnp.log(jnp.exp(a - m) + jnp.exp(b - m) + jnp.exp(c - m))

    def step(alpha, inp):
        e_t, t = inp
        s1 = jnp.concatenate([jnp.full((bsz, 1), NEG, F32), alpha[:, :-1]], axis=1)
        s2 = jnp.concatenate([jnp.full((bsz, 2), NEG, F32), alpha[:, :-2]], axis=1)
        s2 = jnp.where(skip_ok, s2, NEG)
        new = lse3(alpha, s1, s2) + e_t
        new = jnp.where(valid_s, new, NEG)
        new = jnp.where((t < input_lengths)[:, None], new, alpha)
        return new, None

    alpha, _ = jax.lax.scan(step, alpha0,
                            (emit.transpose(1, 0, 2)[1:], jnp.arange(1, T)))
    end = 2 * label_lengths
    a1 = jnp.take_along_axis(alpha, end[:, None], axis=1)[:, 0]
    a2 = jnp.take_along_axis(alpha, jnp.maximum(end - 1, 0)[:, None], axis=1)[:, 0]
    a2 = jnp.where(label_lengths > 0, a2, NEG)
    m = jnp.maximum(a1, a2)
    return -(m + jnp.log(jnp.exp(a1 - m) + jnp.exp(a2 - m)))


def label_smoothing_loss(logq, ys_out):
    # logq: (B*U, ODIM) log-softmax over the real vocabulary
    n, V = logq.shape
    bsz = ys_out.shape[0]
    t = ys_out.reshape(-1)
    ignore = t == IGNORE_ID
    tc = jnp.where(ignore, 0, t)
    conf = 1.0 - LSM_WEIGHT
    low = LSM_WEIGHT / (V - 1)
    true_dist = jnp.full((n, V), low, F32).at[jnp.arange(n), tc].set(conf)
    kl = true_dist * (jnp.log(true_dist) - logq)
    kl = jnp.where(ignore[:, None], 0.0, kl)
    return jnp.sum(kl) / bsz  # transformer_length_normalized_loss=False


def th_accuracy(logq, ys_out):
    pred = jnp.argmax(logq, axis=-1).reshape(ys_out.shape)
    mask = ys_out != IGNORE_ID
    num = jnp.sum(jnp.where((pred == ys_out) & mask, 1, 0))
    den = jnp.sum(jnp.where(mask, 1, 0))
    return num.astype(F32) / den.astype(F32)


# ----------------------------- full forward -----------------------------

def forward(params, x, lengths, label):
    bsz = x.shape[0]

    # ---- ESPnet encoder (transformer_input_layer='linear', pre-LN), one call ----
    # TODO(synk): conv3d/ResNet video frontend and conformer rel-pos variants
    # of the avsr Encoder are not implemented.
    ep = params["encoder"]
    el = ep["layers"]
    h = _stack_call(
        _enc_stack_kernel, lengths,
        batched=[x],
        shared_front=[ep["pe"], ep["embed_w"], ep["embed_b"],
                      ep["emb_ln_g"], ep["emb_ln_b"]],
        stacked=[el["ln1_g"], el["ln1_b"], el["wqkv"], el["bqkv"], el["wo"], el["bo"],
                 el["ln2_g"], el["ln2_b"], el["w1"], el["b1"], el["w2"], el["b2"]],
        shared_tail=[ep["after_g"], ep["after_b"]],
        n_layers=ELAYERS,
        out_shapes=jax.ShapeDtypeStruct((bsz, T_IN, D), F32),
        out_specs=_batched_spec((bsz, T_IN, D)),
        scratch=[pltpu.VMEM((T_IN, D), F32)])

    # ---- mha0 + layer_norm0 + AV-HuBERT encoder + layer_norm1 + CTC head ----
    ap = params["audio_encoder"]
    al = ap["layers"]
    m0 = params["mha0"]
    su = params["unit_embedding"][1:NUM_UNITS + 1]              # ids 1..NUM_UNITS
    enc3, logp_pad = _stack_call(
        _av_stack_kernel, lengths,
        batched=[h],
        shared_front=[su, m0["wq"], m0["bq"], m0["wkv"], m0["bkv"], m0["wo"], m0["bo"],
                      params["ln0_g"], params["ln0_b"],
                      ap["pc_w"], ap["pc_b"], ap["ln_g"], ap["ln_b"]],
        stacked=[al["wqkv"], al["bqkv"], al["wo"], al["bo"], al["ln1_g"], al["ln1_b"],
                 al["w1"], al["b1"], al["w2"], al["b2"], al["ln2_g"], al["ln2_b"]],
        shared_tail=[params["ln1_g"], params["ln1_b"],
                     params["ctc"]["w"], params["ctc"]["b"]],
        n_layers=AE_LAYERS,
        out_shapes=(jax.ShapeDtypeStruct((bsz, T_IN, D), F32),
                    jax.ShapeDtypeStruct((bsz, T_IN, OPAD), F32)),
        out_specs=(_batched_spec((bsz, T_IN, D)), _batched_spec((bsz, T_IN, OPAD))),
        scratch=[pltpu.VMEM((T_IN, D), F32)])

    # ---- CTC branch ----
    logp = logp_pad[:, :, :ODIM]
    lab_len = jnp.sum(label != IGNORE_ID, axis=1)
    loss_ctc = jnp.sum(ctc_nll(logp, lengths, label, lab_len)) / bsz

    # ---- attention decoder branch (proj_decoder is None since adim == ddim) ----
    dp = params["decoder"]
    dl = dp["layers"]
    ys_in, ys_out = add_sos_eos(label)
    U = ys_in.shape[1]
    emb = jnp.take(dp["embed"], ys_in, axis=0)                  # padding row is zero
    nonpad = (ys_in != PAD_IDX).astype(jnp.int32)
    positions = jnp.cumsum(nonpad, axis=1) * nonpad + PAD_IDX
    pos_tab = fairseq_sin_table(PAD_IDX + U + 2, D, PAD_IDX)
    # no_scale_embedding=True in AVHubertSeq2SeqConfig -> embed_scale == 1.0
    xdec0 = emb + jnp.take(pos_tab, positions, axis=0)

    # Note: with all keys masked the softmax degrades to uniform rather than
    # zero, matching torch because those query rows are ignored downstream.
    self_pad = jnp.where(ys_in == PAD_IDX, NEG_INF, 0.0).astype(F32)
    causal = jnp.where(jnp.triu(jnp.ones((U, U), dtype=bool), k=1), NEG_INF, 0.0).astype(F32)
    sbias = causal[None, :, :] + self_pad[:, None, :]           # (B, U, U)

    logq_pad = _stack_call(
        _dec_stack_kernel, lengths,
        batched=[xdec0, enc3, sbias],
        shared_front=[],
        stacked=[dl["ln_s_g"], dl["ln_s_b"], dl["wqkv_s"], dl["bqkv_s"],
                 dl["wo_s"], dl["bo_s"],
                 dl["ln_c_g"], dl["ln_c_b"], dl["wq_c"], dl["bq_c"],
                 dl["wkv_c"], dl["bkv_c"], dl["wo_c"], dl["bo_c"],
                 dl["ln_f_g"], dl["ln_f_b"], dl["w1"], dl["b1"], dl["w2"], dl["b2"]],
        shared_tail=[dp["final_g"], dp["final_b"], dp["out_w"], dp["out_b"]],
        n_layers=DLAYERS,
        out_shapes=jax.ShapeDtypeStruct((bsz, U, OPAD), F32),
        out_specs=_batched_spec((bsz, U, OPAD)),
        scratch=[pltpu.VMEM((U, D), F32)])

    logq = logq_pad[:, :, :ODIM].reshape(bsz * U, ODIM)

    loss_att = label_smoothing_loss(logq, ys_out)
    loss = MTLALPHA * loss_ctc + (1.0 - MTLALPHA) * loss_att
    acc = th_accuracy(logq, ys_out)
    return loss, loss_ctc, loss_att, acc


# ----------------------------- parameter init -----------------------------

def conv_blockdiag(w):
    """(D, D//G, K) grouped Conv1d weight -> stacked (K*D, D) block-diag matmul weight."""
    dg = D // PC_G
    wk = jnp.zeros((PC_K, D, D), F32)
    for g in range(PC_G):
        blk = jnp.transpose(w[g * dg:(g + 1) * dg], (2, 1, 0))     # (K, c_in, c_out)
        wk = wk.at[:, g * dg:(g + 1) * dg, g * dg:(g + 1) * dg].set(blk)
    return wk.reshape(PC_K * D, D).astype(BF16)


def init_params(key):
    keys = iter(jax.random.split(key, 256))
    std = 0.02

    def nrm(shape, s=std):
        return (s * jax.random.normal(next(keys), shape)).astype(F32)

    def z(shape):
        return jnp.zeros(shape, F32)

    def o(shape):
        return jnp.ones(shape, F32)

    def stk(fn, nl):
        return jnp.stack([fn() for _ in range(nl)], axis=0)

    encoder = dict(
        embed_w=nrm((IDIM, D)).astype(BF16), embed_b=z((1, D)),
        emb_ln_g=o((1, D)), emb_ln_b=z((1, D)),
        pe=sinusoidal_pe(T_IN, D),
        layers=dict(
            ln1_g=o((ELAYERS, 1, D)), ln1_b=z((ELAYERS, 1, D)),
            wqkv=stk(lambda: jnp.concatenate([nrm((D, D)), nrm((D, D)), nrm((D, D))],
                                             axis=1), ELAYERS).astype(BF16),
            bqkv=z((ELAYERS, 1, 3 * D)),
            wo=stk(lambda: nrm((D, D)), ELAYERS).astype(BF16), bo=z((ELAYERS, 1, D)),
            ln2_g=o((ELAYERS, 1, D)), ln2_b=z((ELAYERS, 1, D)),
            w1=stk(lambda: nrm((D, EUNITS)), ELAYERS).astype(BF16),
            b1=z((ELAYERS, 1, EUNITS)),
            w2=stk(lambda: nrm((EUNITS, D)), ELAYERS).astype(BF16),
            b2=z((ELAYERS, 1, D))),
        after_g=o((1, D)), after_b=z((1, D)),
    )

    audio_encoder = dict(
        pc_w=conv_blockdiag(nrm((D, D // PC_G, PC_K))), pc_b=z((1, D)),
        ln_g=o((1, D)), ln_b=z((1, D)),
        layers=dict(
            wqkv=stk(lambda: jnp.concatenate([nrm((D, D)), nrm((D, D)), nrm((D, D))],
                                             axis=1), AE_LAYERS).astype(BF16),
            bqkv=z((AE_LAYERS, 1, 3 * D)),
            wo=stk(lambda: nrm((D, D)), AE_LAYERS).astype(BF16), bo=z((AE_LAYERS, 1, D)),
            ln1_g=o((AE_LAYERS, 1, D)), ln1_b=z((AE_LAYERS, 1, D)),
            w1=stk(lambda: nrm((D, AE_FFN)), AE_LAYERS).astype(BF16),
            b1=z((AE_LAYERS, 1, AE_FFN)),
            w2=stk(lambda: nrm((AE_FFN, D)), AE_LAYERS).astype(BF16),
            b2=z((AE_LAYERS, 1, D)),
            ln2_g=o((AE_LAYERS, 1, D)), ln2_b=z((AE_LAYERS, 1, D))),
    )

    mha0 = dict(
        wq=nrm((D, D)).astype(BF16), bq=z((1, D)),
        wkv=jnp.concatenate([nrm((D, D)), nrm((D, D))], axis=1).astype(BF16),
        bkv=z((1, 2 * D)),
        wo=nrm((D, D)).astype(BF16), bo=z((1, D)))

    dec_embed = nrm((ODIM, D), s=D ** -0.5).at[PAD_IDX].set(0.0)
    out_w = jnp.zeros((D, OPAD), F32).at[:, :ODIM].set(dec_embed.T).astype(BF16)
    out_b = jnp.where(jnp.arange(OPAD) < ODIM, 0.0, NEG_INF).astype(F32).reshape(1, OPAD)
    decoder = dict(
        embed=dec_embed, out_w=out_w, out_b=out_b,
        layers=dict(
            ln_s_g=o((DLAYERS, 1, D)), ln_s_b=z((DLAYERS, 1, D)),
            wqkv_s=stk(lambda: jnp.concatenate([nrm((D, D)), nrm((D, D)), nrm((D, D))],
                                               axis=1), DLAYERS).astype(BF16),
            bqkv_s=z((DLAYERS, 1, 3 * D)),
            wo_s=stk(lambda: nrm((D, D)), DLAYERS).astype(BF16), bo_s=z((DLAYERS, 1, D)),
            ln_c_g=o((DLAYERS, 1, D)), ln_c_b=z((DLAYERS, 1, D)),
            wq_c=stk(lambda: nrm((D, D)), DLAYERS).astype(BF16), bq_c=z((DLAYERS, 1, D)),
            wkv_c=stk(lambda: jnp.concatenate([nrm((D, D)), nrm((D, D))], axis=1),
                      DLAYERS).astype(BF16),
            bkv_c=z((DLAYERS, 1, 2 * D)),
            wo_c=stk(lambda: nrm((D, D)), DLAYERS).astype(BF16), bo_c=z((DLAYERS, 1, D)),
            ln_f_g=o((DLAYERS, 1, D)), ln_f_b=z((DLAYERS, 1, D)),
            w1=stk(lambda: nrm((D, DEC_FFN)), DLAYERS).astype(BF16),
            b1=z((DLAYERS, 1, DEC_FFN)),
            w2=stk(lambda: nrm((DEC_FFN, D)), DLAYERS).astype(BF16),
            b2=z((DLAYERS, 1, D))),
        final_g=o((1, D)), final_b=z((1, D)),
    )

    ctc_w = jnp.zeros((D, OPAD), F32).at[:, :ODIM].set(nrm((D, ODIM))).astype(BF16)
    ctc_b = out_b  # zeros on real classes, NEG_INF on lane padding

    return dict(
        encoder=encoder,
        unit_embedding=nrm((NUM_UNITS + 2, D)),
        mha0=mha0,
        ln0_g=o((1, D)), ln0_b=z((1, D)),
        ln1_g=o((1, D)), ln1_b=z((1, D)),
        audio_encoder=audio_encoder,
        ctc=dict(w=ctc_w, b=ctc_b),
        decoder=decoder,
    )


# ----------------------------- main -----------------------------

if __name__ == "__main__":
    root = jax.random.PRNGKey(0)
    k_param, k_x = jax.random.split(root)

    params = init_params(k_param)
    x = jax.random.normal(k_x, (B, T_IN, IDIM), F32)
    lengths = jnp.array([8, 6], jnp.int32)
    label = jnp.array([[3, 4, 5, -1, -1],
                       [6, 7, 8, 9, 2]], jnp.int32)

    fwd = jax.jit(forward)
    loss, loss_ctc, loss_att, acc = fwd(params, x, lengths, label)
    jax.block_until_ready(loss)

    assert bool(jnp.isfinite(loss)) and bool(jnp.isfinite(loss_ctc)) \
        and bool(jnp.isfinite(loss_att)) and bool(jnp.isfinite(acc)), "non-finite output"
    print("KERNEL_OK")
</pallas_src>

<mosaic_0001>
module attributes {stable_mosaic.version = 11 : i64} {
  func.func @_av_stack_kernel(%arg0: i32, %arg1: i32, %arg2: memref<2xi32, #tpu.memory_space<smem>>, %arg3: memref<1x8x128xf32, #tpu.memory_space<vmem>>, %arg4: memref<16x128xf32, #tpu.memory_space<vmem>>, %arg5: memref<128x128xbf16, #tpu.memory_space<vmem>>, %arg6: memref<1x128xf32, #tpu.memory_space<vmem>>, %arg7: memref<128x256xbf16, #tpu.memory_space<vmem>>, %arg8: memref<1x256xf32, #tpu.memory_space<vmem>>, %arg9: memref<128x128xbf16, #tpu.memory_space<vmem>>, %arg10: memref<1x128xf32, #tpu.memory_space<vmem>>, %arg11: memref<1x128xf32, #tpu.memory_space<vmem>>, %arg12: memref<1x128xf32, #tpu.memory_space<vmem>>, %arg13: memref<512x128xbf16, #tpu.memory_space<vmem>>, %arg14: memref<1x128xf32, #tpu.memory_space<vmem>>, %arg15: memref<1x128xf32, #tpu.memory_space<vmem>>, %arg16: memref<1x128xf32, #tpu.memory_space<vmem>>, %arg17: memref<1x128x384xbf16, #tpu.memory_space<vmem>>, %arg18: memref<1x1x384xf32, #tpu.memory_space<vmem>>, %arg19: memref<1x128x128xbf16, #tpu.memory_space<vmem>>, %arg20: memref<1x1x128xf32, #tpu.memory_space<vmem>>, %arg21: memref<1x1x128xf32, #tpu.memory_space<vmem>>, %arg22: memref<1x1x128xf32, #tpu.memory_space<vmem>>, %arg23: memref<1x128x256xbf16, #tpu.memory_space<vmem>>, %arg24: memref<1x1x256xf32, #tpu.memory_space<vmem>>, %arg25: memref<1x256x128xbf16, #tpu.memory_space<vmem>>, %arg26: memref<1x1x128xf32, #tpu.memory_space<vmem>>, %arg27: memref<1x1x128xf32, #tpu.memory_space<vmem>>, %arg28: memref<1x1x128xf32, #tpu.memory_space<vmem>>, %arg29: memref<1x128xf32, #tpu.memory_space<vmem>>, %arg30: memref<1x128xf32, #tpu.memory_space<vmem>>, %arg31: memref<128x128xbf16, #tpu.memory_space<vmem>>, %arg32: memref<1x128xf32, #tpu.memory_space<vmem>>, %arg33: memref<1x8x128xf32, #tpu.memory_space<vmem>>, %arg34: memref<1x8x128xf32, #tpu.memory_space<vmem>>, %arg35: memref<8x128xf32, #tpu.memory_space<vmem>>) attributes {dimension_semantics = [#tpu.dimension_semantics<parallel>, #tpu.dimension_semantics<arbitrary>], iteration_bounds = array<i64: 2, 2>, scalar_prefetch = 1 : i64, scratch_operands = 1 : i64, tpu.core_type = #tpu.core_type<tc>, window_params = [{transform_indices = @transform_0, window_bounds = array<i64: 1, 8, 128>}, {pipeline_mode = #tpu.pipeline_mode<synchronous>, transform_indices = @transform_1, window_bounds = array<i64: 16, 128>}, {pipeline_mode = #tpu.pipeline_mode<synchronous>, transform_indices = @transform_2, window_bounds = array<i64: 128, 128>}, {pipeline_mode = #tpu.pipeline_mode<synchronous>, transform_indices = @transform_3, window_bounds = array<i64: 1, 128>}, {pipeline_mode = #tpu.pipeline_mode<synchronous>, transform_indices = @transform_4, window_bounds = array<i64: 128, 256>}, {pipeline_mode = #tpu.pipeline_mode<synchronous>, transform_indices = @transform_5, window_bounds = array<i64: 1, 256>}, {pipeline_mode = #tpu.pipeline_mode<synchronous>, transform_indices = @transform_6, window_bounds = array<i64: 128, 128>}, {pipeline_mode = #tpu.pipeline_mode<synchronous>, transform_indices = @transform_7, window_bounds = array<i64: 1, 128>}, {pipeline_mode = #tpu.pipeline_mode<synchronous>, transform_indices = @transform_8, window_bounds = array<i64: 1, 128>}, {pipeline_mode = #tpu.pipeline_mode<synchronous>, transform_indices = @transform_9, window_bounds = array<i64: 1, 128>}, {pipeline_mode = #tpu.pipeline_mode<synchronous>, transform_indices = @transform_10, window_bounds = array<i64: 512, 128>}, {pipeline_mode = #tpu.pipeline_mode<synchronous>, transform_indices = @transform_11, window_bounds = array<i64: 1, 128>}, {pipeline_mode = #tpu.pipeline_mode<synchronous>, transform_indices = @transform_12, window_bounds = array<i64: 1, 128>}, {pipeline_mode = #tpu.pipeline_mode<synchronous>, transform_indices = @transform_13, window_bounds = array<i64: 1, 128>}, {transform_indices = @transform_14, window_bounds = array<i64: 1, 128, 384>}, {transform_indices = @transform_15, window_bounds = array<i64: 1, 1, 384>}, {transform_indices = @transform_16, window_bounds = array<i64: 1, 128, 128>}, {transform_indices = @transform_17, window_bounds = array<i64: 1, 1, 128>}, {transform_indices = @transform_18, window_bounds = array<i64: 1, 1, 128>}, {transform_indices = @transform_19, window_bounds = array<i64: 1, 1, 128>}, {transform_indices = @transform_20, window_bounds = array<i64: 1, 128, 256>}, {transform_indices = @transform_21, window_bounds = array<i64: 1, 1, 256>}, {transform_indices = @transform_22, window_bounds = array<i64: 1, 256, 128>}, {transform_indices = @transform_23, window_bounds = array<i64: 1, 1, 128>}, {transform_indices = @transform_24, window_bounds = array<i64: 1, 1, 128>}, {transform_indices = @transform_25, window_bounds = array<i64: 1, 1, 128>}, {pipeline_mode = #tpu.pipeline_mode<synchronous>, transform_indices = @transform_26, window_bounds = array<i64: 1, 128>}, {pipeline_mode = #tpu.pipeline_mode<synchronous>, transform_indices = @transform_27, window_bounds = array<i64: 1, 128>}, {pipeline_mode = #tpu.pipeline_mode<synchronous>, transform_indices = @transform_28, window_bounds = array<i64: 128, 128>}, {pipeline_mode = #tpu.pipeline_mode<synchronous>, transform_indices = @transform_29, window_bounds = array<i64: 1, 128>}, {transform_indices = @transform_30, window_bounds = array<i64: 1, 8, 128>}, {transform_indices = @transform_31, window_bounds = array<i64: 1, 8, 128>}]} {
    %0 = arith.index_cast %arg0 : i32 to index
    %1 = memref.load %arg2[%0] : memref<2xi32, #tpu.memory_space<smem>>
    %2 = tpu.iota {dimensions = array<i32: 1>} : vector<1x8xi32>
    %3 = vector.broadcast %1 : i32 to vector<1x8xi32>
    %4 = arith.cmpi slt, %2, %3 : vector<1x8xi32>
    %cst = arith.constant 0.000000e+00 : f32
    %cst_0 = arith.constant -1.000000e+09 : f32
    %5 = vector.broadcast %cst : f32 to vector<1x8xf32>
    %6 = vector.broadcast %cst_0 : f32 to vector<1x8xf32>
    %7 = arith.select %4, %5, %6 : vector<1x8xi1>, vector<1x8xf32>
    %c0_i32 = arith.constant 0 : i32
    %8 = arith.cmpi eq, %arg1, %c0_i32 : i32
    %9 = arith.extui %8 : i1 to i32
    %c0_i32_1 = arith.constant 0 : i32
    %10 = arith.cmpi ne, %9, %c0_i32_1 : i32
    scf.if %10 {
      %c0_84 = arith.constant 0 : index
      %c0_85 = arith.constant 0 : index
      %c0_86 = arith.constant 0 : index
      %221 = vector.load %arg3[%c0_84, %c0_85, %c0_86] : memref<1x8x128xf32, #tpu.memory_space<vmem>>, vector<1x8x128xf32>
      %222 = vector.shape_cast %221 : vector<1x8x128xf32> to vector<8x128xf32>
      %c0_87 = arith.constant 0 : index
      %c0_88 = arith.constant 0 : index
      %223 = vector.load %arg4[%c0_87, %c0_88] : memref<16x128xf32, #tpu.memory_space<vmem>>, vector<16x128xf32>
      %c0_89 = arith.constant 0 : index
      %c0_90 = arith.constant 0 : index
      %224 = vector.load %arg5[%c0_89, %c0_90] : memref<128x128xbf16, #tpu.memory_space<vmem>>, vector<128x128xbf16>
      %225 = arith.truncf %222 : vector<8x128xf32> to vector<8x128xbf16>
      %cst_91 = arith.constant dense<0.000000e+00> : vector<8x128xf32>
      %226 = tpu.matmul %225, %224, %cst_91 {dimension_numbers = #tpu.dot_dimension_numbers<[1], [0], [0], [1], [0, 0, 1, 1], [], []>} : vector<8x128xbf16>, vector<128x128xbf16>, vector<8x128xf32> -> vector<8x128xf32>
      %c0_92 = arith.constant 0 : index
      %c0_93 = arith.constant 0 : index
      %227 = vector.load %arg6[%c0_92, %c0_93] : memref<1x128xf32, #tpu.memory_space<vmem>>, vector<1x128xf32>
      %228 = vector.broadcast %227 : vector<1x128xf32> to vector<8x128xf32>
      %229 = arith.addf %226, %228 : vector<8x128xf32>
      %c0_94 = arith.constant 0 : index
      %c0_95 = arith.constant 0 : index
      %230 = vector.load %arg7[%c0_94, %c0_95] : memref<128x256xbf16, #tpu.memory_space<vmem>>, vector<128x256xbf16>
      %231 = arith.truncf %223 : vector<16x128xf32> to vector<16x128xbf16>
      %cst_96 = arith.constant dense<0.000000e+00> : vector<16x256xf32>
      %232 = tpu.matmul %231, %230, %cst_96 {dimension_numbers = #tpu.dot_dimension_numbers<[1], [0], [0], [1], [0, 0, 1, 1], [], []>} : vector<16x128xbf16>, vector<128x256xbf16>, vector<16x256xf32> -> vector<16x256xf32>
      %c0_97 = arith.constant 0 : index
      %c0_98 = arith.constant 0 : index
      %233 = vector.load %arg8[%c0_97, %c0_98] : memref<1x256xf32, #tpu.memory_space<vmem>>, vector<1x256xf32>
      %234 = vector.broadcast %233 : vector<1x256xf32> to vector<16x256xf32>
      %235 = arith.addf %232, %234 : vector<16x256xf32>
      %236 = arith.truncf %229 : vector<8x128xf32> to vector<8x128xbf16>
      %237 = vector.extract_strided_slice %235 {offsets = [0, 0], sizes = [16, 128], strides = [1, 1]} : vector<16x256xf32> to vector<16x128xf32>
      %238 = arith.truncf %237 : vector<16x128xf32> to vector<16x128xbf16>
      %cst_99 = arith.constant dense<0.000000e+00> : vector<8x16xf32>
      %239 = tpu.matmul %236, %238, %cst_99 {dimension_numbers = #tpu.dot_dimension_numbers<[1], [1], [0], [0], [0, 0, 1, 0], [], []>} : vector<8x128xbf16>, vector<16x128xbf16>, vector<8x16xf32> -> vector<8x16xf32>
      %cst_100 = arith.constant 0.0883883461 : f32
      %240 = vector.broadcast %cst_100 : f32 to vector<8x16xf32>
      %241 = arith.mulf %239, %240 : vector<8x16xf32>
      %cst_101 = arith.constant dense<0xFF800000> : vector<8xf32>
      %242 = vector.multi_reduction <maximumf>, %241, %cst_101 [1] : vector<8x16xf32> to vector<8xf32>
      %243 = vector.shape_cast %242 : vector<8xf32> to vector<8x1xf32>
      %244 = vector.broadcast %243 : vector<8x1xf32> to vector<8x16xf32>
      %245 = arith.subf %241, %244 : vector<8x16xf32>
      %246 = math.exp %245 : vector<8x16xf32>
      %cst_102 = arith.constant dense<0.000000e+00> : vector<8xf32>
      %247 = vector.multi_reduction <add>, %246, %cst_102 [1] : vector<8x16xf32> to vector<8xf32>
      %248 = vector.shape_cast %247 : vector<8xf32> to vector<8x1xf32>
      %249 = vector.broadcast %248 : vector<8x1xf32> to vector<8x16xf32>
      %250 = arith.divf %246, %249 : vector<8x16xf32>
      %251 = arith.truncf %250 : vector<8x16xf32> to vector<8x16xbf16>
      %252 = vector.extract_strided_slice %235 {offsets = [0, 128], sizes = [16, 128], strides = [1, 1]} : vector<16x256xf32> to vector<16x128xf32>
      %253 = arith.truncf %252 : vector<16x128xf32> to vector<16x128xbf16>
      %cst_103 = arith.constant dense<0.000000e+00> : vector<8x128xf32>
      %254 = tpu.matmul %251, %253, %cst_103 {dimension_numbers = #tpu.dot_dimension_numbers<[1], [0], [0], [1], [0, 0, 1, 1], [], []>} : vector<8x16xbf16>, vector<16x128xbf16>, vector<8x128xf32> -> vector<8x128xf32>
      %c0_104 = arith.constant 0 : index
      %c0_105 = arith.constant 0 : index
      %255 = vector.load %arg9[%c0_104, %c0_105] : memref<128x128xbf16, #tpu.memory_space<vmem>>, vector<128x128xbf16>
      %256 = arith.truncf %254 : vector<8x128xf32> to vector<8x128xbf16>
      %cst_106 = arith.constant dense<0.000000e+00> : vector<8x128xf32>
      %257 = tpu.matmul %256, %255, %cst_106 {dimension_numbers = #tpu.dot_dimension_numbers<[1], [0], [0], [1], [0, 0, 1, 1], [], []>} : vector<8x128xbf16>, vector<128x128xbf16>, vector<8x128xf32> -> vector<8x128xf32>
      %c0_107 = arith.constant 0 : index
      %c0_108 = arith.constant 0 : index
      %258 = vector.load %arg10[%c0_107, %c0_108] : memref<1x128xf32, #tpu.memory_space<vmem>>, vector<1x128xf32>
      %259 = vector.broadcast %258 : vector<1x128xf32> to vector<8x128xf32>
      %260 = arith.addf %257, %259 : vector<8x128xf32>
      %c0_109 = arith.constant 0 : index
      %c0_110 = arith.constant 0 : index
      %261 = vector.load %arg11[%c0_109, %c0_110] : memref<1x128xf32, #tpu.memory_space<vmem>>, vector<1x128xf32>
      %c0_111 = arith.constant 0 : index
      %c0_112 = arith.constant 0 : index
      %262 = vector.load %arg12[%c0_111, %c0_112] : memref<1x128xf32, #tpu.memory_space<vmem>>, vector<1x128xf32>
      %cst_113 = arith.constant dense<0.000000e+00> : vector<8xf32>
      %263 = vector.multi_reduction <add>, %260, %cst_113 [1] : vector<8x128xf32> to vector<8xf32>
      %264 = vector.shape_cast %263 : vector<8xf32> to vector<8x1xf32>
      %cst_114 = arith.constant 1.280000e+02 : f32
      %265 = vector.broadcast %cst_114 : f32 to vector<8x1xf32>
      %266 = arith.divf %264, %265 : vector<8x1xf32>
      %267 = vector.broadcast %266 : vector<8x1xf32> to vector<8x128xf32>
      %268 = arith.subf %260, %267 : vector<8x128xf32>
      %269 = arith.mulf %268, %268 : vector<8x128xf32>
      %cst_115 = arith.constant dense<0.000000e+00> : vector<8xf32>
      %270 = vector.multi_reduction <add>, %269, %cst_115 [1] : vector<8x128xf32> to vector<8xf32>
      %271 = vector.shape_cast %270 : vector<8xf32> to vector<8x1xf32>
      %cst_116 = arith.constant 1.280000e+02 : f32
      %272 = vector.broadcast %cst_116 : f32 to vector<8x1xf32>
      %273 = arith.divf %271, %272 : vector<8x1xf32>
      %274 = vector.broadcast %266 : vector<8x1xf32> to vector<8x128xf32>
      %275 = arith.subf %260, %274 : vector<8x128xf32>
      %cst_117 = arith.constant 9.99999974E-6 : f32
      %276 = vector.broadcast %cst_117 : f32 to vector<8x1xf32>
      %277 = arith.addf %273, %276 : vector<8x1xf32>
      %278 = math.rsqrt %277 : vector<8x1xf32>
      %279 = vector.broadcast %278 : vector<8x1xf32> to vector<8x128xf32>
      %280 = arith.mulf %275, %279 : vector<8x128xf32>
      %281 = vector.broadcast %261 : vector<1x128xf32> to vector<8x128xf32>
      %282 = arith.mulf %280, %281 : vector<8x128xf32>
      %283 = vector.broadcast %262 : vector<1x128xf32> to vector<8x128xf32>
      %284 = arith.addf %282, %283 : vector<8x128xf32>
      %285 = tpu.iota {dimensions = array<i32: 0>} : vector<8x1xi32>
      %286 = vector.broadcast %1 : i32 to vector<8x1xi32>
      %287 = arith.cmpi slt, %285, %286 : vector<8x1xi32>
      %288 = arith.extui %287 : vector<8x1xi1> to vector<8x1xi32>
      %289 = arith.sitofp %288 : vector<8x1xi32> to vector<8x1xf32>
      %290 = vector.broadcast %289 : vector<8x1xf32> to vector<8x128xf32>
      %291 = arith.mulf %284, %290 : vector<8x128xf32>
      %292 = tpu.iota {dimensions = array<i32: 0>} : vector<8x1xi32>
      %c2_i32 = arith.constant 2 : i32
      %293 = vector.broadcast %c2_i32 : i32 to vector<8x1xi32>
      %294 = arith.cmpi sge, %292, %293 : vector<8x1xi32>
      %c10_i32 = arith.constant 10 : i32
      %295 = vector.broadcast %c10_i32 : i32 to vector<8x1xi32>
      %296 = arith.cmpi slt, %292, %295 : vector<8x1xi32>
      %297 = arith.andi %294, %296 : vector<8x1xi1>
      %298 = arith.extui %297 : vector<8x1xi1> to vector<8x1xi32>
      %299 = arith.sitofp %298 : vector<8x1xi32> to vector<8x1xf32>
      %c2_i32_118 = arith.constant 2 : i32
      %300 = tpu.dynamic_rotate %291 by %c2_i32_118 dim 0 : vector<8x128xf32>, i32 -> vector<8x128xf32>
      %301 = vector.broadcast %299 : vector<8x1xf32> to vector<8x128xf32>
      %302 = arith.mulf %300, %301 : vector<8x128xf32>
      %c1_i32_119 = arith.constant 1 : i32
      %303 = vector.broadcast %c1_i32_119 : i32 to vector<8x1xi32>
      %304 = arith.cmpi sge, %292, %303 : vector<8x1xi32>
      %c9_i32 = arith.constant 9 : i32
      %305 = vector.broadcast %c9_i32 : i32 to vector<8x1xi32>
      %306 = arith.cmpi slt, %292, %305 : vector<8x1xi32>
      %307 = arith.andi %304, %306 : vector<8x1xi1>
      %308 = arith.extui %307 : vector<8x1xi1> to vector<8x1xi32>
      %309 = arith.sitofp %308 : vector<8x1xi32> to vector<8x1xf32>
      %c1_i32_120 = arith.constant 1 : i32
      %310 = tpu.dynamic_rotate %291 by %c1_i32_120 dim 0 : vector<8x128xf32>, i32 -> vector<8x128xf32>
      %311 = vector.broadcast %309 : vector<8x1xf32> to vector<8x128xf32>
      %312 = arith.mulf %310, %311 : vector<8x128xf32>
      %c0_i32_121 = arith.constant 0 : i32
      %313 = vector.broadcast %c0_i32_121 : i32 to vector<8x1xi32>
      %314 = arith.cmpi sge, %292, %313 : vector<8x1xi32>
      %c8_i32 = arith.constant 8 : i32
      %315 = vector.broadcast %c8_i32 : i32 to vector<8x1xi32>
      %316 = arith.cmpi slt, %292, %315 : vector<8x1xi32>
      %317 = arith.andi %314, %316 : vector<8x1xi1>
      %318 = arith.extui %317 : vector<8x1xi1> to vector<8x1xi32>
      %319 = arith.sitofp %318 : vector<8x1xi32> to vector<8x1xf32>
      %c0_i32_122 = arith.constant 0 : i32
      %320 = tpu.dynamic_rotate %291 by %c0_i32_122 dim 0 : vector<8x128xf32>, i32 -> vector<8x128xf32>
      %321 = vector.broadcast %319 : vector<8x1xf32> to vector<8x128xf32>
      %322 = arith.mulf %320, %321 : vector<8x128xf32>
      %c-1_i32 = arith.constant -1 : i32
      %323 = vector.broadcast %c-1_i32 : i32 to vector<8x1xi32>
      %324 = arith.cmpi sge, %292, %323 : vector<8x1xi32>
      %c7_i32 = arith.constant 7 : i32
      %325 = vector.broadcast %c7_i32 : i32 to vector<8x1xi32>
      %326 = arith.cmpi slt, %292, %325 : vector<8x1xi32>
      %327 = arith.andi %324, %326 : vector<8x1xi1>
      %328 = arith.extui %327 : vector<8x1xi1> to vector<8x1xi32>
      %329 = arith.sitofp %328 : vector<8x1xi32> to vector<8x1xf32>
      %c7_i32_123 = arith.constant 7 : i32
      %330 = tpu.dynamic_rotate %291 by %c7_i32_123 dim 0 : vector<8x128xf32>, i32 -> vector<8x128xf32>
      %331 = vector.broadcast %329 : vector<8x1xf32> to vector<8x128xf32>
      %332 = arith.mulf %330, %331 : vector<8x128xf32>
      %333 = tpu.concatenate %302, %312, %322, %332 in 1 : vector<8x128xf32>, vector<8x128xf32>, vector<8x128xf32>, vector<8x128xf32> -> vector<8x512xf32>
      %c0_124 = arith.constant 0 : index
      %c0_125 = arith.constant 0 : index
      %334 = vector.load %arg13[%c0_124, %c0_125] : memref<512x128xbf16, #tpu.memory_space<vmem>>, vector<512x128xbf16>
      %335 = arith.truncf %333 : vector<8x512xf32> to vector<8x512xbf16>
      %cst_126 = arith.constant dense<0.000000e+00> : vector<8x128xf32>
      %336 = tpu.matmul %335, %334, %cst_126 {dimension_numbers = #tpu.dot_dimension_numbers<[1], [0], [0], [1], [0, 0, 1, 1], [], []>} : vector<8x512xbf16>, vector<512x128xbf16>, vector<8x128xf32> -> vector<8x128xf32>
      %c0_127 = arith.constant 0 : index
      %c0_128 = arith.constant 0 : index
      %337 = vector.load %arg14[%c0_127, %c0_128] : memref<1x128xf32, #tpu.memory_space<vmem>>, vector<1x128xf32>
      %338 = vector.broadcast %337 : vector<1x128xf32> to vector<8x128xf32>
      %339 = arith.addf %336, %338 : vector<8x128xf32>
      %340 = arith.mulf %339, %339 : vector<8x128xf32>
      %341 = arith.mulf %339, %340 : vector<8x128xf32>
      %cst_129 = arith.constant 4.471500e-02 : f32
      %342 = vector.broadcast %cst_129 : f32 to vector<8x128xf32>
      %343 = arith.mulf %342, %341 : vector<8x128xf32>
      %344 = arith.addf %339, %343 : vector<8x128xf32>
      %cst_130 = arith.constant 0.797884583 : f32
      %345 = vector.broadcast %cst_130 : f32 to vector<8x128xf32>
      %346 = arith.mulf %345, %344 : vector<8x128xf32>
      %347 = math.tanh %346 : vector<8x128xf32>
      %cst_131 = arith.constant 1.000000e+00 : f32
      %348 = vector.broadcast %cst_131 : f32 to vector<8x128xf32>
      %349 = arith.addf %348, %347 : vector<8x128xf32>
      %cst_132 = arith.constant 5.000000e-01 : f32
      %350 = vector.broadcast %cst_132 : f32 to vector<8x128xf32>
      %351 = arith.mulf %350, %349 : vector<8x128xf32>
      %352 = arith.mulf %339, %351 : vector<8x128xf32>
      %353 = arith.addf %291, %352 : vector<8x128xf32>
      %c0_133 = arith.constant 0 : index
      %c0_134 = arith.constant 0 : index
      %354 = vector.load %arg15[%c0_133, %c0_134] : memref<1x128xf32, #tpu.memory_space<vmem>>, vector<1x128xf32>
      %c0_135 = arith.constant 0 : index
      %c0_136 = arith.constant 0 : index
      %355 = vector.load %arg16[%c0_135, %c0_136] : memref<1x128xf32, #tpu.memory_space<vmem>>, vector<1x128xf32>
      %cst_137 = arith.constant dense<0.000000e+00> : vector<8xf32>
      %356 = vector.multi_reduction <add>, %353, %cst_137 [1] : vector<8x128xf32> to vector<8xf32>
      %357 = vector.shape_cast %356 : vector<8xf32> to vector<8x1xf32>
      %cst_138 = arith.constant 1.280000e+02 : f32
      %358 = vector.broadcast %cst_138 : f32 to vector<8x1xf32>
      %359 = arith.divf %357, %358 : vector<8x1xf32>
      %360 = vector.broadcast %359 : vector<8x1xf32> to vector<8x128xf32>
      %361 = arith.subf %353, %360 : vector<8x128xf32>
      %362 = arith.mulf %361, %361 : vector<8x128xf32>
      %cst_139 = arith.constant dense<0.000000e+00> : vector<8xf32>
      %363 = vector.multi_reduction <add>, %362, %cst_139 [1] : vector<8x128xf32> to vector<8xf32>
      %364 = vector.shape_cast %363 : vector<8xf32> to vector<8x1xf32>
      %cst_140 = arith.constant 1.280000e+02 : f32
      %365 = vector.broadcast %cst_140 : f32 to vector<8x1xf32>
      %366 = arith.divf %364, %365 : vector<8x1xf32>
      %367 = vector.broadcast %359 : vector<8x1xf32> to vector<8x128xf32>
      %368 = arith.subf %353, %367 : vector<8x128xf32>
      %cst_141 = arith.constant 9.99999974E-6 : f32
      %369 = vector.broadcast %cst_141 : f32 to vector<8x1xf32>
      %370 = arith.addf %366, %369 : vector<8x1xf32>
      %371 = math.rsqrt %370 : vector<8x1xf32>
      %372 = vector.broadcast %371 : vector<8x1xf32> to vector<8x128xf32>
      %373 = arith.mulf %368, %372 : vector<8x128xf32>
      %374 = vector.broadcast %354 : vector<1x128xf32> to vector<8x128xf32>
      %375 = arith.mulf %373, %374 : vector<8x128xf32>
      %376 = vector.broadcast %355 : vector<1x128xf32> to vector<8x128xf32>
      %377 = arith.addf %375, %376 : vector<8x128xf32>
      %c0_142 = arith.constant 0 : index
      %c0_143 = arith.constant 0 : index
      %378 = vector.load %arg35[%c0_142, %c0_143] : memref<8x128xf32, #tpu.memory_space<vmem>>, vector<8x128xf32>
      tpu.vector_store %arg35[%c0_142, %c0_143], %377 {strides = array<i32>} : memref<8x128xf32, #tpu.memory_space<vmem>>, vector<8x128xf32>,
    } else {
    }
    %c0 = arith.constant 0 : index
    %c0_2 = arith.constant 0 : index
    %11 = vector.load %arg35[%c0, %c0_2] : memref<8x128xf32, #tpu.memory_space<vmem>>, vector<8x128xf32>
    %c0_3 = arith.constant 0 : index
    %c0_4 = arith.constant 0 : index
    %c0_5 = arith.constant 0 : index
    %12 = vector.load %arg17[%c0_3, %c0_4, %c0_5] : memref<1x128x384xbf16, #tpu.memory_space<vmem>>, vector<1x128x384xbf16>
    %13 = vector.shape_cast %12 : vector<1x128x384xbf16> to vector<128x384xbf16>
    %14 = arith.truncf %11 : vector<8x128xf32> to vector<8x128xbf16>
    %cst_6 = arith.constant dense<0.000000e+00> : vector<8x384xf32>
    %15 = tpu.matmul %14, %13, %cst_6 {dimension_numbers = #tpu.dot_dimension_numbers<[1], [0], [0], [1], [0, 0, 1, 1], [], []>} : vector<8x128xbf16>, vector<128x384xbf16>, vector<8x384xf32> -> vector<8x384xf32>
    %c0_7 = arith.constant 0 : index
    %c0_8 = arith.constant 0 : index
    %c0_9 = arith.constant 0 : index
    %16 = vector.load %arg18[%c0_7, %c0_8, %c0_9] : memref<1x1x384xf32, #tpu.memory_space<vmem>>, vector<1x1x384xf32>
    %17 = vector.shape_cast %16 : vector<1x1x384xf32> to vector<1x384xf32>
    %18 = vector.broadcast %17 : vector<1x384xf32> to vector<8x384xf32>
    %19 = arith.addf %15, %18 : vector<8x384xf32>
    %20 = vector.extract_strided_slice %19 {offsets = [0, 0], sizes = [8, 128], strides = [1, 1]} : vector<8x384xf32> to vector<8x128xf32>
    %21 = vector.extract_strided_slice %19 {offsets = [0, 128], sizes = [8, 128], strides = [1, 1]} : vector<8x384xf32> to vector<8x128xf32>
    %22 = vector.extract_strided_slice %19 {offsets = [0, 256], sizes = [8, 128], strides = [1, 1]} : vector<8x384xf32> to vector<8x128xf32>
    %c0_10 = arith.constant 0 : index
    %c0_11 = arith.constant 0 : index
    %c0_12 = arith.constant 0 : index
    %23 = vector.load %arg19[%c0_10, %c0_11, %c0_12] : memref<1x128x128xbf16, #tpu.memory_space<vmem>>, vector<1x128x128xbf16>
    %24 = vector.shape_cast %23 : vector<1x128x128xbf16> to vector<128x128xbf16>
    %cst_13 = arith.constant 0.000000e+00 : f32
    %25 = vector.broadcast %cst_13 : f32 to vector<8x128xf32>
    %26 = vector.extract_strided_slice %20 {offsets = [0, 0], sizes = [8, 32], strides = [1, 1]} : vector<8x128xf32> to vector<8x32xf32>
    %27 = arith.truncf %26 : vector<8x32xf32> to vector<8x32xbf16>
    %28 = vector.extract_strided_slice %21 {offsets = [0, 0], sizes = [8, 32], strides = [1, 1]} : vector<8x128xf32> to vector<8x32xf32>
    %29 = arith.truncf %28 : vector<8x32xf32> to vector<8x32xbf16>
    %cst_14 = arith.constant dense<0.000000e+00> : vector<8x8xf32>
    %30 = tpu.matmul %27, %29, %cst_14 {dimension_numbers = #tpu.dot_dimension_numbers<[1], [1], [0], [0], [0, 0, 1, 0], [], []>} : vector<8x32xbf16>, vector<8x32xbf16>, vector<8x8xf32> -> vector<8x8xf32>
    %cst_15 = arith.constant 0.176776692 : f32
    %31 = vector.broadcast %cst_15 : f32 to vector<8x8xf32>
    %32 = arith.mulf %30, %31 : vector<8x8xf32>
    %33 = vector.broadcast %7 : vector<1x8xf32> to vector<8x8xf32>
    %34 = arith.addf %32, %33 : vector<8x8xf32>
    %cst_16 = arith.constant dense<0xFF800000> : vector<8xf32>
    %35 = vector.multi_reduction <maximumf>, %34, %cst_16 [1] : vector<8x8xf32> to vector<8xf32>
    %36 = vector.shape_cast %35 : vector<8xf32> to vector<8x1xf32>
    %37 = vector.broadcast %36 : vector<8x1xf32> to vector<8x8xf32>
    %38 = arith.subf %34, %37 : vector<8x8xf32>
    %39 = math.exp %38 : vector<8x8xf32>
    %cst_17 = arith.constant dense<0.000000e+00> : vector<8xf32>
    %40 = vector.multi_reduction <add>, %39, %cst_17 [1] : vector<8x8xf32> to vector<8xf32>
    %41 = vector.shape_cast %40 : vector<8xf32> to vector<8x1xf32>
    %42 = vector.broadcast %41 : vector<8x1xf32> to vector<8x8xf32>
    %43 = arith.divf %39, %42 : vector<8x8xf32>
    %44 = arith.truncf %43 : vector<8x8xf32> to vector<8x8xbf16>
    %45 = vector.extract_strided_slice %22 {offsets = [0, 0], sizes = [8, 32], strides = [1, 1]} : vector<8x128xf32> to vector<8x32xf32>
    %46 = arith.truncf %45 : vector<8x32xf32> to vector<8x32xbf16>
    %cst_18 = arith.constant dense<0.000000e+00> : vector<8x32xf32>
    %47 = tpu.matmul %44, %46, %cst_18 {dimension_numbers = #tpu.dot_dimension_numbers<[1], [0], [0], [1], [0, 0, 1, 1], [], []>} : vector<8x8xbf16>, vector<8x32xbf16>, vector<8x32xf32> -> vector<8x32xf32>
    %48 = arith.truncf %47 : vector<8x32xf32> to vector<8x32xbf16>
    %49 = vector.extract_strided_slice %24 {offsets = [0, 0], sizes = [32, 128], strides = [1, 1]} : vector<128x128xbf16> to vector<32x128xbf16>
    %cst_19 = arith.constant dense<0.000000e+00> : vector<8x128xf32>
    %50 = tpu.matmul %48, %49, %cst_19 {dimension_numbers = #tpu.dot_dimension_numbers<[1], [0], [0], [1], [0, 0, 1, 1], [], []>} : vector<8x32xbf16>, vector<32x128xbf16>, vector<8x128xf32> -> vector<8x128xf32>
    %51 = arith.addf %25, %50 : vector<8x128xf32>
    %52 = vector.extract_strided_slice %20 {offsets = [0, 32], sizes = [8, 32], strides = [1, 1]} : vector<8x128xf32> to vector<8x32xf32>
    %53 = arith.truncf %52 : vector<8x32xf32> to vector<8x32xbf16>
    %54 = vector.extract_strided_slice %21 {offsets = [0, 32], sizes = [8, 32], strides = [1, 1]} : vector<8x128xf32> to vector<8x32xf32>
    %55 = arith.truncf %54 : vector<8x32xf32> to vector<8x32xbf16>
    %cst_20 = arith.constant dense<0.000000e+00> : vector<8x8xf32>
    %56 = tpu.matmul %53, %55, %cst_20 {dimension_numbers = #tpu.dot_dimension_numbers<[1], [1], [0], [0], [0, 0, 1, 0], [], []>} : vector<8x32xbf16>, vector<8x32xbf16>, vector<8x8xf32> -> vector<8x8xf32>
    %cst_21 = arith.constant 0.176776692 : f32
    %57 = vector.broadcast %cst_21 : f32 to vector<8x8xf32>
    %58 = arith.mulf %56, %57 : vector<8x8xf32>
    %59 = vector.broadcast %7 : vector<1x8xf32> to vector<8x8xf32>
    %60 = arith.addf %58, %59 : vector<8x8xf32>
    %cst_22 = arith.constant dense<0xFF800000> : vector<8xf32>
    %61 = vector.multi_reduction <maximumf>, %60, %cst_22 [1] : vector<8x8xf32> to vector<8xf32>
    %62 = vector.shape_cast %61 : vector<8xf32> to vector<8x1xf32>
    %63 = vector.broadcast %62 : vector<8x1xf32> to vector<8x8xf32>
    %64 = arith.subf %60, %63 : vector<8x8xf32>
    %65 = math.exp %64 : vector<8x8xf32>
    %cst_23 = arith.constant dense<0.000000e+00> : vector<8xf32>
    %66 = vector.multi_reduction <add>, %65, %cst_23 [1] : vector<8x8xf32> to vector<8xf32>
    %67 = vector.shape_cast %66 : vector<8xf32> to vector<8x1xf32>
    %68 = vector.broadcast %67 : vector<8x1xf32> to vector<8x8xf32>
    %69 = arith.divf %65, %68 : vector<8x8xf32>
    %70 = arith.truncf %69 : vector<8x8xf32> to vector<8x8xbf16>
    %71 = vector.extract_strided_slice %22 {offsets = [0, 32], sizes = [8, 32], strides = [1, 1]} : vector<8x128xf32> to vector<8x32xf32>
    %72 = arith.truncf %71 : vector<8x32xf32> to vector<8x32xbf16>
    %cst_24 = arith.constant dense<0.000000e+00> : vector<8x32xf32>
    %73 = tpu.matmul %70, %72, %cst_24 {dimension_numbers = #tpu.dot_dimension_numbers<[1], [0], [0], [1], [0, 0, 1, 1], [], []>} : vector<8x8xbf16>, vector<8x32xbf16>, vector<8x32xf32> -> vector<8x32xf32>
    %74 = arith.truncf %73 : vector<8x32xf32> to vector<8x32xbf16>
    %75 = vector.extract_strided_slice %24 {offsets = [32, 0], sizes = [32, 128], strides = [1, 1]} : vector<128x128xbf16> to vector<32x128xbf16>
    %cst_25 = arith.constant dense<0.000000e+00> : vector<8x128xf32>
    %76 = tpu.matmul %74, %75, %cst_25 {dimension_numbers = #tpu.dot_dimension_numbers<[1], [0], [0], [1], [0, 0, 1, 1], [], []>} : vector<8x32xbf16>, vector<32x128xbf16>, vector<8x128xf32> -> vector<8x128xf32>
    %77 = arith.addf %51, %76 : vector<8x128xf32>
    %78 = vector.extract_strided_slice %20 {offsets = [0, 64], sizes = [8, 32], strides = [1, 1]} : vector<8x128xf32> to vector<8x32xf32>
    %79 = arith.truncf %78 : vector<8x32xf32> to vector<8x32xbf16>
    %80 = vector.extract_strided_slice %21 {offsets = [0, 64], sizes = [8, 32], strides = [1, 1]} : vector<8x128xf32> to vector<8x32xf32>
    %81 = arith.truncf %80 : vector<8x32xf32> to vector<8x32xbf16>
    %cst_26 = arith.constant dense<0.000000e+00> : vector<8x8xf32>
    %82 = tpu.matmul %79, %81, %cst_26 {dimension_numbers = #tpu.dot_dimension_numbers<[1], [1], [0], [0], [0, 0, 1, 0], [], []>} : vector<8x32xbf16>, vector<8x32xbf16>, vector<8x8xf32> -> vector<8x8xf32>
    %cst_27 = arith.constant 0.176776692 : f32
    %83 = vector.broadcast %cst_27 : f32 to vector<8x8xf32>
    %84 = arith.mulf %82, %83 : vector<8x8xf32>
    %85 = vector.broadcast %7 : vector<1x8xf32> to vector<8x8xf32>
    %86 = arith.addf %84, %85 : vector<8x8xf32>
    %cst_28 = arith.constant dense<0xFF800000> : vector<8xf32>
    %87 = vector.multi_reduction <maximumf>, %86, %cst_28 [1] : vector<8x8xf32> to vector<8xf32>
    %88 = vector.shape_cast %87 : vector<8xf32> to vector<8x1xf32>
    %89 = vector.broadcast %88 : vector<8x1xf32> to vector<8x8xf32>
    %90 = arith.subf %86, %89 : vector<8x8xf32>
    %91 = math.exp %90 : vector<8x8xf32>
    %cst_29 = arith.constant dense<0.000000e+00> : vector<8xf32>
    %92 = vector.multi_reduction <add>, %91, %cst_29 [1] : vector<8x8xf32> to vector<8xf32>
    %93 = vector.shape_cast %92 : vector<8xf32> to vector<8x1xf32>
    %94 = vector.broadcast %93 : vector<8x1xf32> to vector<8x8xf32>
    %95 = arith.divf %91, %94 : vector<8x8xf32>
    %96 = arith.truncf %95 : vector<8x8xf32> to vector<8x8xbf16>
    %97 = vector.extract_strided_slice %22 {offsets = [0, 64], sizes = [8, 32], strides = [1, 1]} : vector<8x128xf32> to vector<8x32xf32>
    %98 = arith.truncf %97 : vector<8x32xf32> to vector<8x32xbf16>
    %cst_30 = arith.constant dense<0.000000e+00> : vector<8x32xf32>
    %99 = tpu.matmul %96, %98, %cst_30 {dimension_numbers = #tpu.dot_dimension_numbers<[1], [0], [0], [1], [0, 0, 1, 1], [], []>} : vector<8x8xbf16>, vector<8x32xbf16>, vector<8x32xf32> -> vector<8x32xf32>
    %100 = arith.truncf %99 : vector<8x32xf32> to vector<8x32xbf16>
    %101 = vector.extract_strided_slice %24 {offsets = [64, 0], sizes = [32, 128], strides = [1, 1]} : vector<128x128xbf16> to vector<32x128xbf16>
    %cst_31 = arith.constant dense<0.000000e+00> : vector<8x128xf32>
    %102 = tpu.matmul %100, %101, %cst_31 {dimension_numbers = #tpu.dot_dimension_numbers<[1], [0], [0], [1], [0, 0, 1, 1], [], []>} : vector<8x32xbf16>, vector<32x128xbf16>, vector<8x128xf32> -> vector<8x128xf32>
    %103 = arith.addf %77, %102 : vector<8x128xf32>
    %104 = vector.extract_strided_slice %20 {offsets = [0, 96], sizes = [8, 32], strides = [1, 1]} : vector<8x128xf32> to vector<8x32xf32>
    %105 = arith.truncf %104 : vector<8x32xf32> to vector<8x32xbf16>
    %106 = vector.extract_strided_slice %21 {offsets = [0, 96], sizes = [8, 32], strides = [1, 1]} : vector<8x128xf32> to vector<8x32xf32>
    %107 = arith.truncf %106 : vector<8x32xf32> to vector<8x32xbf16>
    %cst_32 = arith.constant dense<0.000000e+00> : vector<8x8xf32>
    %108 = tpu.matmul %105, %107, %cst_32 {dimension_numbers = #tpu.dot_dimension_numbers<[1], [1], [0], [0], [0, 0, 1, 0], [], []>} : vector<8x32xbf16>, vector<8x32xbf16>, vector<8x8xf32> -> vector<8x8xf32>
    %cst_33 = arith.constant 0.176776692 : f32
    %109 = vector.broadcast %cst_33 : f32 to vector<8x8xf32>
    %110 = arith.mulf %108, %109 : vector<8x8xf32>
    %111 = vector.broadcast %7 : vector<1x8xf32> to vector<8x8xf32>
    %112 = arith.addf %110, %111 : vector<8x8xf32>
    %cst_34 = arith.constant dense<0xFF800000> : vector<8xf32>
    %113 = vector.multi_reduction <maximumf>, %112, %cst_34 [1] : vector<8x8xf32> to vector<8xf32>
    %114 = vector.shape_cast %113 : vector<8xf32> to vector<8x1xf32>
    %115 = vector.broadcast %114 : vector<8x1xf32> to vector<8x8xf32>
    %116 = arith.subf %112, %115 : vector<8x8xf32>
    %117 = math.exp %116 : vector<8x8xf32>
    %cst_35 = arith.constant dense<0.000000e+00> : vector<8xf32>
    %118 = vector.multi_reduction <add>, %117, %cst_35 [1] : vector<8x8xf32> to vector<8xf32>
    %119 = vector.shape_cast %118 : vector<8xf32> to vector<8x1xf32>
    %120 = vector.broadcast %119 : vector<8x1xf32> to vector<8x8xf32>
    %121 = arith.divf %117, %120 : vector<8x8xf32>
    %122 = arith.truncf %121 : vector<8x8xf32> to vector<8x8xbf16>
    %123 = vector.extract_strided_slice %22 {offsets = [0, 96], sizes = [8, 32], strides = [1, 1]} : vector<8x128xf32> to vector<8x32xf32>
    %124 = arith.truncf %123 : vector<8x32xf32> to vector<8x32xbf16>
    %cst_36 = arith.constant dense<0.000000e+00> : vector<8x32xf32>
    %125 = tpu.matmul %122, %124, %cst_36 {dimension_numbers = #tpu.dot_dimension_numbers<[1], [0], [0], [1], [0, 0, 1, 1], [], []>} : vector<8x8xbf16>, vector<8x32xbf16>, vector<8x32xf32> -> vector<8x32xf32>
    %126 = arith.truncf %125 : vector<8x32xf32> to vector<8x32xbf16>
    %127 = vector.extract_strided_slice %24 {offsets = [96, 0], sizes = [32, 128], strides = [1, 1]} : vector<128x128xbf16> to vector<32x128xbf16>
    %cst_37 = arith.constant dense<0.000000e+00> : vector<8x128xf32>
    %128 = tpu.matmul %126, %127, %cst_37 {dimension_numbers = #tpu.dot_dimension_numbers<[1], [0], [0], [1], [0, 0, 1, 1], [], []>} : vector<8x32xbf16>, vector<32x128xbf16>, vector<8x128xf32> -> vector<8x128xf32>
    %129 = arith.addf %103, %128 : vector<8x128xf32>
    %130 = arith.addf %11, %129 : vector<8x128xf32>
    %c0_38 = arith.constant 0 : index
    %c0_39 = arith.constant 0 : index
    %c0_40 = arith.constant 0 : index
    %131 = vector.load %arg20[%c0_38, %c0_39, %c0_40] : memref<1x1x128xf32, #tpu.memory_space<vmem>>, vector<1x1x128xf32>
    %132 = vector.shape_cast %131 : vector<1x1x128xf32> to vector<1x128xf32>
    %133 = vector.broadcast %132 : vector<1x128xf32> to vector<8x128xf32>
    %134 = arith.addf %130, %133 : vector<8x128xf32>
    %c0_41 = arith.constant 0 : index
    %c0_42 = arith.constant 0 : index
    %c0_43 = arith.constant 0 : index
    %135 = vector.load %arg21[%c0_41, %c0_42, %c0_43] : memref<1x1x128xf32, #tpu.memory_space<vmem>>, vector<1x1x128xf32>
    %136 = vector.shape_cast %135 : vector<1x1x128xf32> to vector<1x128xf32>
    %c0_44 = arith.constant 0 : index
    %c0_45 = arith.constant 0 : index
    %c0_46 = arith.constant 0 : index
    %137 = vector.load %arg22[%c0_44, %c0_45, %c0_46] : memref<1x1x128xf32, #tpu.memory_space<vmem>>, vector<1x1x128xf32>
    %138 = vector.shape_cast %137 : vector<1x1x128xf32> to vector<1x128xf32>
    %cst_47 = arith.constant dense<0.000000e+00> : vector<8xf32>
    %139 = vector.multi_reduction <add>, %134, %cst_47 [1] : vector<8x128xf32> to vector<8xf32>
    %140 = vector.shape_cast %139 : vector<8xf32> to vector<8x1xf32>
    %cst_48 = arith.constant 1.280000e+02 : f32
    %141 = vector.broadcast %cst_48 : f32 to vector<8x1xf32>
    %142 = arith.divf %140, %141 : vector<8x1xf32>
    %143 = vector.broadcast %142 : vector<8x1xf32> to vector<8x128xf32>
    %144 = arith.subf %134, %143 : vector<8x128xf32>
    %145 = arith.mulf %144, %144 : vector<8x128xf32>
    %cst_49 = arith.constant dense<0.000000e+00> : vector<8xf32>
    %146 = vector.multi_reduction <add>, %145, %cst_49 [1] : vector<8x128xf32> to vector<8xf32>
    %147 = vector.shape_cast %146 : vector<8xf32> to vector<8x1xf32>
    %cst_50 = arith.constant 1.280000e+02 : f32
    %148 = vector.broadcast %cst_50 : f32 to vector<8x1xf32>
    %149 = arith.divf %147, %148 : vector<8x1xf32>
    %150 = vector.broadcast %142 : vector<8x1xf32> to vector<8x128xf32>
    %151 = arith.subf %134, %150 : vector<8x128xf32>
    %cst_51 = arith.constant 9.99999974E-6 : f32
    %152 = vector.broadcast %cst_51 : f32 to vector<8x1xf32>
    %153 = arith.addf %149, %152 : vector<8x1xf32>
    %154 = math.rsqrt %153 : vector<8x1xf32>
    %155 = vector.broadcast %154 : vector<8x1xf32> to vector<8x128xf32>
    %156 = arith.mulf %151, %155 : vector<8x128xf32>
    %157 = vector.broadcast %136 : vector<1x128xf32> to vector<8x128xf32>
    %158 = arith.mulf %156, %157 : vector<8x128xf32>
    %159 = vector.broadcast %138 : vector<1x128xf32> to vector<8x128xf32>
    %160 = arith.addf %158, %159 : vector<8x128xf32>
    %c0_52 = arith.constant 0 : index
    %c0_53 = arith.constant 0 : index
    %c0_54 = arith.constant 0 : index
    %161 = vector.load %arg23[%c0_52, %c0_53, %c0_54] : memref<1x128x256xbf16, #tpu.memory_space<vmem>>, vector<1x128x256xbf16>
    %162 = vector.shape_cast %161 : vector<1x128x256xbf16> to vector<128x256xbf16>
    %163 = arith.truncf %160 : vector<8x128xf32> to vector<8x128xbf16>
    %cst_55 = arith.constant dense<0.000000e+00> : vector<8x256xf32>
    %164 = tpu.matmul %163, %162, %cst_55 {dimension_numbers = #tpu.dot_dimension_numbers<[1], [0], [0], [1], [0, 0, 1, 1], [], []>} : vector<8x128xbf16>, vector<128x256xbf16>, vector<8x256xf32> -> vector<8x256xf32>
    %c0_56 = arith.constant 0 : index
    %c0_57 = arith.constant 0 : index
    %c0_58 = arith.constant 0 : index
    %165 = vector.load %arg24[%c0_56, %c0_57, %c0_58] : memref<1x1x256xf32, #tpu.memory_space<vmem>>, vector<1x1x256xf32>
    %166 = vector.shape_cast %165 : vector<1x1x256xf32> to vector<1x256xf32>
    %167 = vector.broadcast %166 : vector<1x256xf32> to vector<8x256xf32>
    %168 = arith.addf %164, %167 : vector<8x256xf32>
    %169 = arith.mulf %168, %168 : vector<8x256xf32>
    %170 = arith.mulf %168, %169 : vector<8x256xf32>
    %cst_59 = arith.constant 4.471500e-02 : f32
    %171 = vector.broadcast %cst_59 : f32 to vector<8x256xf32>
    %172 = arith.mulf %171, %170 : vector<8x256xf32>
    %173 = arith.addf %168, %172 : vector<8x256xf32>
    %cst_60 = arith.constant 0.797884583 : f32
    %174 = vector.broadcast %cst_60 : f32 to vector<8x256xf32>
    %175 = arith.mulf %174, %173 : vector<8x256xf32>
    %176 = math.tanh %175 : vector<8x256xf32>
    %cst_61 = arith.constant 1.000000e+00 : f32
    %177 = vector.broadcast %cst_61 : f32 to vector<8x256xf32>
    %178 = arith.addf %177, %176 : vector<8x256xf32>
    %cst_62 = arith.constant 5.000000e-01 : f32
    %179 = vector.broadcast %cst_62 : f32 to vector<8x256xf32>
    %180 = arith.mulf %179, %178 : vector<8x256xf32>
    %181 = arith.mulf %168, %180 : vector<8x256xf32>
    %c0_63 = arith.constant 0 : index
    %c0_64 = arith.constant 0 : index
    %c0_65 = arith.constant 0 : index
    %182 = vector.load %arg25[%c0_63, %c0_64, %c0_65] : memref<1x256x128xbf16, #tpu.memory_space<vmem>>, vector<1x256x128xbf16>
    %183 = vector.shape_cast %182 : vector<1x256x128xbf16> to vector<256x128xbf16>
    %184 = arith.truncf %181 : vector<8x256xf32> to vector<8x256xbf16>
    %cst_66 = arith.constant dense<0.000000e+00> : vector<8x128xf32>
    %185 = tpu.matmul %184, %183, %cst_66 {dimension_numbers = #tpu.dot_dimension_numbers<[1], [0], [0], [1], [0, 0, 1, 1], [], []>} : vector<8x256xbf16>, vector<256x128xbf16>, vector<8x128xf32> -> vector<8x128xf32>
    %186 = arith.addf %160, %185 : vector<8x128xf32>
    %c0_67 = arith.constant 0 : index
    %c0_68 = arith.constant 0 : index
    %c0_69 = arith.constant 0 : index
    %187 = vector.load %arg26[%c0_67, %c0_68, %c0_69] : memref<1x1x128xf32, #tpu.memory_space<vmem>>, vector<1x1x128xf32>
    %188 = vector.shape_cast %187 : vector<1x1x128xf32> to vector<1x128xf32>
    %189 = vector.broadcast %188 : vector<1x128xf32> to vector<8x128xf32>
    %190 = arith.addf %186, %189 : vector<8x128xf32>
    %c0_70 = arith.constant 0 : index
    %c0_71 = arith.constant 0 : index
    %c0_72 = arith.constant 0 : index
    %191 = vector.load %arg27[%c0_70, %c0_71, %c0_72] : memref<1x1x128xf32, #tpu.memory_space<vmem>>, vector<1x1x128xf32>
    %192 = vector.shape_cast %191 : vector<1x1x128xf32> to vector<1x128xf32>
    %c0_73 = arith.constant 0 : index
    %c0_74 = arith.constant 0 : index
    %c0_75 = arith.constant 0 : index
    %193 = vector.load %arg28[%c0_73, %c0_74, %c0_75] : memref<1x1x128xf32, #tpu.memory_space<vmem>>, vector<1x1x128xf32>
    %194 = vector.shape_cast %193 : vector<1x1x128xf32> to vector<1x128xf32>
    %cst_76 = arith.constant dense<0.000000e+00> : vector<8xf32>
    %195 = vector.multi_reduction <add>, %190, %cst_76 [1] : vector<8x128xf32> to vector<8xf32>
    %196 = vector.shape_cast %195 : vector<8xf32> to vector<8x1xf32>
    %cst_77 = arith.constant 1.280000e+02 : f32
    %197 = vector.broadcast %cst_77 : f32 to vector<8x1xf32>
    %198 = arith.divf %196, %197 : vector<8x1xf32>
    %199 = vector.broadcast %198 : vector<8x1xf32> to vector<8x128xf32>
    %200 = arith.subf %190, %199 : vector<8x128xf32>
    %201 = arith.mulf %200, %200 : vector<8x128xf32>
    %cst_78 = arith.constant dense<0.000000e+00> : vector<8xf32>
    %202 = vector.multi_reduction <add>, %201, %cst_78 [1] : vector<8x128xf32> to vector<8xf32>
    %203 = vector.shape_cast %202 : vector<8xf32> to vector<8x1xf32>
    %cst_79 = arith.constant 1.280000e+02 : f32
    %204 = vector.broadcast %cst_79 : f32 to vector<8x1xf32>
    %205 = arith.divf %203, %204 : vector<8x1xf32>
    %206 = vector.broadcast %198 : vector<8x1xf32> to vector<8x128xf32>
    %207 = arith.subf %190, %206 : vector<8x128xf32>
    %cst_80 = arith.constant 9.99999974E-6 : f32
    %208 = vector.broadcast %cst_80 : f32 to vector<8x1xf32>
    %209 = arith.addf %205, %208 : vector<8x1xf32>
    %210 = math.rsqrt %209 : vector<8x1xf32>
    %211 = vector.broadcast %210 : vector<8x1xf32> to vector<8x128xf32>
    %212 = arith.mulf %207, %211 : vector<8x128xf32>
    %213 = vector.broadcast %192 : vector<1x128xf32> to vector<8x128xf32>
    %214 = arith.mulf %212, %213 : vector<8x128xf32>
    %215 = vector.broadcast %194 : vector<1x128xf32> to vector<8x128xf32>
    %216 = arith.addf %214, %215 : vector<8x128xf32>
    %c0_81 = arith.constant 0 : index
    %c0_82 = arith.constant 0 : index
    %217 = vector.load %arg35[%c0_81, %c0_82] : memref<8x128xf32, #tpu.memory_space<vmem>>, vector<8x128xf32>
    tpu.vector_store %arg35[%c0_81, %c0_82], %216 {strides = array<i32>} : memref<8x128xf32, #tpu.memory_space<vmem>>, vector<8x128xf32>,
    %c1_i32 = arith.constant 1 : i32
    %218 = arith.cmpi eq, %arg1, %c1_i32 : i32
    %219 = arith.extui %218 : i1 to i32
    %c0_i32_83 = arith.constant 0 : i32
    %220 = arith.cmpi ne, %219, %c0_i32_83 : i32
    scf.if %220 {
      %c0_84 = arith.constant 0 : index
      %c0_85 = arith.constant 0 : index
      %c0_86 = arith.constant 0 : index
      %221 = vector.load %arg3[%c0_84, %c0_85, %c0_86] : memref<1x8x128xf32, #tpu.memory_space<vmem>>, vector<1x8x128xf32>
      %222 = vector.shape_cast %221 : vector<1x8x128xf32> to vector<8x128xf32>
      %223 = arith.addf %216, %222 : vector<8x128xf32>
      %c0_87 = arith.constant 0 : index
      %c0_88 = arith.constant 0 : index
      %224 = vector.load %arg29[%c0_87, %c0_88] : memref<1x128xf32, #tpu.memory_space<vmem>>, vector<1x128xf32>
      %c0_89 = arith.constant 0 : index
      %c0_90 = arith.constant 0 : index
      %225 = vector.load %arg30[%c0_89, %c0_90] : memref<1x128xf32, #tpu.memory_space<vmem>>, vector<1x128xf32>
      %cst_91 = arith.constant dense<0.000000e+00> : vector<8xf32>
      %226 = vector.multi_reduction <add>, %223, %cst_91 [1] : vector<8x128xf32> to vector<8xf32>
      %227 = vector.shape_cast %226 : vector<8xf32> to vector<8x1xf32>
      %cst_92 = arith.constant 1.280000e+02 : f32
      %228 = vector.broadcast %cst_92 : f32 to vector<8x1xf32>
      %229 = arith.divf %227, %228 : vector<8x1xf32>
      %230 = vector.broadcast %229 : vector<8x1xf32> to vector<8x128xf32>
      %231 = arith.subf %223, %230 : vector<8x128xf32>
      %232 = arith.mulf %231, %231 : vector<8x128xf32>
      %cst_93 = arith.constant dense<0.000000e+00> : vector<8xf32>
      %233 = vector.multi_reduction <add>, %232, %cst_93 [1] : vector<8x128xf32> to vector<8xf32>
      %234 = vector.shape_cast %233 : vector<8xf32> to vector<8x1xf32>
      %cst_94 = arith.constant 1.280000e+02 : f32
      %235 = vector.broadcast %cst_94 : f32 to vector<8x1xf32>
      %236 = arith.divf %234, %235 : vector<8x1xf32>
      %237 = vector.broadcast %229 : vector<8x1xf32> to vector<8x128xf32>
      %238 = arith.subf %223, %237 : vector<8x128xf32>
      %cst_95 = arith.constant 9.99999974E-6 : f32
      %239 = vector.broadcast %cst_95 : f32 to vector<8x1xf32>
      %240 = arith.addf %236, %239 : vector<8x1xf32>
      %241 = math.rsqrt %240 : vector<8x1xf32>
      %242 = vector.broadcast %241 : vector<8x1xf32> to vector<8x128xf32>
      %243 = arith.mulf %238, %242 : vector<8x128xf32>
      %244 = vector.broadcast %224 : vector<1x128xf32> to vector<8x128xf32>
      %245 = arith.mulf %243, %244 : vector<8x128xf32>
      %246 = vector.broadcast %225 : vector<1x128xf32> to vector<8x128xf32>
      %247 = arith.addf %245, %246 : vector<8x128xf32>
      %c0_96 = arith.constant 0 : index
      %c0_97 = arith.constant 0 : index
      %c0_98 = arith.constant 0 : index
      %248 = vector.load %arg33[%c0_96, %c0_97, %c0_98] : memref<1x8x128xf32, #tpu.memory_space<vmem>>, vector<1x8x128xf32>
      %249 = vector.shape_cast %248 : vector<1x8x128xf32> to vector<8x128xf32>
      %250 = vector.shape_cast %247 : vector<8x128xf32> to vector<1x8x128xf32>
      tpu.vector_store %arg33[%c0_96, %c0_97, %c0_98], %250 {strides = array<i32>} : memref<1x8x128xf32, #tpu.memory_space<vmem>>, vector<1x8x128xf32>,
      %c0_99 = arith.constant 0 : index
      %c0_100 = arith.constant 0 : index
      %251 = vector.load %arg31[%c0_99, %c0_100] : memref<128x128xbf16, #tpu.memory_space<vmem>>, vector<128x128xbf16>
      %252 = arith.truncf %247 : vector<8x128xf32> to vector<8x128xbf16>
      %cst_101 = arith.constant dense<0.000000e+00> : vector<8x128xf32>
      %253 = tpu.matmul %252, %251, %cst_101 {dimension_numbers = #tpu.dot_dimension_numbers<[1], [0], [0], [1], [0, 0, 1, 1], [], []>} : vector<8x128xbf16>, vector<128x128xbf16>, vector<8x128xf32> -> vector<8x128xf32>
      %c0_102 = arith.constant 0 : index
      %c0_103 = arith.constant 0 : index
      %254 = vector.load %arg32[%c0_102, %c0_103] : memref<1x128xf32, #tpu.memory_space<vmem>>, vector<1x128xf32>
      %255 = vector.broadcast %254 : vector<1x128xf32> to vector<8x128xf32>
      %256 = arith.addf %253, %255 : vector<8x128xf32>
      %cst_104 = arith.constant dense<0xFF800000> : vector<8xf32>
      %257 = vector.multi_reduction <maximumf>, %256, %cst_104 [1] : vector<8x128xf32> to vector<8xf32>
      %258 = vector.shape_cast %257 : vector<8xf32> to vector<8x1xf32>
      %259 = vector.broadcast %258 : vector<8x1xf32> to vector<8x128xf32>
      %260 = arith.subf %256, %259 : vector<8x128xf32>
      %261 = math.exp %260 : vector<8x128xf32>
      %262 = vector.broadcast %258 : vector<8x1xf32> to vector<8x128xf32>
      %263 = arith.subf %256, %262 : vector<8x128xf32>
      %cst_105 = arith.constant dense<0.000000e+00> : vector<8xf32>
      %264 = vector.multi_reduction <add>, %261, %cst_105 [1] : vector<8x128xf32> to vector<8xf32>
      %265 = vector.shape_cast %264 : vector<8xf32> to vector<8x1xf32>
      %266 = math.log %265 : vector<8x1xf32>
      %267 = vector.broadcast %266 : vector<8x1xf32> to vector<8x128xf32>
      %268 = arith.subf %263, %267 : vector<8x128xf32>
      %c0_106 = arith.constant 0 : index
      %c0_107 = arith.constant 0 : index
      %c0_108 = arith.constant 0 : index
      %269 = vector.load %arg34[%c0_106, %c0_107, %c0_108] : memref<1x8x128xf32, #tpu.memory_space<vmem>>, vector<1x8x128xf32>
      %270 = vector.shape_cast %269 : vector<1x8x128xf32> to vector<8x128xf32>
      %271 = vector.shape_cast %268 : vector<8x128xf32> to vector<1x8x128xf32>
      tpu.vector_store %arg34[%c0_106, %c0_107, %c0_108], %271 {strides = array<i32>} : memref<1x8x128xf32, #tpu.memory_space<vmem>>, vector<1x8x128xf32>,
    } else {
    }
    return
  }
  func.func @transform_0(%arg0: i32, %arg1: i32, %arg2: memref<2xi32, #tpu.memory_space<smem>>) -> (i32, i32, i32) {
    %c0_i32 = arith.constant 0 : i32
    %c0_i32_0 = arith.constant 0 : i32
    %c0_i32_1 = arith.constant 0 : i32
    return %arg0, %c0_i32, %c0_i32_0 : i32, i32, i32
  }
  func.func @transform_1(%arg0: i32, %arg1: i32, %arg2: memref<2xi32, #tpu.memory_space<smem>>) -> (i32, i32) {
    %c0_i32 = arith.constant 0 : i32
    %c0_i32_0 = arith.constant 0 : i32
    %c0_i32_1 = arith.constant 0 : i32
    return %c0_i32, %c0_i32_0 : i32, i32
  }
  func.func @transform_2(%arg0: i32, %arg1: i32, %arg2: memref<2xi32, #tpu.memory_space<smem>>) -> (i32, i32) {
    %c0_i32 = arith.constant 0 : i32
    %c0_i32_0 = arith.constant 0 : i32
    %c0_i32_1 = arith.constant 0 : i32
    return %c0_i32, %c0_i32_0 : i32, i32
  }
  func.func @transform_3(%arg0: i32, %arg1: i32, %arg2: memref<2xi32, #tpu.memory_space<smem>>) -> (i32, i32) {
    %c0_i32 = arith.constant 0 : i32
    %c0_i32_0 = arith.constant 0 : i32
    %c0_i32_1 = arith.constant 0 : i32
    return %c0_i32, %c0_i32_0 : i32, i32
  }
  func.func @transform_4(%arg0: i32, %arg1: i32, %arg2: memref<2xi32, #tpu.memory_space<smem>>) -> (i32, i32) {
    %c0_i32 = arith.constant 0 : i32
    %c0_i32_0 = arith.constant 0 : i32
    %c0_i32_1 = arith.constant 0 : i32
    return %c0_i32, %c0_i32_0 : i32, i32
  }
  func.func @transform_5(%arg0: i32, %arg1: i32, %arg2: memref<2xi32, #tpu.memory_space<smem>>) -> (i32, i32) {
    %c0_i32 = arith.constant 0 : i32
    %c0_i32_0 = arith.constant 0 : i32
    %c0_i32_1 = arith.constant 0 : i32
    return %c0_i32, %c0_i32_0 : i32, i32
  }
  func.func @transform_6(%arg0: i32, %arg1: i32, %arg2: memref<2xi32, #tpu.memory_space<smem>>) -> (i32, i32) {
    %c0_i32 = arith.constant 0 : i32
    %c0_i32_0 = arith.constant 0 : i32
    %c0_i32_1 = arith.constant 0 : i32
    return %c0_i32, %c0_i32_0 : i32, i32
  }
  func.func @transform_7(%arg0: i32, %arg1: i32, %arg2: memref<2xi32, #tpu.memory_space<smem>>) -> (i32, i32) {
    %c0_i32 = arith.constant 0 : i32
    %c0_i32_0 = arith.constant 0 : i32
    %c0_i32_1 = arith.constant 0 : i32
    return %c0_i32, %c0_i32_0 : i32, i32
  }
  func.func @transform_8(%arg0: i32, %arg1: i32, %arg2: memref<2xi32, #tpu.memory_space<smem>>) -> (i32, i32) {
    %c0_i32 = arith.constant 0 : i32
    %c0_i32_0 = arith.constant 0 : i32
    %c0_i32_1 = arith.constant 0 : i32
    return %c0_i32, %c0_i32_0 : i32, i32
  }
  func.func @transform_9(%arg0: i32, %arg1: i32, %arg2: memref<2xi32, #tpu.memory_space<smem>>) -> (i32, i32) {
    %c0_i32 = arith.constant 0 : i32
    %c0_i32_0 = arith.constant 0 : i32
    %c0_i32_1 = arith.constant 0 : i32
    return %c0_i32, %c0_i32_0 : i32, i32
  }
  func.func @transform_10(%arg0: i32, %arg1: i32, %arg2: memref<2xi32, #tpu.memory_space<smem>>) -> (i32, i32) {
    %c0_i32 = arith.constant 0 : i32
    %c0_i32_0 = arith.constant 0 : i32
    %c0_i32_1 = arith.constant 0 : i32
    return %c0_i32, %c0_i32_0 : i32, i32
  }
  func.func @transform_11(%arg0: i32, %arg1: i32, %arg2: memref<2xi32, #tpu.memory_space<smem>>) -> (i32, i32) {
    %c0_i32 = arith.constant 0 : i32
    %c0_i32_0 = arith.constant 0 : i32
    %c0_i32_1 = arith.constant 0 : i32
    return %c0_i32, %c0_i32_0 : i32, i32
  }
  func.func @transform_12(%arg0: i32, %arg1: i32, %arg2: memref<2xi32, #tpu.memory_space<smem>>) -> (i32, i32) {
    %c0_i32 = arith.constant 0 : i32
    %c0_i32_0 = arith.constant 0 : i32
    %c0_i32_1 = arith.constant 0 : i32
    return %c0_i32, %c0_i32_0 : i32, i32
  }
  func.func @transform_13(%arg0: i32, %arg1: i32, %arg2: memref<2xi32, #tpu.memory_space<smem>>) -> (i32, i32) {
    %c0_i32 = arith.constant 0 : i32
    %c0_i32_0 = arith.constant 0 : i32
    %c0_i32_1 = arith.constant 0 : i32
    return %c0_i32, %c0_i32_0 : i32, i32
  }
  func.func @transform_14(%arg0: i32, %arg1: i32, %arg2: memref<2xi32, #tpu.memory_space<smem>>) -> (i32, i32, i32) {
    %c0_i32 = arith.constant 0 : i32
    %c0_i32_0 = arith.constant 0 : i32
    %c0_i32_1 = arith.constant 0 : i32
    return %arg1, %c0_i32, %c0_i32_0 : i32, i32, i32
  }
  func.func @transform_15(%arg0: i32, %arg1: i32, %arg2: memref<2xi32, #tpu.memory_space<smem>>) -> (i32, i32, i32) {
    %c0_i32 = arith.constant 0 : i32
    %c0_i32_0 = arith.constant 0 : i32
    %c0_i32_1 = arith.constant 0 : i32
    return %arg1, %c0_i32, %c0_i32_0 : i32, i32, i32
  }
  func.func @transform_16(%arg0: i32, %arg1: i32, %arg2: memref<2xi32, #tpu.memory_space<smem>>) -> (i32, i32, i32) {
    %c0_i32 = arith.constant 0 : i32
    %c0_i32_0 = arith.constant 0 : i32
    %c0_i32_1 = arith.constant 0 : i32
    return %arg1, %c0_i32, %c0_i32_0 : i32, i32, i32
  }
  func.func @transform_17(%arg0: i32, %arg1: i32, %arg2: memref<2xi32, #tpu.memory_space<smem>>) -> (i32, i32, i32) {
    %c0_i32 = arith.constant 0 : i32
    %c0_i32_0 = arith.constant 0 : i32
    %c0_i32_1 = arith.constant 0 : i32
    return %arg1, %c0_i32, %c0_i32_0 : i32, i32, i32
  }
  func.func @transform_18(%arg0: i32, %arg1: i32, %arg2: memref<2xi32, #tpu.memory_space<smem>>) -> (i32, i32, i32) {
    %c0_i32 = arith.constant 0 : i32
    %c0_i32_0 = arith.constant 0 : i32
    %c0_i32_1 = arith.constant 0 : i32
    return %arg1, %c0_i32, %c0_i32_0 : i32, i32, i32
  }
  func.func @transform_19(%arg0: i32, %arg1: i32, %arg2: memref<2xi32, #tpu.memory_space<smem>>) -> (i32, i32, i32) {
    %c0_i32 = arith.constant 0 : i32
    %c0_i32_0 = arith.constant 0 : i32
    %c0_i32_1 = arith.constant 0 : i32
    return %arg1, %c0_i32, %c0_i32_0 : i32, i32, i32
  }
  func.func @transform_20(%arg0: i32, %arg1: i32, %arg2: memref<2xi32, #tpu.memory_space<smem>>) -> (i32, i32, i32) {
    %c0_i32 = arith.constant 0 : i32
    %c0_i32_0 = arith.constant 0 : i32
    %c0_i32_1 = arith.constant 0 : i32
    return %arg1, %c0_i32, %c0_i32_0 : i32, i32, i32
  }
  func.func @transform_21(%arg0: i32, %arg1: i32, %arg2: memref<2xi32, #tpu.memory_space<smem>>) -> (i32, i32, i32) {
    %c0_i32 = arith.constant 0 : i32
    %c0_i32_0 = arith.constant 0 : i32
    %c0_i32_1 = arith.constant 0 : i32
    return %arg1, %c0_i32, %c0_i32_0 : i32, i32, i32
  }
  func.func @transform_22(%arg0: i32, %arg1: i32, %arg2: memref<2xi32, #tpu.memory_space<smem>>) -> (i32, i32, i32) {
    %c0_i32 = arith.constant 0 : i32
    %c0_i32_0 = arith.constant 0 : i32
    %c0_i32_1 = arith.constant 0 : i32
    return %arg1, %c0_i32, %c0_i32_0 : i32, i32, i32
  }
  func.func @transform_23(%arg0: i32, %arg1: i32, %arg2: memref<2xi32, #tpu.memory_space<smem>>) -> (i32, i32, i32) {
    %c0_i32 = arith.constant 0 : i32
    %c0_i32_0 = arith.constant 0 : i32
    %c0_i32_1 = arith.constant 0 : i32
    return %arg1, %c0_i32, %c0_i32_0 : i32, i32, i32
  }
  func.func @transform_24(%arg0: i32, %arg1: i32, %arg2: memref<2xi32, #tpu.memory_space<smem>>) -> (i32, i32, i32) {
    %c0_i32 = arith.constant 0 : i32
    %c0_i32_0 = arith.constant 0 : i32
    %c0_i32_1 = arith.constant 0 : i32
    return %arg1, %c0_i32, %c0_i32_0 : i32, i32, i32
  }
  func.func @transform_25(%arg0: i32, %arg1: i32, %arg2: memref<2xi32, #tpu.memory_space<smem>>) -> (i32, i32, i32) {
    %c0_i32 = arith.constant 0 : i32
    %c0_i32_0 = arith.constant 0 : i32
    %c0_i32_1 = arith.constant 0 : i32
    return %arg1, %c0_i32, %c0_i32_0 : i32, i32, i32
  }
  func.func @transform_26(%arg0: i32, %arg1: i32, %arg2: memref<2xi32, #tpu.memory_space<smem>>) -> (i32, i32) {
    %c0_i32 = arith.constant 0 : i32
    %c0_i32_0 = arith.constant 0 : i32
    %c0_i32_1 = arith.constant 0 : i32
    return %c0_i32, %c0_i32_0 : i32, i32
  }
  func.func @transform_27(%arg0: i32, %arg1: i32, %arg2: memref<2xi32, #tpu.memory_space<smem>>) -> (i32, i32) {
    %c0_i32 = arith.constant 0 : i32
    %c0_i32_0 = arith.constant 0 : i32
    %c0_i32_1 = arith.constant 0 : i32
    return %c0_i32, %c0_i32_0 : i32, i32
  }
  func.func @transform_28(%arg0: i32, %arg1: i32, %arg2: memref<2xi32, #tpu.memory_space<smem>>) -> (i32, i32) {
    %c0_i32 = arith.constant 0 : i32
    %c0_i32_0 = arith.constant 0 : i32
    %c0_i32_1 = arith.constant 0 : i32
    return %c0_i32, %c0_i32_0 : i32, i32
  }
  func.func @transform_29(%arg0: i32, %arg1: i32, %arg2: memref<2xi32, #tpu.memory_space<smem>>) -> (i32, i32) {
    %c0_i32 = arith.constant 0 : i32
    %c0_i32_0 = arith.constant 0 : i32
    %c0_i32_1 = arith.constant 0 : i32
    return %c0_i32, %c0_i32_0 : i32, i32
  }
  func.func @transform_30(%arg0: i32, %arg1: i32, %arg2: memref<2xi32, #tpu.memory_space<smem>>) -> (i32, i32, i32) {
    %c0_i32 = arith.constant 0 : i32
    %c0_i32_0 = arith.constant 0 : i32
    %c0_i32_1 = arith.constant 0 : i32
    return %arg0, %c0_i32, %c0_i32_0 : i32, i32, i32
  }
  func.func @transform_31(%arg0: i32, %arg1: i32, %arg2: memref<2xi32, #tpu.memory_space<smem>>) -> (i32, i32, i32) {
    %c0_i32 = arith.constant 0 : i32
    %c0_i32_0 = arith.constant 0 : i32
    %c0_i32_1 = arith.constant 0 : i32
    return %arg0, %c0_i32, %c0_i32_0 : i32, i32, i32
  }
}

module attributes {stable_mosaic.version = 11 : i64} {
  func.func @_enc_stack_kernel(%arg0: i32, %arg1: i32, %arg2: memref<2xi32, #tpu.memory_space<smem>>, %arg3: memref<1x8x80xf32, #tpu.memory_space<vmem>>, %arg4: memref<8x128xf32, #tpu.memory_space<vmem>>, %arg5: memref<80x128xbf16, #tpu.memory_space<vmem>>, %arg6: memref<1x128xf32, #tpu.memory_space<vmem>>, %arg7: memref<1x128xf32, #tpu.memory_space<vmem>>, %arg8: memref<1x128xf32, #tpu.memory_space<vmem>>, %arg9: memref<1x1x128xf32, #tpu.memory_space<vmem>>, %arg10: memref<1x1x128xf32, #tpu.memory_space<vmem>>, %arg11: memref<1x128x384xbf16, #tpu.memory_space<vmem>>, %arg12: memref<1x1x384xf32, #tpu.memory_space<vmem>>, %arg13: memref<1x128x128xbf16, #tpu.memory_space<vmem>>, %arg14: memref<1x1x128xf32, #tpu.memory_space<vmem>>, %arg15: memref<1x1x128xf32, #tpu.memory_space<vmem>>, %arg16: memref<1x1x128xf32, #tpu.memory_space<vmem>>, %arg17: memref<1x128x256xbf16, #tpu.memory_space<vmem>>, %arg18: memref<1x1x256xf32, #tpu.memory_space<vmem>>, %arg19: memref<1x256x128xbf16, #tpu.memory_space<vmem>>, %arg20: memref<1x1x128xf32, #tpu.memory_space<vmem>>, %arg21: memref<1x128xf32, #tpu.memory_space<vmem>>, %arg22: memref<1x128xf32, #tpu.memory_space<vmem>>, %arg23: memref<1x8x128xf32, #tpu.memory_space<vmem>>, %arg24: memref<8x128xf32, #tpu.memory_space<vmem>>) attributes {dimension_semantics = [#tpu.dimension_semantics<parallel>, #tpu.dimension_semantics<arbitrary>], iteration_bounds = array<i64: 2, 2>, scalar_prefetch = 1 : i64, scratch_operands = 1 : i64, tpu.core_type = #tpu.core_type<tc>, window_params = [{transform_indices = @transform_0, window_bounds = array<i64: 1, 8, 80>}, {pipeline_mode = #tpu.pipeline_mode<synchronous>, transform_indices = @transform_1, window_bounds = array<i64: 8, 128>}, {pipeline_mode = #tpu.pipeline_mode<synchronous>, transform_indices = @transform_2, window_bounds = array<i64: 80, 128>}, {pipeline_mode = #tpu.pipeline_mode<synchronous>, transform_indices = @transform_3, window_bounds = array<i64: 1, 128>}, {pipeline_mode = #tpu.pipeline_mode<synchronous>, transform_indices = @transform_4, window_bounds = array<i64: 1, 128>}, {pipeline_mode = #tpu.pipeline_mode<synchronous>, transform_indices = @transform_5, window_bounds = array<i64: 1, 128>}, {transform_indices = @transform_6, window_bounds = array<i64: 1, 1, 128>}, {transform_indices = @transform_7, window_bounds = array<i64: 1, 1, 128>}, {transform_indices = @transform_8, window_bounds = array<i64: 1, 128, 384>}, {transform_indices = @transform_9, window_bounds = array<i64: 1, 1, 384>}, {transform_indices = @transform_10, window_bounds = array<i64: 1, 128, 128>}, {transform_indices = @transform_11, window_bounds = array<i64: 1, 1, 128>}, {transform_indices = @transform_12, window_bounds = array<i64: 1, 1, 128>}, {transform_indices = @transform_13, window_bounds = array<i64: 1, 1, 128>}, {transform_indices = @transform_14, window_bounds = array<i64: 1, 128, 256>}, {transform_indices = @transform_15, window_bounds = array<i64: 1, 1, 256>}, {transform_indices = @transform_16, window_bounds = array<i64: 1, 256, 128>}, {transform_indices = @transform_17, window_bounds = array<i64: 1, 1, 128>}, {pipeline_mode = #tpu.pipeline_mode<synchronous>, transform_indices = @transform_18, window_bounds = array<i64: 1, 128>}, {pipeline_mode = #tpu.pipeline_mode<synchronous>, transform_indices = @transform_19, window_bounds = array<i64: 1, 128>}, {transform_indices = @transform_20, window_bounds = array<i64: 1, 8, 128>}]} {
    %0 = arith.index_cast %arg0 : i32 to index
    %1 = memref.load %arg2[%0] : memref<2xi32, #tpu.memory_space<smem>>
    %2 = tpu.iota {dimensions = array<i32: 1>} : vector<1x8xi32>
    %3 = vector.broadcast %1 : i32 to vector<1x8xi32>
    %4 = arith.cmpi slt, %2, %3 : vector<1x8xi32>
    %cst = arith.constant 0.000000e+00 : f32
    %cst_0 = arith.constant -1.000000e+09 : f32
    %5 = vector.broadcast %cst : f32 to vector<1x8xf32>
    %6 = vector.broadcast %cst_0 : f32 to vector<1x8xf32>
    %7 = arith.select %4, %5, %6 : vector<1x8xi1>, vector<1x8xf32>
    %c0_i32 = arith.constant 0 : i32
    %8 = arith.cmpi eq, %arg1, %c0_i32 : i32
    %9 = arith.extui %8 : i1 to i32
    %c0_i32_1 = arith.constant 0 : i32
    %10 = arith.cmpi ne, %9, %c0_i32_1 : i32
    scf.if %10 {
      %c0_81 = arith.constant 0 : index
      %c0_82 = arith.constant 0 : index
      %c0_83 = arith.constant 0 : index
      %210 = vector.load %arg3[%c0_81, %c0_82, %c0_83] : memref<1x8x80xf32, #tpu.memory_space<vmem>>, vector<1x8x80xf32>
      %211 = vector.shape_cast %210 : vector<1x8x80xf32> to vector<8x80xf32>
      %c0_84 = arith.constant 0 : index
      %c0_85 = arith.constant 0 : index
      %212 = vector.load %arg5[%c0_84, %c0_85] : memref<80x128xbf16, #tpu.memory_space<vmem>>, vector<80x128xbf16>
      %213 = arith.truncf %211 : vector<8x80xf32> to vector<8x80xbf16>
      %cst_86 = arith.constant dense<0.000000e+00> : vector<8x128xf32>
      %214 = tpu.matmul %213, %212, %cst_86 {dimension_numbers = #tpu.dot_dimension_numbers<[1], [0], [0], [1], [0, 0, 1, 1], [], []>} : vector<8x80xbf16>, vector<80x128xbf16>, vector<8x128xf32> -> vector<8x128xf32>
      %c0_87 = arith.constant 0 : index
      %c0_88 = arith.constant 0 : index
      %215 = vector.load %arg6[%c0_87, %c0_88] : memref<1x128xf32, #tpu.memory_space<vmem>>, vector<1x128xf32>
      %216 = vector.broadcast %215 : vector<1x128xf32> to vector<8x128xf32>
      %217 = arith.addf %214, %216 : vector<8x128xf32>
      %c0_89 = arith.constant 0 : index
      %c0_90 = arith.constant 0 : index
      %218 = vector.load %arg7[%c0_89, %c0_90] : memref<1x128xf32, #tpu.memory_space<vmem>>, vector<1x128xf32>
      %c0_91 = arith.constant 0 : index
      %c0_92 = arith.constant 0 : index
      %219 = vector.load %arg8[%c0_91, %c0_92] : memref<1x128xf32, #tpu.memory_space<vmem>>, vector<1x128xf32>
      %cst_93 = arith.constant dense<0.000000e+00> : vector<8xf32>
      %220 = vector.multi_reduction <add>, %217, %cst_93 [1] : vector<8x128xf32> to vector<8xf32>
      %221 = vector.shape_cast %220 : vector<8xf32> to vector<8x1xf32>
      %cst_94 = arith.constant 1.280000e+02 : f32
      %222 = vector.broadcast %cst_94 : f32 to vector<8x1xf32>
      %223 = arith.divf %221, %222 : vector<8x1xf32>
      %224 = vector.broadcast %223 : vector<8x1xf32> to vector<8x128xf32>
      %225 = arith.subf %217, %224 : vector<8x128xf32>
      %226 = arith.mulf %225, %225 : vector<8x128xf32>
      %cst_95 = arith.constant dense<0.000000e+00> : vector<8xf32>
      %227 = vector.multi_reduction <add>, %226, %cst_95 [1] : vector<8x128xf32> to vector<8xf32>
      %228 = vector.shape_cast %227 : vector<8xf32> to vector<8x1xf32>
      %cst_96 = arith.constant 1.280000e+02 : f32
      %229 = vector.broadcast %cst_96 : f32 to vector<8x1xf32>
      %230 = arith.divf %228, %229 : vector<8x1xf32>
      %231 = vector.broadcast %223 : vector<8x1xf32> to vector<8x128xf32>
      %232 = arith.subf %217, %231 : vector<8x128xf32>
      %cst_97 = arith.constant 9.99999974E-6 : f32
      %233 = vector.broadcast %cst_97 : f32 to vector<8x1xf32>
      %234 = arith.addf %230, %233 : vector<8x1xf32>
      %235 = math.rsqrt %234 : vector<8x1xf32>
      %236 = vector.broadcast %235 : vector<8x1xf32> to vector<8x128xf32>
      %237 = arith.mulf %232, %236 : vector<8x128xf32>
      %238 = vector.broadcast %218 : vector<1x128xf32> to vector<8x128xf32>
      %239 = arith.mulf %237, %238 : vector<8x128xf32>
      %240 = vector.broadcast %219 : vector<1x128xf32> to vector<8x128xf32>
      %241 = arith.addf %239, %240 : vector<8x128xf32>
      %cst_98 = arith.constant 0.000000e+00 : f32
      %242 = vector.broadcast %cst_98 : f32 to vector<8x128xf32>
      %243 = arith.maximumf %241, %242 : vector<8x128xf32>
      %cst_99 = arith.constant 11.3137083 : f32
      %244 = vector.broadcast %cst_99 : f32 to vector<8x128xf32>
      %245 = arith.mulf %243, %244 : vector<8x128xf32>
      %c0_100 = arith.constant 0 : index
      %c0_101 = arith.constant 0 : index
      %246 = vector.load %arg4[%c0_100, %c0_101] : memref<8x128xf32, #tpu.memory_space<vmem>>, vector<8x128xf32>
      %247 = arith.addf %245, %246 : vector<8x128xf32>
      %c0_102 = arith.constant 0 : index
      %c0_103 = arith.constant 0 : index
      %248 = vector.load %arg24[%c0_102, %c0_103] : memref<8x128xf32, #tpu.memory_space<vmem>>, vector<8x128xf32>
      tpu.vector_store %arg24[%c0_102, %c0_103], %247 {strides = array<i32>} : memref<8x128xf32, #tpu.memory_space<vmem>>, vector<8x128xf32>,
    } else {
    }
    %c0 = arith.constant 0 : index
    %c0_2 = arith.constant 0 : index
    %11 = vector.load %arg24[%c0, %c0_2] : memref<8x128xf32, #tpu.memory_space<vmem>>, vector<8x128xf32>
    %c0_3 = arith.constant 0 : index
    %c0_4 = arith.constant 0 : index
    %c0_5 = arith.constant 0 : index
    %12 = vector.load %arg9[%c0_3, %c0_4, %c0_5] : memref<1x1x128xf32, #tpu.memory_space<vmem>>, vector<1x1x128xf32>
    %13 = vector.shape_cast %12 : vector<1x1x128xf32> to vector<1x128xf32>
    %c0_6 = arith.constant 0 : index
    %c0_7 = arith.constant 0 : index
    %c0_8 = arith.constant 0 : index
    %14 = vector.load %arg10[%c0_6, %c0_7, %c0_8] : memref<1x1x128xf32, #tpu.memory_space<vmem>>, vector<1x1x128xf32>
    %15 = vector.shape_cast %14 : vector<1x1x128xf32> to vector<1x128xf32>
    %cst_9 = arith.constant dense<0.000000e+00> : vector<8xf32>
    %16 = vector.multi_reduction <add>, %11, %cst_9 [1] : vector<8x128xf32> to vector<8xf32>
    %17 = vector.shape_cast %16 : vector<8xf32> to vector<8x1xf32>
    %cst_10 = arith.constant 1.280000e+02 : f32
    %18 = vector.broadcast %cst_10 : f32 to vector<8x1xf32>
    %19 = arith.divf %17, %18 : vector<8x1xf32>
    %20 = vector.broadcast %19 : vector<8x1xf32> to vector<8x128xf32>
    %21 = arith.subf %11, %20 : vector<8x128xf32>
    %22 = arith.mulf %21, %21 : vector<8x128xf32>
    %cst_11 = arith.constant dense<0.000000e+00> : vector<8xf32>
    %23 = vector.multi_reduction <add>, %22, %cst_11 [1] : vector<8x128xf32> to vector<8xf32>
    %24 = vector.shape_cast %23 : vector<8xf32> to vector<8x1xf32>
    %cst_12 = arith.constant 1.280000e+02 : f32
    %25 = vector.broadcast %cst_12 : f32 to vector<8x1xf32>
    %26 = arith.divf %24, %25 : vector<8x1xf32>
    %27 = vector.broadcast %19 : vector<8x1xf32> to vector<8x128xf32>
    %28 = arith.subf %11, %27 : vector<8x128xf32>
    %cst_13 = arith.constant 9.99999974E-6 : f32
    %29 = vector.broadcast %cst_13 : f32 to vector<8x1xf32>
    %30 = arith.addf %26, %29 : vector<8x1xf32>
    %31 = math.rsqrt %30 : vector<8x1xf32>
    %32 = vector.broadcast %31 : vector<8x1xf32> to vector<8x128xf32>
    %33 = arith.mulf %28, %32 : vector<8x128xf32>
    %34 = vector.broadcast %13 : vector<1x128xf32> to vector<8x128xf32>
    %35 = arith.mulf %33, %34 : vector<8x128xf32>
    %36 = vector.broadcast %15 : vector<1x128xf32> to vector<8x128xf32>
    %37 = arith.addf %35, %36 : vector<8x128xf32>
    %c0_14 = arith.constant 0 : index
    %c0_15 = arith.constant 0 : index
    %c0_16 = arith.constant 0 : index
    %38 = vector.load %arg11[%c0_14, %c0_15, %c0_16] : memref<1x128x384xbf16, #tpu.memory_space<vmem>>, vector<1x128x384xbf16>
    %39 = vector.shape_cast %38 : vector<1x128x384xbf16> to vector<128x384xbf16>
    %40 = arith.truncf %37 : vector<8x128xf32> to vector<8x128xbf16>
    %cst_17 = arith.constant dense<0.000000e+00> : vector<8x384xf32>
    %41 = tpu.matmul %40, %39, %cst_17 {dimension_numbers = #tpu.dot_dimension_numbers<[1], [0], [0], [1], [0, 0, 1, 1], [], []>} : vector<8x128xbf16>, vector<128x384xbf16>, vector<8x384xf32> -> vector<8x384xf32>
    %c0_18 = arith.constant 0 : index
    %c0_19 = arith.constant 0 : index
    %c0_20 = arith.constant 0 : index
    %42 = vector.load %arg12[%c0_18, %c0_19, %c0_20] : memref<1x1x384xf32, #tpu.memory_space<vmem>>, vector<1x1x384xf32>
    %43 = vector.shape_cast %42 : vector<1x1x384xf32> to vector<1x384xf32>
    %44 = vector.broadcast %43 : vector<1x384xf32> to vector<8x384xf32>
    %45 = arith.addf %41, %44 : vector<8x384xf32>
    %46 = vector.extract_strided_slice %45 {offsets = [0, 0], sizes = [8, 128], strides = [1, 1]} : vector<8x384xf32> to vector<8x128xf32>
    %47 = vector.extract_strided_slice %45 {offsets = [0, 128], sizes = [8, 128], strides = [1, 1]} : vector<8x384xf32> to vector<8x128xf32>
    %48 = vector.extract_strided_slice %45 {offsets = [0, 256], sizes = [8, 128], strides = [1, 1]} : vector<8x384xf32> to vector<8x128xf32>
    %c0_21 = arith.constant 0 : index
    %c0_22 = arith.constant 0 : index
    %c0_23 = arith.constant 0 : index
    %49 = vector.load %arg13[%c0_21, %c0_22, %c0_23] : memref<1x128x128xbf16, #tpu.memory_space<vmem>>, vector<1x128x128xbf16>
    %50 = vector.shape_cast %49 : vector<1x128x128xbf16> to vector<128x128xbf16>
    %cst_24 = arith.constant 0.000000e+00 : f32
    %51 = vector.broadcast %cst_24 : f32 to vector<8x128xf32>
    %52 = vector.extract_strided_slice %46 {offsets = [0, 0], sizes = [8, 32], strides = [1, 1]} : vector<8x128xf32> to vector<8x32xf32>
    %53 = arith.truncf %52 : vector<8x32xf32> to vector<8x32xbf16>
    %54 = vector.extract_strided_slice %47 {offsets = [0, 0], sizes = [8, 32], strides = [1, 1]} : vector<8x128xf32> to vector<8x32xf32>
    %55 = arith.truncf %54 : vector<8x32xf32> to vector<8x32xbf16>
    %cst_25 = arith.constant dense<0.000000e+00> : vector<8x8xf32>
    %56 = tpu.matmul %53, %55, %cst_25 {dimension_numbers = #tpu.dot_dimension_numbers<[1], [1], [0], [0], [0, 0, 1, 0], [], []>} : vector<8x32xbf16>, vector<8x32xbf16>, vector<8x8xf32> -> vector<8x8xf32>
    %cst_26 = arith.constant 0.176776692 : f32
    %57 = vector.broadcast %cst_26 : f32 to vector<8x8xf32>
    %58 = arith.mulf %56, %57 : vector<8x8xf32>
    %59 = vector.broadcast %7 : vector<1x8xf32> to vector<8x8xf32>
    %60 = arith.addf %58, %59 : vector<8x8xf32>
    %cst_27 = arith.constant dense<0xFF800000> : vector<8xf32>
    %61 = vector.multi_reduction <maximumf>, %60, %cst_27 [1] : vector<8x8xf32> to vector<8xf32>
    %62 = vector.shape_cast %61 : vector<8xf32> to vector<8x1xf32>
    %63 = vector.broadcast %62 : vector<8x1xf32> to vector<8x8xf32>
    %64 = arith.subf %60, %63 : vector<8x8xf32>
    %65 = math.exp %64 : vector<8x8xf32>
    %cst_28 = arith.constant dense<0.000000e+00> : vector<8xf32>
    %66 = vector.multi_reduction <add>, %65, %cst_28 [1] : vector<8x8xf32> to vector<8xf32>
    %67 = vector.shape_cast %66 : vector<8xf32> to vector<8x1xf32>
    %68 = vector.broadcast %67 : vector<8x1xf32> to vector<8x8xf32>
    %69 = arith.divf %65, %68 : vector<8x8xf32>
    %70 = arith.truncf %69 : vector<8x8xf32> to vector<8x8xbf16>
    %71 = vector.extract_strided_slice %48 {offsets = [0, 0], sizes = [8, 32], strides = [1, 1]} : vector<8x128xf32> to vector<8x32xf32>
    %72 = arith.truncf %71 : vector<8x32xf32> to vector<8x32xbf16>
    %cst_29 = arith.constant dense<0.000000e+00> : vector<8x32xf32>
    %73 = tpu.matmul %70, %72, %cst_29 {dimension_numbers = #tpu.dot_dimension_numbers<[1], [0], [0], [1], [0, 0, 1, 1], [], []>} : vector<8x8xbf16>, vector<8x32xbf16>, vector<8x32xf32> -> vector<8x32xf32>
    %74 = arith.truncf %73 : vector<8x32xf32> to vector<8x32xbf16>
    %75 = vector.extract_strided_slice %50 {offsets = [0, 0], sizes = [32, 128], strides = [1, 1]} : vector<128x128xbf16> to vector<32x128xbf16>
    %cst_30 = arith.constant dense<0.000000e+00> : vector<8x128xf32>
    %76 = tpu.matmul %74, %75, %cst_30 {dimension_numbers = #tpu.dot_dimension_numbers<[1], [0], [0], [1], [0, 0, 1, 1], [], []>} : vector<8x32xbf16>, vector<32x128xbf16>, vector<8x128xf32> -> vector<8x128xf32>
    %77 = arith.addf %51, %76 : vector<8x128xf32>
    %78 = vector.extract_strided_slice %46 {offsets = [0, 32], sizes = [8, 32], strides = [1, 1]} : vector<8x128xf32> to vector<8x32xf32>
    %79 = arith.truncf %78 : vector<8x32xf32> to vector<8x32xbf16>
    %80 = vector.extract_strided_slice %47 {offsets = [0, 32], sizes = [8, 32], strides = [1, 1]} : vector<8x128xf32> to vector<8x32xf32>
    %81 = arith.truncf %80 : vector<8x32xf32> to vector<8x32xbf16>
    %cst_31 = arith.constant dense<0.000000e+00> : vector<8x8xf32>
    %82 = tpu.matmul %79, %81, %cst_31 {dimension_numbers = #tpu.dot_dimension_numbers<[1], [1], [0], [0], [0, 0, 1, 0], [], []>} : vector<8x32xbf16>, vector<8x32xbf16>, vector<8x8xf32> -> vector<8x8xf32>
    %cst_32 = arith.constant 0.176776692 : f32
    %83 = vector.broadcast %cst_32 : f32 to vector<8x8xf32>
    %84 = arith.mulf %82, %83 : vector<8x8xf32>
    %85 = vector.broadcast %7 : vector<1x8xf32> to vector<8x8xf32>
    %86 = arith.addf %84, %85 : vector<8x8xf32>
    %cst_33 = arith.constant dense<0xFF800000> : vector<8xf32>
    %87 = vector.multi_reduction <maximumf>, %86, %cst_33 [1] : vector<8x8xf32> to vector<8xf32>
    %88 = vector.shape_cast %87 : vector<8xf32> to vector<8x1xf32>
    %89 = vector.broadcast %88 : vector<8x1xf32> to vector<8x8xf32>
    %90 = arith.subf %86, %89 : vector<8x8xf32>
    %91 = math.exp %90 : vector<8x8xf32>
    %cst_34 = arith.constant dense<0.000000e+00> : vector<8xf32>
    %92 = vector.multi_reduction <add>, %91, %cst_34 [1] : vector<8x8xf32> to vector<8xf32>
    %93 = vector.shape_cast %92 : vector<8xf32> to vector<8x1xf32>
    %94 = vector.broadcast %93 : vector<8x1xf32> to vector<8x8xf32>
    %95 = arith.divf %91, %94 : vector<8x8xf32>
    %96 = arith.truncf %95 : vector<8x8xf32> to vector<8x8xbf16>
    %97 = vector.extract_strided_slice %48 {offsets = [0, 32], sizes = [8, 32], strides = [1, 1]} : vector<8x128xf32> to vector<8x32xf32>
    %98 = arith.truncf %97 : vector<8x32xf32> to vector<8x32xbf16>
    %cst_35 = arith.constant dense<0.000000e+00> : vector<8x32xf32>
    %99 = tpu.matmul %96, %98, %cst_35 {dimension_numbers = #tpu.dot_dimension_numbers<[1], [0], [0], [1], [0, 0, 1, 1], [], []>} : vector<8x8xbf16>, vector<8x32xbf16>, vector<8x32xf32> -> vector<8x32xf32>
    %100 = arith.truncf %99 : vector<8x32xf32> to vector<8x32xbf16>
    %101 = vector.extract_strided_slice %50 {offsets = [32, 0], sizes = [32, 128], strides = [1, 1]} : vector<128x128xbf16> to vector<32x128xbf16>
    %cst_36 = arith.constant dense<0.000000e+00> : vector<8x128xf32>
    %102 = tpu.matmul %100, %101, %cst_36 {dimension_numbers = #tpu.dot_dimension_numbers<[1], [0], [0], [1], [0, 0, 1, 1], [], []>} : vector<8x32xbf16>, vector<32x128xbf16>, vector<8x128xf32> -> vector<8x128xf32>
    %103 = arith.addf %77, %102 : vector<8x128xf32>
    %104 = vector.extract_strided_slice %46 {offsets = [0, 64], sizes = [8, 32], strides = [1, 1]} : vector<8x128xf32> to vector<8x32xf32>
    %105 = arith.truncf %104 : vector<8x32xf32> to vector<8x32xbf16>
    %106 = vector.extract_strided_slice %47 {offsets = [0, 64], sizes = [8, 32], strides = [1, 1]} : vector<8x128xf32> to vector<8x32xf32>
    %107 = arith.truncf %106 : vector<8x32xf32> to vector<8x32xbf16>
    %cst_37 = arith.constant dense<0.000000e+00> : vector<8x8xf32>
    %108 = tpu.matmul %105, %107, %cst_37 {dimension_numbers = #tpu.dot_dimension_numbers<[1], [1], [0], [0], [0, 0, 1, 0], [], []>} : vector<8x32xbf16>, vector<8x32xbf16>, vector<8x8xf32> -> vector<8x8xf32>
    %cst_38 = arith.constant 0.176776692 : f32
    %109 = vector.broadcast %cst_38 : f32 to vector<8x8xf32>
    %110 = arith.mulf %108, %109 : vector<8x8xf32>
    %111 = vector.broadcast %7 : vector<1x8xf32> to vector<8x8xf32>
    %112 = arith.addf %110, %111 : vector<8x8xf32>
    %cst_39 = arith.constant dense<0xFF800000> : vector<8xf32>
    %113 = vector.multi_reduction <maximumf>, %112, %cst_39 [1] : vector<8x8xf32> to vector<8xf32>
    %114 = vector.shape_cast %113 : vector<8xf32> to vector<8x1xf32>
    %115 = vector.broadcast %114 : vector<8x1xf32> to vector<8x8xf32>
    %116 = arith.subf %112, %115 : vector<8x8xf32>
    %117 = math.exp %116 : vector<8x8xf32>
    %cst_40 = arith.constant dense<0.000000e+00> : vector<8xf32>
    %118 = vector.multi_reduction <add>, %117, %cst_40 [1] : vector<8x8xf32> to vector<8xf32>
    %119 = vector.shape_cast %118 : vector<8xf32> to vector<8x1xf32>
    %120 = vector.broadcast %119 : vector<8x1xf32> to vector<8x8xf32>
    %121 = arith.divf %117, %120 : vector<8x8xf32>
    %122 = arith.truncf %121 : vector<8x8xf32> to vector<8x8xbf16>
    %123 = vector.extract_strided_slice %48 {offsets = [0, 64], sizes = [8, 32], strides = [1, 1]} : vector<8x128xf32> to vector<8x32xf32>
    %124 = arith.truncf %123 : vector<8x32xf32> to vector<8x32xbf16>
    %cst_41 = arith.constant dense<0.000000e+00> : vector<8x32xf32>
    %125 = tpu.matmul %122, %124, %cst_41 {dimension_numbers = #tpu.dot_dimension_numbers<[1], [0], [0], [1], [0, 0, 1, 1], [], []>} : vector<8x8xbf16>, vector<8x32xbf16>, vector<8x32xf32> -> vector<8x32xf32>
    %126 = arith.truncf %125 : vector<8x32xf32> to vector<8x32xbf16>
    %127 = vector.extract_strided_slice %50 {offsets = [64, 0], sizes = [32, 128], strides = [1, 1]} : vector<128x128xbf16> to vector<32x128xbf16>
    %cst_42 = arith.constant dense<0.000000e+00> : vector<8x128xf32>
    %128 = tpu.matmul %126, %127, %cst_42 {dimension_numbers = #tpu.dot_dimension_numbers<[1], [0], [0], [1], [0, 0, 1, 1], [], []>} : vector<8x32xbf16>, vector<32x128xbf16>, vector<8x128xf32> -> vector<8x128xf32>
    %129 = arith.addf %103, %128 : vector<8x128xf32>
    %130 = vector.extract_strided_slice %46 {offsets = [0, 96], sizes = [8, 32], strides = [1, 1]} : vector<8x128xf32> to vector<8x32xf32>
    %131 = arith.truncf %130 : vector<8x32xf32> to vector<8x32xbf16>
    %132 = vector.extract_strided_slice %47 {offsets = [0, 96], sizes = [8, 32], strides = [1, 1]} : vector<8x128xf32> to vector<8x32xf32>
    %133 = arith.truncf %132 : vector<8x32xf32> to vector<8x32xbf16>
    %cst_43 = arith.constant dense<0.000000e+00> : vector<8x8xf32>
    %134 = tpu.matmul %131, %133, %cst_43 {dimension_numbers = #tpu.dot_dimension_numbers<[1], [1], [0], [0], [0, 0, 1, 0], [], []>} : vector<8x32xbf16>, vector<8x32xbf16>, vector<8x8xf32> -> vector<8x8xf32>
    %cst_44 = arith.constant 0.176776692 : f32
    %135 = vector.broadcast %cst_44 : f32 to vector<8x8xf32>
    %136 = arith.mulf %134, %135 : vector<8x8xf32>
    %137 = vector.broadcast %7 : vector<1x8xf32> to vector<8x8xf32>
    %138 = arith.addf %136, %137 : vector<8x8xf32>
    %cst_45 = arith.constant dense<0xFF800000> : vector<8xf32>
    %139 = vector.multi_reduction <maximumf>, %138, %cst_45 [1] : vector<8x8xf32> to vector<8xf32>
    %140 = vector.shape_cast %139 : vector<8xf32> to vector<8x1xf32>
    %141 = vector.broadcast %140 : vector<8x1xf32> to vector<8x8xf32>
    %142 = arith.subf %138, %141 : vector<8x8xf32>
    %143 = math.exp %142 : vector<8x8xf32>
    %cst_46 = arith.constant dense<0.000000e+00> : vector<8xf32>
    %144 = vector.multi_reduction <add>, %143, %cst_46 [1] : vector<8x8xf32> to vector<8xf32>
    %145 = vector.shape_cast %144 : vector<8xf32> to vector<8x1xf32>
    %146 = vector.broadcast %145 : vector<8x1xf32> to vector<8x8xf32>
    %147 = arith.divf %143, %146 : vector<8x8xf32>
    %148 = arith.truncf %147 : vector<8x8xf32> to vector<8x8xbf16>
    %149 = vector.extract_strided_slice %48 {offsets = [0, 96], sizes = [8, 32], strides = [1, 1]} : vector<8x128xf32> to vector<8x32xf32>
    %150 = arith.truncf %149 : vector<8x32xf32> to vector<8x32xbf16>
    %cst_47 = arith.constant dense<0.000000e+00> : vector<8x32xf32>
    %151 = tpu.matmul %148, %150, %cst_47 {dimension_numbers = #tpu.dot_dimension_numbers<[1], [0], [0], [1], [0, 0, 1, 1], [], []>} : vector<8x8xbf16>, vector<8x32xbf16>, vector<8x32xf32> -> vector<8x32xf32>
    %152 = arith.truncf %151 : vector<8x32xf32> to vector<8x32xbf16>
    %153 = vector.extract_strided_slice %50 {offsets = [96, 0], sizes = [32, 128], strides = [1, 1]} : vector<128x128xbf16> to vector<32x128xbf16>
    %cst_48 = arith.constant dense<0.000000e+00> : vector<8x128xf32>
    %154 = tpu.matmul %152, %153, %cst_48 {dimension_numbers = #tpu.dot_dimension_numbers<[1], [0], [0], [1], [0, 0, 1, 1], [], []>} : vector<8x32xbf16>, vector<32x128xbf16>, vector<8x128xf32> -> vector<8x128xf32>
    %155 = arith.addf %129, %154 : vector<8x128xf32>
    %156 = arith.addf %11, %155 : vector<8x128xf32>
    %c0_49 = arith.constant 0 : index
    %c0_50 = arith.constant 0 : index
    %c0_51 = arith.constant 0 : index
    %157 = vector.load %arg14[%c0_49, %c0_50, %c0_51] : memref<1x1x128xf32, #tpu.memory_space<vmem>>, vector<1x1x128xf32>
    %158 = vector.shape_cast %157 : vector<1x1x128xf32> to vector<1x128xf32>
    %159 = vector.broadcast %158 : vector<1x128xf32> to vector<8x128xf32>
    %160 = arith.addf %156, %159 : vector<8x128xf32>
    %c0_52 = arith.constant 0 : index
    %c0_53 = arith.constant 0 : index
    %c0_54 = arith.constant 0 : index
    %161 = vector.load %arg15[%c0_52, %c0_53, %c0_54] : memref<1x1x128xf32, #tpu.memory_space<vmem>>, vector<1x1x128xf32>
    %162 = vector.shape_cast %161 : vector<1x1x128xf32> to vector<1x128xf32>
    %c0_55 = arith.constant 0 : index
    %c0_56 = arith.constant 0 : index
    %c0_57 = arith.constant 0 : index
    %163 = vector.load %arg16[%c0_55, %c0_56, %c0_57] : memref<1x1x128xf32, #tpu.memory_space<vmem>>, vector<1x1x128xf32>
    %164 = vector.shape_cast %163 : vector<1x1x128xf32> to vector<1x128xf32>
    %cst_58 = arith.constant dense<0.000000e+00> : vector<8xf32>
    %165 = vector.multi_reduction <add>, %160, %cst_58 [1] : vector<8x128xf32> to vector<8xf32>
    %166 = vector.shape_cast %165 : vector<8xf32> to vector<8x1xf32>
    %cst_59 = arith.constant 1.280000e+02 : f32
    %167 = vector.broadcast %cst_59 : f32 to vector<8x1xf32>
    %168 = arith.divf %166, %167 : vector<8x1xf32>
    %169 = vector.broadcast %168 : vector<8x1xf32> to vector<8x128xf32>
    %170 = arith.subf %160, %169 : vector<8x128xf32>
    %171 = arith.mulf %170, %170 : vector<8x128xf32>
    %cst_60 = arith.constant dense<0.000000e+00> : vector<8xf32>
    %172 = vector.multi_reduction <add>, %171, %cst_60 [1] : vector<8x128xf32> to vector<8xf32>
    %173 = vector.shape_cast %172 : vector<8xf32> to vector<8x1xf32>
    %cst_61 = arith.constant 1.280000e+02 : f32
    %174 = vector.broadcast %cst_61 : f32 to vector<8x1xf32>
    %175 = arith.divf %173, %174 : vector<8x1xf32>
    %176 = vector.broadcast %168 : vector<8x1xf32> to vector<8x128xf32>
    %177 = arith.subf %160, %176 : vector<8x128xf32>
    %cst_62 = arith.constant 9.99999974E-6 : f32
    %178 = vector.broadcast %cst_62 : f32 to vector<8x1xf32>
    %179 = arith.addf %175, %178 : vector<8x1xf32>
    %180 = math.rsqrt %179 : vector<8x1xf32>
    %181 = vector.broadcast %180 : vector<8x1xf32> to vector<8x128xf32>
    %182 = arith.mulf %177, %181 : vector<8x128xf32>
    %183 = vector.broadcast %162 : vector<1x128xf32> to vector<8x128xf32>
    %184 = arith.mulf %182, %183 : vector<8x128xf32>
    %185 = vector.broadcast %164 : vector<1x128xf32> to vector<8x128xf32>
    %186 = arith.addf %184, %185 : vector<8x128xf32>
    %c0_63 = arith.constant 0 : index
    %c0_64 = arith.constant 0 : index
    %c0_65 = arith.constant 0 : index
    %187 = vector.load %arg17[%c0_63, %c0_64, %c0_65] : memref<1x128x256xbf16, #tpu.memory_space<vmem>>, vector<1x128x256xbf16>
    %188 = vector.shape_cast %187 : vector<1x128x256xbf16> to vector<128x256xbf16>
    %189 = arith.truncf %186 : vector<8x128xf32> to vector<8x128xbf16>
    %cst_66 = arith.constant dense<0.000000e+00> : vector<8x256xf32>
    %190 = tpu.matmul %189, %188, %cst_66 {dimension_numbers = #tpu.dot_dimension_numbers<[1], [0], [0], [1], [0, 0, 1, 1], [], []>} : vector<8x128xbf16>, vector<128x256xbf16>, vector<8x256xf32> -> vector<8x256xf32>
    %c0_67 = arith.constant 0 : index
    %c0_68 = arith.constant 0 : index
    %c0_69 = arith.constant 0 : index
    %191 = vector.load %arg18[%c0_67, %c0_68, %c0_69] : memref<1x1x256xf32, #tpu.memory_space<vmem>>, vector<1x1x256xf32>
    %192 = vector.shape_cast %191 : vector<1x1x256xf32> to vector<1x256xf32>
    %193 = vector.broadcast %192 : vector<1x256xf32> to vector<8x256xf32>
    %194 = arith.addf %190, %193 : vector<8x256xf32>
    %cst_70 = arith.constant 0.000000e+00 : f32
    %195 = vector.broadcast %cst_70 : f32 to vector<8x256xf32>
    %196 = arith.maximumf %194, %195 : vector<8x256xf32>
    %c0_71 = arith.constant 0 : index
    %c0_72 = arith.constant 0 : index
    %c0_73 = arith.constant 0 : index
    %197 = vector.load %arg19[%c0_71, %c0_72, %c0_73] : memref<1x256x128xbf16, #tpu.memory_space<vmem>>, vector<1x256x128xbf16>
    %198 = vector.shape_cast %197 : vector<1x256x128xbf16> to vector<256x128xbf16>
    %199 = arith.truncf %196 : vector<8x256xf32> to vector<8x256xbf16>
    %cst_74 = arith.constant dense<0.000000e+00> : vector<8x128xf32>
    %200 = tpu.matmul %199, %198, %cst_74 {dimension_numbers = #tpu.dot_dimension_numbers<[1], [0], [0], [1], [0, 0, 1, 1], [], []>} : vector<8x256xbf16>, vector<256x128xbf16>, vector<8x128xf32> -> vector<8x128xf32>
    %201 = arith.addf %160, %200 : vector<8x128xf32>
    %c0_75 = arith.constant 0 : index
    %c0_76 = arith.constant 0 : index
    %c0_77 = arith.constant 0 : index
    %202 = vector.load %arg20[%c0_75, %c0_76, %c0_77] : memref<1x1x128xf32, #tpu.memory_space<vmem>>, vector<1x1x128xf32>
    %203 = vector.shape_cast %202 : vector<1x1x128xf32> to vector<1x128xf32>
    %204 = vector.broadcast %203 : vector<1x128xf32> to vector<8x128xf32>
    %205 = arith.addf %201, %204 : vector<8x128xf32>
    %c0_78 = arith.constant 0 : index
    %c0_79 = arith.constant 0 : index
    %206 = vector.load %arg24[%c0_78, %c0_79] : memref<8x128xf32, #tpu.memory_space<vmem>>, vector<8x128xf32>
    tpu.vector_store %arg24[%c0_78, %c0_79], %205 {strides = array<i32>} : memref<8x128xf32, #tpu.memory_space<vmem>>, vector<8x128xf32>,
    %c1_i32 = arith.constant 1 : i32
    %207 = arith.cmpi eq, %arg1, %c1_i32 : i32
    %208 = arith.extui %207 : i1 to i32
    %c0_i32_80 = arith.constant 0 : i32
    %209 = arith.cmpi ne, %208, %c0_i32_80 : i32
    scf.if %209 {
      %c0_81 = arith.constant 0 : index
      %c0_82 = arith.constant 0 : index
      %210 = vector.load %arg21[%c0_81, %c0_82] : memref<1x128xf32, #tpu.memory_space<vmem>>, vector<1x128xf32>
      %c0_83 = arith.constant 0 : index
      %c0_84 = arith.constant 0 : index
      %211 = vector.load %arg22[%c0_83, %c0_84] : memref<1x128xf32, #tpu.memory_space<vmem>>, vector<1x128xf32>
      %cst_85 = arith.constant dense<0.000000e+00> : vector<8xf32>
      %212 = vector.multi_reduction <add>, %205, %cst_85 [1] : vector<8x128xf32> to vector<8xf32>
      %213 = vector.shape_cast %212 : vector<8xf32> to vector<8x1xf32>
      %cst_86 = arith.constant 1.280000e+02 : f32
      %214 = vector.broadcast %cst_86 : f32 to vector<8x1xf32>
      %215 = arith.divf %213, %214 : vector<8x1xf32>
      %216 = vector.broadcast %215 : vector<8x1xf32> to vector<8x128xf32>
      %217 = arith.subf %205, %216 : vector<8x128xf32>
      %218 = arith.mulf %217, %217 : vector<8x128xf32>
      %cst_87 = arith.constant dense<0.000000e+00> : vector<8xf32>
      %219 = vector.multi_reduction <add>, %218, %cst_87 [1] : vector<8x128xf32> to vector<8xf32>
      %220 = vector.shape_cast %219 : vector<8xf32> to vector<8x1xf32>
      %cst_88 = arith.constant 1.280000e+02 : f32
      %221 = vector.broadcast %cst_88 : f32 to vector<8x1xf32>
      %222 = arith.divf %220, %221 : vector<8x1xf32>
      %223 = vector.broadcast %215 : vector<8x1xf32> to vector<8x128xf32>
      %224 = arith.subf %205, %223 : vector<8x128xf32>
      %cst_89 = arith.constant 9.99999974E-6 : f32
      %225 = vector.broadcast %cst_89 : f32 to vector<8x1xf32>
      %226 = arith.addf %222, %225 : vector<8x1xf32>
      %227 = math.rsqrt %226 : vector<8x1xf32>
      %228 = vector.broadcast %227 : vector<8x1xf32> to vector<8x128xf32>
      %229 = arith.mulf %224, %228 : vector<8x128xf32>
      %230 = vector.broadcast %210 : vector<1x128xf32> to vector<8x128xf32>
      %231 = arith.mulf %229, %230 : vector<8x128xf32>
      %232 = vector.broadcast %211 : vector<1x128xf32> to vector<8x128xf32>
      %233 = arith.addf %231, %232 : vector<8x128xf32>
      %c0_90 = arith.constant 0 : index
      %c0_91 = arith.constant 0 : index
      %c0_92 = arith.constant 0 : index
      %234 = vector.load %arg23[%c0_90, %c0_91, %c0_92] : memref<1x8x128xf32, #tpu.memory_space<vmem>>, vector<1x8x128xf32>
      %235 = vector.shape_cast %234 : vector<1x8x128xf32> to vector<8x128xf32>
      %236 = vector.shape_cast %233 : vector<8x128xf32> to vector<1x8x128xf32>
      tpu.vector_store %arg23[%c0_90, %c0_91, %c0_92], %236 {strides = array<i32>} : memref<1x8x128xf32, #tpu.memory_space<vmem>>, vector<1x8x128xf32>,
    } else {
    }
    return
  }
  func.func @transform_0(%arg0: i32, %arg1: i32, %arg2: memref<2xi32, #tpu.memory_space<smem>>) -> (i32, i32, i32) {
    %c0_i32 = arith.constant 0 : i32
    %c0_i32_0 = arith.constant 0 : i32
    %c0_i32_1 = arith.constant 0 : i32
    return %arg0, %c0_i32, %c0_i32_0 : i32, i32, i32
  }
  func.func @transform_1(%arg0: i32, %arg1: i32, %arg2: memref<2xi32, #tpu.memory_space<smem>>) -> (i32, i32) {
    %c0_i32 = arith.constant 0 : i32
    %c0_i32_0 = arith.constant 0 : i32
    %c0_i32_1 = arith.constant 0 : i32
    return %c0_i32, %c0_i32_0 : i32, i32
  }
  func.func @transform_2(%arg0: i32, %arg1: i32, %arg2: memref<2xi32, #tpu.memory_space<smem>>) -> (i32, i32) {
    %c0_i32 = arith.constant 0 : i32
    %c0_i32_0 = arith.constant 0 : i32
    %c0_i32_1 = arith.constant 0 : i32
    return %c0_i32, %c0_i32_0 : i32, i32
  }
  func.func @transform_3(%arg0: i32, %arg1: i32, %arg2: memref<2xi32, #tpu.memory_space<smem>>) -> (i32, i32) {
    %c0_i32 = arith.constant 0 : i32
    %c0_i32_0 = arith.constant 0 : i32
    %c0_i32_1 = arith.constant 0 : i32
    return %c0_i32, %c0_i32_0 : i32, i32
  }
  func.func @transform_4(%arg0: i32, %arg1: i32, %arg2: memref<2xi32, #tpu.memory_space<smem>>) -> (i32, i32) {
    %c0_i32 = arith.constant 0 : i32
    %c0_i32_0 = arith.constant 0 : i32
    %c0_i32_1 = arith.constant 0 : i32
    return %c0_i32, %c0_i32_0 : i32, i32
  }
  func.func @transform_5(%arg0: i32, %arg1: i32, %arg2: memref<2xi32, #tpu.memory_space<smem>>) -> (i32, i32) {
    %c0_i32 = arith.constant 0 : i32
    %c0_i32_0 = arith.constant 0 : i32
    %c0_i32_1 = arith.constant 0 : i32
    return %c0_i32, %c0_i32_0 : i32, i32
  }
  func.func @transform_6(%arg0: i32, %arg1: i32, %arg2: memref<2xi32, #tpu.memory_space<smem>>) -> (i32, i32, i32) {
    %c0_i32 = arith.constant 0 : i32
    %c0_i32_0 = arith.constant 0 : i32
    %c0_i32_1 = arith.constant 0 : i32
    return %arg1, %c0_i32, %c0_i32_0 : i32, i32, i32
  }
  func.func @transform_7(%arg0: i32, %arg1: i32, %arg2: memref<2xi32, #tpu.memory_space<smem>>) -> (i32, i32, i32) {
    %c0_i32 = arith.constant 0 : i32
    %c0_i32_0 = arith.constant 0 : i32
    %c0_i32_1 = arith.constant 0 : i32
    return %arg1, %c0_i32, %c0_i32_0 : i32, i32, i32
  }
  func.func @transform_8(%arg0: i32, %arg1: i32, %arg2: memref<2xi32, #tpu.memory_space<smem>>) -> (i32, i32, i32) {
    %c0_i32 = arith.constant 0 : i32
    %c0_i32_0 = arith.constant 0 : i32
    %c0_i32_1 = arith.constant 0 : i32
    return %arg1, %c0_i32, %c0_i32_0 : i32, i32, i32
  }
  func.func @transform_9(%arg0: i32, %arg1: i32, %arg2: memref<2xi32, #tpu.memory_space<smem>>) -> (i32, i32, i32) {
    %c0_i32 = arith.constant 0 : i32
    %c0_i32_0 = arith.constant 0 : i32
    %c0_i32_1 = arith.constant 0 : i32
    return %arg1, %c0_i32, %c0_i32_0 : i32, i32, i32
  }
  func.func @transform_10(%arg0: i32, %arg1: i32, %arg2: memref<2xi32, #tpu.memory_space<smem>>) -> (i32, i32, i32) {
    %c0_i32 = arith.constant 0 : i32
    %c0_i32_0 = arith.constant 0 : i32
    %c0_i32_1 = arith.constant 0 : i32
    return %arg1, %c0_i32, %c0_i32_0 : i32, i32, i32
  }
  func.func @transform_11(%arg0: i32, %arg1: i32, %arg2: memref<2xi32, #tpu.memory_space<smem>>) -> (i32, i32, i32) {
    %c0_i32 = arith.constant 0 : i32
    %c0_i32_0 = arith.constant 0 : i32
    %c0_i32_1 = arith.constant 0 : i32
    return %arg1, %c0_i32, %c0_i32_0 : i32, i32, i32
  }
  func.func @transform_12(%arg0: i32, %arg1: i32, %arg2: memref<2xi32, #tpu.memory_space<smem>>) -> (i32, i32, i32) {
    %c0_i32 = arith.constant 0 : i32
    %c0_i32_0 = arith.constant 0 : i32
    %c0_i32_1 = arith.constant 0 : i32
    return %arg1, %c0_i32, %c0_i32_0 : i32, i32, i32
  }
  func.func @transform_13(%arg0: i32, %arg1: i32, %arg2: memref<2xi32, #tpu.memory_space<smem>>) -> (i32, i32, i32) {
    %c0_i32 = arith.constant 0 : i32
    %c0_i32_0 = arith.constant 0 : i32
    %c0_i32_1 = arith.constant 0 : i32
    return %arg1, %c0_i32, %c0_i32_0 : i32, i32, i32
  }
  func.func @transform_14(%arg0: i32, %arg1: i32, %arg2: memref<2xi32, #tpu.memory_space<smem>>) -> (i32, i32, i32) {
    %c0_i32 = arith.constant 0 : i32
    %c0_i32_0 = arith.constant 0 : i32
    %c0_i32_1 = arith.constant 0 : i32
    return %arg1, %c0_i32, %c0_i32_0 : i32, i32, i32
  }
  func.func @transform_15(%arg0: i32, %arg1: i32, %arg2: memref<2xi32, #tpu.memory_space<smem>>) -> (i32, i32, i32) {
    %c0_i32 = arith.constant 0 : i32
    %c0_i32_0 = arith.constant 0 : i32
    %c0_i32_1 = arith.constant 0 : i32
    return %arg1, %c0_i32, %c0_i32_0 : i32, i32, i32
  }
  func.func @transform_16(%arg0: i32, %arg1: i32, %arg2: memref<2xi32, #tpu.memory_space<smem>>) -> (i32, i32, i32) {
    %c0_i32 = arith.constant 0 : i32
    %c0_i32_0 = arith.constant 0 : i32
    %c0_i32_1 = arith.constant 0 : i32
    return %arg1, %c0_i32, %c0_i32_0 : i32, i32, i32
  }
  func.func @transform_17(%arg0: i32, %arg1: i32, %arg2: memref<2xi32, #tpu.memory_space<smem>>) -> (i32, i32, i32) {
    %c0_i32 = arith.constant 0 : i32
    %c0_i32_0 = arith.constant 0 : i32
    %c0_i32_1 = arith.constant 0 : i32
    return %arg1, %c0_i32, %c0_i32_0 : i32, i32, i32
  }
  func.func @transform_18(%arg0: i32, %arg1: i32, %arg2: memref<2xi32, #tpu.memory_space<smem>>) -> (i32, i32) {
    %c0_i32 = arith.constant 0 : i32
    %c0_i32_0 = arith.constant 0 : i32
    %c0_i32_1 = arith.constant 0 : i32
    return %c0_i32, %c0_i32_0 : i32, i32
  }
  func.func @transform_19(%arg0: i32, %arg1: i32, %arg2: memref<2xi32, #tpu.memory_space<smem>>) -> (i32, i32) {
    %c0_i32 = arith.constant 0 : i32
    %c0_i32_0 = arith.constant 0 : i32
    %c0_i32_1 = arith.constant 0 : i32
    return %c0_i32, %c0_i32_0 : i32, i32
  }
  func.func @transform_20(%arg0: i32, %arg1: i32, %arg2: memref<2xi32, #tpu.memory_space<smem>>) -> (i32, i32, i32) {
    %c0_i32 = arith.constant 0 : i32
    %c0_i32_0 = arith.constant 0 : i32
    %c0_i32_1 = arith.constant 0 : i32
    return %arg0, %c0_i32, %c0_i32_0 : i32, i32, i32
  }
}

module attributes {stable_mosaic.version = 11 : i64} {
  func.func @_dec_stack_kernel(%arg0: i32, %arg1: i32, %arg2: memref<2xi32, #tpu.memory_space<smem>>, %arg3: memref<1x6x128xf32, #tpu.memory_space<vmem>>, %arg4: memref<1x8x128xf32, #tpu.memory_space<vmem>>, %arg5: memref<1x6x6xf32, #tpu.memory_space<vmem>>, %arg6: memref<1x1x128xf32, #tpu.memory_space<vmem>>, %arg7: memref<1x1x128xf32, #tpu.memory_space<vmem>>, %arg8: memref<1x128x384xbf16, #tpu.memory_space<vmem>>, %arg9: memref<1x1x384xf32, #tpu.memory_space<vmem>>, %arg10: memref<1x128x128xbf16, #tpu.memory_space<vmem>>, %arg11: memref<1x1x128xf32, #tpu.memory_space<vmem>>, %arg12: memref<1x1x128xf32, #tpu.memory_space<vmem>>, %arg13: memref<1x1x128xf32, #tpu.memory_space<vmem>>, %arg14: memref<1x128x128xbf16, #tpu.memory_space<vmem>>, %arg15: memref<1x1x128xf32, #tpu.memory_space<vmem>>, %arg16: memref<1x128x256xbf16, #tpu.memory_space<vmem>>, %arg17: memref<1x1x256xf32, #tpu.memory_space<vmem>>, %arg18: memref<1x128x128xbf16, #tpu.memory_space<vmem>>, %arg19: memref<1x1x128xf32, #tpu.memory_space<vmem>>, %arg20: memref<1x1x128xf32, #tpu.memory_space<vmem>>, %arg21: memref<1x1x128xf32, #tpu.memory_space<vmem>>, %arg22: memref<1x128x256xbf16, #tpu.memory_space<vmem>>, %arg23: memref<1x1x256xf32, #tpu.memory_space<vmem>>, %arg24: memref<1x256x128xbf16, #tpu.memory_space<vmem>>, %arg25: memref<1x1x128xf32, #tpu.memory_space<vmem>>, %arg26: memref<1x128xf32, #tpu.memory_space<vmem>>, %arg27: memref<1x128xf32, #tpu.memory_space<vmem>>, %arg28: memref<128x128xbf16, #tpu.memory_space<vmem>>, %arg29: memref<1x128xf32, #tpu.memory_space<vmem>>, %arg30: memref<1x6x128xf32, #tpu.memory_space<vmem>>, %arg31: memref<6x128xf32, #tpu.memory_space<vmem>>) attributes {dimension_semantics = [#tpu.dimension_semantics<parallel>, #tpu.dimension_semantics<arbitrary>], iteration_bounds = array<i64: 2, 2>, scalar_prefetch = 1 : i64, scratch_operands = 1 : i64, tpu.core_type = #tpu.core_type<tc>, window_params = [{transform_indices = @transform_0, window_bounds = array<i64: 1, 6, 128>}, {transform_indices = @transform_1, window_bounds = array<i64: 1, 8, 128>}, {transform_indices = @transform_2, window_bounds = array<i64: 1, 6, 6>}, {transform_indices = @transform_3, window_bounds = array<i64: 1, 1, 128>}, {transform_indices = @transform_4, window_bounds = array<i64: 1, 1, 128>}, {transform_indices = @transform_5, window_bounds = array<i64: 1, 128, 384>}, {transform_indices = @transform_6, window_bounds = array<i64: 1, 1, 384>}, {transform_indices = @transform_7, window_bounds = array<i64: 1, 128, 128>}, {transform_indices = @transform_8, window_bounds = array<i64: 1, 1, 128>}, {transform_indices = @transform_9, window_bounds = array<i64: 1, 1, 128>}, {transform_indices = @transform_10, window_bounds = array<i64: 1, 1, 128>}, {transform_indices = @transform_11, window_bounds = array<i64: 1, 128, 128>}, {transform_indices = @transform_12, window_bounds = array<i64: 1, 1, 128>}, {transform_indices = @transform_13, window_bounds = array<i64: 1, 128, 256>}, {transform_indices = @transform_14, window_bounds = array<i64: 1, 1, 256>}, {transform_indices = @transform_15, window_bounds = array<i64: 1, 128, 128>}, {transform_indices = @transform_16, window_bounds = array<i64: 1, 1, 128>}, {transform_indices = @transform_17, window_bounds = array<i64: 1, 1, 128>}, {transform_indices = @transform_18, window_bounds = array<i64: 1, 1, 128>}, {transform_indices = @transform_19, window_bounds = array<i64: 1, 128, 256>}, {transform_indices = @transform_20, window_bounds = array<i64: 1, 1, 256>}, {transform_indices = @transform_21, window_bounds = array<i64: 1, 256, 128>}, {transform_indices = @transform_22, window_bounds = array<i64: 1, 1, 128>}, {pipeline_mode = #tpu.pipeline_mode<synchronous>, transform_indices = @transform_23, window_bounds = array<i64: 1, 128>}, {pipeline_mode = #tpu.pipeline_mode<synchronous>, transform_indices = @transform_24, window_bounds = array<i64: 1, 128>}, {pipeline_mode = #tpu.pipeline_mode<synchronous>, transform_indices = @transform_25, window_bounds = array<i64: 128, 128>}, {pipeline_mode = #tpu.pipeline_mode<synchronous>, transform_indices = @transform_26, window_bounds = array<i64: 1, 128>}, {transform_indices = @transform_27, window_bounds = array<i64: 1, 6, 128>}]} {
    %0 = arith.index_cast %arg0 : i32 to index
    %1 = memref.load %arg2[%0] : memref<2xi32, #tpu.memory_space<smem>>
    %2 = tpu.iota {dimensions = array<i32: 1>} : vector<1x8xi32>
    %3 = vector.broadcast %1 : i32 to vector<1x8xi32>
    %4 = arith.cmpi slt, %2, %3 : vector<1x8xi32>
    %cst = arith.constant 0.000000e+00 : f32
    %cst_0 = arith.constant -1.000000e+09 : f32
    %5 = vector.broadcast %cst : f32 to vector<1x8xf32>
    %6 = vector.broadcast %cst_0 : f32 to vector<1x8xf32>
    %7 = arith.select %4, %5, %6 : vector<1x8xi1>, vector<1x8xf32>
    %c0 = arith.constant 0 : index
    %c0_1 = arith.constant 0 : index
    %c0_2 = arith.constant 0 : index
    %8 = vector.load %arg5[%c0, %c0_1, %c0_2] : memref<1x6x6xf32, #tpu.memory_space<vmem>>, vector<1x6x6xf32>
    %9 = vector.shape_cast %8 : vector<1x6x6xf32> to vector<6x6xf32>
    %c0_i32 = arith.constant 0 : i32
    %10 = arith.cmpi eq, %arg1, %c0_i32 : i32
    %11 = arith.extui %10 : i1 to i32
    %c0_i32_3 = arith.constant 0 : i32
    %12 = arith.cmpi ne, %11, %c0_i32_3 : i32
    scf.if %12 {
      %c0_143 = arith.constant 0 : index
      %c0_144 = arith.constant 0 : index
      %c0_145 = arith.constant 0 : index
      %366 = vector.load %arg3[%c0_143, %c0_144, %c0_145] : memref<1x6x128xf32, #tpu.memory_space<vmem>>, vector<1x6x128xf32>
      %367 = vector.shape_cast %366 : vector<1x6x128xf32> to vector<6x128xf32>
      %c0_146 = arith.constant 0 : index
      %c0_147 = arith.constant 0 : index
      %368 = vector.load %arg31[%c0_146, %c0_147] : memref<6x128xf32, #tpu.memory_space<vmem>>, vector<6x128xf32>
      tpu.vector_store %arg31[%c0_146, %c0_147], %367 {strides = array<i32>} : memref<6x128xf32, #tpu.memory_space<vmem>>, vector<6x128xf32>,
    } else {
    }
    %c0_4 = arith.constant 0 : index
    %c0_5 = arith.constant 0 : index
    %13 = vector.load %arg31[%c0_4, %c0_5] : memref<6x128xf32, #tpu.memory_space<vmem>>, vector<6x128xf32>
    %c0_6 = arith.constant 0 : index
    %c0_7 = arith.constant 0 : index
    %c0_8 = arith.constant 0 : index
    %14 = vector.load %arg4[%c0_6, %c0_7, %c0_8] : memref<1x8x128xf32, #tpu.memory_space<vmem>>, vector<1x8x128xf32>
    %15 = vector.shape_cast %14 : vector<1x8x128xf32> to vector<8x128xf32>
    %c0_9 = arith.constant 0 : index
    %c0_10 = arith.constant 0 : index
    %c0_11 = arith.constant 0 : index
    %16 = vector.load %arg6[%c0_9, %c0_10, %c0_11] : memref<1x1x128xf32, #tpu.memory_space<vmem>>, vector<1x1x128xf32>
    %17 = vector.shape_cast %16 : vector<1x1x128xf32> to vector<1x128xf32>
    %c0_12 = arith.constant 0 : index
    %c0_13 = arith.constant 0 : index
    %c0_14 = arith.constant 0 : index
    %18 = vector.load %arg7[%c0_12, %c0_13, %c0_14] : memref<1x1x128xf32, #tpu.memory_space<vmem>>, vector<1x1x128xf32>
    %19 = vector.shape_cast %18 : vector<1x1x128xf32> to vector<1x128xf32>
    %cst_15 = arith.constant dense<0.000000e+00> : vector<6xf32>
    %20 = vector.multi_reduction <add>, %13, %cst_15 [1] : vector<6x128xf32> to vector<6xf32>
    %21 = vector.shape_cast %20 : vector<6xf32> to vector<6x1xf32>
    %cst_16 = arith.constant 1.280000e+02 : f32
    %22 = vector.broadcast %cst_16 : f32 to vector<6x1xf32>
    %23 = arith.divf %21, %22 : vector<6x1xf32>
    %24 = vector.broadcast %23 : vector<6x1xf32> to vector<6x128xf32>
    %25 = arith.subf %13, %24 : vector<6x128xf32>
    %26 = arith.mulf %25, %25 : vector<6x128xf32>
    %cst_17 = arith.constant dense<0.000000e+00> : vector<6xf32>
    %27 = vector.multi_reduction <add>, %26, %cst_17 [1] : vector<6x128xf32> to vector<6xf32>
    %28 = vector.shape_cast %27 : vector<6xf32> to vector<6x1xf32>
    %cst_18 = arith.constant 1.280000e+02 : f32
    %29 = vector.broadcast %cst_18 : f32 to vector<6x1xf32>
    %30 = arith.divf %28, %29 : vector<6x1xf32>
    %31 = vector.broadcast %23 : vector<6x1xf32> to vector<6x128xf32>
    %32 = arith.subf %13, %31 : vector<6x128xf32>
    %cst_19 = arith.constant 9.99999974E-6 : f32
    %33 = vector.broadcast %cst_19 : f32 to vector<6x1xf32>
    %34 = arith.addf %30, %33 : vector<6x1xf32>
    %35 = math.rsqrt %34 : vector<6x1xf32>
    %36 = vector.broadcast %35 : vector<6x1xf32> to vector<6x128xf32>
    %37 = arith.mulf %32, %36 : vector<6x128xf32>
    %38 = vector.broadcast %17 : vector<1x128xf32> to vector<6x128xf32>
    %39 = arith.mulf %37, %38 : vector<6x128xf32>
    %40 = vector.broadcast %19 : vector<1x128xf32> to vector<6x128xf32>
    %41 = arith.addf %39, %40 : vector<6x128xf32>
    %c0_20 = arith.constant 0 : index
    %c0_21 = arith.constant 0 : index
    %c0_22 = arith.constant 0 : index
    %42 = vector.load %arg8[%c0_20, %c0_21, %c0_22] : memref<1x128x384xbf16, #tpu.memory_space<vmem>>, vector<1x128x384xbf16>
    %43 = vector.shape_cast %42 : vector<1x128x384xbf16> to vector<128x384xbf16>
    %44 = arith.truncf %41 : vector<6x128xf32> to vector<6x128xbf16>
    %cst_23 = arith.constant dense<0.000000e+00> : vector<6x384xf32>
    %45 = tpu.matmul %44, %43, %cst_23 {dimension_numbers = #tpu.dot_dimension_numbers<[1], [0], [0], [1], [0, 0, 1, 1], [], []>} : vector<6x128xbf16>, vector<128x384xbf16>, vector<6x384xf32> -> vector<6x384xf32>
    %c0_24 = arith.constant 0 : index
    %c0_25 = arith.constant 0 : index
    %c0_26 = arith.constant 0 : index
    %46 = vector.load %arg9[%c0_24, %c0_25, %c0_26] : memref<1x1x384xf32, #tpu.memory_space<vmem>>, vector<1x1x384xf32>
    %47 = vector.shape_cast %46 : vector<1x1x384xf32> to vector<1x384xf32>
    %48 = vector.broadcast %47 : vector<1x384xf32> to vector<6x384xf32>
    %49 = arith.addf %45, %48 : vector<6x384xf32>
    %50 = vector.extract_strided_slice %49 {offsets = [0, 0], sizes = [6, 128], strides = [1, 1]} : vector<6x384xf32> to vector<6x128xf32>
    %51 = vector.extract_strided_slice %49 {offsets = [0, 128], sizes = [6, 128], strides = [1, 1]} : vector<6x384xf32> to vector<6x128xf32>
    %52 = vector.extract_strided_slice %49 {offsets = [0, 256], sizes = [6, 128], strides = [1, 1]} : vector<6x384xf32> to vector<6x128xf32>
    %c0_27 = arith.constant 0 : index
    %c0_28 = arith.constant 0 : index
    %c0_29 = arith.constant 0 : index
    %53 = vector.load %arg10[%c0_27, %c0_28, %c0_29] : memref<1x128x128xbf16, #tpu.memory_space<vmem>>, vector<1x128x128xbf16>
    %54 = vector.shape_cast %53 : vector<1x128x128xbf16> to vector<128x128xbf16>
    %cst_30 = arith.constant 0.000000e+00 : f32
    %55 = vector.broadcast %cst_30 : f32 to vector<6x128xf32>
    %56 = vector.extract_strided_slice %50 {offsets = [0, 0], sizes = [6, 32], strides = [1, 1]} : vector<6x128xf32> to vector<6x32xf32>
    %57 = arith.truncf %56 : vector<6x32xf32> to vector<6x32xbf16>
    %58 = vector.extract_strided_slice %51 {offsets = [0, 0], sizes = [6, 32], strides = [1, 1]} : vector<6x128xf32> to vector<6x32xf32>
    %59 = arith.truncf %58 : vector<6x32xf32> to vector<6x32xbf16>
    %cst_31 = arith.constant dense<0.000000e+00> : vector<6x6xf32>
    %60 = tpu.matmul %57, %59, %cst_31 {dimension_numbers = #tpu.dot_dimension_numbers<[1], [1], [0], [0], [0, 0, 1, 0], [], []>} : vector<6x32xbf16>, vector<6x32xbf16>, vector<6x6xf32> -> vector<6x6xf32>
    %cst_32 = arith.constant 0.176776692 : f32
    %61 = vector.broadcast %cst_32 : f32 to vector<6x6xf32>
    %62 = arith.mulf %60, %61 : vector<6x6xf32>
    %63 = arith.addf %62, %9 : vector<6x6xf32>
    %cst_33 = arith.constant dense<0xFF800000> : vector<6xf32>
    %64 = vector.multi_reduction <maximumf>, %63, %cst_33 [1] : vector<6x6xf32> to vector<6xf32>
    %65 = vector.shape_cast %64 : vector<6xf32> to vector<6x1xf32>
    %66 = vector.broadcast %65 : vector<6x1xf32> to vector<6x6xf32>
    %67 = arith.subf %63, %66 : vector<6x6xf32>
    %68 = math.exp %67 : vector<6x6xf32>
    %cst_34 = arith.constant dense<0.000000e+00> : vector<6xf32>
    %69 = vector.multi_reduction <add>, %68, %cst_34 [1] : vector<6x6xf32> to vector<6xf32>
    %70 = vector.shape_cast %69 : vector<6xf32> to vector<6x1xf32>
    %71 = vector.broadcast %70 : vector<6x1xf32> to vector<6x6xf32>
    %72 = arith.divf %68, %71 : vector<6x6xf32>
    %73 = arith.truncf %72 : vector<6x6xf32> to vector<6x6xbf16>
    %74 = vector.extract_strided_slice %52 {offsets = [0, 0], sizes = [6, 32], strides = [1, 1]} : vector<6x128xf32> to vector<6x32xf32>
    %75 = arith.truncf %74 : vector<6x32xf32> to vector<6x32xbf16>
    %cst_35 = arith.constant dense<0.000000e+00> : vector<6x32xf32>
    %76 = tpu.matmul %73, %75, %cst_35 {dimension_numbers = #tpu.dot_dimension_numbers<[1], [0], [0], [1], [0, 0, 1, 1], [], []>} : vector<6x6xbf16>, vector<6x32xbf16>, vector<6x32xf32> -> vector<6x32xf32>
    %77 = arith.truncf %76 : vector<6x32xf32> to vector<6x32xbf16>
    %78 = vector.extract_strided_slice %54 {offsets = [0, 0], sizes = [32, 128], strides = [1, 1]} : vector<128x128xbf16> to vector<32x128xbf16>
    %cst_36 = arith.constant dense<0.000000e+00> : vector<6x128xf32>
    %79 = tpu.matmul %77, %78, %cst_36 {dimension_numbers = #tpu.dot_dimension_numbers<[1], [0], [0], [1], [0, 0, 1, 1], [], []>} : vector<6x32xbf16>, vector<32x128xbf16>, vector<6x128xf32> -> vector<6x128xf32>
    %80 = arith.addf %55, %79 : vector<6x128xf32>
    %81 = vector.extract_strided_slice %50 {offsets = [0, 32], sizes = [6, 32], strides = [1, 1]} : vector<6x128xf32> to vector<6x32xf32>
    %82 = arith.truncf %81 : vector<6x32xf32> to vector<6x32xbf16>
    %83 = vector.extract_strided_slice %51 {offsets = [0, 32], sizes = [6, 32], strides = [1, 1]} : vector<6x128xf32> to vector<6x32xf32>
    %84 = arith.truncf %83 : vector<6x32xf32> to vector<6x32xbf16>
    %cst_37 = arith.constant dense<0.000000e+00> : vector<6x6xf32>
    %85 = tpu.matmul %82, %84, %cst_37 {dimension_numbers = #tpu.dot_dimension_numbers<[1], [1], [0], [0], [0, 0, 1, 0], [], []>} : vector<6x32xbf16>, vector<6x32xbf16>, vector<6x6xf32> -> vector<6x6xf32>
    %cst_38 = arith.constant 0.176776692 : f32
    %86 = vector.broadcast %cst_38 : f32 to vector<6x6xf32>
    %87 = arith.mulf %85, %86 : vector<6x6xf32>
    %88 = arith.addf %87, %9 : vector<6x6xf32>
    %cst_39 = arith.constant dense<0xFF800000> : vector<6xf32>
    %89 = vector.multi_reduction <maximumf>, %88, %cst_39 [1] : vector<6x6xf32> to vector<6xf32>
    %90 = vector.shape_cast %89 : vector<6xf32> to vector<6x1xf32>
    %91 = vector.broadcast %90 : vector<6x1xf32> to vector<6x6xf32>
    %92 = arith.subf %88, %91 : vector<6x6xf32>
    %93 = math.exp %92 : vector<6x6xf32>
    %cst_40 = arith.constant dense<0.000000e+00> : vector<6xf32>
    %94 = vector.multi_reduction <add>, %93, %cst_40 [1] : vector<6x6xf32> to vector<6xf32>
    %95 = vector.shape_cast %94 : vector<6xf32> to vector<6x1xf32>
    %96 = vector.broadcast %95 : vector<6x1xf32> to vector<6x6xf32>
    %97 = arith.divf %93, %96 : vector<6x6xf32>
    %98 = arith.truncf %97 : vector<6x6xf32> to vector<6x6xbf16>
    %99 = vector.extract_strided_slice %52 {offsets = [0, 32], sizes = [6, 32], strides = [1, 1]} : vector<6x128xf32> to vector<6x32xf32>
    %100 = arith.truncf %99 : vector<6x32xf32> to vector<6x32xbf16>
    %cst_41 = arith.constant dense<0.000000e+00> : vector<6x32xf32>
    %101 = tpu.matmul %98, %100, %cst_41 {dimension_numbers = #tpu.dot_dimension_numbers<[1], [0], [0], [1], [0, 0, 1, 1], [], []>} : vector<6x6xbf16>, vector<6x32xbf16>, vector<6x32xf32> -> vector<6x32xf32>
    %102 = arith.truncf %101 : vector<6x32xf32> to vector<6x32xbf16>
    %103 = vector.extract_strided_slice %54 {offsets = [32, 0], sizes = [32, 128], strides = [1, 1]} : vector<128x128xbf16> to vector<32x128xbf16>
    %cst_42 = arith.constant dense<0.000000e+00> : vector<6x128xf32>
    %104 = tpu.matmul %102, %103, %cst_42 {dimension_numbers = #tpu.dot_dimension_numbers<[1], [0], [0], [1], [0, 0, 1, 1], [], []>} : vector<6x32xbf16>, vector<32x128xbf16>, vector<6x128xf32> -> vector<6x128xf32>
    %105 = arith.addf %80, %104 : vector<6x128xf32>
    %106 = vector.extract_strided_slice %50 {offsets = [0, 64], sizes = [6, 32], strides = [1, 1]} : vector<6x128xf32> to vector<6x32xf32>
    %107 = arith.truncf %106 : vector<6x32xf32> to vector<6x32xbf16>
    %108 = vector.extract_strided_slice %51 {offsets = [0, 64], sizes = [6, 32], strides = [1, 1]} : vector<6x128xf32> to vector<6x32xf32>
    %109 = arith.truncf %108 : vector<6x32xf32> to vector<6x32xbf16>
    %cst_43 = arith.constant dense<0.000000e+00> : vector<6x6xf32>
    %110 = tpu.matmul %107, %109, %cst_43 {dimension_numbers = #tpu.dot_dimension_numbers<[1], [1], [0], [0], [0, 0, 1, 0], [], []>} : vector<6x32xbf16>, vector<6x32xbf16>, vector<6x6xf32> -> vector<6x6xf32>
    %cst_44 = arith.constant 0.176776692 : f32
    %111 = vector.broadcast %cst_44 : f32 to vector<6x6xf32>
    %112 = arith.mulf %110, %111 : vector<6x6xf32>
    %113 = arith.addf %112, %9 : vector<6x6xf32>
    %cst_45 = arith.constant dense<0xFF800000> : vector<6xf32>
    %114 = vector.multi_reduction <maximumf>, %113, %cst_45 [1] : vector<6x6xf32> to vector<6xf32>
    %115 = vector.shape_cast %114 : vector<6xf32> to vector<6x1xf32>
    %116 = vector.broadcast %115 : vector<6x1xf32> to vector<6x6xf32>
    %117 = arith.subf %113, %116 : vector<6x6xf32>
    %118 = math.exp %117 : vector<6x6xf32>
    %cst_46 = arith.constant dense<0.000000e+00> : vector<6xf32>
    %119 = vector.multi_reduction <add>, %118, %cst_46 [1] : vector<6x6xf32> to vector<6xf32>
    %120 = vector.shape_cast %119 : vector<6xf32> to vector<6x1xf32>
    %121 = vector.broadcast %120 : vector<6x1xf32> to vector<6x6xf32>
    %122 = arith.divf %118, %121 : vector<6x6xf32>
    %123 = arith.truncf %122 : vector<6x6xf32> to vector<6x6xbf16>
    %124 = vector.extract_strided_slice %52 {offsets = [0, 64], sizes = [6, 32], strides = [1, 1]} : vector<6x128xf32> to vector<6x32xf32>
    %125 = arith.truncf %124 : vector<6x32xf32> to vector<6x32xbf16>
    %cst_47 = arith.constant dense<0.000000e+00> : vector<6x32xf32>
    %126 = tpu.matmul %123, %125, %cst_47 {dimension_numbers = #tpu.dot_dimension_numbers<[1], [0], [0], [1], [0, 0, 1, 1], [], []>} : vector<6x6xbf16>, vector<6x32xbf16>, vector<6x32xf32> -> vector<6x32xf32>
    %127 = arith.truncf %126 : vector<6x32xf32> to vector<6x32xbf16>
    %128 = vector.extract_strided_slice %54 {offsets = [64, 0], sizes = [32, 128], strides = [1, 1]} : vector<128x128xbf16> to vector<32x128xbf16>
    %cst_48 = arith.constant dense<0.000000e+00> : vector<6x128xf32>
    %129 = tpu.matmul %127, %128, %cst_48 {dimension_numbers = #tpu.dot_dimension_numbers<[1], [0], [0], [1], [0, 0, 1, 1], [], []>} : vector<6x32xbf16>, vector<32x128xbf16>, vector<6x128xf32> -> vector<6x128xf32>
    %130 = arith.addf %105, %129 : vector<6x128xf32>
    %131 = vector.extract_strided_slice %50 {offsets = [0, 96], sizes = [6, 32], strides = [1, 1]} : vector<6x128xf32> to vector<6x32xf32>
    %132 = arith.truncf %131 : vector<6x32xf32> to vector<6x32xbf16>
    %133 = vector.extract_strided_slice %51 {offsets = [0, 96], sizes = [6, 32], strides = [1, 1]} : vector<6x128xf32> to vector<6x32xf32>
    %134 = arith.truncf %133 : vector<6x32xf32> to vector<6x32xbf16>
    %cst_49 = arith.constant dense<0.000000e+00> : vector<6x6xf32>
    %135 = tpu.matmul %132, %134, %cst_49 {dimension_numbers = #tpu.dot_dimension_numbers<[1], [1], [0], [0], [0, 0, 1, 0], [], []>} : vector<6x32xbf16>, vector<6x32xbf16>, vector<6x6xf32> -> vector<6x6xf32>
    %cst_50 = arith.constant 0.176776692 : f32
    %136 = vector.broadcast %cst_50 : f32 to vector<6x6xf32>
    %137 = arith.mulf %135, %136 : vector<6x6xf32>
    %138 = arith.addf %137, %9 : vector<6x6xf32>
    %cst_51 = arith.constant dense<0xFF800000> : vector<6xf32>
    %139 = vector.multi_reduction <maximumf>, %138, %cst_51 [1] : vector<6x6xf32> to vector<6xf32>
    %140 = vector.shape_cast %139 : vector<6xf32> to vector<6x1xf32>
    %141 = vector.broadcast %140 : vector<6x1xf32> to vector<6x6xf32>
    %142 = arith.subf %138, %141 : vector<6x6xf32>
    %143 = math.exp %142 : vector<6x6xf32>
    %cst_52 = arith.constant dense<0.000000e+00> : vector<6xf32>
    %144 = vector.multi_reduction <add>, %143, %cst_52 [1] : vector<6x6xf32> to vector<6xf32>
    %145 = vector.shape_cast %144 : vector<6xf32> to vector<6x1xf32>
    %146 = vector.broadcast %145 : vector<6x1xf32> to vector<6x6xf32>
    %147 = arith.divf %143, %146 : vector<6x6xf32>
    %148 = arith.truncf %147 : vector<6x6xf32> to vector<6x6xbf16>
    %149 = vector.extract_strided_slice %52 {offsets = [0, 96], sizes = [6, 32], strides = [1, 1]} : vector<6x128xf32> to vector<6x32xf32>
    %150 = arith.truncf %149 : vector<6x32xf32> to vector<6x32xbf16>
    %cst_53 = arith.constant dense<0.000000e+00> : vector<6x32xf32>
    %151 = tpu.matmul %148, %150, %cst_53 {dimension_numbers = #tpu.dot_dimension_numbers<[1], [0], [0], [1], [0, 0, 1, 1], [], []>} : vector<6x6xbf16>, vector<6x32xbf16>, vector<6x32xf32> -> vector<6x32xf32>
    %152 = arith.truncf %151 : vector<6x32xf32> to vector<6x32xbf16>
    %153 = vector.extract_strided_slice %54 {offsets = [96, 0], sizes = [32, 128], strides = [1, 1]} : vector<128x128xbf16> to vector<32x128xbf16>
    %cst_54 = arith.constant dense<0.000000e+00> : vector<6x128xf32>
    %154 = tpu.matmul %152, %153, %cst_54 {dimension_numbers = #tpu.dot_dimension_numbers<[1], [0], [0], [1], [0, 0, 1, 1], [], []>} : vector<6x32xbf16>, vector<32x128xbf16>, vector<6x128xf32> -> vector<6x128xf32>
    %155 = arith.addf %130, %154 : vector<6x128xf32>
    %156 = arith.addf %13, %155 : vector<6x128xf32>
    %c0_55 = arith.constant 0 : index
    %c0_56 = arith.constant 0 : index
    %c0_57 = arith.constant 0 : index
    %157 = vector.load %arg11[%c0_55, %c0_56, %c0_57] : memref<1x1x128xf32, #tpu.memory_space<vmem>>, vector<1x1x128xf32>
    %158 = vector.shape_cast %157 : vector<1x1x128xf32> to vector<1x128xf32>
    %159 = vector.broadcast %158 : vector<1x128xf32> to vector<6x128xf32>
    %160 = arith.addf %156, %159 : vector<6x128xf32>
    %c0_58 = arith.constant 0 : index
    %c0_59 = arith.constant 0 : index
    %c0_60 = arith.constant 0 : index
    %161 = vector.load %arg12[%c0_58, %c0_59, %c0_60] : memref<1x1x128xf32, #tpu.memory_space<vmem>>, vector<1x1x128xf32>
    %162 = vector.shape_cast %161 : vector<1x1x128xf32> to vector<1x128xf32>
    %c0_61 = arith.constant 0 : index
    %c0_62 = arith.constant 0 : index
    %c0_63 = arith.constant 0 : index
    %163 = vector.load %arg13[%c0_61, %c0_62, %c0_63] : memref<1x1x128xf32, #tpu.memory_space<vmem>>, vector<1x1x128xf32>
    %164 = vector.shape_cast %163 : vector<1x1x128xf32> to vector<1x128xf32>
    %cst_64 = arith.constant dense<0.000000e+00> : vector<6xf32>
    %165 = vector.multi_reduction <add>, %160, %cst_64 [1] : vector<6x128xf32> to vector<6xf32>
    %166 = vector.shape_cast %165 : vector<6xf32> to vector<6x1xf32>
    %cst_65 = arith.constant 1.280000e+02 : f32
    %167 = vector.broadcast %cst_65 : f32 to vector<6x1xf32>
    %168 = arith.divf %166, %167 : vector<6x1xf32>
    %169 = vector.broadcast %168 : vector<6x1xf32> to vector<6x128xf32>
    %170 = arith.subf %160, %169 : vector<6x128xf32>
    %171 = arith.mulf %170, %170 : vector<6x128xf32>
    %cst_66 = arith.constant dense<0.000000e+00> : vector<6xf32>
    %172 = vector.multi_reduction <add>, %171, %cst_66 [1] : vector<6x128xf32> to vector<6xf32>
    %173 = vector.shape_cast %172 : vector<6xf32> to vector<6x1xf32>
    %cst_67 = arith.constant 1.280000e+02 : f32
    %174 = vector.broadcast %cst_67 : f32 to vector<6x1xf32>
    %175 = arith.divf %173, %174 : vector<6x1xf32>
    %176 = vector.broadcast %168 : vector<6x1xf32> to vector<6x128xf32>
    %177 = arith.subf %160, %176 : vector<6x128xf32>
    %cst_68 = arith.constant 9.99999974E-6 : f32
    %178 = vector.broadcast %cst_68 : f32 to vector<6x1xf32>
    %179 = arith.addf %175, %178 : vector<6x1xf32>
    %180 = math.rsqrt %179 : vector<6x1xf32>
    %181 = vector.broadcast %180 : vector<6x1xf32> to vector<6x128xf32>
    %182 = arith.mulf %177, %181 : vector<6x128xf32>
    %183 = vector.broadcast %162 : vector<1x128xf32> to vector<6x128xf32>
    %184 = arith.mulf %182, %183 : vector<6x128xf32>
    %185 = vector.broadcast %164 : vector<1x128xf32> to vector<6x128xf32>
    %186 = arith.addf %184, %185 : vector<6x128xf32>
    %c0_69 = arith.constant 0 : index
    %c0_70 = arith.constant 0 : index
    %c0_71 = arith.constant 0 : index
    %187 = vector.load %arg14[%c0_69, %c0_70, %c0_71] : memref<1x128x128xbf16, #tpu.memory_space<vmem>>, vector<1x128x128xbf16>
    %188 = vector.shape_cast %187 : vector<1x128x128xbf16> to vector<128x128xbf16>
    %189 = arith.truncf %186 : vector<6x128xf32> to vector<6x128xbf16>
    %cst_72 = arith.constant dense<0.000000e+00> : vector<6x128xf32>
    %190 = tpu.matmul %189, %188, %cst_72 {dimension_numbers = #tpu.dot_dimension_numbers<[1], [0], [0], [1], [0, 0, 1, 1], [], []>} : vector<6x128xbf16>, vector<128x128xbf16>, vector<6x128xf32> -> vector<6x128xf32>
    %c0_73 = arith.constant 0 : index
    %c0_74 = arith.constant 0 : index
    %c0_75 = arith.constant 0 : index
    %191 = vector.load %arg15[%c0_73, %c0_74, %c0_75] : memref<1x1x128xf32, #tpu.memory_space<vmem>>, vector<1x1x128xf32>
    %192 = vector.shape_cast %191 : vector<1x1x128xf32> to vector<1x128xf32>
    %193 = vector.broadcast %192 : vector<1x128xf32> to vector<6x128xf32>
    %194 = arith.addf %190, %193 : vector<6x128xf32>
    %c0_76 = arith.constant 0 : index
    %c0_77 = arith.constant 0 : index
    %c0_78 = arith.constant 0 : index
    %195 = vector.load %arg16[%c0_76, %c0_77, %c0_78] : memref<1x128x256xbf16, #tpu.memory_space<vmem>>, vector<1x128x256xbf16>
    %196 = vector.shape_cast %195 : vector<1x128x256xbf16> to vector<128x256xbf16>
    %197 = arith.truncf %15 : vector<8x128xf32> to vector<8x128xbf16>
    %cst_79 = arith.constant dense<0.000000e+00> : vector<8x256xf32>
    %198 = tpu.matmul %197, %196, %cst_79 {dimension_numbers = #tpu.dot_dimension_numbers<[1], [0], [0], [1], [0, 0, 1, 1], [], []>} : vector<8x128xbf16>, vector<128x256xbf16>, vector<8x256xf32> -> vector<8x256xf32>
    %c0_80 = arith.constant 0 : index
    %c0_81 = arith.constant 0 : index
    %c0_82 = arith.constant 0 : index
    %199 = vector.load %arg17[%c0_80, %c0_81, %c0_82] : memref<1x1x256xf32, #tpu.memory_space<vmem>>, vector<1x1x256xf32>
    %200 = vector.shape_cast %199 : vector<1x1x256xf32> to vector<1x256xf32>
    %201 = vector.broadcast %200 : vector<1x256xf32> to vector<8x256xf32>
    %202 = arith.addf %198, %201 : vector<8x256xf32>
    %203 = vector.extract_strided_slice %202 {offsets = [0, 0], sizes = [8, 128], strides = [1, 1]} : vector<8x256xf32> to vector<8x128xf32>
    %204 = vector.extract_strided_slice %202 {offsets = [0, 128], sizes = [8, 128], strides = [1, 1]} : vector<8x256xf32> to vector<8x128xf32>
    %c0_83 = arith.constant 0 : index
    %c0_84 = arith.constant 0 : index
    %c0_85 = arith.constant 0 : index
    %205 = vector.load %arg18[%c0_83, %c0_84, %c0_85] : memref<1x128x128xbf16, #tpu.memory_space<vmem>>, vector<1x128x128xbf16>
    %206 = vector.shape_cast %205 : vector<1x128x128xbf16> to vector<128x128xbf16>
    %cst_86 = arith.constant 0.000000e+00 : f32
    %207 = vector.broadcast %cst_86 : f32 to vector<6x128xf32>
    %208 = vector.extract_strided_slice %194 {offsets = [0, 0], sizes = [6, 32], strides = [1, 1]} : vector<6x128xf32> to vector<6x32xf32>
    %209 = arith.truncf %208 : vector<6x32xf32> to vector<6x32xbf16>
    %210 = vector.extract_strided_slice %203 {offsets = [0, 0], sizes = [8, 32], strides = [1, 1]} : vector<8x128xf32> to vector<8x32xf32>
    %211 = arith.truncf %210 : vector<8x32xf32> to vector<8x32xbf16>
    %cst_87 = arith.constant dense<0.000000e+00> : vector<6x8xf32>
    %212 = tpu.matmul %209, %211, %cst_87 {dimension_numbers = #tpu.dot_dimension_numbers<[1], [1], [0], [0], [0, 0, 1, 0], [], []>} : vector<6x32xbf16>, vector<8x32xbf16>, vector<6x8xf32> -> vector<6x8xf32>
    %cst_88 = arith.constant 0.176776692 : f32
    %213 = vector.broadcast %cst_88 : f32 to vector<6x8xf32>
    %214 = arith.mulf %212, %213 : vector<6x8xf32>
    %215 = vector.broadcast %7 : vector<1x8xf32> to vector<6x8xf32>
    %216 = arith.addf %214, %215 : vector<6x8xf32>
    %cst_89 = arith.constant dense<0xFF800000> : vector<6xf32>
    %217 = vector.multi_reduction <maximumf>, %216, %cst_89 [1] : vector<6x8xf32> to vector<6xf32>
    %218 = vector.shape_cast %217 : vector<6xf32> to vector<6x1xf32>
    %219 = vector.broadcast %218 : vector<6x1xf32> to vector<6x8xf32>
    %220 = arith.subf %216, %219 : vector<6x8xf32>
    %221 = math.exp %220 : vector<6x8xf32>
    %cst_90 = arith.constant dense<0.000000e+00> : vector<6xf32>
    %222 = vector.multi_reduction <add>, %221, %cst_90 [1] : vector<6x8xf32> to vector<6xf32>
    %223 = vector.shape_cast %222 : vector<6xf32> to vector<6x1xf32>
    %224 = vector.broadcast %223 : vector<6x1xf32> to vector<6x8xf32>
    %225 = arith.divf %221, %224 : vector<6x8xf32>
    %226 = arith.truncf %225 : vector<6x8xf32> to vector<6x8xbf16>
    %227 = vector.extract_strided_slice %204 {offsets = [0, 0], sizes = [8, 32], strides = [1, 1]} : vector<8x128xf32> to vector<8x32xf32>
    %228 = arith.truncf %227 : vector<8x32xf32> to vector<8x32xbf16>
    %cst_91 = arith.constant dense<0.000000e+00> : vector<6x32xf32>
    %229 = tpu.matmul %226, %228, %cst_91 {dimension_numbers = #tpu.dot_dimension_numbers<[1], [0], [0], [1], [0, 0, 1, 1], [], []>} : vector<6x8xbf16>, vector<8x32xbf16>, vector<6x32xf32> -> vector<6x32xf32>
    %230 = arith.truncf %229 : vector<6x32xf32> to vector<6x32xbf16>
    %231 = vector.extract_strided_slice %206 {offsets = [0, 0], sizes = [32, 128], strides = [1, 1]} : vector<128x128xbf16> to vector<32x128xbf16>
    %cst_92 = arith.constant dense<0.000000e+00> : vector<6x128xf32>
    %232 = tpu.matmul %230, %231, %cst_92 {dimension_numbers = #tpu.dot_dimension_numbers<[1], [0], [0], [1], [0, 0, 1, 1], [], []>} : vector<6x32xbf16>, vector<32x128xbf16>, vector<6x128xf32> -> vector<6x128xf32>
    %233 = arith.addf %207, %232 : vector<6x128xf32>
    %234 = vector.extract_strided_slice %194 {offsets = [0, 32], sizes = [6, 32], strides = [1, 1]} : vector<6x128xf32> to vector<6x32xf32>
    %235 = arith.truncf %234 : vector<6x32xf32> to vector<6x32xbf16>
    %236 = vector.extract_strided_slice %203 {offsets = [0, 32], sizes = [8, 32], strides = [1, 1]} : vector<8x128xf32> to vector<8x32xf32>
    %237 = arith.truncf %236 : vector<8x32xf32> to vector<8x32xbf16>
    %cst_93 = arith.constant dense<0.000000e+00> : vector<6x8xf32>
    %238 = tpu.matmul %235, %237, %cst_93 {dimension_numbers = #tpu.dot_dimension_numbers<[1], [1], [0], [0], [0, 0, 1, 0], [], []>} : vector<6x32xbf16>, vector<8x32xbf16>, vector<6x8xf32> -> vector<6x8xf32>
    %cst_94 = arith.constant 0.176776692 : f32
    %239 = vector.broadcast %cst_94 : f32 to vector<6x8xf32>
    %240 = arith.mulf %238, %239 : vector<6x8xf32>
    %241 = vector.broadcast %7 : vector<1x8xf32> to vector<6x8xf32>
    %242 = arith.addf %240, %241 : vector<6x8xf32>
    %cst_95 = arith.constant dense<0xFF800000> : vector<6xf32>
    %243 = vector.multi_reduction <maximumf>, %242, %cst_95 [1] : vector<6x8xf32> to vector<6xf32>
    %244 = vector.shape_cast %243 : vector<6xf32> to vector<6x1xf32>
    %245 = vector.broadcast %244 : vector<6x1xf32> to vector<6x8xf32>
    %246 = arith.subf %242, %245 : vector<6x8xf32>
    %247 = math.exp %246 : vector<6x8xf32>
    %cst_96 = arith.constant dense<0.000000e+00> : vector<6xf32>
    %248 = vector.multi_reduction <add>, %247, %cst_96 [1] : vector<6x8xf32> to vector<6xf32>
    %249 = vector.shape_cast %248 : vector<6xf32> to vector<6x1xf32>
    %250 = vector.broadcast %249 : vector<6x1xf32> to vector<6x8xf32>
    %251 = arith.divf %247, %250 : vector<6x8xf32>
    %252 = arith.truncf %251 : vector<6x8xf32> to vector<6x8xbf16>
    %253 = vector.extract_strided_slice %204 {offsets = [0, 32], sizes = [8, 32], strides = [1, 1]} : vector<8x128xf32> to vector<8x32xf32>
    %254 = arith.truncf %253 : vector<8x32xf32> to vector<8x32xbf16>
    %cst_97 = arith.constant dense<0.000000e+00> : vector<6x32xf32>
    %255 = tpu.matmul %252, %254, %cst_97 {dimension_numbers = #tpu.dot_dimension_numbers<[1], [0], [0], [1], [0, 0, 1, 1], [], []>} : vector<6x8xbf16>, vector<8x32xbf16>, vector<6x32xf32> -> vector<6x32xf32>
    %256 = arith.truncf %255 : vector<6x32xf32> to vector<6x32xbf16>
    %257 = vector.extract_strided_slice %206 {offsets = [32, 0], sizes = [32, 128], strides = [1, 1]} : vector<128x128xbf16> to vector<32x128xbf16>
    %cst_98 = arith.constant dense<0.000000e+00> : vector<6x128xf32>
    %258 = tpu.matmul %256, %257, %cst_98 {dimension_numbers = #tpu.dot_dimension_numbers<[1], [0], [0], [1], [0, 0, 1, 1], [], []>} : vector<6x32xbf16>, vector<32x128xbf16>, vector<6x128xf32> -> vector<6x128xf32>
    %259 = arith.addf %233, %258 : vector<6x128xf32>
    %260 = vector.extract_strided_slice %194 {offsets = [0, 64], sizes = [6, 32], strides = [1, 1]} : vector<6x128xf32> to vector<6x32xf32>
    %261 = arith.truncf %260 : vector<6x32xf32> to vector<6x32xbf16>
    %262 = vector.extract_strided_slice %203 {offsets = [0, 64], sizes = [8, 32], strides = [1, 1]} : vector<8x128xf32> to vector<8x32xf32>
    %263 = arith.truncf %262 : vector<8x32xf32> to vector<8x32xbf16>
    %cst_99 = arith.constant dense<0.000000e+00> : vector<6x8xf32>
    %264 = tpu.matmul %261, %263, %cst_99 {dimension_numbers = #tpu.dot_dimension_numbers<[1], [1], [0], [0], [0, 0, 1, 0], [], []>} : vector<6x32xbf16>, vector<8x32xbf16>, vector<6x8xf32> -> vector<6x8xf32>
    %cst_100 = arith.constant 0.176776692 : f32
    %265 = vector.broadcast %cst_100 : f32 to vector<6x8xf32>
    %266 = arith.mulf %264, %265 : vector<6x8xf32>
    %267 = vector.broadcast %7 : vector<1x8xf32> to vector<6x8xf32>
    %268 = arith.addf %266, %267 : vector<6x8xf32>
    %cst_101 = arith.constant dense<0xFF800000> : vector<6xf32>
    %269 = vector.multi_reduction <maximumf>, %268, %cst_101 [1] : vector<6x8xf32> to vector<6xf32>
    %270 = vector.shape_cast %269 : vector<6xf32> to vector<6x1xf32>
    %271 = vector.broadcast %270 : vector<6x1xf32> to vector<6x8xf32>
    %272 = arith.subf %268, %271 : vector<6x8xf32>
    %273 = math.exp %272 : vector<6x8xf32>
    %cst_102 = arith.constant dense<0.000000e+00> : vector<6xf32>
    %274 = vector.multi_reduction <add>, %273, %cst_102 [1] : vector<6x8xf32> to vector<6xf32>
    %275 = vector.shape_cast %274 : vector<6xf32> to vector<6x1xf32>
    %276 = vector.broadcast %275 : vector<6x1xf32> to vector<6x8xf32>
    %277 = arith.divf %273, %276 : vector<6x8xf32>
    %278 = arith.truncf %277 : vector<6x8xf32> to vector<6x8xbf16>
    %279 = vector.extract_strided_slice %204 {offsets = [0, 64], sizes = [8, 32], strides = [1, 1]} : vector<8x128xf32> to vector<8x32xf32>
    %280 = arith.truncf %279 : vector<8x32xf32> to vector<8x32xbf16>
    %cst_103 = arith.constant dense<0.000000e+00> : vector<6x32xf32>
    %281 = tpu.matmul %278, %280, %cst_103 {dimension_numbers = #tpu.dot_dimension_numbers<[1], [0], [0], [1], [0, 0, 1, 1], [], []>} : vector<6x8xbf16>, vector<8x32xbf16>, vector<6x32xf32> -> vector<6x32xf32>
    %282 = arith.truncf %281 : vector<6x32xf32> to vector<6x32xbf16>
    %283 = vector.extract_strided_slice %206 {offsets = [64, 0], sizes = [32, 128], strides = [1, 1]} : vector<128x128xbf16> to vector<32x128xbf16>
    %cst_104 = arith.constant dense<0.000000e+00> : vector<6x128xf32>
    %284 = tpu.matmul %282, %283, %cst_104 {dimension_numbers = #tpu.dot_dimension_numbers<[1], [0], [0], [1], [0, 0, 1, 1], [], []>} : vector<6x32xbf16>, vector<32x128xbf16>, vector<6x128xf32> -> vector<6x128xf32>
    %285 = arith.addf %259, %284 : vector<6x128xf32>
    %286 = vector.extract_strided_slice %194 {offsets = [0, 96], sizes = [6, 32], strides = [1, 1]} : vector<6x128xf32> to vector<6x32xf32>
    %287 = arith.truncf %286 : vector<6x32xf32> to vector<6x32xbf16>
    %288 = vector.extract_strided_slice %203 {offsets = [0, 96], sizes = [8, 32], strides = [1, 1]} : vector<8x128xf32> to vector<8x32xf32>
    %289 = arith.truncf %288 : vector<8x32xf32> to vector<8x32xbf16>
    %cst_105 = arith.constant dense<0.000000e+00> : vector<6x8xf32>
    %290 = tpu.matmul %287, %289, %cst_105 {dimension_numbers = #tpu.dot_dimension_numbers<[1], [1], [0], [0], [0, 0, 1, 0], [], []>} : vector<6x32xbf16>, vector<8x32xbf16>, vector<6x8xf32> -> vector<6x8xf32>
    %cst_106 = arith.constant 0.176776692 : f32
    %291 = vector.broadcast %cst_106 : f32 to vector<6x8xf32>
    %292 = arith.mulf %290, %291 : vector<6x8xf32>
    %293 = vector.broadcast %7 : vector<1x8xf32> to vector<6x8xf32>
    %294 = arith.addf %292, %293 : vector<6x8xf32>
    %cst_107 = arith.constant dense<0xFF800000> : vector<6xf32>
    %295 = vector.multi_reduction <maximumf>, %294, %cst_107 [1] : vector<6x8xf32> to vector<6xf32>
    %296 = vector.shape_cast %295 : vector<6xf32> to vector<6x1xf32>
    %297 = vector.broadcast %296 : vector<6x1xf32> to vector<6x8xf32>
    %298 = arith.subf %294, %297 : vector<6x8xf32>
    %299 = math.exp %298 : vector<6x8xf32>
    %cst_108 = arith.constant dense<0.000000e+00> : vector<6xf32>
    %300 = vector.multi_reduction <add>, %299, %cst_108 [1] : vector<6x8xf32> to vector<6xf32>
    %301 = vector.shape_cast %300 : vector<6xf32> to vector<6x1xf32>
    %302 = vector.broadcast %301 : vector<6x1xf32> to vector<6x8xf32>
    %303 = arith.divf %299, %302 : vector<6x8xf32>
    %304 = arith.truncf %303 : vector<6x8xf32> to vector<6x8xbf16>
    %305 = vector.extract_strided_slice %204 {offsets = [0, 96], sizes = [8, 32], strides = [1, 1]} : vector<8x128xf32> to vector<8x32xf32>
    %306 = arith.truncf %305 : vector<8x32xf32> to vector<8x32xbf16>
    %cst_109 = arith.constant dense<0.000000e+00> : vector<6x32xf32>
    %307 = tpu.matmul %304, %306, %cst_109 {dimension_numbers = #tpu.dot_dimension_numbers<[1], [0], [0], [1], [0, 0, 1, 1], [], []>} : vector<6x8xbf16>, vector<8x32xbf16>, vector<6x32xf32> -> vector<6x32xf32>
    %308 = arith.truncf %307 : vector<6x32xf32> to vector<6x32xbf16>
    %309 = vector.extract_strided_slice %206 {offsets = [96, 0], sizes = [32, 128], strides = [1, 1]} : vector<128x128xbf16> to vector<32x128xbf16>
    %cst_110 = arith.constant dense<0.000000e+00> : vector<6x128xf32>
    %310 = tpu.matmul %308, %309, %cst_110 {dimension_numbers = #tpu.dot_dimension_numbers<[1], [0], [0], [1], [0, 0, 1, 1], [], []>} : vector<6x32xbf16>, vector<32x128xbf16>, vector<6x128xf32> -> vector<6x128xf32>
    %311 = arith.addf %285, %310 : vector<6x128xf32>
    %312 = arith.addf %160, %311 : vector<6x128xf32>
    %c0_111 = arith.constant 0 : index
    %c0_112 = arith.constant 0 : index
    %c0_113 = arith.constant 0 : index
    %313 = vector.load %arg19[%c0_111, %c0_112, %c0_113] : memref<1x1x128xf32, #tpu.memory_space<vmem>>, vector<1x1x128xf32>
    %314 = vector.shape_cast %313 : vector<1x1x128xf32> to vector<1x128xf32>
    %315 = vector.broadcast %314 : vector<1x128xf32> to vector<6x128xf32>
    %316 = arith.addf %312, %315 : vector<6x128xf32>
    %c0_114 = arith.constant 0 : index
    %c0_115 = arith.constant 0 : index
    %c0_116 = arith.constant 0 : index
    %317 = vector.load %arg20[%c0_114, %c0_115, %c0_116] : memref<1x1x128xf32, #tpu.memory_space<vmem>>, vector<1x1x128xf32>
    %318 = vector.shape_cast %317 : vector<1x1x128xf32> to vector<1x128xf32>
    %c0_117 = arith.constant 0 : index
    %c0_118 = arith.constant 0 : index
    %c0_119 = arith.constant 0 : index
    %319 = vector.load %arg21[%c0_117, %c0_118, %c0_119] : memref<1x1x128xf32, #tpu.memory_space<vmem>>, vector<1x1x128xf32>
    %320 = vector.shape_cast %319 : vector<1x1x128xf32> to vector<1x128xf32>
    %cst_120 = arith.constant dense<0.000000e+00> : vector<6xf32>
    %321 = vector.multi_reduction <add>, %316, %cst_120 [1] : vector<6x128xf32> to vector<6xf32>
    %322 = vector.shape_cast %321 : vector<6xf32> to vector<6x1xf32>
    %cst_121 = arith.constant 1.280000e+02 : f32
    %323 = vector.broadcast %cst_121 : f32 to vector<6x1xf32>
    %324 = arith.divf %322, %323 : vector<6x1xf32>
    %325 = vector.broadcast %324 : vector<6x1xf32> to vector<6x128xf32>
    %326 = arith.subf %316, %325 : vector<6x128xf32>
    %327 = arith.mulf %326, %326 : vector<6x128xf32>
    %cst_122 = arith.constant dense<0.000000e+00> : vector<6xf32>
    %328 = vector.multi_reduction <add>, %327, %cst_122 [1] : vector<6x128xf32> to vector<6xf32>
    %329 = vector.shape_cast %328 : vector<6xf32> to vector<6x1xf32>
    %cst_123 = arith.constant 1.280000e+02 : f32
    %330 = vector.broadcast %cst_123 : f32 to vector<6x1xf32>
    %331 = arith.divf %329, %330 : vector<6x1xf32>
    %332 = vector.broadcast %324 : vector<6x1xf32> to vector<6x128xf32>
    %333 = arith.subf %316, %332 : vector<6x128xf32>
    %cst_124 = arith.constant 9.99999974E-6 : f32
    %334 = vector.broadcast %cst_124 : f32 to vector<6x1xf32>
    %335 = arith.addf %331, %334 : vector<6x1xf32>
    %336 = math.rsqrt %335 : vector<6x1xf32>
    %337 = vector.broadcast %336 : vector<6x1xf32> to vector<6x128xf32>
    %338 = arith.mulf %333, %337 : vector<6x128xf32>
    %339 = vector.broadcast %318 : vector<1x128xf32> to vector<6x128xf32>
    %340 = arith.mulf %338, %339 : vector<6x128xf32>
    %341 = vector.broadcast %320 : vector<1x128xf32> to vector<6x128xf32>
    %342 = arith.addf %340, %341 : vector<6x128xf32>
    %c0_125 = arith.constant 0 : index
    %c0_126 = arith.constant 0 : index
    %c0_127 = arith.constant 0 : index
    %343 = vector.load %arg22[%c0_125, %c0_126, %c0_127] : memref<1x128x256xbf16, #tpu.memory_space<vmem>>, vector<1x128x256xbf16>
    %344 = vector.shape_cast %343 : vector<1x128x256xbf16> to vector<128x256xbf16>
    %345 = arith.truncf %342 : vector<6x128xf32> to vector<6x128xbf16>
    %cst_128 = arith.constant dense<0.000000e+00> : vector<6x256xf32>
    %346 = tpu.matmul %345, %344, %cst_128 {dimension_numbers = #tpu.dot_dimension_numbers<[1], [0], [0], [1], [0, 0, 1, 1], [], []>} : vector<6x128xbf16>, vector<128x256xbf16>, vector<6x256xf32> -> vector<6x256xf32>
    %c0_129 = arith.constant 0 : index
    %c0_130 = arith.constant 0 : index
    %c0_131 = arith.constant 0 : index
    %347 = vector.load %arg23[%c0_129, %c0_130, %c0_131] : memref<1x1x256xf32, #tpu.memory_space<vmem>>, vector<1x1x256xf32>
    %348 = vector.shape_cast %347 : vector<1x1x256xf32> to vector<1x256xf32>
    %349 = vector.broadcast %348 : vector<1x256xf32> to vector<6x256xf32>
    %350 = arith.addf %346, %349 : vector<6x256xf32>
    %cst_132 = arith.constant 0.000000e+00 : f32
    %351 = vector.broadcast %cst_132 : f32 to vector<6x256xf32>
    %352 = arith.maximumf %350, %351 : vector<6x256xf32>
    %c0_133 = arith.constant 0 : index
    %c0_134 = arith.constant 0 : index
    %c0_135 = arith.constant 0 : index
    %353 = vector.load %arg24[%c0_133, %c0_134, %c0_135] : memref<1x256x128xbf16, #tpu.memory_space<vmem>>, vector<1x256x128xbf16>
    %354 = vector.shape_cast %353 : vector<1x256x128xbf16> to vector<256x128xbf16>
    %355 = arith.truncf %352 : vector<6x256xf32> to vector<6x256xbf16>
    %cst_136 = arith.constant dense<0.000000e+00> : vector<6x128xf32>
    %356 = tpu.matmul %355, %354, %cst_136 {dimension_numbers = #tpu.dot_dimension_numbers<[1], [0], [0], [1], [0, 0, 1, 1], [], []>} : vector<6x256xbf16>, vector<256x128xbf16>, vector<6x128xf32> -> vector<6x128xf32>
    %357 = arith.addf %316, %356 : vector<6x128xf32>
    %c0_137 = arith.constant 0 : index
    %c0_138 = arith.constant 0 : index
    %c0_139 = arith.constant 0 : index
    %358 = vector.load %arg25[%c0_137, %c0_138, %c0_139] : memref<1x1x128xf32, #tpu.memory_space<vmem>>, vector<1x1x128xf32>
    %359 = vector.shape_cast %358 : vector<1x1x128xf32> to vector<1x128xf32>
    %360 = vector.broadcast %359 : vector<1x128xf32> to vector<6x128xf32>
    %361 = arith.addf %357, %360 : vector<6x128xf32>
    %c0_140 = arith.constant 0 : index
    %c0_141 = arith.constant 0 : index
    %362 = vector.load %arg31[%c0_140, %c0_141] : memref<6x128xf32, #tpu.memory_space<vmem>>, vector<6x128xf32>
    tpu.vector_store %arg31[%c0_140, %c0_141], %361 {strides = array<i32>} : memref<6x128xf32, #tpu.memory_space<vmem>>, vector<6x128xf32>,
    %c1_i32 = arith.constant 1 : i32
    %363 = arith.cmpi eq, %arg1, %c1_i32 : i32
    %364 = arith.extui %363 : i1 to i32
    %c0_i32_142 = arith.constant 0 : i32
    %365 = arith.cmpi ne, %364, %c0_i32_142 : i32
    scf.if %365 {
      %c0_143 = arith.constant 0 : index
      %c0_144 = arith.constant 0 : index
      %366 = vector.load %arg26[%c0_143, %c0_144] : memref<1x128xf32, #tpu.memory_space<vmem>>, vector<1x128xf32>
      %c0_145 = arith.constant 0 : index
      %c0_146 = arith.constant 0 : index
      %367 = vector.load %arg27[%c0_145, %c0_146] : memref<1x128xf32, #tpu.memory_space<vmem>>, vector<1x128xf32>
      %cst_147 = arith.constant dense<0.000000e+00> : vector<6xf32>
      %368 = vector.multi_reduction <add>, %361, %cst_147 [1] : vector<6x128xf32> to vector<6xf32>
      %369 = vector.shape_cast %368 : vector<6xf32> to vector<6x1xf32>
      %cst_148 = arith.constant 1.280000e+02 : f32
      %370 = vector.broadcast %cst_148 : f32 to vector<6x1xf32>
      %371 = arith.divf %369, %370 : vector<6x1xf32>
      %372 = vector.broadcast %371 : vector<6x1xf32> to vector<6x128xf32>
      %373 = arith.subf %361, %372 : vector<6x128xf32>
      %374 = arith.mulf %373, %373 : vector<6x128xf32>
      %cst_149 = arith.constant dense<0.000000e+00> : vector<6xf32>
      %375 = vector.multi_reduction <add>, %374, %cst_149 [1] : vector<6x128xf32> to vector<6xf32>
      %376 = vector.shape_cast %375 : vector<6xf32> to vector<6x1xf32>
      %cst_150 = arith.constant 1.280000e+02 : f32
      %377 = vector.broadcast %cst_150 : f32 to vector<6x1xf32>
      %378 = arith.divf %376, %377 : vector<6x1xf32>
      %379 = vector.broadcast %371 : vector<6x1xf32> to vector<6x128xf32>
      %380 = arith.subf %361, %379 : vector<6x128xf32>
      %cst_151 = arith.constant 9.99999974E-6 : f32
      %381 = vector.broadcast %cst_151 : f32 to vector<6x1xf32>
      %382 = arith.addf %378, %381 : vector<6x1xf32>
      %383 = math.rsqrt %382 : vector<6x1xf32>
      %384 = vector.broadcast %383 : vector<6x1xf32> to vector<6x128xf32>
      %385 = arith.mulf %380, %384 : vector<6x128xf32>
      %386 = vector.broadcast %366 : vector<1x128xf32> to vector<6x128xf32>
      %387 = arith.mulf %385, %386 : vector<6x128xf32>
      %388 = vector.broadcast %367 : vector<1x128xf32> to vector<6x128xf32>
      %389 = arith.addf %387, %388 : vector<6x128xf32>
      %c0_152 = arith.constant 0 : index
      %c0_153 = arith.constant 0 : index
      %390 = vector.load %arg28[%c0_152, %c0_153] : memref<128x128xbf16, #tpu.memory_space<vmem>>, vector<128x128xbf16>
      %391 = arith.truncf %389 : vector<6x128xf32> to vector<6x128xbf16>
      %cst_154 = arith.constant dense<0.000000e+00> : vector<6x128xf32>
      %392 = tpu.matmul %391, %390, %cst_154 {dimension_numbers = #tpu.dot_dimension_numbers<[1], [0], [0], [1], [0, 0, 1, 1], [], []>} : vector<6x128xbf16>, vector<128x128xbf16>, vector<6x128xf32> -> vector<6x128xf32>
      %c0_155 = arith.constant 0 : index
      %c0_156 = arith.constant 0 : index
      %393 = vector.load %arg29[%c0_155, %c0_156] : memref<1x128xf32, #tpu.memory_space<vmem>>, vector<1x128xf32>
      %394 = vector.broadcast %393 : vector<1x128xf32> to vector<6x128xf32>
      %395 = arith.addf %392, %394 : vector<6x128xf32>
      %cst_157 = arith.constant dense<0xFF800000> : vector<6xf32>
      %396 = vector.multi_reduction <maximumf>, %395, %cst_157 [1] : vector<6x128xf32> to vector<6xf32>
      %397 = vector.shape_cast %396 : vector<6xf32> to vector<6x1xf32>
      %398 = vector.broadcast %397 : vector<6x1xf32> to vector<6x128xf32>
      %399 = arith.subf %395, %398 : vector<6x128xf32>
      %400 = math.exp %399 : vector<6x128xf32>
      %401 = vector.broadcast %397 : vector<6x1xf32> to vector<6x128xf32>
      %402 = arith.subf %395, %401 : vector<6x128xf32>
      %cst_158 = arith.constant dense<0.000000e+00> : vector<6xf32>
      %403 = vector.multi_reduction <add>, %400, %cst_158 [1] : vector<6x128xf32> to vector<6xf32>
      %404 = vector.shape_cast %403 : vector<6xf32> to vector<6x1xf32>
      %405 = math.log %404 : vector<6x1xf32>
      %406 = vector.broadcast %405 : vector<6x1xf32> to vector<6x128xf32>
      %407 = arith.subf %402, %406 : vector<6x128xf32>
      %c0_159 = arith.constant 0 : index
      %c0_160 = arith.constant 0 : index
      %c0_161 = arith.constant 0 : index
      %408 = vector.load %arg30[%c0_159, %c0_160, %c0_161] : memref<1x6x128xf32, #tpu.memory_space<vmem>>, vector<1x6x128xf32>
      %409 = vector.shape_cast %408 : vector<1x6x128xf32> to vector<6x128xf32>
      %410 = vector.shape_cast %407 : vector<6x128xf32> to vector<1x6x128xf32>
      tpu.vector_store %arg30[%c0_159, %c0_160, %c0_161], %410 {strides = array<i32>} : memref<1x6x128xf32, #tpu.memory_space<vmem>>, vector<1x6x128xf32>,
    } else {
    }
    return
  }
  func.func @transform_0(%arg0: i32, %arg1: i32, %arg2: memref<2xi32, #tpu.memory_space<smem>>) -> (i32, i32, i32) {
    %c0_i32 = arith.constant 0 : i32
    %c0_i32_0 = arith.constant 0 : i32
    %c0_i32_1 = arith.constant 0 : i32
    return %arg0, %c0_i32, %c0_i32_0 : i32, i32, i32
  }
  func.func @transform_1(%arg0: i32, %arg1: i32, %arg2: memref<2xi32, #tpu.memory_space<smem>>) -> (i32, i32, i32) {
    %c0_i32 = arith.constant 0 : i32
    %c0_i32_0 = arith.constant 0 : i32
    %c0_i32_1 = arith.constant 0 : i32
    return %arg0, %c0_i32, %c0_i32_0 : i32, i32, i32
  }
  func.func @transform_2(%arg0: i32, %arg1: i32, %arg2: memref<2xi32, #tpu.memory_space<smem>>) -> (i32, i32, i32) {
    %c0_i32 = arith.constant 0 : i32
    %c0_i32_0 = arith.constant 0 : i32
    %c0_i32_1 = arith.constant 0 : i32
    return %arg0, %c0_i32, %c0_i32_0 : i32, i32, i32
  }
  func.func @transform_3(%arg0: i32, %arg1: i32, %arg2: memref<2xi32, #tpu.memory_space<smem>>) -> (i32, i32, i32) {
    %c0_i32 = arith.constant 0 : i32
    %c0_i32_0 = arith.constant 0 : i32
    %c0_i32_1 = arith.constant 0 : i32
    return %arg1, %c0_i32, %c0_i32_0 : i32, i32, i32
  }
  func.func @transform_4(%arg0: i32, %arg1: i32, %arg2: memref<2xi32, #tpu.memory_space<smem>>) -> (i32, i32, i32) {
    %c0_i32 = arith.constant 0 : i32
    %c0_i32_0 = arith.constant 0 : i32
    %c0_i32_1 = arith.constant 0 : i32
    return %arg1, %c0_i32, %c0_i32_0 : i32, i32, i32
  }
  func.func @transform_5(%arg0: i32, %arg1: i32, %arg2: memref<2xi32, #tpu.memory_space<smem>>) -> (i32, i32, i32) {
    %c0_i32 = arith.constant 0 : i32
    %c0_i32_0 = arith.constant 0 : i32
    %c0_i32_1 = arith.constant 0 : i32
    return %arg1, %c0_i32, %c0_i32_0 : i32, i32, i32
  }
  func.func @transform_6(%arg0: i32, %arg1: i32, %arg2: memref<2xi32, #tpu.memory_space<smem>>) -> (i32, i32, i32) {
    %c0_i32 = arith.constant 0 : i32
    %c0_i32_0 = arith.constant 0 : i32
    %c0_i32_1 = arith.constant 0 : i32
    return %arg1, %c0_i32, %c0_i32_0 : i32, i32, i32
  }
  func.func @transform_7(%arg0: i32, %arg1: i32, %arg2: memref<2xi32, #tpu.memory_space<smem>>) -> (i32, i32, i32) {
    %c0_i32 = arith.constant 0 : i32
    %c0_i32_0 = arith.constant 0 : i32
    %c0_i32_1 = arith.constant 0 : i32
    return %arg1, %c0_i32, %c0_i32_0 : i32, i32, i32
  }
  func.func @transform_8(%arg0: i32, %arg1: i32, %arg2: memref<2xi32, #tpu.memory_space<smem>>) -> (i32, i32, i32) {
    %c0_i32 = arith.constant 0 : i32
    %c0_i32_0 = arith.constant 0 : i32
    %c0_i32_1 = arith.constant 0 : i32
    return %arg1, %c0_i32, %c0_i32_0 : i32, i32, i32
  }
  func.func @transform_9(%arg0: i32, %arg1: i32, %arg2: memref<2xi32, #tpu.memory_space<smem>>) -> (i32, i32, i32) {
    %c0_i32 = arith.constant 0 : i32
    %c0_i32_0 = arith.constant 0 : i32
    %c0_i32_1 = arith.constant 0 : i32
    return %arg1, %c0_i32, %c0_i32_0 : i32, i32, i32
  }
  func.func @transform_10(%arg0: i32, %arg1: i32, %arg2: memref<2xi32, #tpu.memory_space<smem>>) -> (i32, i32, i32) {
    %c0_i32 = arith.constant 0 : i32
    %c0_i32_0 = arith.constant 0 : i32
    %c0_i32_1 = arith.constant 0 : i32
    return %arg1, %c0_i32, %c0_i32_0 : i32, i32, i32
  }
  func.func @transform_11(%arg0: i32, %arg1: i32, %arg2: memref<2xi32, #tpu.memory_space<smem>>) -> (i32, i32, i32) {
    %c0_i32 = arith.constant 0 : i32
    %c0_i32_0 = arith.constant 0 : i32
    %c0_i32_1 = arith.constant 0 : i32
    return %arg1, %c0_i32, %c0_i32_0 : i32, i32, i32
  }
  func.func @transform_12(%arg0: i32, %arg1: i32, %arg2: memref<2xi32, #tpu.memory_space<smem>>) -> (i32, i32, i32) {
    %c0_i32 = arith.constant 0 : i32
    %c0_i32_0 = arith.constant 0 : i32
    %c0_i32_1 = arith.constant 0 : i32
    return %arg1, %c0_i32, %c0_i32_0 : i32, i32, i32
  }
  func.func @transform_13(%arg0: i32, %arg1: i32, %arg2: memref<2xi32, #tpu.memory_space<smem>>) -> (i32, i32, i32) {
    %c0_i32 = arith.constant 0 : i32
    %c0_i32_0 = arith.constant 0 : i32
    %c0_i32_1 = arith.constant 0 : i32
    return %arg1, %c0_i32, %c0_i32_0 : i32, i32, i32
  }
  func.func @transform_14(%arg0: i32, %arg1: i32, %arg2: memref<2xi32, #tpu.memory_space<smem>>) -> (i32, i32, i32) {
    %c0_i32 = arith.constant 0 : i32
    %c0_i32_0 = arith.constant 0 : i32
    %c0_i32_1 = arith.constant 0 : i32
    return %arg1, %c0_i32, %c0_i32_0 : i32, i32, i32
  }
  func.func @transform_15(%arg0: i32, %arg1: i32, %arg2: memref<2xi32, #tpu.memory_space<smem>>) -> (i32, i32, i32) {
    %c0_i32 = arith.constant 0 : i32
    %c0_i32_0 = arith.constant 0 : i32
    %c0_i32_1 = arith.constant 0 : i32
    return %arg1, %c0_i32, %c0_i32_0 : i32, i32, i32
  }
  func.func @transform_16(%arg0: i32, %arg1: i32, %arg2: memref<2xi32, #tpu.memory_space<smem>>) -> (i32, i32, i32) {
    %c0_i32 = arith.constant 0 : i32
    %c0_i32_0 = arith.constant 0 : i32
    %c0_i32_1 = arith.constant 0 : i32
    return %arg1, %c0_i32, %c0_i32_0 : i32, i32, i32
  }
  func.func @transform_17(%arg0: i32, %arg1: i32, %arg2: memref<2xi32, #tpu.memory_space<smem>>) -> (i32, i32, i32) {
    %c0_i32 = arith.constant 0 : i32
    %c0_i32_0 = arith.constant 0 : i32
    %c0_i32_1 = arith.constant 0 : i32
    return %arg1, %c0_i32, %c0_i32_0 : i32, i32, i32
  }
  func.func @transform_18(%arg0: i32, %arg1: i32, %arg2: memref<2xi32, #tpu.memory_space<smem>>) -> (i32, i32, i32) {
    %c0_i32 = arith.constant 0 : i32
    %c0_i32_0 = arith.constant 0 : i32
    %c0_i32_1 = arith.constant 0 : i32
    return %arg1, %c0_i32, %c0_i32_0 : i32, i32, i32
  }
  func.func @transform_19(%arg0: i32, %arg1: i32, %arg2: memref<2xi32, #tpu.memory_space<smem>>) -> (i32, i32, i32) {
    %c0_i32 = arith.constant 0 : i32
    %c0_i32_0 = arith.constant 0 : i32
    %c0_i32_1 = arith.constant 0 : i32
    return %arg1, %c0_i32, %c0_i32_0 : i32, i32, i32
  }
  func.func @transform_20(%arg0: i32, %arg1: i32, %arg2: memref<2xi32, #tpu.memory_space<smem>>) -> (i32, i32, i32) {
    %c0_i32 = arith.constant 0 : i32
    %c0_i32_0 = arith.constant 0 : i32
    %c0_i32_1 = arith.constant 0 : i32
    return %arg1, %c0_i32, %c0_i32_0 : i32, i32, i32
  }
  func.func @transform_21(%arg0: i32, %arg1: i32, %arg2: memref<2xi32, #tpu.memory_space<smem>>) -> (i32, i32, i32) {
    %c0_i32 = arith.constant 0 : i32
    %c0_i32_0 = arith.constant 0 : i32
    %c0_i32_1 = arith.constant 0 : i32
    return %arg1, %c0_i32, %c0_i32_0 : i32, i32, i32
  }
  func.func @transform_22(%arg0: i32, %arg1: i32, %arg2: memref<2xi32, #tpu.memory_space<smem>>) -> (i32, i32, i32) {
    %c0_i32 = arith.constant 0 : i32
    %c0_i32_0 = arith.constant 0 : i32
    %c0_i32_1 = arith.constant 0 : i32
    return %arg1, %c0_i32, %c0_i32_0 : i32, i32, i32
  }
  func.func @transform_23(%arg0: i32, %arg1: i32, %arg2: memref<2xi32, #tpu.memory_space<smem>>) -> (i32, i32) {
    %c0_i32 = arith.constant 0 : i32
    %c0_i32_0 = arith.constant 0 : i32
    %c0_i32_1 = arith.constant 0 : i32
    return %c0_i32, %c0_i32_0 : i32, i32
  }
  func.func @transform_24(%arg0: i32, %arg1: i32, %arg2: memref<2xi32, #tpu.memory_space<smem>>) -> (i32, i32) {
    %c0_i32 = arith.constant 0 : i32
    %c0_i32_0 = arith.constant 0 : i32
    %c0_i32_1 = arith.constant 0 : i32
    return %c0_i32, %c0_i32_0 : i32, i32
  }
  func.func @transform_25(%arg0: i32, %arg1: i32, %arg2: memref<2xi32, #tpu.memory_space<smem>>) -> (i32, i32) {
    %c0_i32 = arith.constant 0 : i32
    %c0_i32_0 = arith.constant 0 : i32
    %c0_i32_1 = arith.constant 0 : i32
    return %c0_i32, %c0_i32_0 : i32, i32
  }
  func.func @transform_26(%arg0: i32, %arg1: i32, %arg2: memref<2xi32, #tpu.memory_space<smem>>) -> (i32, i32) {
    %c0_i32 = arith.constant 0 : i32
    %c0_i32_0 = arith.constant 0 : i32
    %c0_i32_1 = arith.constant 0 : i32
    return %c0_i32, %c0_i32_0 : i32, i32
  }
  func.func @transform_27(%arg0: i32, %arg1: i32, %arg2: memref<2xi32, #tpu.memory_space<smem>>) -> (i32, i32, i32) {
    %c0_i32 = arith.constant 0 : i32
    %c0_i32_0 = arith.constant 0 : i32
    %c0_i32_1 = arith.constant 0 : i32
    return %arg0, %c0_i32, %c0_i32_0 : i32, i32, i32
  }
}

</mosaic_0001>

<bundles_post_ra>
// kernel: forward.3
= control target key start
LH: loop header
LB: loop body
LE: loop exit
PB: predicated region body
PF: predicated region fallthrough
CT: control target
= control target key end

     0   :  { %s4990_s0 = inlined_call_operand.vmem [shape: s32[2], index: 0, kind: input, shape index: {}]   ;;  %s4991_s1 = inlined_call_operand.hbm [shape: f32[2,8,80], index: 1, kind: input, shape index: {}]   ;;  %s4992_s2 = inlined_call_operand.hbm [shape: f32[8,128], index: 2, kind: input, shape index: {}]   ;;  %s4993_s3 = inlined_call_operand.vmem [shape: bf16[80,128], index: 3, kind: input, shape index: {}]   ;;  %s4994_s4 = inlined_call_operand.vmem [shape: f32[1,128], index: 4, kind: input, shape index: {}]   ;;  %s4995_s5 = inlined_call_operand.vmem [shape: f32[1,128], index: 5, kind: input, shape index: {}]   ;;  %s4996_s6 = inlined_call_operand.vmem [shape: f32[1,128], index: 6, kind: input, shape index: {}]   ;;  %s4997_s7 = inlined_call_operand.hbm [shape: f32[2,1,128], index: 7, kind: input, shape index: {}]   ;;  %s4998_s8 = inlined_call_operand.hbm [shape: f32[2,1,128], index: 8, kind: input, shape index: {}]   ;;  %s4999_s9 = inlined_call_operand.vmem [shape: bf16[2,128,384], index: 9, kind: input, shape index: {}]   ;;  %s5000_s10 = inlined_call_operand.hbm [shape: f32[2,1,384], index: 10, kind: input, shape index: {}]   ;;  %s5001_s11 = inlined_call_operand.hbm [shape: bf16[2,128,128], index: 11, kind: input, shape index: {}]   ;;  %s5002_s12 = inlined_call_operand.hbm [shape: f32[2,1,128], index: 12, kind: input, shape index: {}]   ;;  %s5003_s13 = inlined_call_operand.hbm [shape: f32[2,1,128], index: 13, kind: input, shape index: {}]   ;;  %s5004_s14 = inlined_call_operand.hbm [shape: f32[2,1,128], index: 14, kind: input, shape index: {}]   ;;  %s5005_s15 = inlined_call_operand.hbm [shape: bf16[2,128,256], index: 15, kind: input, shape index: {}]   ;;  %s5006_s16 = inlined_call_operand.hbm [shape: f32[2,1,256], index: 16, kind: input, shape index: {}]   ;;  %s5007_s17 = inlined_call_operand.hbm [shape: bf16[2,256,128], index: 17, kind: input, shape index: {}]   ;;  %s5008_s18 = inlined_call_operand.hbm [shape: f32[2,1,128], index: 18, kind: input, shape index: {}]   ;;  %s5009_s19 = inlined_call_operand.vmem [shape: f32[1,128], index: 19, kind: input, shape index: {}]   ;;  %s5010_s20 = inlined_call_operand.vmem [shape: f32[1,128], index: 20, kind: input, shape index: {}]   ;;  %s5011_s21 = inlined_call_operand.vmem [shape: f32[2,8,128], index: 21, kind: output, shape index: {}]  }
   0x1   :  { %5044 = sst [smem:[#allocation33_spill]] %s4990_s0 }
   0x2   :  { %5045 = sst [smem:[#allocation34_spill]] %s4991_s1  ;;  %s5066_s26 = sld [smem:[#allocation33_spill]] }
   0x3   :  { %5046 = sst [smem:[#allocation35_spill]] %s4992_s2 }
   0x4   :  { %5047 = sst [smem:[#allocation36_spill]] %s4993_s3 }
   0x5   :  { %5048 = sst [smem:[#allocation37_spill]] %s4994_s4 }
   0x6   :  { %5049 = sst [smem:[#allocation38_spill]] %s4995_s5 }
   0x7   :  { %5050 = sst [smem:[#allocation39_spill]] %s4996_s6 }
   0x8   :  { %5051 = sst [smem:[#allocation40_spill]] %s4997_s7  ;;  %s26_s6 = sshll.u32 %s5066_s26, 4  ;;  %s27_s6 = int_to_ptr.vmem [resolvable:$true] %s26_s6 }
   0x9   :  { %5052 = sst [smem:[#allocation41_spill]] %s4998_s8  ;;  %s3485_s27 = scalar_lea.vmem %s27_s6, 16 }
   0xa   :  { %5053 = sst [smem:[#allocation42_spill]] %s4999_s9  ;;  %p3486_p0 = scmp.ne.s32.totalorder %s27_s6, %s3485_s27 }
   0xb   :  { %5054 = sst [smem:[#allocation43_spill]] %s5000_s10  ;;  %p3490_p1 = scmp.lt.s32.totalorder %s27_s6, %s27_s6 }
   0xc   :  { %5055 = sst [smem:[#allocation44_spill]] %s5001_s11  ;;  %p3491_p2 = scmp.lt.s32.totalorder %s3485_s27, %s3485_s27 }
   0xd   :  { %5056 = sst [smem:[#allocation45_spill]] %s5002_s12 }
   0xe   :  { %5057 = sst [smem:[#allocation46_spill]] %s5003_s13  ;;  %p3492_p3 = por %p3491_p2, %p3490_p1 }
   0xf   :  { %5058 = sst [smem:[#allocation47_spill]] %s5004_s14 }
  0x10   :  { %5059 = sst [smem:[#allocation48_spill]] %s5005_s15  ;;  %p3493_p4 = pnand %p3492_p3, %p3486_p0 }
  0x11   :  { %5060 = sst [smem:[#allocation49_spill]] %s5006_s16 }
  0x12   :  { %5061 = sst [smem:[#allocation50_spill]] %s5007_s17 }
  0x13   :  { %5062 = sst [smem:[#allocation51_spill]] %s5008_s18 }
  0x14   :  { %5063 = sst [smem:[#allocation52_spill]] %s5009_s19 }
  0x15   :  { %5064 = sst [smem:[#allocation53_spill]] %s5010_s20 }
  0x16   :  { %5065 = sst [smem:[#allocation54_spill]] %s5011_s21 }
  0x17   :  { %3496 = shalt.err (!%p3493_p4)  }
  0x18   :  { %s3987_s3 = smov [#allocation4]  }
  0x19   :  { %29 = dma.vmem_to_smem %s27_s6, 16, %s3987_s3, [#allocation3] }
  0x1a   :  { %3929 = dma.done.wait [#allocation3], 16 }
  0x1b   :  { %3930 = vsyncadd [#allocation3], 4294967280 }
  0x1c   :  { %31 = sfence }
  0x1d   :  { %32 = vsyncpa [#allocation6], 0 }
  0x1e   :  { %34 = vsyncpa [#allocation6 + $0x1], 0 }
  0x1f   :  { %35 = vsyncpa [#allocation8], 0  ;;  %s4127_s28 = smov 0   ;;  %s4129_s29 = smov 0  }
  0x20   :  { %s4131_s0 = smov 0   ;;  %s4133_s4 = smov 0  }
  0x21   :  { %s4135_s30 = smov 0   ;;  %s4137_s5 = smov 0  }
  0x22   :  { %s4139_s22 = smov 0   ;;  %s4141_s6 = smov 0  }
  0x23   :  { %s4143_s23 = smov 0   ;;  %s4145_s1 = smov 0  }
  0x24   :  { %s4147_s24 = smov 0  }
  0x25 LB: > { %5067 = sst [smem:[#allocation24_spill]] %s3945_s28  ;;  %s50_s2 = sadd.s32 1, %s3977_s23  ;;  %s3985_s24 = sphi %s4147_s24, %s41_s24   ;;  %s3981_s1 = sphi %s4145_s1, %s5141_s1   ;;  %s3977_s23 = sphi %s4143_s23, %s5147_s23   ;;  %s3973_s6 = sphi %s4141_s6, %s5139_s6   ;;  %s3969_s22 = sphi %s4139_s22, %s5146_s22   ;;  %s3965_s5 = sphi %s4137_s5, %s5145_s5   ;;  %s3961_s30 = sphi %s4135_s30, %s5144_s30   ;;  %s3957_s4 = sphi %s4133_s4, %s5138_s4   ;;  %s3953_s0 = sphi %s4131_s0, %s5143_s0   ;;  %s3949_s29 = sphi %s4129_s29, %s5142_s29   ;;  %s3945_s28 = sphi %s4127_s28, %s5137_s28  }
  0x26   : > { %5068 = sst [smem:[#allocation25_spill]] %s3949_s29  ;;  %s53_s25 = sadd.s32 1, %s3981_s1 }
  0x27   : > { %5069 = sst [smem:[#allocation26_spill]] %s3957_s4  ;;  %p51_p5 = scmp.ge.s32.totalorder %s50_s2, 2 }
  0x28   : > { %5070 = sst [smem:[#allocation27_spill]] %s3961_s30  ;;  %s60_s26 = sadd.s32 1, %s3965_s5 }
  0x29   : > { %5071 = sst [smem:[#allocation28_spill]] %s3969_s22  ;;  %p67_p6 = scmp.ne.s32.totalorder %s3965_s5, %s3961_s30 }
  0x2a   : > { %5072 = sst [smem:[#allocation29_spill]] %s3973_s6  ;;  %p68_p7 = scmp.eq.s32.totalorder %s3985_s24, 0 }
  0x2b   : > { %5073 = sst [smem:[#allocation30_spill]] %s3981_s1  ;;  %s5149_s2 = smov (%p51_p5, %s50_s2), 0 }
  0x2c   : > { %5074 = sst [smem:[#allocation31_spill]] %s5149_s2  ;;  %s5151_s25 = smov (!%p51_p5, %s53_s25), %s3981_s1 }
  0x2d   : > { %p4191_p8 = por %p68_p7, %p67_p6  ;;  %s188_s3 = ssub.s32 %s3977_s23, %s5149_s2 }
  0x2e   : > { %p55_p9 = scmp.ge.s32.totalorder %s5151_s25, 2  ;;  %p189_p10 = scmp.eq.s32.totalorder %s188_s3, 0 }
  0x2f   : > { %s191_s20 = sadd.s32 1, %s3953_s0  ;;  %p198_p11 = scmp.ne.s32.totalorder %s3953_s0, %s3949_s29 }
  0x30   : > { %s5153_s25 = smov (%p55_p9, %s5151_s25), 0  ;;  %p3271_p0 = scmp.lt.s32.totalorder %s3985_s24, 4 }
  0x31   : > { %5076 = sst [smem:[#allocation32_spill]] %s5153_s25  ;;  %s57_s21 = ssub.s32 %s3981_s1, %s5153_s25 }
  0x32   : > { %s4203_s19 = scalar_select %p189_p10, %s3953_s0, %s191_s20  }
  0x33   : > { %p4207_p12 = por %p198_p11, %p68_p7  ;;  %p58_p13 = scmp.eq.s32.totalorder %s57_s21, 0 }
  0x34   : > { %s611_s2 = sand.u32 1, %s3985_s24   ;;  %s613_s3 = sand.u32 1, %s3965_s5  }
  0x35   : > { %s4214_s22 = scalar_select %p58_p13, %s3965_s5, %s60_s26  }
  0x36   : > { %s2887_s6 = sshll.u32 %s613_s3, 3  ;;  %s2888_s18 = sshll.u32 %s3981_s1, 7 }
  0x37   : > { %s5078_s30 = sld [smem:[#allocation34_spill]]  ;;  %s615_s20 = scalar_lea.vmem [#allocation5], %s2887_s6 }
  0x38   : > { %s622_s25 = sshll.u32 %s615_s20, 4  ;;  %p4225_p1 = pnand %p3271_p0, %p4191_p8  ;;  %s4229_s25 = int_to_ptr.vmem [resolvable:$true] %s622_s25 }
  0x39   : > { %s4232_s26 = sand.u32 1, %s3953_s0   ;;  %p4236_p2 = pnand %p3271_p0, %p4207_p12 }
  0x3a   : > { %s4240_s28 = scalar_lea.sflag [#allocation6], %s611_s2  ;;  %p3499_p4 = pneg %p4225_p1 }
  0x3d   : > { %s5079_s17 = smov %s5078_s30  ;;  %s4221_s4 = scalar_lea.hbm %s5078_s30, %s2888_s18 }
  0x3e   : > { %s5081_s18 = scalar_select %p4236_p2, 1, 0 }
  0x3f   : > { %s3497_s29 = scalar_lea.hbm %s4221_s4, 128  ;;  %s3502_s27 = scalar_lea.hbm %s5079_s17, 256 }
  0x40   : > { %p3498_p3 = scmp.ne.s32.totalorder %s4221_s4, %s3497_s29  ;;  %p3503_p7 = scmp.lt.u32.totalorder %s4221_s4, %s5079_s17 }
  0x41   : > { %p3504_p8 = scmp.lt.u32.totalorder %s3502_s27, %s3497_s29  ;;  %p3506_p10 = scmp.lt.u32.totalorder %s3497_s29, %s4221_s4 }
  0x42   : > { %p3500_p5 = pnand %p3499_p4, %p3498_p3 }
  0x43   : > { %p3505_p9 = por %p3504_p8, %p3503_p7 }
  0x44   : > { %p3501_p6 = pneg %p3500_p5 }
  0x45   : > { %p3507_p11 = por %p3506_p10, %p3505_p9 }
  0x47   : > { %p3508_p12 = pnand %p3507_p11, %p3501_p6 }
  0x49   : > { %3511 = shalt.err (!%p3508_p12)
}
  0x4a   : > { %s3512_s2 = scalar_lea.vmem %s4229_s25, 128  ;;  %s3988_s20 = smov [#allocation5]  }
  0x4b   : > { %p3513_p13 = scmp.ne.s32.totalorder %s4229_s25, %s3512_s2  ;;  %s3517_s30 = sshll.u32 %s3988_s20, 4  ;;  %s3518_s30 = int_to_ptr.vmem [resolvable:$false] %s3517_s30 }
  0x4c   : > { %s3519_s6 = scalar_lea.vmem %s3518_s30, 256  ;;  %p3520_p5 = scmp.lt.s32.totalorder %s4229_s25, %s3518_s30 }
  0x4d   : > { %p3515_p0 = pnand %p3513_p13, %p3499_p4  ;;  %p3521_p7 = scmp.lt.s32.totalorder %s3519_s6, %s3512_s2 }
  0x4f   : > { %p3516_p3 = pneg %p3515_p0  ;;  %p3522_p8 = por %p3521_p7, %p3520_p5 }
  0x51   : > { %p3523_p9 = pnand %p3522_p8, %p3516_p3 }
  0x53   : > { %3526 = shalt.err (!%p3523_p9)
}
  0x54   : > { %3236 = dma.hbm_to_vmem [thread:$0]  (!%p4225_p1), %s4221_s4, 128, %s4229_s25, %s4240_s28  }
  0x55   : > { %s4269_s29 = sshll.u32 %s3977_s23, 4  ;;  %s632_s27 = scalar_lea.vmem [#allocation9], %s4232_s26 }
  0x56   : > { %s639_s3 = sshll.u32 %s632_s27, 4  ;;  %s5082_s7 = sld [smem:[#allocation40_spill]]  ;;  %s640_s3 = int_to_ptr.vmem [resolvable:$true] %s639_s3 }
  0x57   : > { %p4282_p6 = pneg %p4236_p2 }
  0x59   : > { %s5083_s4 = scalar_select %p4282_p6, 1, 0 }
  0x5c   : > { %s4276_s2 = scalar_lea.hbm %s5082_s7, %s4269_s29  ;;  %s3532_s6 = scalar_lea.hbm %s5082_s7, 32 }
  0x5d   : > { %s3527_s21 = scalar_lea.hbm %s4276_s2, 16  ;;  %p3533_p11 = scmp.lt.u32.totalorder %s4276_s2, %s5082_s7 }
  0x5e   : > { %p3528_p4 = scmp.ne.s32.totalorder %s4276_s2, %s3527_s21  ;;  %p3534_p12 = scmp.lt.u32.totalorder %s3532_s6, %s3527_s21 }
  0x5f   : > { %p3536_p0 = scmp.lt.u32.totalorder %s3527_s21, %s4276_s2 }
  0x60   : > { %p3530_p1 = pnand %p4282_p6, %p3528_p4  ;;  %p3535_p13 = por %p3534_p12, %p3533_p11 }
  0x62   : > { %p3531_p10 = pneg %p3530_p1  ;;  %p3537_p3 = por %p3536_p0, %p3535_p13 }
  0x64   : > { %p3538_p5 = pnand %p3537_p3, %p3531_p10 }
  0x66   : > { %3541 = shalt.err (!%p3538_p5)
}
  0x67   : > { %s3542_s20 = scalar_lea.vmem %s640_s3, 16  ;;  %s3989_s17 = smov [#allocation9]  }
  0x68   : > { %p3543_p7 = scmp.ne.s32.totalorder %s640_s3, %s3542_s20  ;;  %s3547_s1 = sshll.u32 %s3989_s17, 4  ;;  %s3548_s1 = int_to_ptr.vmem [resolvable:$false] %s3547_s1 }
  0x69   : > { %s3549_s25 = scalar_lea.vmem %s3548_s1, 32  ;;  %p3550_p4 = scmp.lt.s32.totalorder %s640_s3, %s3548_s1 }
  0x6a   : > { %p3545_p8 = pnand %p3543_p7, %p4282_p6  ;;  %p3551_p1 = scmp.lt.s32.totalorder %s3549_s25, %s3542_s20 }
  0x6c   : > { %p3546_p9 = pneg %p3545_p8  ;;  %p3552_p2 = por %p3551_p1, %p3550_p4 }
  0x6e   : > { %p3553_p11 = pnand %p3552_p2, %p3546_p9 }
  0x70   : > { %3556 = shalt.err (!%p3553_p11)
}
  0x71   : > { %p5084_p12 = scmp.ne.s32.totalorder %s5081_s18, 0  ;;  %s5085_s8 = sld [smem:[#allocation41_spill]] }
  0x72   : > { %s649_s1 = scalar_lea.vmem [#allocation10], %s4232_s26  ;;  %s3198_s9 = smul.u32 48, %s3977_s23 }
  0x73   : > { %3239 = dma.hbm_to_vmem [thread:$0]  (!%p5084_p12), %s4276_s2, 16, %s640_s3, %s4240_s28  }
  0x74   : > { %s656_s6 = sshll.u32 %s649_s1, 4  ;;  %s657_s6 = int_to_ptr.vmem [resolvable:$true] %s656_s6 }
  0x77   : > { %s4306_s17 = scalar_lea.hbm %s5085_s8, %s4269_s29  ;;  %s3562_s25 = scalar_lea.hbm %s5085_s8, 32 }
  0x78   : > { %s3557_s20 = scalar_lea.hbm %s4306_s17, 16  ;;  %p3563_p0 = scmp.lt.u32.totalorder %s4306_s17, %s5085_s8 }
  0x79   : > { %p3558_p2 = scmp.ne.s32.totalorder %s4306_s17, %s3557_s20  ;;  %p3564_p3 = scmp.lt.u32.totalorder %s3562_s25, %s3557_s20 }
  0x7a   : > { %p3566_p7 = scmp.lt.u32.totalorder %s3557_s20, %s4306_s17 }
  0x7b   : > { %p3560_p10 = pnand %p3558_p2, %p4282_p6  ;;  %p3565_p5 = por %p3564_p3, %p3563_p0 }
  0x7d   : > { %p3561_p13 = pneg %p3560_p10  ;;  %p3567_p8 = por %p3566_p7, %p3565_p5 }
  0x7f   : > { %p3568_p9 = pnand %p3567_p8, %p3561_p13 }
  0x81   : > { %3571 = shalt.err (!%p3568_p9)
}
  0x82   : > { %s3572_s1 = scalar_lea.vmem %s657_s6, 16  ;;  %s3990_s27 = smov [#allocation10]  }
  0x83   : > { %p3573_p4 = scmp.ne.s32.totalorder %s657_s6, %s3572_s1  ;;  %s3577_s7 = sshll.u32 %s3990_s27, 4  ;;  %s3578_s7 = int_to_ptr.vmem [resolvable:$false] %s3577_s7 }
  0x84   : > { %s3579_s3 = scalar_lea.vmem %s3578_s7, 32  ;;  %p3580_p2 = scmp.lt.s32.totalorder %s657_s6, %s3578_s7 }
  0x85   : > { %p3575_p1 = pnand %p3573_p4, %p4282_p6  ;;  %p3581_p10 = scmp.lt.s32.totalorder %s3579_s3, %s3572_s1 }
  0x87   : > { %p3576_p11 = pneg %p3575_p1  ;;  %p3582_p12 = por %p3581_p10, %p3580_p2 }
  0x89   : > { %p3583_p0 = pnand %p3582_p12, %p3576_p11 }
  0x8b   : > { %3586 = shalt.err (!%p3583_p0)
}
  0x8c   : > { %p5086_p3 = scmp.ne.s32.totalorder %s5081_s18, 0  ;;  %s5087_s10 = sld [smem:[#allocation43_spill]] }
  0x8d   : > { %s5088_s27 = smul.u32 3, %s4232_s26  ;;  %s2892_s30 = sshll.u32 %s4232_s26, 6 }
  0x8e   : > { %3242 = dma.hbm_to_vmem [thread:$0]  (!%p5086_p3), %s4306_s17, 16, %s657_s6, %s4240_s28  }
  0x8f   : > { %s675_s7 = scalar_lea.vmem [#allocation11], %s5088_s27 }
  0x90   : > { %s683_s21 = sshll.u32 %s675_s7, 4  ;;  %s684_s21 = int_to_ptr.vmem [resolvable:$true] %s683_s21 }
  0x92   : > { %s4332_s25 = scalar_lea.hbm %s5087_s10, %s3198_s9  ;;  %s3592_s3 = scalar_lea.hbm %s5087_s10, 96 }
  0x93   : > { %s3587_s1 = scalar_lea.hbm %s4332_s25, 48  ;;  %p3593_p7 = scmp.lt.u32.totalorder %s4332_s25, %s5087_s10 }
  0x94   : > { %p3588_p12 = scmp.ne.s32.totalorder %s4332_s25, %s3587_s1  ;;  %p3594_p8 = scmp.lt.u32.totalorder %s3592_s3, %s3587_s1 }
  0x95   : > { %p3596_p4 = scmp.lt.u32.totalorder %s3587_s1, %s4332_s25 }
  0x96   : > { %p3590_p13 = pnand %p3588_p12, %p4282_p6  ;;  %p3595_p9 = por %p3594_p8, %p3593_p7 }
  0x98   : > { %p3591_p5 = pneg %p3590_p13  ;;  %p3597_p1 = por %p3596_p4, %p3595_p9 }
  0x9a   : > { %p3598_p11 = pnand %p3597_p1, %p3591_p5 }
  0x9c   : > { %3601 = shalt.err (!%p3598_p11)
}
  0x9d   : > { %s3602_s2 = scalar_lea.vmem %s684_s21, 48  ;;  %s3991_s27 = smov [#allocation11]  }
  0x9e   : > { %p3603_p2 = scmp.ne.s32.totalorder %s684_s21, %s3602_s2  ;;  %s3607_s7 = sshll.u32 %s3991_s27, 4  ;;  %s3608_s7 = int_to_ptr.vmem [resolvable:$false] %s3607_s7 }
  0x9f   : > { %s3609_s17 = scalar_lea.vmem %s3608_s7, 96  ;;  %p3610_p12 = scmp.lt.s32.totalorder %s684_s21, %s3608_s7 }
  0xa0   : > { %p3605_p10 = pnand %p3603_p2, %p4282_p6  ;;  %p3611_p13 = scmp.lt.s32.totalorder %s3609_s17, %s3602_s2 }
  0xa2   : > { %p3606_p0 = pneg %p3605_p10  ;;  %p3612_p3 = por %p3611_p13, %p3610_p12 }
  0xa4   : > { %p3613_p7 = pnand %p3612_p3, %p3606_p0 }
  0xa6   : > { %3616 = shalt.err (!%p3613_p7)
}
  0xa7   : > { %p5089_p8 = scmp.ne.s32.totalorder %s5081_s18, 0  ;;  %s3014_s1 = sshll.u32 %s3977_s23, 10 }
  0xa8   : > { %s694_s6 = scalar_lea.vmem [#allocation12], %s2892_s30  ;;  %s5090_s11 = sld [smem:[#allocation44_spill]] }
  0xa9   : > { %3245 = dma.hbm_to_vmem [thread:$0]  (!%p5089_p8), %s4332_s25, 48, %s684_s21, %s4240_s28  }
  0xaa   : > { %s701_s3 = sshll.u32 %s694_s6, 4  ;;  %s4363_s3 = int_to_ptr.vmem [resolvable:$true] %s701_s3 }
  0xae   : > { %s4361_s27 = scalar_lea.hbm %s5090_s11, %s3014_s1  ;;  %s3622_s30 = scalar_lea.hbm %s5090_s11, 2048 }
  0xaf   : > { %s3617_s2 = scalar_lea.hbm %s4361_s27, 1024  ;;  %p3623_p4 = scmp.lt.u32.totalorder %s4361_s27, %s5090_s11 }
  0xb0   : > { %p3618_p3 = scmp.ne.s32.totalorder %s4361_s27, %s3617_s2  ;;  %p3624_p1 = scmp.lt.u32.totalorder %s3622_s30, %s3617_s2 }
  0xb1   : > { %p3626_p2 = scmp.lt.u32.totalorder %s3617_s2, %s4361_s27 }
  0xb2   : > { %p3620_p5 = pnand %p3618_p3, %p4282_p6  ;;  %p3625_p11 = por %p3624_p1, %p3623_p4 }
  0xb4   : > { %p3621_p9 = pneg %p3620_p5  ;;  %p3627_p10 = por %p3626_p2, %p3625_p11 }
  0xb6   : > { %p3628_p0 = pnand %p3627_p10, %p3621_p9 }
  0xb8   : > { %3631 = shalt.err (!%p3628_p0)
}
  0xb9   : > { %s3632_s1 = scalar_lea.vmem %s4363_s3, 1024  ;;  %s3992_s6 = smov [#allocation12]  }
  0xba   : > { %p3633_p12 = scmp.ne.s32.totalorder %s4363_s3, %s3632_s1  ;;  %s3637_s9 = sshll.u32 %s3992_s6, 4  ;;  %s3638_s9 = int_to_ptr.vmem [resolvable:$false] %s3637_s9 }
  0xbb   : > { %s3639_s20 = scalar_lea.vmem %s3638_s9, 2048  ;;  %p3640_p3 = scmp.lt.s32.totalorder %s4363_s3, %s3638_s9 }
  0xbc   : > { %p3635_p13 = pnand %p3633_p12, %p4282_p6  ;;  %p3641_p5 = scmp.lt.s32.totalorder %s3639_s20, %s3632_s1 }
  0xbe   : > { %p3636_p7 = pneg %p3635_p13  ;;  %p3642_p4 = por %p3641_p5, %p3640_p3 }
  0xc0   : > { %p3643_p1 = pnand %p3642_p4, %p3636_p7 }
  0xc2   : > { %3646 = shalt.err (!%p3643_p1)
}
  0xc3   : > { %s5027_s2 = smov 64   ;;  %s5029_s25 = smov 4  }
  0xc4   : > { %3248 = dma.hbm_to_vmem [thread:$0]  (!%p5089_p8), %s4361_s27, 1024, %s4363_s3, %s4240_s28, %s5027_s2, %s5027_s2, %s5029_s25  }
  0xc5   : > { %s5091_s12 = sld [smem:[#allocation45_spill]]  ;;  %s714_s17 = scalar_lea.vmem [#allocation13], %s4232_s26 }
  0xc6   : > { %s721_s1 = sshll.u32 %s714_s17, 4  ;;  %s5092_s13 = sld [smem:[#allocation46_spill]]  ;;  %s722_s1 = int_to_ptr.vmem [resolvable:$true] %s721_s1 }
  0xcb   : > { %s4394_s7 = scalar_lea.hbm %s5091_s12, %s4269_s29  ;;  %s3652_s21 = scalar_lea.hbm %s5091_s12, 32 }
  0xcc   : > { %s4401_s20 = scalar_lea.hbm %s5092_s13, %s4269_s29  ;;  %s3647_s8 = scalar_lea.hbm %s4394_s7, 16 }
  0xcd   : > { %p3648_p9 = scmp.ne.s32.totalorder %s4394_s7, %s3647_s8  ;;  %p3653_p10 = scmp.lt.u32.totalorder %s4394_s7, %s5091_s12 }
  0xce   : > { %p3654_p0 = scmp.lt.u32.totalorder %s3652_s21, %s3647_s8  ;;  %p3656_p13 = scmp.lt.u32.totalorder %s3647_s8, %s4394_s7 }
  0xcf   : > { %p3650_p11 = pnand %p3648_p9, %p4282_p6 }
  0xd0   : > { %p3655_p12 = por %p3654_p0, %p3653_p10 }
  0xd1   : > { %p3651_p2 = pneg %p3650_p11 }
  0xd2   : > { %p3657_p7 = por %p3656_p13, %p3655_p12 }
  0xd4   : > { %p3658_p3 = pnand %p3657_p7, %p3651_p2 }
  0xd6   : > { %3661 = shalt.err (!%p3658_p3)
}
  0xd7   : > { %s3662_s17 = scalar_lea.vmem %s722_s1, 16  ;;  %s3995_s6 = smov [#allocation13]  }
  0xd8   : > { %p3663_p5 = scmp.ne.s32.totalorder %s722_s1, %s3662_s17  ;;  %s3667_s9 = sshll.u32 %s3995_s6, 4  ;;  %s3668_s9 = int_to_ptr.vmem [resolvable:$false] %s3667_s9 }
  0xd9   : > { %s3669_s3 = scalar_lea.vmem %s3668_s9, 32  ;;  %p3670_p9 = scmp.lt.s32.totalorder %s722_s1, %s3668_s9 }
  0xda   : > { %p3665_p4 = pnand %p3663_p5, %p4282_p6  ;;  %p3671_p11 = scmp.lt.s32.totalorder %s3669_s3, %s3662_s17 }
  0xdc   : > { %p3666_p1 = pneg %p3665_p4  ;;  %p3672_p8 = por %p3671_p11, %p3670_p9 }
  0xde   : > { %p3673_p0 = pnand %p3672_p8, %p3666_p1 }
  0xe0   : > { %3676 = shalt.err (!%p3673_p0)
}
  0xe1   : > { %p5093_p10 = scmp.ne.s32.totalorder %s5081_s18, 0  ;;  %s731_s8 = scalar_lea.vmem [#allocation14], %s4232_s26 }
  0xe2   : > { %s738_s2 = sshll.u32 %s731_s8, 4  ;;  %s5094_s14 = sld [smem:[#allocation47_spill]]  ;;  %s739_s2 = int_to_ptr.vmem [resolvable:$true] %s738_s2 }
  0xe3   : > { %3251 = dma.hbm_to_vmem [thread:$0]  (!%p5093_p10), %s4394_s7, 16, %s722_s1, %s4240_s28  }
  0xe4   : > { %s3677_s17 = scalar_lea.hbm %s4401_s20, 16  ;;  %s3682_s3 = scalar_lea.hbm %s5092_s13, 32 }
  0xe5   : > { %p3678_p8 = scmp.ne.s32.totalorder %s4401_s20, %s3677_s17  ;;  %p3683_p13 = scmp.lt.u32.totalorder %s4401_s20, %s5092_s13 }
  0xe6   : > { %p3684_p7 = scmp.lt.u32.totalorder %s3682_s3, %s3677_s17  ;;  %p3686_p5 = scmp.lt.u32.totalorder %s3677_s17, %s4401_s20 }
  0xe7   : > { %p3680_p2 = pnand %p3678_p8, %p4282_p6 }
  0xe8   : > { %s4426_s30 = scalar_lea.hbm %s5094_s14, %s4269_s29  ;;  %p3685_p3 = por %p3684_p7, %p3683_p13 }
  0xe9   : > { %p3681_p12 = pneg %p3680_p2 }
  0xea   : > { %p3687_p4 = por %p3686_p5, %p3685_p3 }
  0xec   : > { %p3688_p1 = pnand %p3687_p4, %p3681_p12 }
  0xee   : > { %3691 = shalt.err (!%p3688_p1)
}
  0xef   : > { %s3692_s7 = scalar_lea.vmem %s739_s2, 16  ;;  %s3996_s1 = smov [#allocation14]  }
  0xf0   : > { %p3693_p9 = scmp.ne.s32.totalorder %s739_s2, %s3692_s7  ;;  %s3697_s8 = sshll.u32 %s3996_s1, 4  ;;  %s3698_s8 = int_to_ptr.vmem [resolvable:$false] %s3697_s8 }
  0xf1   : > { %s3699_s27 = scalar_lea.vmem %s3698_s8, 32  ;;  %p3700_p8 = scmp.lt.s32.totalorder %s739_s2, %s3698_s8 }
  0xf2   : > { %p3695_p11 = pnand %p3693_p9, %p4282_p6  ;;  %p3701_p2 = scmp.lt.s32.totalorder %s3699_s27, %s3692_s7 }
  0xf4   : > { %p3696_p0 = pneg %p3695_p11  ;;  %p3702_p10 = por %p3701_p2, %p3700_p8 }
  0xf6   : > { %p3703_p7 = pnand %p3702_p10, %p3696_p0 }
  0xf8   : > { %3706 = shalt.err (!%p3703_p7)
}
  0xf9   : > { %p5095_p13 = scmp.ne.s32.totalorder %s5081_s18, 0  ;;  %s748_s10 = scalar_lea.vmem [#allocation15], %s4232_s26 }
  0xfa   : > { %s755_s25 = sshll.u32 %s748_s10, 4  ;;  %s5030_s21 = sshll.u32 %s4232_s26, 7  ;;  %s756_s25 = int_to_ptr.vmem [resolvable:$true] %s755_s25 }
  0xfb   : > { %3254 = dma.hbm_to_vmem [thread:$0]  (!%p5095_p13), %s4401_s20, 16, %s739_s2, %s4240_s28  }
  0xfc   : > { %s3707_s17 = scalar_lea.hbm %s4426_s30, 16  ;;  %s3712_s3 = scalar_lea.hbm %s5094_s14, 32 }
  0xfd   : > { %p3708_p12 = scmp.ne.s32.totalorder %s4426_s30, %s3707_s17  ;;  %p3713_p5 = scmp.lt.u32.totalorder %s4426_s30, %s5094_s14 }
  0xfe   : > { %p3714_p4 = scmp.lt.u32.totalorder %s3712_s3, %s3707_s17  ;;  %p3716_p9 = scmp.lt.u32.totalorder %s3707_s17, %s4426_s30 }
  0xff   : > { %p3710_p10 = pnand %p3708_p12, %p4282_p6 }
 0x100   : > { %p3715_p1 = por %p3714_p4, %p3713_p5 }
 0x101   : > { %p3711_p3 = pneg %p3710_p10 }
 0x102   : > { %p3717_p11 = por %p3716_p9, %p3715_p1 }
 0x104   : > { %p3718_p0 = pnand %p3717_p11, %p3711_p3 }
 0x106   : > { %3721 = shalt.err (!%p3718_p0)
}
 0x107   : > { %s3722_s20 = scalar_lea.vmem %s756_s25, 16  ;;  %s3997_s2 = smov [#allocation15]  }
 0x108   : > { %p3723_p8 = scmp.ne.s32.totalorder %s756_s25, %s3722_s20  ;;  %s3727_s8 = sshll.u32 %s3997_s2, 4  ;;  %s3728_s8 = int_to_ptr.vmem [resolvable:$false] %s3727_s8 }
 0x109   : > { %s3729_s27 = scalar_lea.vmem %s3728_s8, 32  ;;  %p3730_p12 = scmp.lt.s32.totalorder %s756_s25, %s3728_s8 }
 0x10a   : > { %p3725_p2 = pnand %p3723_p8, %p4282_p6  ;;  %p3731_p10 = scmp.lt.s32.totalorder %s3729_s27, %s3722_s20 }
 0x10c   : > { %p3726_p7 = pneg %p3725_p2  ;;  %p3732_p13 = por %p3731_p10, %p3730_p12 }
 0x10e   : > { %p3733_p4 = pnand %p3732_p13, %p3726_p7 }
 0x110   : > { %3736 = shalt.err (!%p3733_p4)
}
 0x111   : > { %p5096_p5 = scmp.ne.s32.totalorder %s5081_s18, 0  ;;  %s3015_s10 = sshll.u32 %s3977_s23, 11 }
 0x112   : > { %s766_s17 = scalar_lea.vmem [#allocation16], %s5030_s21  ;;  %s5097_s15 = sld [smem:[#allocation48_spill]] }
 0x113   : > { %3257 = dma.hbm_to_vmem [thread:$0]  (!%p5096_p5), %s4426_s30, 16, %s756_s25, %s4240_s28  }
 0x114   : > { %s773_s6 = sshll.u32 %s766_s17, 4  ;;  %s4476_s6 = int_to_ptr.vmem [resolvable:$true] %s773_s6 }
 0x118   : > { %s4474_s7 = scalar_lea.hbm %s5097_s15, %s3015_s10  ;;  %s3742_s20 = scalar_lea.hbm %s5097_s15, 4096 }
 0x119   : > { %s3737_s1 = scalar_lea.hbm %s4474_s7, 2048  ;;  %p3743_p9 = scmp.lt.u32.totalorder %s4474_s7, %s5097_s15 }
 0x11a   : > { %p3738_p13 = scmp.ne.s32.totalorder %s4474_s7, %s3737_s1  ;;  %p3744_p11 = scmp.lt.u32.totalorder %s3742_s20, %s3737_s1 }
 0x11b   : > { %p3746_p8 = scmp.lt.u32.totalorder %s3737_s1, %s4474_s7 }
 0x11c   : > { %p3740_p3 = pnand %p3738_p13, %p4282_p6  ;;  %p3745_p0 = por %p3744_p11, %p3743_p9 }
 0x11e   : > { %p3741_p1 = pneg %p3740_p3  ;;  %p3747_p2 = por %p3746_p8, %p3745_p0 }
 0x120   : > { %p3748_p7 = pnand %p3747_p2, %p3741_p1 }
 0x122   : > { %3751 = shalt.err (!%p3748_p7)
}
 0x123   : > { %s3752_s27 = scalar_lea.vmem %s4476_s6, 2048  ;;  %s3998_s17 = smov [#allocation16]  }
 0x124   : > { %p3753_p12 = scmp.ne.s32.totalorder %s4476_s6, %s3752_s27  ;;  %s3757_s9 = sshll.u32 %s3998_s17, 4  ;;  %s3758_s9 = int_to_ptr.vmem [resolvable:$false] %s3757_s9 }
 0x125   : > { %s3759_s3 = scalar_lea.vmem %s3758_s9, 4096  ;;  %p3760_p13 = scmp.lt.s32.totalorder %s4476_s6, %s3758_s9 }
 0x126   : > { %p3755_p10 = pnand %p3753_p12, %p4282_p6  ;;  %p3761_p3 = scmp.lt.s32.totalorder %s3759_s3, %s3752_s27 }
 0x128   : > { %p3756_p4 = pneg %p3755_p10  ;;  %p3762_p9 = por %p3761_p3, %p3760_p13 }
 0x12a   : > { %p3763_p11 = pnand %p3762_p9, %p3756_p4 }
 0x12c   : > { %3766 = shalt.err (!%p3763_p11)
}
 0x12d   : > { %s3999_s1 = smov 128   ;;  %s4000_s30 = smov 8  }
 0x12e   : > { %3260 = dma.hbm_to_vmem [thread:$0]  (!%p5096_p5), %s4474_s7, 2048, %s4476_s6, %s4240_s28, %s3999_s1, %s3999_s1, %s4000_s30  }
 0x12f   : > { %s2901_s25 = sshll.u32 %s4232_s26, 1  ;;  %s3016_s20 = sshll.u32 %s3977_s23, 5 }
 0x130   : > { %s5098_s16 = sld [smem:[#allocation49_spill]]  ;;  %s787_s17 = scalar_lea.vmem [#allocation17], %s2901_s25 }
 0x131   : > { %s795_s9 = sshll.u32 %s787_s17, 4  ;;  %s5099_s11 = sld [smem:[#allocation50_spill]]  ;;  %s796_s9 = int_to_ptr.vmem [resolvable:$true] %s795_s9 }
 0x136   : > { %s4505_s27 = scalar_lea.hbm %s5098_s16, %s3016_s20  ;;  %s3772_s30 = scalar_lea.hbm %s5098_s16, 64 }
 0x137   : > { %s4512_s12 = scalar_lea.hbm %s5099_s11, %s3015_s10  ;;  %s3767_s6 = scalar_lea.hbm %s4505_s27, 32 }
 0x138   : > { %p3768_p1 = scmp.ne.s32.totalorder %s4505_s27, %s3767_s6  ;;  %p3773_p2 = scmp.lt.u32.totalorder %s4505_s27, %s5098_s16 }
 0x139   : > { %p3774_p7 = scmp.lt.u32.totalorder %s3772_s30, %s3767_s6  ;;  %p3776_p10 = scmp.lt.u32.totalorder %s3767_s6, %s4505_s27 }
 0x13a   : > { %p3770_p0 = pnand %p3768_p1, %p4282_p6 }
 0x13b   : > { %p3775_p12 = por %p3774_p7, %p3773_p2 }
 0x13c   : > { %p3771_p8 = pneg %p3770_p0 }
 0x13d   : > { %p3777_p4 = por %p3776_p10, %p3775_p12 }
 0x13f   : > { %p3778_p13 = pnand %p3777_p4, %p3771_p8 }
 0x141   : > { %3781 = shalt.err (!%p3778_p13)
}
 0x142   : > { %s3782_s21 = scalar_lea.vmem %s796_s9, 32  ;;  %s4001_s10 = smov [#allocation17]  }
 0x143   : > { %p3783_p3 = scmp.ne.s32.totalorder %s796_s9, %s3782_s21  ;;  %s3787_s25 = sshll.u32 %s4001_s10, 4  ;;  %s3788_s25 = int_to_ptr.vmem [resolvable:$false] %s3787_s25 }
 0x144   : > { %s3789_s8 = scalar_lea.vmem %s3788_s25, 64  ;;  %p3790_p1 = scmp.lt.s32.totalorder %s796_s9, %s3788_s25 }
 0x145   : > { %p3785_p9 = pnand %p3783_p3, %p4282_p6  ;;  %p3791_p0 = scmp.lt.s32.totalorder %s3789_s8, %s3782_s21 }
 0x147   : > { %p3786_p11 = pneg %p3785_p9  ;;  %p3792_p5 = por %p3791_p0, %p3790_p1 }
 0x149   : > { %p3793_p2 = pnand %p3792_p5, %p3786_p11 }
 0x14b   : > { %3796 = shalt.err (!%p3793_p2)
}
 0x14c   : > { %p5100_p7 = scmp.ne.s32.totalorder %s5081_s18, 0  ;;  %s5101_s17 = sshll.u32 %s4232_s26, 7 }
 0x14d   : > { %s806_s3 = scalar_lea.vmem [#allocation18], %s5101_s17  ;;  %s3797_s7 = scalar_lea.hbm %s4512_s12, 2048 }
 0x14e   : > { %3263 = dma.hbm_to_vmem [thread:$0]  (!%p5100_p7), %s4505_s27, 32, %s796_s9, %s4240_s28  }
 0x14f   : > { %s813_s6 = sshll.u32 %s806_s3, 4  ;;  %p3798_p8 = scmp.ne.s32.totalorder %s4512_s12, %s3797_s7  ;;  %s4534_s6 = int_to_ptr.vmem [resolvable:$true] %s813_s6 }
 0x150   : > { %s3802_s20 = scalar_lea.hbm %s5099_s11, 4096  ;;  %p3803_p10 = scmp.lt.u32.totalorder %s4512_s12, %s5099_s11 }
 0x151   : > { %p3800_p5 = pnand %p3798_p8, %p4282_p6  ;;  %p3804_p4 = scmp.lt.u32.totalorder %s3802_s20, %s3797_s7 }
 0x152   : > { %p3806_p3 = scmp.lt.u32.totalorder %s3797_s7, %s4512_s12 }
 0x153   : > { %p3801_p12 = pneg %p3800_p5  ;;  %p3805_p13 = por %p3804_p4, %p3803_p10 }
 0x155   : > { %p3807_p9 = por %p3806_p3, %p3805_p13 }
 0x157   : > { %p3808_p11 = pnand %p3807_p9, %p3801_p12 }
 0x159   : > { %3811 = shalt.err (!%p3808_p11)
}
 0x15a   : > { %s3812_s27 = scalar_lea.vmem %s4534_s6, 2048  ;;  %s4002_s9 = smov [#allocation18]  }
 0x15b   : > { %p3813_p1 = scmp.ne.s32.totalorder %s4534_s6, %s3812_s27  ;;  %s3817_s10 = sshll.u32 %s4002_s9, 4  ;;  %s3818_s10 = int_to_ptr.vmem [resolvable:$false] %s3817_s10 }
 0x15c   : > { %s3819_s25 = scalar_lea.vmem %s3818_s10, 4096  ;;  %p3820_p8 = scmp.lt.s32.totalorder %s4534_s6, %s3818_s10 }
 0x15d   : > { %p3815_p0 = pnand %p3813_p1, %p4282_p6  ;;  %p3821_p5 = scmp.lt.s32.totalorder %s3819_s25, %s3812_s27 }
 0x15f   : > { %p3816_p2 = pneg %p3815_p0  ;;  %p3822_p10 = por %p3821_p5, %p3820_p8 }
 0x161   : > { %p3823_p4 = pnand %p3822_p10, %p3816_p2 }
 0x163   : > { %3826 = shalt.err (!%p3823_p4)
}
 0x164   : > { %s5102_s8 = smov 4   ;;  %s5103_s17 = smov 64  }
 0x165   : > { %s5104_s3 = sld [smem:[#allocation26_spill]]  ;;  %s5105_s7 = sld [smem:[#allocation27_spill]] }
 0x166   : > { %s5106_s1 = sld [smem:[#allocation24_spill]]  ;;  %s5107_s30 = sld [smem:[#allocation25_spill]] }
 0x167   : > { %3266 = dma.hbm_to_vmem [thread:$0]  (!%p5100_p7), %s4512_s12, 2048, %s4534_s6, %s4240_s28, %s5103_s17, %s5103_s17, %s5102_s8  }
 0x168   : > { %s5032_s20 = sadd.s32 4294967295, %s3985_s24   ;;  %p2884_p9 = scmp.ge.s32.totalorder %s3985_s24, 1 }
 0x169   : > { %p4566_p13 = scmp.eq.s32.totalorder %s5032_s20, 0  ;;  %p569_p11 = scmp.lt.s32.totalorder %s3985_s24, 5 }
 0x16a   : > { %s4003_s27 = smov [#allocation7]   ;;  %s826_s25 = scalar_lea.vmem [#allocation19], %s4232_s26 }
 0x16b   : > { %p73_p12 = scmp.ne.s32.totalorder %s5105_s7, %s5104_s3  ;;  %p4586_p2 = pnand %p2884_p9, %p569_p11 }
 0x16c   : > { %s5108_s2 = scalar_select %p4566_p13, 1, 0 }
 0x16d   : > { %p204_p3 = scmp.ne.s32.totalorder %s5107_s30, %s5106_s1  ;;  %p4576_p1 = por %p4566_p13, %p73_p12 }
 0x16e   : > { %s5111_s6 = scalar_select %p4586_p2, 1, 0 }
 0x16f   : > { %s5109_s21 = scalar_select %p4576_p1, 1, 0 }
 0x170   : > { %p4582_p0 = por %p204_p3, %p4566_p13  ;;  %p3229_p8 = pneg %p4586_p2 }
 0x171   : > { %s582_s9 = sshll.u32 %s4003_s27, 4  ;;  %s833_s8 = sshll.u32 %s826_s25, 4  ;;  %s583_s9 = int_to_ptr.vmem [resolvable:$true] %s582_s9  ;;  %s4605_s8 = int_to_ptr.vmem [resolvable:$true] %s833_s8 }
 0x172   : > { %s5110_s12 = scalar_select %p4582_p0, 1, 0 }
 0x173   : > { %p4594_p5 = pnand %p3229_p8, %p4566_p13  ;;  %s5113_s7 = sld [smem:[#allocation51_spill]] }
 0x174   : > { %s5114_s11 = sld [smem:[#allocation35_spill]] }
 0x175   : > { %p3829_p4 = pneg %p4594_p5 }
 0x179   : > { %s4603_s1 = scalar_lea.hbm %s5113_s7, %s4269_s29 }
 0x17a   : > { %s3827_s27 = scalar_lea.hbm %s5114_s11, 128 }
 0x17b   : > { %p3828_p10 = scmp.ne.s32.totalorder %s5114_s11, %s3827_s27  ;;  %p3834_p9 = scmp.lt.u32.totalorder %s3827_s27, %s5114_s11 }
 0x17d   : > { %p3830_p12 = pnand %p3829_p4, %p3828_p10 }
 0x17f   : > { %p3831_p3 = pneg %p3830_p12 }
 0x181   : > { %p3836_p11 = pnand %p3834_p9, %p3831_p3 }
 0x183   : > { %3839 = shalt.err (!%p3836_p11)
}
 0x184   : > { %s3840_s29 = scalar_lea.vmem %s583_s9, 128  ;;  %p3848_p1 = scmp.lt.s32.totalorder %s583_s9, %s583_s9 }
 0x185   : > { %p3841_p8 = scmp.ne.s32.totalorder %s583_s9, %s3840_s29  ;;  %p3849_p2 = scmp.lt.s32.totalorder %s3840_s29, %s3840_s29 }
 0x187   : > { %p3843_p0 = pnand %p3841_p8, %p3829_p4  ;;  %p3850_p7 = por %p3849_p2, %p3848_p1 }
 0x189   : > { %p3844_p13 = pneg %p3843_p0 }
 0x18b   : > { %p3851_p6 = pnand %p3850_p7, %p3844_p13 }
 0x18d   : > { %3854 = shalt.err (!%p3851_p6)
}
 0x18e   : > { %3232 = dma.hbm_to_vmem [thread:$0]  (!%p4594_p5), %s5114_s11, 128, %s583_s9, [#allocation8]  }
 0x18f   : > { %s3855_s20 = scalar_lea.hbm %s4603_s1, 16  ;;  %p5115_p4 = scmp.ne.s32.totalorder %s5083_s4, 0 }
 0x190   : > { %p3856_p10 = scmp.ne.s32.totalorder %s4603_s1, %s3855_s20  ;;  %s3860_s30 = scalar_lea.hbm %s5113_s7, 32 }
 0x191   : > { %p3861_p6 = scmp.lt.u32.totalorder %s4603_s1, %s5113_s7  ;;  %p3862_p7 = scmp.lt.u32.totalorder %s3860_s30, %s3855_s20 }
 0x192   : > { %p3858_p0 = pnand %p3856_p10, %p5115_p4  ;;  %p3864_p1 = scmp.lt.u32.totalorder %s3855_s20, %s4603_s1 }
 0x193   : > { %p3863_p13 = por %p3862_p7, %p3861_p6 }
 0x194   : > { %p3859_p12 = pneg %p3858_p0 }
 0x195   : > { %p3865_p2 = por %p3864_p1, %p3863_p13 }
 0x197   : > { %p3866_p3 = pnand %p3865_p2, %p3859_p12 }
 0x199   : > { %3869 = shalt.err (!%p3866_p3)
}
 0x19a   : > { %s3870_s9 = scalar_lea.vmem %s4605_s8, 16  ;;  %s4004_s26 = smov [#allocation19]  }
 0x19b   : > { %p3871_p5 = scmp.ne.s32.totalorder %s4605_s8, %s3870_s9  ;;  %s3875_s25 = sshll.u32 %s4004_s26, 4  ;;  %s3876_s25 = int_to_ptr.vmem [resolvable:$false] %s3875_s25 }
 0x19c   : > { %s3877_s29 = scalar_lea.vmem %s3876_s25, 32  ;;  %p3878_p8 = scmp.lt.s32.totalorder %s4605_s8, %s3876_s25 }
 0x19d   : > { %p3873_p9 = pnand %p3871_p5, %p5115_p4  ;;  %p3879_p10 = scmp.lt.s32.totalorder %s3877_s29, %s3870_s9 }
 0x19f   : > { %p3874_p11 = pneg %p3873_p9  ;;  %p3880_p0 = por %p3879_p10, %p3878_p8 }
 0x1a1   : > { %p3881_p6 = pnand %p3880_p0, %p3874_p11 }
 0x1a3   : > { %3884 = shalt.err (!%p3881_p6)
}
 0x1a4   : > { %p5116_p12 = scmp.ne.s32.totalorder %s5081_s18, 0  ;;  %p5117_p7 = scmp.ne.s32.totalorder %s5111_s6, 0 }
 0x1a5   : > { %s5118_s4 = sadd.s32 (!%p5117_p7), 4294967295, %s3985_s24   ;;  %s5119_s13 = sld [smem:[#allocation27_spill]] (!%p5117_p7) }
 0x1a6   : > { %3269 = dma.hbm_to_vmem [thread:$0]  (!%p5116_p12), %s4603_s1, 16, %s4605_s8, %s4240_s28  }
 0x1a7   : > { %842 = sbr.rel (%p5117_p7) target bundleno = 4997 (0x1385), region = 100  ;;  %s844_s14 = sand.u32 (!%p5117_p7), 1, %s5118_s4  }
 0x1a8   : > { %s845_s3 = scalar_lea.sflag (!%p5117_p7), [#allocation6], %s844_s14  ;;  %p5120_p4 = scmp.ne.s32.totalorder (!%p5117_p7), %s5109_s21, 0 }
 0x1ab   : > { %s846_s20 = sand.u32 (!%p5117_p7), 1, %s5119_s13  }
 0x1ac   : > { %s4650_s17 = sshll.u32 (!%p5117_p7), %s846_s20, 3 }
 0x1ae   : > { %3932 = dma.done.wait (%p5120_p4), %s845_s3, 128  }
 0x1af   : > { %3934 = vsyncadd (%p5120_p4), %s845_s3, 4294967168  ;;  %p5121_p13 = scmp.ne.s32.totalorder %s5108_s2, 0 }
 0x1b1   : > { %3936 = dma.done.wait (%p5121_p13), [#allocation8], 128  }
 0x1b2   : > { %3938 = vsyncadd (%p5121_p13), [#allocation8], 4294967168  ;;  %s5122_s18 = sld [smem:[#allocation25_spill]]  ;;  %p5123_p1 = scmp.ne.s32.totalorder %s5110_s12, 0 }
 0x1b8   : > { %s4662_s28 = sand.u32 1, %s5122_s18  }
 0x1b9   : > { %3940 = dma.done.wait (%p5123_p1), %s845_s3, 5296  }
 0x1ba   : > { %3942 = vsyncadd (%p5123_p1), %s845_s3, 4294962000  ;;  %s5124_s21 = sld [smem:[#allocation29_spill]]  ;;  %s5125_s8 = sld [smem:[#allocation28_spill]]  ;;  %v1066_v0 = vlaneseq  ;;  %v4005_v3 = vmov -1e+09  }
 0x1bb   : > { %s3199_s2 = smul.u32 3, %s4662_s28  ;;  %s2911_s27 = sshll.u32 %s4662_s28, 6 }
 0x1bc   : > { %v1067_v1 = vand.u32 127, %v1066_v0  ;;  %s2912_s10 = sshll.u32 %s4662_s28, 7  ;;  %s2913_s9 = sshll.u32 %s4662_s28, 1 }
 0x1bd   : > { %s5126_s13 = sld [smem:[#allocation42_spill]]  ;;  %s5127_s18 = sld [smem:[#allocation54_spill]] }
 0x1be   : > { %s868_s6 = scalar_lea.vmem [#allocation10], %s4662_s28  ;;  %s4692_s30 = scalar_lea.vmem [#allocation11], %s3199_s2 }
 0x1bf   : > { %s4694_s7 = scalar_lea.vmem [#allocation12], %s2911_s27  ;;  %s894_s11 = scalar_lea.vmem [#allocation13], %s4662_s28 }
 0x1c0   : > { %s1065_s1 = sld [smem:[#allocation4 + %s5124_s21]]  ;;  %p1055_p2 = scmp.lt.s32.totalorder %s5125_s8, 1 }
 0x1c1   : > { %p1060_p3 = scmp.lt.s32.totalorder %s5124_s21, 1  ;;  %s902_s15 = scalar_lea.vmem [#allocation14], %s4662_s28 }
 0x1c2   : > { %s1056_s12 = scalar_select %p1055_p2, %s5125_s8, 1 }
 0x1c3   : > { %s5155_s21 = smov (!%p1060_p3, %s5124_s21), 1  ;;  %s910_s16 = scalar_lea.vmem [#allocation15], %s4662_s28 }
 0x1c4   : > { %s3200_s26 = smul.u32 192, %s1056_s12  ;;  %s2916_s25 = sshll.u32 %s5155_s21, 3 }
 0x1c5   : > { %s4699_s12 = scalar_lea.vmem [#allocation16], %s2912_s10  ;;  %s4701_s21 = scalar_lea.vmem [#allocation17], %s2913_s9 }
 0x1c6   : > { %v1068_v2 = vstv %s1065_s1  ;;  %s4684_s14 = scalar_lea.vmem %s5126_s13, %s3200_s26  ;;  %s4689_s1 = scalar_lea.vmem %s5127_s18, %s2916_s25 }
 0x1c7   : > { %vm1069_vm0 = vcmp.lt.s32.totalorder %v1067_v1, %v1068_v2  ;;  %s4703_s29 = scalar_lea.vmem [#allocation18], %s2912_s10  ;;  %s945_s26 = scalar_lea.vmem [#allocation19], %s4662_s28 }
 0x1c8   : > { %v4677_v4 = vsel %vm1069_vm0, 0.0, %v4005_v3  ;;  %p2917_p5 = scmp.ne.s32.totalorder %s5125_s8, 0 }
 0x1c9   : > { %s5128_s13 = sld [smem:[#allocation36_spill]] (!%p2917_p5)  ;;  %v4006_v6 = vmov (!%p2917_p5), 0.0   ;;  %vm4007_vm1 = vmmov (!%p2917_p5), 0   ;;  %s5129_s25 = scalar_lea.vmem (!%p2917_p5), [#allocation5], %s4650_s17  ;;  %vm1124_vm2 = vcmask (!%p2917_p5), 654336   ;;  %v1198_v33 = vld [vmem:[#allocation7] sm:$0xff] (!%p2917_p5) }
 0x1ca   : > { %1074 = sbr.rel (%p2917_p5) target bundleno = 1015 (0x3f7), region = 156  ;;  %3083 = vmatprep.subr.bf16.mxu0 (!%p2917_p5), %v4006_v6  ;;  %3093 = vmatprep.mubr.msk.bf16.mxu0 (!%p2917_p5), %vm4007_vm1, %v4006_v6  ;;  %v1075_v11 = vld [vmem:[%s5129_s25] sm:$0xff] (!%p2917_p5)  ;;  %s5130_s27 = sld [smem:[#allocation37_spill]] (!%p2917_p5) }
 0x1cb   : > { %v1086_v12 = vpack.c.bf16 (!%p2917_p5), %v1075_v11, %v1075_v11  ;;  %s5131_s9 = sld [smem:[#allocation38_spill]] (!%p2917_p5)  ;;  %s5132_s3 = sld [smem:[#allocation39_spill]] (!%p2917_p5) }
 0x1cf   : > { %v3376_v5 = vld [vmem:[%s5128_s13] sm:$0xff] (!%p2917_p5)   ;;  %v3377_v7 = vld [vmem:[%s5128_s13 + $0x8] sm:$0xff] (!%p2917_p5)   ;;  %v3378_v8 = vld [vmem:[%s5128_s13 + $0x10] sm:$0xff] (!%p2917_p5)  }
 0x1d0   : > { %3084 = vmatpush3.bf16.msra.mxu0 (!%p2917_p5), %v3376_v5  ;;  %v3379_v9 = vld [vmem:[%s5128_s13 + $0x18] sm:$0xff] (!%p2917_p5)   ;;  %v3380_v10 = vld [vmem:[%s5128_s13 + $0x20] sm:$0xff] (!%p2917_p5)  }
 0x1d1   : > { %3085 = vmatprep.subr.bf16.mxu0 %v4006_v6  ;;  %v2918_v13 = vld [vmem:[%s5130_s27] ss:$0 sm:$0xff] }
 0x1d2   : > { %v2925_v27 = vld [vmem:[%s5131_s9] ss:$0 sm:$0xff] }
 0x1d3   : > { %v2926_v29 = vld [vmem:[%s5132_s3] ss:$0 sm:$0xff] }
 0x1d4   : > { %3086 = vmatpush3.bf16.msra.mxu0 %v3377_v7 }
 0x1d5   : > { %3087 = vmatprep.subr.bf16.mxu0 %v4006_v6 }
 0x1d8   : > { %3088 = vmatpush3.bf16.msra.mxu0 %v3378_v8 }
 0x1d9   : > { %3089 = vmatprep.subr.bf16.mxu0 %v4006_v6 }
 0x1dc   : > { %3090 = vmatpush3.bf16.msra.mxu0 %v3379_v9 }
 0x1dd   : > { %3091 = vmatprep.subr.bf16.mxu0 %v4006_v6 }
 0x1e0   : > { %3092 = vmatpush3.bf16.msra.mxu0 %v3380_v10 }
 0x1e3   : > { %3094 = vmatmul.mubr.msk.bf16.vlgmr.msra.gmra.mrb[0].mxu0 %vm1124_vm2, %v1086_v12 }
 0x2b6   : > { %v1162_v14 = vpop.f32.mrb[0].mxu0 }
 0x2b7   : > { %v1163_v15 = vadd.f32 %v2918_v13, %v1162_v14  ;;  %v3095_v16 = vpop.f32.mrb[1].mxu0 }
 0x2b8   : > { %v1165_v17 = vpop.f32.mrb[2].mxu0 }
 0x2b9   : > { %1170 = vadd.xlane.f32.xlu0 %v1163_v15  ;;  %v3096_v18 = vpop.f32.mrb[3].mxu0 }
 0x346   : > { %v1171_v19 = vpop.xlane.xlu0 %1170 }
 0x347   : > { %v1173_v20 = vmul.f32 0.0078125, %v1171_v19 }
 0x349   : > { %v1174_v21 = vsub.f32 %v1163_v15, %v1173_v20 }
 0x34b   : > { %v1175_v22 = vmul.f32 %v1174_v21, %v1174_v21 }
 0x34d   : > { %1176 = vadd.xlane.f32.xlu0 %v1175_v22 }
 0x3da   : > { %v1177_v23 = vpop.xlane.xlu0 %1176 }
 0x3db   : > { %v1178_v24 = vmul.f32 0.0078125, %v1177_v23 }
 0x3dd   : > { %v1179_v25 = vadd.f32 1e-05, %v1178_v24 }
 0x3df   : > { %3381 = vrsqrt.f32 %v1179_v25 }
 0x3e9   : > { %v3382_v26 = vpop.eup %3381 }
 0x3ea   : > { %v1181_v28 = vmul.f32 %v3382_v26, %v1174_v21 }
 0x3ec   : > { %v1188_v30 = vmul.f32 %v2925_v27, %v1181_v28 }
 0x3ee   : > { %v1195_v31 = vadd.f32 %v2926_v29, %v1188_v30 }
 0x3f0   : > { %v1196_v32 = vmax.f32 %v1195_v31, 0.0 }
 0x3f2   : > { %v1197_v34 = vmul.f32 11.313708, %v1196_v32 }
 0x3f4   : > { %v1199_v35 = vadd.f32 %v1198_v33, %v1197_v34 }
 0x3f6   : > { %1200 = vst [vmem:[#allocation2] sm:$0xff] %v1199_v35 }
 0x3f7 PF: > { %v3383_v37 = vld [vmem:[%s4684_s14 + $0x4] ss:$12 sps:$4 sm:$0xff]   ;;  %v3385_v38 = vld [vmem:[%s4684_s14] ss:$12 sps:$4 sm:$0xff]   ;;  %v4008_v39 = vmov 0.0   ;;  %v4009_v61 = vmov 0  }
 0x3f8   : > { %3097 = vmatprep.subr.bf16.mxu1 %v4008_v39  ;;  %v3386_v40 = vld [vmem:[%s4684_s14 + $0x8] ss:$12 sps:$4 sm:$0xff]   ;;  %v3389_v42 = vld [vmem:[%s4684_s14 + $0x18] ss:$12 sps:$4 sm:$0xff]   ;;  %1408 = vmatprep.subr.bf16.mxu0 %v3383_v37  ;;  %v3390_v43 = vld [vmem:[%s4684_s14 + $0x20] ss:$12 sps:$4 sm:$0xff]  }
 0x3f9   : > { %v3387_v41 = vld [vmem:[%s4684_s14 + $0x1c] ss:$12 sps:$4 sm:$0xff]   ;;  %v3391_v44 = vld [vmem:[%s4684_s14 + $0x34] ss:$12 sps:$4 sm:$0xff]   ;;  %1409 = vmatpush1.bf16.msra.mxu0 %v3385_v38  ;;  %3098 = vmatpush3.bf16.msra.mxu1 %v3386_v40  ;;  %v3394_v50 = vld [vmem:[%s4684_s14 + $0x38] ss:$12 sps:$4 sm:$0xff]  }
 0x3fa   : > { %1410 = vmatprep.subr.bf16.mxu0 %v3387_v41  ;;  %3099 = vmatprep.subr.bf16.mxu1 %v4008_v39  ;;  %v3393_v49 = vld [vmem:[%s4684_s14 + $0x30] ss:$12 sps:$4 sm:$0xff]   ;;  %v3395_v51 = vld [vmem:[%s4684_s14 + $0x4c] ss:$12 sps:$4 sm:$0xff]   ;;  %v3397_v52 = vld [vmem:[%s4684_s14 + $0x48] ss:$12 sps:$4 sm:$0xff]  }
 0x3fb   : > { %v3398_v53 = vld [vmem:[%s4684_s14 + $0x50] ss:$12 sps:$4 sm:$0xff]   ;;  %v3401_v55 = vld [vmem:[%s4684_s14 + $0x60] ss:$12 sps:$4 sm:$0xff]   ;;  %v3402_v56 = vld [vmem:[%s4684_s14 + $0x68] ss:$12 sps:$4 sm:$0xff]   ;;  %1440 = vmatprep.mubr.bf16.mxu0 %v4009_v61 }
 0x3fc   : > { %v3399_v54 = vld [vmem:[%s4684_s14 + $0x64] ss:$12 sps:$4 sm:$0xff]   ;;  %v3403_v57 = vld [vmem:[%s4684_s14 + $0x7c] ss:$12 sps:$4 sm:$0xff]   ;;  %v3406_v59 = vld [vmem:[%s4684_s14 + $0x80] ss:$12 sps:$4 sm:$0xff]  }
 0x3fd   : > { %v4733_v36 = vld [vmem:[#allocation2] sm:$0xff]  ;;  %1411 = vmatpush1.bf16.msra.mxu0 %v3389_v42  ;;  %3100 = vmatpush3.bf16.msra.mxu1 %v3390_v43  ;;  %vm4010_vm3 = vmmov 0   ;;  %v3409_v62 = vld [vmem:[%s4684_s14 + $0x90] ss:$12 sps:$4 sm:$0xff]   ;;  %v3411_v1 = vld [vmem:[%s4684_s14 + $0xac] ss:$12 sps:$4 sm:$0xff]  }
 0x3fe   : > { %1204 = vadd.xlane.f32.xlu0 %v4733_v36  ;;  %1412 = vmatprep.subr.bf16.mxu0 %v3391_v44  ;;  %v3405_v58 = vld [vmem:[%s4684_s14 + $0x78] ss:$12 sps:$4 sm:$0xff]   ;;  %v3407_v60 = vld [vmem:[%s4684_s14 + $0x94] ss:$12 sps:$4 sm:$0xff]   ;;  %v3414_v3 = vld [vmem:[%s4684_s14 + $0xb0] ss:$12 sps:$4 sm:$0xff]  }
 0x3ff   : > { %3101 = vmatprep.subr.bf16.mxu1 %v4008_v39  ;;  %3113 = vmatprep.mubr.msk.bf16.mxu1 %vm4010_vm3, %v4008_v39  ;;  %v3410_v63 = vld [vmem:[%s4684_s14 + $0x98] ss:$12 sps:$4 sm:$0xff]   ;;  %v3413_v2 = vld [vmem:[%s4684_s14 + $0xa8] ss:$12 sps:$4 sm:$0xff]   ;;  %s5133_s18 = scalar_lea.vmem [#allocation9], %s4662_s28  ;;  %v4783_v15 = vshrl.u32 %v1066_v0, 7 }
 0x400   : > { %v2927_v9 = vld [vmem:[%s5133_s18] ss:$0 sm:$0xff]  ;;  %v1263_v17 = vld [vmem:[%s4692_s30] sm:$0x7]  ;;  %vm1573_vm4 = vcmask 1043456   ;;  %vm1507_vm5 = vcmask 261120  }
 0x401   : > { %1413 = vmatpush1.bf16.msra.mxu0 %v3393_v49  ;;  %3102 = vmatpush3.bf16.msra.mxu1 %v3394_v50  ;;  %v2928_v11 = vld [vmem:[%s868_s6] ss:$0 sm:$0xff]  ;;  %v1275_v16 = vsub.s32 2, %v4783_v15  ;;  %v1271_v18 = vsub.s32 1, %v4783_v15  ;;  %v1267_v19 = vsub.s32 0, %v4783_v15  ;;  %s4011_s30 = smov 96  }
 0x402   : > { %3103 = vmatprep.subr.bf16.mxu1 %v4008_v39  ;;  %1414 = vmatprep.subr.bf16.mxu0 %v3395_v51  ;;  %vm1556_vm6 = vcmask 64512   ;;  %s4012_s6 = smov 64   ;;  %s4013_s14 = smov 32   ;;  %v3008_v15 = vld [vmem:[%s945_s26] ss:$0 sm:$0xff] }
 0x403   : > { %v1276_v20 = vrot.slane %v1263_v17, %v1275_v16  ;;  %v1272_v21 = vrot.slane %v1263_v17, %v1271_v18  ;;  %v1268_v22 = vrot.slane %v1263_v17, %v1267_v19 }
 0x405   : > { %1415 = vmatpush1.bf16.msra.mxu0 %v3397_v52  ;;  %3104 = vmatpush3.bf16.msra.mxu1 %v3398_v53 }
 0x406   : > { %3105 = vmatprep.subr.bf16.mxu1 %v4008_v39  ;;  %1416 = vmatprep.subr.bf16.mxu0 %v3399_v54 }
 0x409   : > { %1417 = vmatpush1.bf16.msra.mxu0 %v3401_v55  ;;  %3106 = vmatpush3.bf16.msra.mxu1 %v3402_v56 }
 0x40a   : > { %1418 = vmatprep.subr.bf16.mxu0 %v3403_v57  ;;  %3107 = vmatprep.subr.bf16.mxu1 %v4008_v39 }
 0x40d   : > { %1419 = vmatpush1.bf16.msra.mxu0 %v3405_v58  ;;  %3108 = vmatpush3.bf16.msra.mxu1 %v3406_v59 }
 0x40e   : > { %1420 = vmatprep.subr.bf16.mxu0 %v3407_v60  ;;  %3109 = vmatprep.subr.bf16.mxu1 %v4008_v39 }
 0x411   : > { %1421 = vmatpush1.bf16.msra.mxu0 %v3409_v62  ;;  %3110 = vmatpush3.bf16.msra.mxu1 %v3410_v63 }
 0x412   : > { %1422 = vmatprep.subr.bf16.mxu0 %v3411_v1  ;;  %3111 = vmatprep.subr.bf16.mxu1 %v4008_v39 }
 0x415   : > { %1423 = vmatpush1.bf16.msra.mxu0 %v3413_v2  ;;  %3112 = vmatpush3.bf16.msra.mxu1 %v3414_v3 }
 0x416   : > { %3123 = vmatprep.subr.bf16.mxu1 %v4008_v39  ;;  %3117 = vmatprep.subr.bf16.mxu0 %v4008_v39 }
 0x48b   : > { %v1205_v45 = vpop.xlane.xlu0 %1204 }
 0x48c   : > { %v1207_v46 = vmul.f32 0.0078125, %v1205_v45 }
 0x48e   : > { %v1208_v47 = vsub.f32 %v4733_v36, %v1207_v46 }
 0x490   : > { %v1209_v48 = vmul.f32 %v1208_v47, %v1208_v47 }
 0x492   : > { %1210 = vadd.xlane.f32.xlu0 %v1209_v48 }
 0x51f   : > { %v1211_v5 = vpop.xlane.xlu0 %1210 }
 0x520   : > { %v1212_v6 = vmul.f32 0.0078125, %v1211_v5 }
 0x522   : > { %v1213_v7 = vadd.f32 1e-05, %v1212_v6 }
 0x524   : > { %3463 = vrsqrt.f32 %v1213_v7 }
 0x52e   : > { %v3464_v8 = vpop.eup %3463 }
 0x52f   : > { %v1215_v10 = vmul.f32 %v3464_v8, %v1208_v47 }
 0x531   : > { %v1222_v12 = vmul.f32 %v2927_v9, %v1215_v10  ;;  %v3417_v10 = vld [vmem:[%s4694_s7 + $0x10] sm:$0xff]  }
 0x533   : > { %v1229_v13 = vadd.f32 %v2928_v11, %v1222_v12  ;;  %v3418_v11 = vld [vmem:[%s4694_s7 + $0x18] sm:$0xff]  }
 0x535   : > { %v1262_v14 = vpack.c.bf16 %v1229_v13, %v1229_v13 }
 0x537   : > { %1441 = vmatmul.mubr.bf16.vlgmr.msra.gmra.mrb[0].mxu0 %v1262_v14  ;;  %3114 = vmatmul.mubr.bf16.vlgmr.msra.gmra.mrb[0].mxu1 %v1262_v14 }
 0x538   : > { %3119 = vmatprep.mubr.msk.bf16.mxu0 %vm4010_vm3, %v4008_v39  ;;  %3125 = vmatprep.mubr.msk.bf16.mxu1 %vm4010_vm3, %v4008_v39 }
 0x60a   : > { %v1442_v23 = vpop.f32.mrb[0].mxu0  ;;  %v1483_v24 = vpop.f32.mrb[0].mxu1 }
 0x60b   : > { %v1484_v25 = vadd.f32 %v1483_v24, %v1276_v20  ;;  %v1444_v26 = vpop.f32.mrb[1].mxu0  ;;  %v3115_v0 = vpop.f32.mrb[1].mxu1  ;;  %v1443_v33 = vadd.f32 %v1442_v23, %v1268_v22  ;;  %v3415_v20 = vld [vmem:[%s4694_s7] sm:$0xff]   ;;  %v3416_v22 = vld [vmem:[%s4694_s7 + $0x8] sm:$0xff]  }
 0x60c   : > { %v1445_v27 = vadd.f32 %v1444_v26, %v1272_v21  ;;  %v1446_v28 = vpop.f32.mrb[2].mxu0  ;;  %v1486_v29 = vpop.f32.mrb[2].mxu1 }
 0x60d   : > { %v4793_v30 = vpack.c.bf16 %v1484_v25, %v1484_v25  ;;  %v1447_v31 = vpop.f32.mrb[3].mxu0  ;;  %v3116_v32 = vpop.f32.mrb[3].mxu1  ;;  %v4804_v38 = vpack.c.bf16 %v1443_v33, %v1443_v33 }
 0x60e   : > { %v4795_v34 = vpack.c.bf16 %v1445_v27, %v1445_v27 }
 0x60f   : > { %v1575_v35 = vsel %vm1573_vm4, %v4793_v30, 0 }
 0x610   : > { %3124 = vmatpush3.bf16.msra.mxu1 %v1575_v35  ;;  %1622 = vrot.lane.b32.xlu1 %v4795_v34, %s4011_s30  ;;  %v1512_v37 = vsel %vm1507_vm5, %v4795_v34, 0 }
 0x611   : > { %3118 = vmatpush3.bf16.xpose.msra.mxu0 %v1512_v37  ;;  %3135 = vmatprep.subr.bf16.mxu1 %v4008_v39 }
 0x612   : > { %3129 = vmatprep.subr.bf16.mxu0 %v4008_v39 }
 0x614   : > { %1619 = vrot.lane.b32.xlu1 %v4804_v38, %s4011_s30 }
 0x618   : > { %3120 = vmatmul.mubr.msk.bf16.vlgmr.msra.gmra.mrb[4].mxu0 %vm1507_vm5, %v4804_v38 }
 0x619   : > { %3131 = vmatprep.mubr.msk.bf16.mxu0 %vm4010_vm3, %v4008_v39 }
 0x682   : > { %v1623_v40 = vpop.permute.xlu1 %1622 }
 0x683   : > { %v1628_v41 = vsel %vm1507_vm5, %v1623_v40, 0 }
 0x684   : > { %3130 = vmatpush3.bf16.xpose.msra.mxu0 %v1628_v41 }
 0x685   : > { %3141 = vmatprep.subr.bf16.mxu0 %v4008_v39 }
 0x686   : > { %v1620_v42 = vpop.permute.xlu1 %1619 }
 0x68b   : > { %3132 = vmatmul.mubr.msk.bf16.vlgmr.msra.gmra.mrb[8].mxu0 %vm1507_vm5, %v1620_v42 }
 0x68c   : > { %3145 = vmatprep.mubr.msk.bf16.mxu0 %vm4010_vm3, %v4008_v39  ;;  %3142 = vmatpush3.bf16.msra.mxu0 %v3417_v10 }
 0x68d   : > { %3143 = vmatprep.subr.bf16.mxu0 %v4008_v39 }
 0x690   : > { %3144 = vmatpush3.bf16.msra.mxu0 %v3418_v11 }
 0x691   : > { %3157 = vmatprep.subr.bf16.mxu0 %v4008_v39 }
 0x6eb   : > { %v1548_v43 = vpop.f32.mrb[4].mxu0 }
 0x6ec   : > { %v1554_v44 = vmul.f32 0.17677669, %v1548_v43  ;;  %v3121_v45 = vpop.f32.mrb[5].mxu0 }
 0x6ed   : > { %v1551_v46 = vpop.f32.mrb[6].mxu0 }
 0x6ee   : > { %v1555_v47 = vadd.f32 %v1554_v44, %v4677_v4  ;;  %v3122_v48 = vpop.f32.mrb[7].mxu0 }
 0x6f0   : > { %v1557_v49 = vsel %vm1556_vm6, %v1555_v47, -inf }
 0x6f1   : > { %1558 = vmax.xlane.f32.xlu0 %v1557_v49 }
 0x75e   : > { %v1664_v50 = vpop.f32.mrb[8].mxu0 }
 0x75f   : > { %v1670_v51 = vmul.f32 0.17677669, %v1664_v50  ;;  %v3133_v52 = vpop.f32.mrb[9].mxu0 }
 0x760   : > { %v1667_v53 = vpop.f32.mrb[10].mxu0 }
 0x761   : > { %v1671_v54 = vadd.f32 %v1670_v51, %v4677_v4  ;;  %v3134_v55 = vpop.f32.mrb[11].mxu0 }
 0x763   : > { %v1672_v56 = vsel %vm1556_vm6, %v1671_v54, -inf }
 0x764   : > { %1673 = vmax.xlane.f32.xlu1 %v1672_v56 }
 0x775   : > { %1844 = vrot.lane.b32.xlu1 %v4804_v38, %s4012_s6 }
 0x77e   : > { %v1559_v57 = vpop.xlane.xlu0 %1558 }
 0x77f   : > { %v1560_v58 = vsub.f32 %v1555_v47, %v1559_v57 }
 0x781   : > { %v1561_v59 = vmul.f32 1.442695, %v1560_v58 }
 0x783   : > { %3465 = vpow2.f32 %v1561_v59 }
 0x78d   : > { %v3466_v60 = vpop.eup %3465 }
 0x78e   : > { %v1563_v62 = vsel %vm1556_vm6, %v3466_v60, 0.0 }
 0x78f   : > { %1564 = vadd.xlane.f32.xlu0 %v1563_v62 }
 0x7f1   : > { %v1674_v63 = vpop.xlane.xlu1 %1673 }
 0x7f2   : > { %v1675_v1 = vsub.f32 %v1671_v54, %v1674_v63 }
 0x7f4   : > { %v1676_v2 = vmul.f32 1.442695, %v1675_v1  ;;  %v3419_v1 = vld [vmem:[%s4694_s7 + $0x20] sm:$0xff]  }
 0x7f5   : > { %v1845_v37 = vpop.permute.xlu1 %1844 }
 0x7f6   : > { %3467 = vpow2.f32 %v1676_v2 }
 0x800   : > { %v3468_v3 = vpop.eup %3467 }
 0x801   : > { %v1678_v5 = vsel %vm1556_vm6, %v3468_v3, 0.0 }
 0x802   : > { %1679 = vadd.xlane.f32.xlu0 %v1678_v5 }
 0x818   : > { %1685 = vrot.lane.b32.xlu0 %v4793_v30, %s4011_s30 }
 0x81c   : > { %v1565_v6 = vpop.xlane.xlu0 %1564  ;;  %1846 = vrot.lane.b32.xlu0 %v4795_v34, %s4012_s6 }
 0x81d   : > { %3469 = vrcp.f32 %v1565_v6 }
 0x827   : > { %v3470_v7 = vpop.eup %3469 }
 0x828   : > { %v1567_v8 = vmul.f32 %v3470_v7, %v3466_v60 }
 0x82a   : > { %v1568_v9 = vpack.c.bf16 %v1567_v8, %v1567_v8  ;;  %v3420_v8 = vld [vmem:[%s4694_s7 + $0x28] sm:$0xff]  }
 0x82c   : > { %3126 = vmatmul.mubr.msk.bf16.vlgmr.msra.gmra.mrb[4].mxu1 %vm1556_vm6, %v1568_v9 }
 0x82d   : > { %3137 = vmatprep.mubr.msk.bf16.mxu1 %vm4010_vm3, %v4008_v39 }
 0x88f   : > { %v1680_v12 = vpop.xlane.xlu0 %1679 }
 0x890   : > { %3471 = vrcp.f32 %v1680_v12 }
 0x893   : > { %v1686_v13 = vpop.permute.xlu0 %1685 }
 0x894   : > { %v1691_v14 = vsel %vm1573_vm4, %v1686_v13, 0 }
 0x895   : > { %3136 = vmatpush3.bf16.msra.mxu1 %v1691_v14 }
 0x896   : > { %3149 = vmatprep.subr.bf16.mxu1 %v4008_v39 }
 0x897   : > { %v1847_v27 = vpop.permute.xlu0 %1846 }
 0x898   : > { %v1852_v33 = vsel %vm1507_vm5, %v1847_v27, 0 }
 0x89a   : > { %v3472_v16 = vpop.eup %3471 }
 0x89b   : > { %v1682_v17 = vmul.f32 %v3472_v16, %v3468_v3 }
 0x89d   : > { %v1683_v21 = vpack.c.bf16 %v1682_v17, %v1682_v17 }
 0x89f   : > { %3138 = vmatmul.mubr.msk.bf16.vlgmr.msra.gmra.mrb[8].mxu1 %vm1556_vm6, %v1683_v21 }
 0x8a0   : > { %3150 = vmatpush3.bf16.msra.mxu1 %v3415_v20  ;;  %3153 = vmatprep.mubr.msk.bf16.mxu1 %vm4010_vm3, %v4008_v39 }
 0x8a1   : > { %3151 = vmatprep.subr.bf16.mxu1 %v4008_v39 }
 0x8a4   : > { %3152 = vmatpush3.bf16.msra.mxu1 %v3416_v22 }
 0x8a5   : > { %3163 = vmatprep.subr.bf16.mxu1 %v4008_v39 }
 0x8ff   : > { %v1611_v23 = vpop.f32.mrb[4].mxu1 }
 0x900   : > { %v1617_v24 = vpack.c.bf16 %v1611_v23, %v1611_v23  ;;  %v3127_v25 = vpop.f32.mrb[5].mxu1 }
 0x901   : > { %v1614_v26 = vpop.f32.mrb[6].mxu1 }
 0x902   : > { %v3128_v0 = vpop.f32.mrb[7].mxu1  ;;  %3154 = vmatmul.mubr.msk.bf16.vlgmr.msra.gmra.mrb[12].mxu1 %vm1507_vm5, %v1617_v24 }
 0x903   : > { %3165 = vmatprep.mubr.msk.bf16.mxu1 %vm4010_vm3, %v4008_v39 }
 0x972   : > { %v1727_v28 = vpop.f32.mrb[8].mxu1 }
 0x973   : > { %v1733_v29 = vpack.c.bf16 %v1727_v28, %v1727_v28  ;;  %v3139_v31 = vpop.f32.mrb[9].mxu1 }
 0x974   : > { %v1730_v32 = vpop.f32.mrb[10].mxu1 }
 0x975   : > { %v3140_v35 = vpop.f32.mrb[11].mxu1  ;;  %3146 = vmatmul.mubr.msk.bf16.vlgmr.msra.gmra.mrb[12].mxu0 %vm1507_vm5, %v1733_v29 }
 0x976   : > { %3158 = vmatpush3.bf16.xpose.msra.mxu0 %v1852_v33  ;;  %3159 = vmatprep.mubr.msk.bf16.mxu0 %vm4010_vm3, %v4008_v39 }
 0x977   : > { %3169 = vmatprep.subr.bf16.mxu0 %v4008_v39 }
 0x97d   : > { %3160 = vmatmul.mubr.msk.bf16.vlgmr.msra.gmra.mrb[16].mxu0 %vm1507_vm5, %v1845_v37 }
 0x97e   : > { %3173 = vmatprep.mubr.msk.bf16.mxu0 %vm4010_vm3, %v4008_v39  ;;  %3170 = vmatpush3.bf16.msra.mxu0 %v3419_v1 }
 0x97f   : > { %3171 = vmatprep.subr.bf16.mxu0 %v4008_v39 }
 0x982   : > { %3172 = vmatpush3.bf16.msra.mxu0 %v3420_v8  ;;  %v3441_v8 = vld [vmem:[%s4699_s12 + $0x60] ss:$8 sps:$4 sm:$0xff]  }
 0x983   : > { %3183 = vmatprep.subr.bf16.mxu0 %v4008_v39 }
 0x9d5   : > { %v1838_v40 = vpop.f32.mrb[12].mxu1 }
 0x9d6   : > { %v3155_v41 = vpop.f32.mrb[13].mxu1 }
 0x9d7   : > { %v1841_v42 = vpop.f32.mrb[14].mxu1 }
 0x9d8   : > { %v3156_v43 = vpop.f32.mrb[15].mxu1 }
 0x9d9   : > { %v3422_v43 = vld [vmem:[%s4694_s7 + $0x38] sm:$0xff]  }
 0xa48   : > { %v1783_v44 = vpop.f32.mrb[12].mxu0 }
 0xa49   : > { %v4857_v45 = vadd.f32 %v1838_v40, %v1783_v44  ;;  %v3147_v46 = vpop.f32.mrb[13].mxu0 }
 0xa4a   : > { %v1786_v47 = vpop.f32.mrb[14].mxu0 }
 0xa4b   : > { %v3148_v48 = vpop.f32.mrb[15].mxu0 }
 0xa50   : > { %v1888_v49 = vpop.f32.mrb[16].mxu0 }
 0xa51   : > { %v1894_v50 = vmul.f32 0.17677669, %v1888_v49  ;;  %v3161_v51 = vpop.f32.mrb[17].mxu0 }
 0xa52   : > { %v1891_v52 = vpop.f32.mrb[18].mxu0 }
 0xa53   : > { %v1895_v53 = vadd.f32 %v1894_v50, %v4677_v4  ;;  %v3162_v54 = vpop.f32.mrb[19].mxu0 }
 0xa55   : > { %v1896_v55 = vsel %vm1556_vm6, %v1895_v53, -inf }
 0xa56   : > { %1897 = vmax.xlane.f32.xlu0 %v1896_v55  ;;  %v3423_v55 = vld [vmem:[%s4699_s12] ss:$8 sps:$4 sm:$0xff]  }
 0xa6c   : > { %1908 = vrot.lane.b32.xlu0 %v4793_v30, %s4012_s6 }
 0xa70   : > { %2013 = vrot.lane.b32.xlu0 %v4804_v38, %s4013_s14 }
 0xae3   : > { %v1898_v56 = vpop.xlane.xlu0 %1897 }
 0xae4   : > { %v1899_v57 = vsub.f32 %v1895_v53, %v1898_v56  ;;  %v3425_v56 = vld [vmem:[%s4699_s12 + $0x4] ss:$8 sps:$4 sm:$0xff]  }
 0xae6   : > { %v1900_v58 = vmul.f32 1.442695, %v1899_v57  ;;  %v3428_v57 = vld [vmem:[%s4699_s12 + $0x14] ss:$8 sps:$4 sm:$0xff]  }
 0xae7   : > { %v1909_v59 = vpop.permute.xlu0 %1908 }
 0xae8   : > { %3473 = vpow2.f32 %v1900_v58  ;;  %v1914_v60 = vsel %vm1573_vm4, %v1909_v59, 0  ;;  %v3426_v58 = vld [vmem:[%s4699_s12 + $0x10] ss:$8 sps:$4 sm:$0xff]   ;;  %v3431_v59 = vld [vmem:[%s4699_s12 + $0x24] ss:$8 sps:$4 sm:$0xff]  }
 0xae9   : > { %3164 = vmatpush3.bf16.msra.mxu1 %v1914_v60  ;;  %v3429_v60 = vld [vmem:[%s4699_s12 + $0x20] ss:$8 sps:$4 sm:$0xff]  }
 0xaea   : > { %3177 = vmatprep.subr.bf16.mxu1 %v4008_v39 }
 0xaf2   : > { %v3474_v62 = vpop.eup %3473 }
 0xaf3   : > { %v1902_v63 = vsel %vm1556_vm6, %v3474_v62, 0.0 }
 0xaf4   : > { %1903 = vadd.xlane.f32.xlu1 %v1902_v63 }
 0xb05   : > { %2015 = vrot.lane.b32.xlu1 %v4795_v34, %s4013_s14  ;;  %v2014_v34 = vpop.permute.xlu0 %2013 }
 0xb81   : > { %v1904_v38 = vpop.xlane.xlu1 %1903 }
 0xb82   : > { %3475 = vrcp.f32 %v1904_v38  ;;  %v3434_v38 = vld [vmem:[%s4699_s12 + $0x34] ss:$8 sps:$4 sm:$0xff]  }
 0xb85   : > { %v2016_v5 = vpop.permute.xlu1 %2015 }
 0xb86   : > { %v2021_v7 = vsel %vm1507_vm5, %v2016_v5, 0  ;;  %v3435_v5 = vld [vmem:[%s4699_s12 + $0x40] ss:$8 sps:$4 sm:$0xff]  }
 0xb8c   : > { %v3476_v2 = vpop.eup %3475 }
 0xb8d   : > { %v1906_v3 = vmul.f32 %v3476_v2, %v3474_v62  ;;  %v3432_v2 = vld [vmem:[%s4699_s12 + $0x30] ss:$8 sps:$4 sm:$0xff]  }
 0xb8f   : > { %v1907_v6 = vpack.c.bf16 %v1906_v3, %v1906_v3  ;;  %v3437_v3 = vld [vmem:[%s4699_s12 + $0x44] ss:$8 sps:$4 sm:$0xff]  }
 0xb91   : > { %3166 = vmatmul.mubr.msk.bf16.vlgmr.msra.gmra.mrb[16].mxu1 %vm1556_vm6, %v1907_v6  ;;  %v3440_v6 = vld [vmem:[%s4699_s12 + $0x54] ss:$8 sps:$4 sm:$0xff]  }
 0xb92   : > { %3178 = vmatpush3.bf16.xpose.msra.mxu1 %v2021_v7  ;;  %3179 = vmatprep.mubr.msk.bf16.mxu1 %vm4010_vm3, %v4008_v39  ;;  %v3438_v7 = vld [vmem:[%s4699_s12 + $0x50] ss:$8 sps:$4 sm:$0xff]  }
 0xb93   : > { %3189 = vmatprep.subr.bf16.mxu1 %v4008_v39 }
 0xb99   : > { %3180 = vmatmul.mubr.msk.bf16.vlgmr.msra.gmra.mrb[20].mxu1 %vm1507_vm5, %v2014_v34  ;;  %v3443_v34 = vld [vmem:[%s4699_s12 + $0x64] ss:$8 sps:$4 sm:$0xff]  }
 0xb9a   : > { %3193 = vmatprep.mubr.msk.bf16.mxu1 %vm4010_vm3, %v4008_v39 }
 0xc64   : > { %v1950_v9 = vpop.f32.mrb[16].mxu1 }
 0xc65   : > { %v1956_v10 = vpack.c.bf16 %v1950_v9, %v1950_v9  ;;  %v3167_v11 = vpop.f32.mrb[17].mxu1  ;;  %v3446_v9 = vld [vmem:[%s4699_s12 + $0x74] ss:$8 sps:$4 sm:$0xff]  }
 0xc66   : > { %v1953_v12 = vpop.f32.mrb[18].mxu1  ;;  %v3447_v11 = vld [vmem:[%s4703_s29 + $0x40] sm:$0xff]  }
 0xc67   : > { %v3168_v13 = vpop.f32.mrb[19].mxu1  ;;  %3174 = vmatmul.mubr.msk.bf16.vlgmr.msra.gmra.mrb[20].mxu0 %vm1507_vm5, %v1956_v10  ;;  %v3444_v10 = vld [vmem:[%s4699_s12 + $0x70] ss:$8 sps:$4 sm:$0xff]   ;;  %v3448_v12 = vld [vmem:[%s4703_s29] sm:$0xff]  }
 0xc68   : > { %3185 = vmatprep.mubr.msk.bf16.mxu0 %vm4010_vm3, %v4008_v39  ;;  %v3449_v13 = vld [vmem:[%s4703_s29 + $0x48] sm:$0xff]  }
 0xc6c   : > { %v2057_v14 = vpop.f32.mrb[20].mxu1 }
 0xc6d   : > { %v2063_v16 = vmul.f32 0.17677669, %v2057_v14  ;;  %v3181_v17 = vpop.f32.mrb[21].mxu1  ;;  %v3450_v14 = vld [vmem:[%s4703_s29 + $0x8] sm:$0xff]  }
 0xc6e   : > { %v2060_v20 = vpop.f32.mrb[22].mxu1  ;;  %v3452_v17 = vld [vmem:[%s4703_s29 + $0x10] sm:$0xff]  }
 0xc6f   : > { %v2064_v21 = vadd.f32 %v2063_v16, %v4677_v4  ;;  %v3182_v22 = vpop.f32.mrb[23].mxu1  ;;  %v3421_v4 = vld [vmem:[%s4694_s7 + $0x30] sm:$0xff]   ;;  %v3451_v16 = vld [vmem:[%s4703_s29 + $0x50] sm:$0xff]   ;;  %v3453_v20 = vld [vmem:[%s4703_s29 + $0x58] sm:$0xff]  }
 0xc70   : > { %3190 = vmatpush3.bf16.msra.mxu1 %v3421_v4  ;;  %v3455_v22 = vld [vmem:[%s4703_s29 + $0x60] sm:$0xff]  }
 0xc71   : > { %v2065_v23 = vsel %vm1556_vm6, %v2064_v21, -inf  ;;  %3191 = vmatprep.subr.bf16.mxu1 %v4008_v39 }
 0xc72   : > { %2066 = vmax.xlane.f32.xlu0 %v2065_v23  ;;  %v3456_v23 = vld [vmem:[%s4703_s29 + $0x20] sm:$0xff]  }
 0xc74   : > { %3192 = vmatpush3.bf16.msra.mxu1 %v3422_v43 }
 0xc75   : > { %3061 = vmatprep.subr.bf16.mxu1 %v3447_v11 }
 0xc88   : > { %2077 = vrot.lane.b32.xlu0 %v4793_v30, %s4013_s14 }
 0xcff   : > { %v2067_v24 = vpop.xlane.xlu0 %2066 }
 0xd00   : > { %v2068_v25 = vsub.f32 %v2064_v21, %v2067_v24  ;;  %v3454_v21 = vld [vmem:[%s4703_s29 + $0x18] sm:$0xff]   ;;  %v3457_v24 = vld [vmem:[%s4703_s29 + $0x68] sm:$0xff]  }
 0xd02   : > { %v2069_v26 = vmul.f32 1.442695, %v2068_v25  ;;  %v3458_v25 = vld [vmem:[%s4703_s29 + $0x28] sm:$0xff]  }
 0xd03   : > { %v2078_v0 = vpop.permute.xlu0 %2077 }
 0xd04   : > { %3477 = vpow2.f32 %v2069_v26  ;;  %v2083_v27 = vsel %vm1573_vm4, %v2078_v0, 0 }
 0xd05   : > { %3184 = vmatpush3.bf16.msra.mxu0 %v2083_v27 }
 0xd06   : > { %2327 = vmatprep.subr.bf16.mxu0 %v3425_v56 }
 0xd0e   : > { %v3478_v28 = vpop.eup %3477 }
 0xd0f   : > { %v2071_v29 = vsel %vm1556_vm6, %v3478_v28, 0.0 }
 0xd10   : > { %2072 = vadd.xlane.f32.xlu1 %v2071_v29  ;;  %v2974_v29 = vld [vmem:[%s902_s15] ss:$0 sm:$0xff] }
 0xd3a   : > { %v2006_v31 = vpop.f32.mrb[20].mxu0 }
 0xd3b   : > { %v2012_v30 = vadd.f32 %v2006_v31, %v4857_v45  ;;  %v3175_v32 = vpop.f32.mrb[21].mxu0  ;;  %v2975_v31 = vld [vmem:[%s910_s16] ss:$0 sm:$0xff] }
 0xd3c   : > { %v2009_v33 = vpop.f32.mrb[22].mxu0 }
 0xd3d   : > { %v3176_v35 = vpop.f32.mrb[23].mxu0 }
 0xd3e   : > { %v3459_v35 = vld [vmem:[%s4703_s29 + $0x70] sm:$0xff]  }
 0xd9d   : > { %v2073_v37 = vpop.xlane.xlu1 %2072 }
 0xd9e   : > { %3479 = vrcp.f32 %v2073_v37  ;;  %v3460_v37 = vld [vmem:[%s4703_s29 + $0x30] sm:$0xff]  }
 0xda8   : > { %v3480_v40 = vpop.eup %3479 }
 0xda9   : > { %v2075_v41 = vmul.f32 %v3480_v40, %v3478_v28  ;;  %v3461_v40 = vld [vmem:[%s4703_s29 + $0x78] sm:$0xff]  }
 0xdab   : > { %v2076_v42 = vpack.c.bf16 %v2075_v41, %v2075_v41  ;;  %v3462_v41 = vld [vmem:[%s4703_s29 + $0x38] sm:$0xff]  }
 0xdad   : > { %3186 = vmatmul.mubr.msk.bf16.vlgmr.msra.gmra.mrb[24].mxu0 %vm1556_vm6, %v2076_v42  ;;  %v2235_v42 = vld [vmem:[%s4701_s21] sm:$0x3] }
 0xdae   : > { %2359 = vmatprep.mubr.bf16.mxu0 %v4009_v61  ;;  %v2973_v61 = vld [vmem:[%s894_s11] ss:$0 sm:$0xff]  ;;  %2328 = vmatpush1.bf16.msra.mxu0 %v3423_v55  ;;  %v2240_v43 = vrot.slane %v2235_v42, %v1267_v19  ;;  %s5134_s11 = sld [smem:[#allocation28_spill]] }
 0xdaf   : > { %2329 = vmatprep.subr.bf16.mxu0 %v3428_v57 }
 0xdb2   : > { %2330 = vmatpush1.bf16.msra.mxu0 %v3426_v58 }
 0xdb3   : > { %2331 = vmatprep.subr.bf16.mxu0 %v3431_v59 }
 0xdb4   : > { %p3009_p9 = scmp.ne.s32.totalorder %s5134_s11, 1 }
 0xdb5   : > { %s5135_s7 = sld [smem:[#allocation52_spill]] (!%p3009_p9)  ;;  %s5136_s21 = sld [smem:[#allocation53_spill]] (!%p3009_p9) }
 0xdb6   : > { %2332 = vmatpush1.bf16.msra.mxu0 %v3429_v60 }
 0xdb7   : > { %2333 = vmatprep.subr.bf16.mxu0 %v3434_v38 }
 0xdba   : > { %2334 = vmatpush1.bf16.msra.mxu0 %v3432_v2 }
 0xdbb   : > { %2335 = vmatprep.subr.bf16.mxu0 %v3437_v3 }
 0xdbe   : > { %2336 = vmatpush1.bf16.msra.mxu0 %v3435_v5  ;;  %v3011_v5 = vld [vmem:[%s5136_s21] ss:$0 sm:$0xff] (!%p3009_p9) }
 0xdbf   : > { %2337 = vmatprep.subr.bf16.mxu0 %v3440_v6 }
 0xdc2   : > { %2338 = vmatpush1.bf16.msra.mxu0 %v3438_v7 }
 0xdc3   : > { %2339 = vmatprep.subr.bf16.mxu0 %v3443_v34 }
 0xdc6   : > { %2340 = vmatpush1.bf16.msra.mxu0 %v3441_v8 }
 0xdc7   : > { %2341 = vmatprep.subr.bf16.mxu0 %v3446_v9 }
 0xdca   : > { %2342 = vmatpush1.bf16.msra.mxu0 %v3444_v10 }
 0xe80   : > { %v2119_v39 = vpop.f32.mrb[24].mxu0 }
 0xe81   : > { %v2125_v44 = vpack.c.bf16 %v2119_v39, %v2119_v39  ;;  %v3187_v45 = vpop.f32.mrb[25].mxu0  ;;  %v2244_v39 = vrot.slane %v2235_v42, %v1271_v18 }
 0xe82   : > { %v2122_v46 = vpop.f32.mrb[26].mxu0 }
 0xe83   : > { %v3188_v47 = vpop.f32.mrb[27].mxu0  ;;  %3194 = vmatmul.mubr.msk.bf16.vlgmr.msra.gmra.mrb[24].mxu1 %vm1507_vm5, %v2125_v44 }
 0xe84   : > { %3062 = vmatpush3.bf16.msra.mxu1 %v3448_v12 }
 0xe85   : > { %3063 = vmatprep.subr.bf16.mxu1 %v3449_v13 }
 0xe88   : > { %3064 = vmatpush3.bf16.msra.mxu1 %v3450_v14 }
 0xe89   : > { %3065 = vmatprep.subr.bf16.mxu1 %v3451_v16 }
 0xe8c   : > { %3066 = vmatpush3.bf16.msra.mxu1 %v3452_v17 }
 0xe8d   : > { %3067 = vmatprep.subr.bf16.mxu1 %v3453_v20 }
 0xe90   : > { %3068 = vmatpush3.bf16.msra.mxu1 %v3454_v21 }
 0xe91   : > { %3069 = vmatprep.subr.bf16.mxu1 %v3455_v22 }
 0xe94   : > { %3070 = vmatpush3.bf16.msra.mxu1 %v3456_v23 }
 0xe95   : > { %3071 = vmatprep.subr.bf16.mxu1 %v3457_v24 }
 0xe98   : > { %3072 = vmatpush3.bf16.msra.mxu1 %v3458_v25 }
 0xe99   : > { %3073 = vmatprep.subr.bf16.mxu1 %v3459_v35 }
 0xe9c   : > { %3074 = vmatpush3.bf16.msra.mxu1 %v3460_v37 }
 0xe9d   : > { %3075 = vmatprep.subr.bf16.mxu1 %v3461_v40 }
 0xea0   : > { %3076 = vmatpush3.bf16.msra.mxu1 %v3462_v41 }
 0xf56   : > { %v2175_v48 = vpop.f32.mrb[24].mxu1 }
 0xf57   : > { %v2181_v49 = vadd.f32 %v2175_v48, %v2012_v30  ;;  %v3195_v50 = vpop.f32.mrb[25].mxu1 }
 0xf58   : > { %v2178_v51 = vpop.f32.mrb[26].mxu1 }
 0xf59   : > { %v2182_v52 = vadd.f32 %v2181_v49, %v4733_v36  ;;  %v3196_v53 = vpop.f32.mrb[27].mxu1 }
 0xf5b   : > { %v4901_v54 = vadd.f32 %v2973_v61, %v2182_v52 }
 0xf5d   : > { %2193 = vadd.xlane.f32.xlu1 %v4901_v54 }
 0xfea   : > { %v2194_v36 = vpop.xlane.xlu1 %2193 }
 0xfeb   : > { %v2195_v62 = vmul.f32 0.0078125, %v2194_v36 }
 0xfed   : > { %v2196_v63 = vsub.f32 %v4901_v54, %v2195_v62 }
 0xfef   : > { %v2197_v1 = vmul.f32 %v2196_v63, %v2196_v63 }
 0xff1   : > { %2198 = vadd.xlane.f32.xlu1 %v2197_v1 }
0x107e   : > { %v2199_v26 = vpop.xlane.xlu1 %2198 }
0x107f   : > { %v2200_v0 = vmul.f32 0.0078125, %v2199_v26 }
0x1081   : > { %v2201_v27 = vadd.f32 1e-05, %v2200_v0 }
0x1083   : > { %3481 = vrsqrt.f32 %v2201_v27 }
0x108d   : > { %v3482_v28 = vpop.eup %3481 }
0x108e   : > { %v2203_v4 = vmul.f32 %v3482_v28, %v2196_v63 }
0x1090   : > { %v2210_v30 = vmul.f32 %v2974_v29, %v2203_v4 }
0x1092   : > { %v2217_v32 = vadd.f32 %v2975_v31, %v2210_v30 }
0x1094   : > { %v2234_v33 = vpack.c.bf16 %v2217_v32, %v2217_v32 }
0x1096   : > { %2360 = vmatmul.mubr.bf16.vlgmr.msra.gmra.mrb[28].mxu0 %v2234_v33 }
0x1169   : > { %v2361_v44 = vpop.f32.mrb[28].mxu0 }
0x116a   : > { %v2362_v45 = vadd.f32 %v2361_v44, %v2240_v43  ;;  %v2363_v46 = vpop.f32.mrb[29].mxu0 }
0x116b   : > { %v2364_v47 = vadd.f32 %v2363_v46, %v2244_v39  ;;  %v2365_v48 = vpop.f32.mrb[30].mxu0 }
0x116c   : > { %v2368_v49 = vmax.f32 %v2362_v45, 0.0  ;;  %v2366_v50 = vpop.f32.mrb[31].mxu0 }
0x116d   : > { %v2369_v51 = vmax.f32 %v2364_v47, 0.0 }
0x116e   : > { %v2402_v52 = vpack.c.bf16 %v2368_v49, %v2368_v49 }
0x116f   : > { %v2403_v61 = vpack.c.bf16 %v2369_v51, %v2369_v51 }
0x1171   : > { %2532 = vmatprep.mubr.bf16.mxu1 %v2403_v61 }
0x1172   : > { %2533 = vmatmul.mubr.bf16.vlgmr.msra.gmra.mrb[28].mxu1 %v2402_v52 }
0x1245   : > { %v3077_v53 = vpop.f32.mrb[28].mxu1 }
0x1246   : > { %v3078_v55 = vpop.f32.mrb[29].mxu1 }
0x1247   : > { %v3079_v56 = vadd.f32 %v3078_v55, %v3077_v53  ;;  %v3080_v19 = vpop.f32.mrb[30].mxu1  ;;  %2553 = sbr.rel (%p3009_p9) target bundleno = 4997 (0x1385), region = 160 }
0x1248   : > { %v3081_v18 = vpop.f32.mrb[31].mxu1 }
0x1249   : > { %v2540_v57 = vadd.f32 %v3079_v56, %v4901_v54  ;;  %v3010_v54 = vld [vmem:[%s5135_s7] ss:$0 sm:$0xff] (!%p3009_p9) }
0x124b   : > { %v2548_v58 = vadd.f32 %v3008_v15, %v2540_v57 }
0x124d   : > { %2549 = vst [vmem:[#allocation2] sm:$0xff] %v2548_v58  ;;  %2556 = vadd.xlane.f32.xlu0 (!%p3009_p9), %v2548_v58 }
0x12da   : > { %v2557_v59 = vpop.xlane.xlu0 %2556 }
0x12db   : > { %v2558_v60 = vmul.f32 0.0078125, %v2557_v59 }
0x12dd   : > { %v2559_v36 = vsub.f32 %v2548_v58, %v2558_v60 }
0x12df   : > { %v2560_v62 = vmul.f32 %v2559_v36, %v2559_v36 }
0x12e1   : > { %2561 = vadd.xlane.f32.xlu0 %v2560_v62 }
0x136e   : > { %v2562_v63 = vpop.xlane.xlu0 %2561 }
0x136f   : > { %v2563_v1 = vmul.f32 0.0078125, %v2562_v63 }
0x1371   : > { %v2564_v38 = vadd.f32 1e-05, %v2563_v1 }
0x1373   : > { %3483 = vrsqrt.f32 %v2564_v38 }
0x137d   : > { %v3484_v2 = vpop.eup %3483 }
0x137e   : > { %v2566_v3 = vmul.f32 %v3484_v2, %v2559_v36 }
0x1380   : > { %v2573_v6 = vmul.f32 %v3010_v54, %v2566_v3 }
0x1382   : > { %v2580_v7 = vadd.f32 %v3011_v5, %v2573_v6 }
0x1384   : > { %2581 = vst [vmem:[%s4689_s1] sm:$0xff] %v2580_v7 }
0x1385 PF: > { %s41_s24 = sadd.s32 1, %s3985_s24   ;;  %s5137_s28 = sld [smem:[#allocation25_spill]] }
0x1386   : > { %p38_p11 = scmp.ge.s32.totalorder %s41_s24, 6   ;;  %s5138_s4 = sld [smem:[#allocation27_spill]] }
0x1387   : > { %s5139_s6 = sld [smem:[#allocation30_spill]]  ;;  %s5140_s26 = sld [smem:[#allocation31_spill]] }
0x1388   : > { %s5141_s1 = sld [smem:[#allocation32_spill]]  ;;  %s5142_s29 = smov %s3953_s0 }
0x1389   : > { %s5143_s0 = smov %s4203_s19  ;;  %s5144_s30 = smov %s3965_s5 }
0x138a   : > { %s5145_s5 = smov %s4214_s22  ;;  %s5146_s22 = smov %s3977_s23 }
0x138b   :  { %40 = sbr.rel (!%p38_p11) target bundleno = 37 (0x25), region = 276 }
0x138d   : > { %s5147_s23 = smov %s5140_s26 }
0x1392   :  { %2601 = vsyncpa [#allocation6], 1 }
0x1393   :  { %2603 = vsyncpa [#allocation6 + $0x1], 1 }
0x1394   :  { %2604 = vsyncpa [#allocation8], 1 }

// kernel: forward.4
= control target key start
LH: loop header
LB: loop body
LE: loop exit
PB: predicated region body
PF: predicated region fallthrough
CT: control target
= control target key end

     0   :  { %s6137_s6 = smov 1   ;;  %s6138_s10 = smov 2   ;;  %s7238_s0 = inlined_call_operand.smem [shape: u32[33], index: -1, kind: input, shape index: {}] }
   0x1   :  { %s6215_s5 = sld [smem:[%s7238_s0]]   ;;  %s6139_s14 = smov 3  }
   0x2   :  { %s6220_s9 = sld [smem:[%s7238_s0 + %s6137_s6]]   ;;  %s6140_s18 = smov 4  }
   0x3   :  { %s6225_s13 = sld [smem:[%s7238_s0 + %s6138_s10]]   ;;  %s6141_s22 = smov 5  }
   0x4   :  { %s6230_s17 = sld [smem:[%s7238_s0 + %s6139_s14]]   ;;  %s6142_s26 = smov 6  }
   0x5   :  { %s6235_s21 = sld [smem:[%s7238_s0 + %s6140_s18]]   ;;  %s6143_s30 = smov 7  }
   0x6   :  { %s6240_s25 = sld [smem:[%s7238_s0 + %s6141_s22]]   ;;  %s6144_s4 = smov 8  }
   0x7   :  { %s6245_s29 = sld [smem:[%s7238_s0 + %s6142_s26]]   ;;  %s6145_s10 = smov 9  }
   0x8   :  { %7296 = sst [smem:[#allocation44_spill]] %s6220_s9  ;;  %s6146_s15 = smov 10  }
   0x9   :  { %7297 = sst [smem:[#allocation45_spill]] %s6225_s13  ;;  %s6147_s20 = smov 11  }
   0xa   :  { %7298 = sst [smem:[#allocation46_spill]] %s6230_s17  ;;  %s6148_s26 = smov 12  }
   0xb   :  { %s6250_s3 = sld [smem:[%s7238_s0 + %s6143_s30]]   ;;  %s6149_s1 = smov 13  }
   0xc   :  { %s6255_s8 = sld [smem:[%s7238_s0 + %s6144_s4]]   ;;  %s6150_s7 = smov 14  }
   0xd   :  { %7299 = sst [smem:[#allocation47_spill]] %s6245_s29  ;;  %s6152_s22 = smov 16  }
   0xe   :  { %s6260_s14 = sld [smem:[%s7238_s0 + %s6145_s10]]   ;;  %s6153_s28 = smov 17  }
   0xf   :  { %s6265_s19 = sld [smem:[%s7238_s0 + %s6146_s15]]   ;;  %s6151_s15 = smov 15  }
  0x10   :  { %s6270_s24 = sld [smem:[%s7238_s0 + %s6147_s20]]  }
  0x11   :  { %7300 = sst [smem:[#allocation48_spill]] %s6250_s3 }
  0x12   :  { %7301 = sst [smem:[#allocation49_spill]] %s6255_s8 }
  0x13   :  { %s6275_s30 = sld [smem:[%s7238_s0 + %s6148_s26]]  }
  0x14   :  { %7302 = sst [smem:[#allocation50_spill]] %s6260_s14 }
  0x15   :  { %7303 = sst [smem:[#allocation51_spill]] %s6265_s19 }
  0x16   :  { %7304 = sst [smem:[#allocation52_spill]] %s6270_s24 }
  0x17   :  { %s6280_s6 = sld [smem:[%s7238_s0 + %s6149_s1]]  }
  0x18   :  { %s6285_s12 = sld [smem:[%s7238_s0 + %s6150_s7]]   ;;  %s6154_s7 = smov 18  }
  0x19   :  { %s6290_s20 = sld [smem:[%s7238_s0 + %s6151_s15]]   ;;  %s6155_s15 = smov 19  }
  0x1a   :  { %s6295_s27 = sld [smem:[%s7238_s0 + %s6152_s22]]   ;;  %s6156_s22 = smov 20  }
  0x1b   :  { %s6300_s4 = sld [smem:[%s7238_s0 + %s6153_s28]]   ;;  %s6157_s28 = smov 21  }
  0x1c   :  { %s6305_s24 = sld [smem:[%s7238_s0 + %s6154_s7]]   ;;  %s6158_s7 = smov 22  }
  0x1d   :  { %7305 = sst [smem:[#allocation53_spill]] %s6280_s6  ;;  %s71_s6 = sshll.u32 %s6215_s5, 4  ;;  %s72_s6 = int_to_ptr.vmem [resolvable:$true] %s71_s6 }
  0x1e   :  { %7306 = sst [smem:[#allocation54_spill]] %s6285_s12  ;;  %p5418_p1 = scmp.lt.s32.totalorder %s72_s6, %s72_s6 }
  0x1f   :  { %7307 = sst [smem:[#allocation55_spill]] %s6290_s20 }
  0x20   :  { %7308 = sst [smem:[#allocation56_spill]] %s6295_s27 }
  0x21   :  { %7309 = sst [smem:[#allocation57_spill]] %s6300_s4 }
  0x22   :  { %s6310_s29 = sld [smem:[%s7238_s0 + %s6155_s15]]   ;;  %s6159_s15 = smov 23  }
  0x23   :  { %s6315_s13 = sld [smem:[%s7238_s0 + %s6156_s22]]   ;;  %s6160_s22 = smov 24  }
  0x24   :  { %s6320_s27 = sld [smem:[%s7238_s0 + %s6157_s28]]   ;;  %s6161_s28 = smov 25  }
  0x25   :  { %s6325_s20 = sld [smem:[%s7238_s0 + %s6158_s7]]   ;;  %s6162_s7 = smov 26  }
  0x26   :  { %s6330_s9 = sld [smem:[%s7238_s0 + %s6159_s15]]   ;;  %s6163_s15 = smov 27  }
  0x27   :  { %s6335_s12 = sld [smem:[%s7238_s0 + %s6160_s22]]   ;;  %s6164_s22 = smov 28  }
  0x28   :  { %s6340_s10 = sld [smem:[%s7238_s0 + %s6161_s28]]   ;;  %s6165_s28 = smov 29  }
  0x29   :  { %7310 = sst [smem:[#allocation58_spill]] %s6315_s13 }
  0x2a   :  { %7311 = sst [smem:[#allocation59_spill]] %s6320_s27  ;;  %s6168_s27 = smov 32  }
  0x2b   :  { %7312 = sst [smem:[#allocation60_spill]] %s6325_s20  ;;  %s6166_s20 = smov 30  }
  0x2c   :  { %7313 = sst [smem:[#allocation61_spill]] %s6330_s9  ;;  %s6167_s9 = smov 31  }
  0x2d   :  { %7314 = sst [smem:[#allocation62_spill]] %s6335_s12 }
  0x2e   :  { %7315 = sst [smem:[#allocation63_spill]] %s6340_s10 }
  0x2f   :  { %s6345_s16 = sld [smem:[%s7238_s0 + %s6162_s7]]  }
  0x30   :  { %s6350_s23 = sld [smem:[%s7238_s0 + %s6163_s15]]  }
  0x31   :  { %s6355_s1 = sld [smem:[%s7238_s0 + %s6164_s22]]  }
  0x32   :  { %s6360_s10 = sld [smem:[%s7238_s0 + %s6165_s28]]   ;;  %s5413_s28 = scalar_lea.vmem %s72_s6, 16 }
  0x33   :  { %p5414_p0 = scmp.ne.s32.totalorder %s72_s6, %s5413_s28  ;;  %p5419_p2 = scmp.lt.s32.totalorder %s5413_s28, %s5413_s28 }
  0x35   :  { %7316 = sst [smem:[#allocation64_spill]] %s6345_s16  ;;  %p5420_p3 = por %p5419_p2, %p5418_p1 }
  0x36   :  { %7317 = sst [smem:[#allocation65_spill]] %s6350_s23 }
  0x37   :  { %7318 = sst [smem:[#allocation66_spill]] %s6355_s1  ;;  %p5421_p4 = pnand %p5420_p3, %p5414_p0 }
  0x38   :  { %7319 = sst [smem:[#allocation67_spill]] %s6360_s10 }
  0x39   :  { %s6365_s16 = sld [smem:[%s7238_s0 + %s6166_s20]]  }
  0x3a   :  { %s6370_s23 = sld [smem:[%s7238_s0 + %s6167_s9]]  }
  0x3b   :  { %s6375_s1 = sld [smem:[%s7238_s0 + %s6168_s27]]  }
  0x3f   :  { %7320 = sst [smem:[#allocation68_spill]] %s6365_s16 }
  0x40   :  { %7321 = sst [smem:[#allocation69_spill]] %s6370_s23 }
  0x41   :  { %7322 = sst [smem:[#allocation70_spill]] %s6375_s1 }
  0x42   :  { %5424 = shalt.err (!%p5421_p4)  }
  0x43   :  { %s6169_s2 = smov [#allocation4]  }
  0x44   :  { %74 = dma.vmem_to_smem %s72_s6, 16, %s6169_s2, [#allocation3] }
  0x45   :  { %6059 = dma.done.wait [#allocation3], 16 }
  0x46   :  { %6060 = vsyncadd [#allocation3], 4294967280 }
  0x47   :  { %76 = sfence }
  0x48   :  { %77 = vsyncpa [#allocation6], 0 }
  0x49   :  { %78 = vsyncpa [#allocation8], 0 }
  0x4a   :  { %79 = vsyncpa [#allocation11], 0 }
  0x4b   :  { %80 = vsyncpa [#allocation14], 0 }
  0x4c   :  { %81 = vsyncpa [#allocation17], 0 }
  0x4d   :  { %82 = vsyncpa [#allocation20], 0  ;;  %s6378_s0 = smov 0   ;;  %s6380_s5 = smov 0  }
  0x4e   :  { %s6382_s20 = smov 0   ;;  %s6384_s7 = smov 0  }
  0x4f   :  { %s6386_s11 = smov 0   ;;  %s6388_s9 = smov 0  }
  0x50   :  { %s6390_s15 = smov 0   ;;  %s6392_s18 = smov 0  }
  0x51 LB: > { %s7323_s19 = sld [smem:[#allocation51_spill]]  ;;  %s7324_s14 = sld [smem:[#allocation50_spill]]  ;;  %s6107_s0 = sphi %s6378_s0, %s7408_s0   ;;  %s6135_s18 = sphi %s6392_s18, %s88_s18   ;;  %s6131_s15 = sphi %s6390_s15, %s7414_s15   ;;  %s6127_s9 = sphi %s6388_s9, %s7413_s9   ;;  %s6123_s11 = sphi %s6386_s11, %s7412_s11   ;;  %s6119_s7 = sphi %s6384_s7, %s7411_s7   ;;  %s6115_s20 = sphi %s6382_s20, %s7410_s20   ;;  %s6111_s5 = sphi %s6380_s5, %s7409_s5  }
  0x52   : > { %s7325_s13 = sld [smem:[#allocation58_spill]]  ;;  %s7326_s10 = sld [smem:[#allocation67_spill]] }
  0x53   : > { %s7327_s12 = sld [smem:[#allocation62_spill]]  ;;  %s7328_s8 = sld [smem:[#allocation49_spill]] }
  0x54   : > { %s7329_s3 = sld [smem:[#allocation48_spill]]  ;;  %s7330_s4 = sld [smem:[#allocation57_spill]] }
  0x55   : > { %s7331_s17 = sld [smem:[#allocation46_spill]]  ;;  %7332 = sst [smem:[#allocation71_spill]] %s6111_s5 }
  0x56   : > { %7333 = sst [smem:[#allocation72_spill]] %s6115_s20  ;;  %s7247_s27 = sadd.s32 4294967295, %s6135_s18  }
  0x57   : > { %7334 = sst [smem:[#allocation73_spill]] %s6119_s7  ;;  %p4388_p5 = scmp.ge.s32.totalorder %s6135_s18, 1 }
  0x58   : > { %7335 = sst [smem:[#allocation74_spill]] %s6123_s11  ;;  %p6422_p6 = scmp.eq.s32.totalorder %s7247_s27, 0 }
  0x59   : > { %7336 = sst [smem:[#allocation75_spill]] %s6127_s9  ;;  %p852_p7 = scmp.lt.s32.totalorder %s6135_s18, 5 }
  0x5a   : > { %7337 = sst [smem:[#allocation76_spill]] %s6131_s15  ;;  %s6170_s6 = smov [#allocation5]  }
  0x5b   : > { %7338 = sst [smem:[#allocation77_spill]] %s6135_s18  ;;  %p6427_p8 = pnand %p4388_p5, %p852_p7 }
  0x5c   : > { %s7339_s22 = scalar_select %p6422_p6, 1, 0 }
  0x5d   : > { %s7340_s26 = scalar_select %p6427_p8, 1, 0 }
  0x5e   : > { %s867_s28 = sshll.u32 %s6170_s6, 4  ;;  %p4992_p9 = pneg %p6427_p8  ;;  %s868_s28 = int_to_ptr.vmem [resolvable:$true] %s867_s28 }
  0x5f   : > { %7341 = sst [smem:[#allocation78_spill]] %s7340_s26  ;;  %s5425_s27 = scalar_lea.hbm %s7331_s17, 1024 }
  0x60   : > { %p6435_p10 = pnand %p4992_p9, %p6422_p6  ;;  %p5426_p11 = scmp.ne.s32.totalorder %s7331_s17, %s5425_s27 }
  0x61   : > { %p5432_p1 = scmp.lt.u32.totalorder %s5425_s27, %s7331_s17 }
  0x62   : > { %s7342_s2 = scalar_select %p6435_p10, 1, 0 }
  0x63   : > { %p6443_p12 = pneg %p6435_p10 }
  0x65   : > { %s7343_s1 = scalar_select %p6443_p12, 1, 0 }
  0x66   : > { %p5428_p13 = pnand %p6443_p12, %p5426_p11 }
  0x68   : > { %p5429_p0 = pneg %p5428_p13 }
  0x6a   : > { %p5434_p2 = pnand %p5432_p1, %p5429_p0 }
  0x6c   : > { %5437 = shalt.err (!%p5434_p2)
}
  0x6d   : > { %s5438_s6 = scalar_lea.vmem %s868_s28, 1024  ;;  %p5446_p7 = scmp.lt.s32.totalorder %s868_s28, %s868_s28 }
  0x6e   : > { %p5439_p3 = scmp.ne.s32.totalorder %s868_s28, %s5438_s6  ;;  %p5447_p9 = scmp.lt.s32.totalorder %s5438_s6, %s5438_s6 }
  0x70   : > { %p5441_p4 = pnand %p5439_p3, %p6443_p12  ;;  %p5448_p8 = por %p5447_p9, %p5446_p7 }
  0x72   : > { %p5442_p5 = pneg %p5441_p4 }
  0x74   : > { %p5449_p6 = pnand %p5448_p8, %p5442_p5 }
  0x76   : > { %5452 = shalt.err (!%p5449_p6)
}
  0x77   : > { %s7254_s23 = smov 64   ;;  %s7256_s27 = smov 4  }
  0x78   : > { %4995 = dma.hbm_to_vmem [thread:$0]  (!%p6435_p10), %s7331_s17, 1024, %s868_s28, [#allocation6], %s7254_s23, %s7254_s23, %s7256_s27  }
  0x79   : > { %s97_s6 = sadd.s32 1, %s6127_s9  ;;  %s100_s7 = sadd.s32 1, %s6131_s15 }
  0x7a   : > { %p98_p6 = scmp.ge.s32.totalorder %s97_s6, 2  ;;  %s458_s11 = sadd.s32 1, %s6115_s20 }
  0x7b   : > { %p465_p8 = scmp.ne.s32.totalorder %s6115_s20, %s6111_s5  ;;  %p466_p11 = scmp.eq.s32.totalorder %s6135_s18, 0 }
  0x7c   : > { %s7416_s6 = smov (%p98_p6, %s97_s6), 0  ;;  %s7418_s7 = smov (!%p98_p6, %s100_s7), %s6131_s15 }
  0x7d   : > { %7344 = sst [smem:[#allocation79_spill]] %s7416_s6  ;;  %s455_s26 = ssub.s32 %s6127_s9, %s7416_s6 }
  0x7e   : > { %p102_p13 = scmp.ge.s32.totalorder %s7418_s7, 2  ;;  %p456_p0 = scmp.eq.s32.totalorder %s455_s26, 0 }
  0x7f   : > { %p6469_p1 = por %p466_p11, %p465_p8  ;;  %p471_p2 = scmp.ne.s32.totalorder %s6111_s5, %s6107_s0 }
  0x80   : > { %s7420_s7 = smov (%p102_p13, %s7418_s7), 0  ;;  %p7348_p3 = scmp.ne.s32.totalorder %s7339_s22, 0 }
  0x81   : > { %7346 = sst [smem:[#allocation80_spill]] %s7420_s7  ;;  %p5071_p5 = scmp.lt.s32.totalorder %s6135_s18, 4 }
  0x82   : > { %s6478_s23 = scalar_select %p456_p0, %s6115_s20, %s458_s11  }
  0x83   : > { %p6482_p4 = por %p7348_p3, %p471_p2  ;;  %s1058_s17 = sand.u32 1, %s6135_s18  }
  0x84   : > { %7347 = sst [smem:[#allocation81_spill]] %s6478_s23  ;;  %s6489_s26 = sand.u32 1, %s6115_s20  }
  0x85   : > { %s7349_s27 = scalar_select %p6482_p4, 1, 0 }
  0x86   : > { %s4404_s6 = sshll.u32 %s6489_s26, 6  ;;  %s4611_s15 = sshll.u32 %s6127_s9, 10 }
  0x87   : > { %7350 = sst [smem:[#allocation82_spill]] %s7349_s27  ;;  %s6494_s16 = scalar_lea.hbm %s7330_s4, %s4611_s15 }
  0x88   : > { %s1062_s0 = scalar_lea.vmem [#allocation21], %s4404_s6  ;;  %p6500_p7 = pnand %p5071_p5, %p6469_p1 }
  0x89   : > { %s1069_s11 = sshll.u32 %s1062_s0, 4  ;;  %s6505_s23 = sshll.u32 %s6127_s9, 4  ;;  %s6496_s11 = int_to_ptr.vmem [resolvable:$true] %s1069_s11 }
  0x8a   : > { %s7351_s7 = scalar_select %p6500_p7, 1, 0 }
  0x8b   : > { %s6509_s20 = scalar_lea.hbm %s6305_s24, %s6505_s23  ;;  %s6511_s15 = scalar_lea.sflag [#allocation6], %s1058_s17 }
  0x8c   : > { %s5453_s27 = scalar_lea.hbm %s6494_s16, 1024  ;;  %p6517_p6 = pneg %p6500_p7 }
  0x8d   : > { %p5454_p9 = scmp.ne.s32.totalorder %s6494_s16, %s5453_s27  ;;  %s5458_s28 = scalar_lea.hbm %s7330_s4, 2048 }
  0x8e   : > { %s7352_s6 = scalar_select %p6517_p6, 1, 0 }
  0x8f   : > { %p5456_p8 = pnand %p6517_p6, %p5454_p9  ;;  %p5459_p13 = scmp.lt.u32.totalorder %s6494_s16, %s7330_s4 }
  0x90   : > { %p5460_p0 = scmp.lt.u32.totalorder %s5458_s28, %s5453_s27  ;;  %p5462_p2 = scmp.lt.u32.totalorder %s5453_s27, %s6494_s16 }
  0x91   : > { %p5457_p11 = pneg %p5456_p8 }
  0x92   : > { %p5461_p1 = por %p5460_p0, %p5459_p13 }
  0x94   : > { %p5463_p3 = por %p5462_p2, %p5461_p1 }
  0x96   : > { %p5464_p5 = pnand %p5463_p3, %p5457_p11 }
  0x98   : > { %5467 = shalt.err (!%p5464_p5)
}
  0x99   : > { %s5468_s17 = scalar_lea.vmem %s6496_s11, 1024  ;;  %s6173_s0 = smov [#allocation21]  }
  0x9a   : > { %p5469_p4 = scmp.ne.s32.totalorder %s6496_s11, %s5468_s17  ;;  %s5473_s9 = sshll.u32 %s6173_s0, 4  ;;  %s5474_s9 = int_to_ptr.vmem [resolvable:$false] %s5473_s9 }
  0x9b   : > { %s5475_s5 = scalar_lea.vmem %s5474_s9, 2048  ;;  %p5476_p9 = scmp.lt.s32.totalorder %s6496_s11, %s5474_s9 }
  0x9c   : > { %p5471_p10 = pnand %p5469_p4, %p6517_p6  ;;  %p5477_p8 = scmp.lt.s32.totalorder %s5475_s5, %s5468_s17 }
  0x9e   : > { %p5472_p12 = pneg %p5471_p10  ;;  %p5478_p13 = por %p5477_p8, %p5476_p9 }
  0xa0   : > { %p5479_p0 = pnand %p5478_p13, %p5472_p12 }
  0xa2   : > { %5482 = shalt.err (!%p5479_p0)
}
  0xa3   : > { %s7353_s27 = smov 4   ;;  %s7354_s28 = smov 64  }
  0xa4   : > { %5038 = dma.hbm_to_vmem [thread:$0]  (!%p6500_p7), %s6494_s16, 1024, %s6496_s11, %s6511_s15, %s7354_s28, %s7354_s28, %s7353_s27  }
  0xa5   : > { %s1082_s5 = scalar_lea.vmem [#allocation22], %s6489_s26  ;;  %s6543_s17 = scalar_lea.hbm %s6310_s29, %s6505_s23 }
  0xa6   : > { %s1089_s9 = sshll.u32 %s1082_s5, 4  ;;  %s5483_s0 = scalar_lea.hbm %s6509_s20, 16  ;;  %s1090_s9 = int_to_ptr.vmem [resolvable:$true] %s1089_s9 }
  0xa7   : > { %p5484_p10 = scmp.ne.s32.totalorder %s6509_s20, %s5483_s0  ;;  %s5488_s4 = scalar_lea.hbm %s6305_s24, 32 }
  0xa8   : > { %p5489_p11 = scmp.lt.u32.totalorder %s6509_s20, %s6305_s24  ;;  %p5490_p1 = scmp.lt.u32.totalorder %s5488_s4, %s5483_s0 }
  0xa9   : > { %p5486_p12 = pnand %p5484_p10, %p6517_p6  ;;  %p5492_p3 = scmp.lt.u32.totalorder %s5483_s0, %s6509_s20 }
  0xaa   : > { %p5491_p2 = por %p5490_p1, %p5489_p11 }
  0xab   : > { %p5487_p4 = pneg %p5486_p12 }
  0xac   : > { %p5493_p5 = por %p5492_p3, %p5491_p2 }
  0xae   : > { %p5494_p9 = pnand %p5493_p5, %p5487_p4 }
  0xb0   : > { %5497 = shalt.err (!%p5494_p9)
}
  0xb1   : > { %s5498_s18 = scalar_lea.vmem %s1090_s9, 16  ;;  %s6174_s16 = smov [#allocation22]  }
  0xb2   : > { %p5499_p8 = scmp.ne.s32.totalorder %s1090_s9, %s5498_s18  ;;  %s5503_s11 = sshll.u32 %s6174_s16, 4  ;;  %s5504_s11 = int_to_ptr.vmem [resolvable:$false] %s5503_s11 }
  0xb3   : > { %s5505_s5 = scalar_lea.vmem %s5504_s11, 32  ;;  %p5506_p10 = scmp.lt.s32.totalorder %s1090_s9, %s5504_s11 }
  0xb4   : > { %p5501_p13 = pnand %p5499_p8, %p6517_p6  ;;  %p5507_p12 = scmp.lt.s32.totalorder %s5505_s5, %s5498_s18 }
  0xb6   : > { %p5502_p0 = pneg %p5501_p13  ;;  %p5508_p7 = por %p5507_p12, %p5506_p10 }
  0xb8   : > { %p5509_p1 = pnand %p5508_p7, %p5502_p0 }
  0xba   : > { %5512 = shalt.err (!%p5509_p1)
}
  0xbb   : > { %p7355_p11 = scmp.ne.s32.totalorder %s7351_s7, 0  ;;  %s1099_s4 = scalar_lea.vmem [#allocation23], %s6489_s26 }
  0xbc   : > { %s1106_s18 = sshll.u32 %s1099_s4, 4  ;;  %s6562_s0 = scalar_lea.hbm %s7325_s13, %s6505_s23  ;;  %s1107_s18 = int_to_ptr.vmem [resolvable:$true] %s1106_s18 }
  0xbd   : > { %5041 = dma.hbm_to_vmem [thread:$0]  (!%p7355_p11), %s6509_s20, 16, %s1090_s9, %s6511_s15  }
  0xbe   : > { %s5513_s16 = scalar_lea.hbm %s6543_s17, 16  ;;  %s5518_s11 = scalar_lea.hbm %s6310_s29, 32 }
  0xbf   : > { %p5514_p7 = scmp.ne.s32.totalorder %s6543_s17, %s5513_s16  ;;  %p5519_p3 = scmp.lt.u32.totalorder %s6543_s17, %s6310_s29 }
  0xc0   : > { %p5520_p5 = scmp.lt.u32.totalorder %s5518_s11, %s5513_s16  ;;  %p5522_p8 = scmp.lt.u32.totalorder %s5513_s16, %s6543_s17 }
  0xc1   : > { %p5516_p4 = pnand %p5514_p7, %p6517_p6 }
  0xc2   : > { %p5521_p9 = por %p5520_p5, %p5519_p3 }
  0xc3   : > { %p5517_p2 = pneg %p5516_p4 }
  0xc4   : > { %p5523_p13 = por %p5522_p8, %p5521_p9 }
  0xc6   : > { %p5524_p0 = pnand %p5523_p13, %p5517_p2 }
  0xc8   : > { %5527 = shalt.err (!%p5524_p0)
}
  0xc9   : > { %s5528_s5 = scalar_lea.vmem %s1107_s18, 16  ;;  %s6175_s20 = smov [#allocation23]  }
  0xca   : > { %p5529_p10 = scmp.ne.s32.totalorder %s1107_s18, %s5528_s5  ;;  %s5533_s9 = sshll.u32 %s6175_s20, 4  ;;  %s5534_s9 = int_to_ptr.vmem [resolvable:$false] %s5533_s9 }
  0xcb   : > { %s5535_s4 = scalar_lea.vmem %s5534_s9, 32  ;;  %p5536_p7 = scmp.lt.s32.totalorder %s1107_s18, %s5534_s9 }
  0xcc   : > { %p5531_p12 = pnand %p5529_p10, %p6517_p6  ;;  %p5537_p4 = scmp.lt.s32.totalorder %s5535_s4, %s5528_s5 }
  0xce   : > { %p5532_p1 = pneg %p5531_p12  ;;  %p5538_p11 = por %p5537_p4, %p5536_p7 }
  0xd0   : > { %p5539_p3 = pnand %p5538_p11, %p5532_p1 }
  0xd2   : > { %5542 = shalt.err (!%p5539_p3)
}
  0xd3   : > { %p7356_p5 = scmp.ne.s32.totalorder %s7351_s7, 0  ;;  %s1116_s16 = scalar_lea.vmem [#allocation24], %s6489_s26 }
  0xd4   : > { %s1123_s11 = sshll.u32 %s1116_s16, 4  ;;  %s6176_s5 = smov [#allocation7]   ;;  %s6579_s11 = int_to_ptr.vmem [resolvable:$true] %s1123_s11 }
  0xd5   : > { %5044 = dma.hbm_to_vmem [thread:$0]  (!%p7356_p5), %s6543_s17, 16, %s1107_s18, %s6511_s15  }
  0xd6   : > { %s881_s20 = sshll.u32 %s6176_s5, 4  ;;  %s5543_s9 = scalar_lea.hbm %s6562_s0, 16  ;;  %s882_s20 = int_to_ptr.vmem [resolvable:$true] %s881_s20 }
  0xd7   : > { %p5544_p11 = scmp.ne.s32.totalorder %s6562_s0, %s5543_s9  ;;  %s5548_s4 = scalar_lea.hbm %s7325_s13, 32 }
  0xd8   : > { %p5549_p8 = scmp.lt.u32.totalorder %s6562_s0, %s7325_s13  ;;  %p5550_p13 = scmp.lt.u32.totalorder %s5548_s4, %s5543_s9 }
  0xd9   : > { %p5546_p2 = pnand %p5544_p11, %p6517_p6  ;;  %p5552_p10 = scmp.lt.u32.totalorder %s5543_s9, %s6562_s0 }
  0xda   : > { %p5551_p0 = por %p5550_p13, %p5549_p8 }
  0xdb   : > { %p5547_p9 = pneg %p5546_p2 }
  0xdc   : > { %p5553_p12 = por %p5552_p10, %p5551_p0 }
  0xde   : > { %p5554_p1 = pnand %p5553_p12, %p5547_p9 }
  0xe0   : > { %5557 = shalt.err (!%p5554_p1)
}
  0xe1   : > { %s5558_s17 = scalar_lea.vmem %s6579_s11, 16  ;;  %s6177_s18 = smov [#allocation24]  }
  0xe2   : > { %p5559_p7 = scmp.ne.s32.totalorder %s6579_s11, %s5558_s17  ;;  %s5563_s16 = sshll.u32 %s6177_s18, 4  ;;  %s5564_s16 = int_to_ptr.vmem [resolvable:$false] %s5563_s16 }
  0xe3   : > { %s5565_s5 = scalar_lea.vmem %s5564_s16, 32  ;;  %p5566_p11 = scmp.lt.s32.totalorder %s6579_s11, %s5564_s16 }
  0xe4   : > { %p5561_p4 = pnand %p5559_p7, %p6517_p6  ;;  %p5567_p2 = scmp.lt.s32.totalorder %s5565_s5, %s5558_s17 }
  0xe6   : > { %p5562_p3 = pneg %p5561_p4  ;;  %p5568_p8 = por %p5567_p2, %p5566_p11 }
  0xe8   : > { %p5569_p13 = pnand %p5568_p8, %p5562_p3 }
  0xea   : > { %5572 = shalt.err (!%p5569_p13)
}
  0xeb   : > { %5047 = dma.hbm_to_vmem [thread:$0]  (!%p7356_p5), %s6562_s0, 16, %s6579_s11, %s6511_s15  }
  0xec   : > { %s5573_s9 = scalar_lea.hbm %s6235_s21, 16  ;;  %p7357_p0 = scmp.ne.s32.totalorder %s7343_s1, 0 }
  0xed   : > { %p5574_p9 = scmp.ne.s32.totalorder %s6235_s21, %s5573_s9  ;;  %p5580_p1 = scmp.lt.u32.totalorder %s5573_s9, %s6235_s21 }
  0xef   : > { %p5576_p10 = pnand %p5574_p9, %p7357_p0 }
  0xf1   : > { %p5577_p12 = pneg %p5576_p10 }
  0xf3   : > { %p5582_p7 = pnand %p5580_p1, %p5577_p12 }
  0xf5   : > { %5585 = shalt.err (!%p5582_p7)
}
  0xf6   : > { %s5586_s4 = scalar_lea.vmem %s882_s20, 16  ;;  %s5593_s17 = scalar_lea.vmem %s882_s20, 32 }
  0xf7   : > { %p5587_p4 = scmp.ne.s32.totalorder %s882_s20, %s5586_s4  ;;  %p5594_p2 = scmp.lt.s32.totalorder %s882_s20, %s882_s20 }
  0xf8   : > { %p5595_p8 = scmp.lt.s32.totalorder %s5593_s17, %s5586_s4 }
  0xf9   : > { %p5589_p3 = pnand %p5587_p4, %p7357_p0 }
  0xfa   : > { %p5596_p13 = por %p5595_p8, %p5594_p2 }
  0xfb   : > { %p5590_p11 = pneg %p5589_p3 }
  0xfd   : > { %p5597_p5 = pnand %p5596_p13, %p5590_p11 }
  0xff   : > { %5600 = shalt.err (!%p5597_p5)
}
 0x100   : > { %p7358_p6 = scmp.ne.s32.totalorder %s7342_s2, 0  ;;  %s6178_s0 = smov [#allocation10]  }
 0x101   : > { %s907_s11 = sshll.u32 %s6178_s0, 4  ;;  %s6179_s18 = smov [#allocation13]   ;;  %s908_s11 = int_to_ptr.vmem [resolvable:$true] %s907_s11 }
 0x102   : > { %4998 = dma.hbm_to_vmem [thread:$0]  (!%p7358_p6), %s6235_s21, 16, %s882_s20, [#allocation8]  }
 0x103   : > { %s932_s16 = sshll.u32 %s6179_s18, 4  ;;  %s5601_s5 = scalar_lea.hbm %s7329_s3, 1024  ;;  %s933_s16 = int_to_ptr.vmem [resolvable:$true] %s932_s16 }
 0x104   : > { %p5602_p9 = scmp.ne.s32.totalorder %s7329_s3, %s5601_s5  ;;  %p5608_p1 = scmp.lt.u32.totalorder %s5601_s5, %s7329_s3 }
 0x106   : > { %p5604_p10 = pnand %p5602_p9, %p7357_p0 }
 0x108   : > { %p5605_p12 = pneg %p5604_p10 }
 0x10a   : > { %p5610_p5 = pnand %p5608_p1, %p5605_p12 }
 0x10c   : > { %5613 = shalt.err (!%p5610_p5)
}
 0x10d   : > { %s5614_s9 = scalar_lea.vmem %s908_s11, 1024  ;;  %p5622_p11 = scmp.lt.s32.totalorder %s908_s11, %s908_s11 }
 0x10e   : > { %p5615_p7 = scmp.ne.s32.totalorder %s908_s11, %s5614_s9  ;;  %p5623_p2 = scmp.lt.s32.totalorder %s5614_s9, %s5614_s9 }
 0x110   : > { %p5617_p4 = pnand %p5615_p7, %p7357_p0  ;;  %p5624_p8 = por %p5623_p2, %p5622_p11 }
 0x112   : > { %p5618_p3 = pneg %p5617_p4 }
 0x114   : > { %p5625_p13 = pnand %p5624_p8, %p5618_p3 }
 0x116   : > { %5628 = shalt.err (!%p5625_p13)
}
 0x117   : > { %5004 = dma.hbm_to_vmem [thread:$0]  (!%p7358_p6), %s7329_s3, 1024, %s908_s11, [#allocation11], %s7354_s28, %s7354_s28, %s7353_s27  }
 0x118   : > { %s5629_s20 = scalar_lea.hbm %s7324_s14, 16 }
 0x119   : > { %p5630_p9 = scmp.ne.s32.totalorder %s7324_s14, %s5629_s20  ;;  %p5636_p1 = scmp.lt.u32.totalorder %s5629_s20, %s7324_s14 }
 0x11b   : > { %p5632_p10 = pnand %p5630_p9, %p7357_p0 }
 0x11d   : > { %p5633_p12 = pneg %p5632_p10 }
 0x11f   : > { %p5638_p5 = pnand %p5636_p1, %p5633_p12 }
 0x121   : > { %5641 = shalt.err (!%p5638_p5)
}
 0x122   : > { %s5642_s4 = scalar_lea.vmem %s933_s16, 16  ;;  %s5649_s17 = scalar_lea.vmem %s933_s16, 32 }
 0x123   : > { %p5643_p7 = scmp.ne.s32.totalorder %s933_s16, %s5642_s4  ;;  %p5650_p11 = scmp.lt.s32.totalorder %s933_s16, %s933_s16 }
 0x124   : > { %p5651_p2 = scmp.lt.s32.totalorder %s5649_s17, %s5642_s4 }
 0x125   : > { %p5645_p4 = pnand %p5643_p7, %p7357_p0 }
 0x126   : > { %p5652_p8 = por %p5651_p2, %p5650_p11 }
 0x127   : > { %p5646_p3 = pneg %p5645_p4 }
 0x129   : > { %p5653_p13 = pnand %p5652_p8, %p5646_p3 }
 0x12b   : > { %5656 = shalt.err (!%p5653_p13)
}
 0x12c   : > { %5010 = dma.hbm_to_vmem [thread:$0]  (!%p7358_p6), %s7324_s14, 16, %s933_s16, [#allocation14]  }
 0x12d   : > { %s6180_s0 = smov [#allocation16]   ;;  %s6634_s18 = scalar_lea.hbm %s7327_s12, %s6505_s23 }
 0x12e   : > { %s957_s11 = sshll.u32 %s6180_s0, 4  ;;  %s5657_s5 = scalar_lea.hbm %s6275_s30, 16  ;;  %s958_s11 = int_to_ptr.vmem [resolvable:$true] %s957_s11 }
 0x12f   : > { %p5658_p9 = scmp.ne.s32.totalorder %s6275_s30, %s5657_s5  ;;  %p5664_p1 = scmp.lt.u32.totalorder %s5657_s5, %s6275_s30 }
 0x131   : > { %p5660_p10 = pnand %p5658_p9, %p7357_p0 }
 0x133   : > { %p5661_p12 = pneg %p5660_p10 }
 0x135   : > { %p5666_p5 = pnand %p5664_p1, %p5661_p12 }
 0x137   : > { %5669 = shalt.err (!%p5666_p5)
}
 0x138   : > { %s5670_s9 = scalar_lea.vmem %s958_s11, 16  ;;  %s5677_s16 = scalar_lea.vmem %s958_s11, 32 }
 0x139   : > { %p5671_p7 = scmp.ne.s32.totalorder %s958_s11, %s5670_s9  ;;  %p5678_p11 = scmp.lt.s32.totalorder %s958_s11, %s958_s11 }
 0x13a   : > { %p5679_p2 = scmp.lt.s32.totalorder %s5677_s16, %s5670_s9 }
 0x13b   : > { %p5673_p4 = pnand %p5671_p7, %p7357_p0 }
 0x13c   : > { %p5680_p8 = por %p5679_p2, %p5678_p11 }
 0x13d   : > { %p5674_p3 = pneg %p5673_p4 }
 0x13f   : > { %p5681_p13 = pnand %p5680_p8, %p5674_p3 }
 0x141   : > { %5684 = shalt.err (!%p5681_p13)
}
 0x142   : > { %5016 = dma.hbm_to_vmem [thread:$0]  (!%p7358_p6), %s6275_s30, 16, %s958_s11, [#allocation17]  }
 0x143   : > { %s1156_s20 = scalar_lea.vmem [#allocation25], %s6489_s26  ;;  %s6181_s17 = smov [#allocation9]  }
 0x144   : > { %s1163_s4 = sshll.u32 %s1156_s20, 4  ;;  %s891_s0 = sshll.u32 %s6181_s17, 4  ;;  %s6647_s4 = int_to_ptr.vmem [resolvable:$true] %s1163_s4  ;;  %s892_s0 = int_to_ptr.vmem [resolvable:$true] %s891_s0 }
 0x145   : > { %s5685_s5 = scalar_lea.hbm %s6634_s18, 16  ;;  %p7359_p10 = scmp.ne.s32.totalorder %s7352_s6, 0 }
 0x146   : > { %p5686_p9 = scmp.ne.s32.totalorder %s6634_s18, %s5685_s5  ;;  %s5690_s9 = scalar_lea.hbm %s7327_s12, 32 }
 0x147   : > { %p5691_p5 = scmp.lt.u32.totalorder %s6634_s18, %s7327_s12  ;;  %p5692_p7 = scmp.lt.u32.totalorder %s5690_s9, %s5685_s5 }
 0x148   : > { %p5688_p12 = pnand %p5686_p9, %p7359_p10  ;;  %p5694_p3 = scmp.lt.u32.totalorder %s5685_s5, %s6634_s18 }
 0x149   : > { %p5693_p4 = por %p5692_p7, %p5691_p5 }
 0x14a   : > { %p5689_p1 = pneg %p5688_p12 }
 0x14b   : > { %p5695_p11 = por %p5694_p3, %p5693_p4 }
 0x14d   : > { %p5696_p2 = pnand %p5695_p11, %p5689_p1 }
 0x14f   : > { %5699 = shalt.err (!%p5696_p2)
}
 0x150   : > { %s5700_s11 = scalar_lea.vmem %s6647_s4, 16  ;;  %s6182_s16 = smov [#allocation25]  }
 0x151   : > { %p5701_p8 = scmp.ne.s32.totalorder %s6647_s4, %s5700_s11  ;;  %s5705_s20 = sshll.u32 %s6182_s16, 4  ;;  %s5706_s20 = int_to_ptr.vmem [resolvable:$false] %s5705_s20 }
 0x152   : > { %s5707_s17 = scalar_lea.vmem %s5706_s20, 32  ;;  %p5708_p9 = scmp.lt.s32.totalorder %s6647_s4, %s5706_s20 }
 0x153   : > { %p5703_p13 = pnand %p5701_p8, %p7359_p10  ;;  %p5709_p12 = scmp.lt.s32.totalorder %s5707_s17, %s5700_s11 }
 0x155   : > { %p5704_p6 = pneg %p5703_p13  ;;  %p5710_p5 = por %p5709_p12, %p5708_p9 }
 0x157   : > { %p5711_p7 = pnand %p5710_p5, %p5704_p6 }
 0x159   : > { %5714 = shalt.err (!%p5711_p7)
}
 0x15a   : > { %p7360_p1 = scmp.ne.s32.totalorder %s7351_s7, 0  ;;  %s5715_s5 = scalar_lea.hbm %s6240_s25, 2048 }
 0x15b   : > { %p5716_p4 = scmp.ne.s32.totalorder %s6240_s25, %s5715_s5  ;;  %p5722_p2 = scmp.lt.u32.totalorder %s5715_s5, %s6240_s25 }
 0x15c   : > { %5050 = dma.hbm_to_vmem [thread:$0]  (!%p7360_p1), %s6634_s18, 16, %s6647_s4, %s6511_s15  }
 0x15d   : > { %p5718_p3 = pnand %p5716_p4, %p7357_p0 }
 0x15f   : > { %p5719_p11 = pneg %p5718_p3 }
 0x161   : > { %p5724_p8 = pnand %p5722_p2, %p5719_p11 }
 0x163   : > { %5727 = shalt.err (!%p5724_p8)
}
 0x164   : > { %s5728_s9 = scalar_lea.vmem %s892_s0, 2048  ;;  %p5736_p12 = scmp.lt.s32.totalorder %s892_s0, %s892_s0 }
 0x165   : > { %p5729_p6 = scmp.ne.s32.totalorder %s892_s0, %s5728_s9  ;;  %p5737_p5 = scmp.lt.s32.totalorder %s5728_s9, %s5728_s9 }
 0x167   : > { %p5731_p13 = pnand %p5729_p6, %p7357_p0  ;;  %p5738_p7 = por %p5737_p5, %p5736_p12 }
 0x169   : > { %p5732_p9 = pneg %p5731_p13 }
 0x16b   : > { %p5739_p10 = pnand %p5738_p7, %p5732_p9 }
 0x16d   : > { %5742 = shalt.err (!%p5739_p10)
}
 0x16e   : > { %s6183_s18 = smov 128   ;;  %s6184_s4 = smov 8  }
 0x16f   : > { %p7361_p4 = scmp.ne.s32.totalorder %s7342_s2, 0  ;;  %s6185_s11 = smov [#allocation12]  }
 0x170   : > { %s921_s16 = sshll.u32 %s6185_s11, 4  ;;  %s6186_s20 = smov [#allocation15]   ;;  %s922_s16 = int_to_ptr.vmem [resolvable:$true] %s921_s16 }
 0x171   : > { %5001 = dma.hbm_to_vmem [thread:$0]  (!%p7361_p4), %s6240_s25, 2048, %s892_s0, [#allocation8], %s6183_s18, %s6183_s18, %s6184_s4  }
 0x172   : > { %s943_s17 = sshll.u32 %s6186_s20, 4  ;;  %s5743_s5 = scalar_lea.hbm %s7328_s8, 16  ;;  %s944_s17 = int_to_ptr.vmem [resolvable:$true] %s943_s17 }
 0x173   : > { %p5744_p3 = scmp.ne.s32.totalorder %s7328_s8, %s5743_s5  ;;  %p5750_p2 = scmp.lt.u32.totalorder %s5743_s5, %s7328_s8 }
 0x175   : > { %p5746_p11 = pnand %p5744_p3, %p7357_p0 }
 0x177   : > { %p5747_p10 = pneg %p5746_p11 }
 0x179   : > { %p5752_p8 = pnand %p5750_p2, %p5747_p10 }
 0x17b   : > { %5755 = shalt.err (!%p5752_p8)
}
 0x17c   : > { %s5756_s9 = scalar_lea.vmem %s922_s16, 16  ;;  %s5763_s0 = scalar_lea.vmem %s922_s16, 32 }
 0x17d   : > { %p5757_p6 = scmp.ne.s32.totalorder %s922_s16, %s5756_s9  ;;  %p5764_p12 = scmp.lt.s32.totalorder %s922_s16, %s922_s16 }
 0x17e   : > { %p5765_p5 = scmp.lt.s32.totalorder %s5763_s0, %s5756_s9 }
 0x17f   : > { %p5759_p13 = pnand %p5757_p6, %p7357_p0 }
 0x180   : > { %p5766_p7 = por %p5765_p5, %p5764_p12 }
 0x181   : > { %p5760_p9 = pneg %p5759_p13 }
 0x183   : > { %p5767_p1 = pnand %p5766_p7, %p5760_p9 }
 0x185   : > { %5770 = shalt.err (!%p5767_p1)
}
 0x186   : > { %5007 = dma.hbm_to_vmem [thread:$0]  (!%p7361_p4), %s7328_s8, 16, %s922_s16, [#allocation11]  }
 0x187   : > { %s5771_s18 = scalar_lea.hbm %s7323_s19, 16 }
 0x188   : > { %p5772_p3 = scmp.ne.s32.totalorder %s7323_s19, %s5771_s18  ;;  %p5778_p2 = scmp.lt.u32.totalorder %s5771_s18, %s7323_s19 }
 0x18a   : > { %p5774_p11 = pnand %p5772_p3, %p7357_p0 }
 0x18c   : > { %p5775_p10 = pneg %p5774_p11 }
 0x18e   : > { %p5780_p8 = pnand %p5778_p2, %p5775_p10 }
 0x190   : > { %5783 = shalt.err (!%p5780_p8)
}
 0x191   : > { %s5784_s4 = scalar_lea.vmem %s944_s17, 16  ;;  %s5791_s11 = scalar_lea.vmem %s944_s17, 32 }
 0x192   : > { %p5785_p1 = scmp.ne.s32.totalorder %s944_s17, %s5784_s4  ;;  %p5792_p9 = scmp.lt.s32.totalorder %s944_s17, %s944_s17 }
 0x193   : > { %p5793_p12 = scmp.lt.s32.totalorder %s5791_s11, %s5784_s4 }
 0x194   : > { %p5787_p6 = pnand %p5785_p1, %p7357_p0 }
 0x195   : > { %p5794_p5 = por %p5793_p12, %p5792_p9 }
 0x196   : > { %p5788_p13 = pneg %p5787_p6 }
 0x198   : > { %p5795_p7 = pnand %p5794_p5, %p5788_p13 }
 0x19a   : > { %5798 = shalt.err (!%p5795_p7)
}
 0x19b   : > { %s7362_s16 = sld [smem:[#allocation63_spill]]  ;;  %s7363_s20 = sld [smem:[#allocation53_spill]] }
 0x19c   : > { %5013 = dma.hbm_to_vmem [thread:$0]  (!%p7361_p4), %s7323_s19, 16, %s944_s17, [#allocation14]  }
 0x19d   : > { %s6187_s5 = smov [#allocation18]  }
 0x19e   : > { %s968_s9 = sshll.u32 %s6187_s5, 4  ;;  %s969_s9 = int_to_ptr.vmem [resolvable:$true] %s968_s9 }
 0x1a1   : > { %s7364_s3 = smov %s7363_s20  ;;  %s6699_s0 = scalar_lea.hbm %s7362_s16, %s6505_s23 }
 0x1a2   : > { %s5799_s18 = scalar_lea.hbm %s7363_s20, 16 }
 0x1a3   : > { %p5800_p3 = scmp.ne.s32.totalorder %s7364_s3, %s5799_s18  ;;  %p5806_p2 = scmp.lt.u32.totalorder %s5799_s18, %s7364_s3 }
 0x1a5   : > { %p5802_p11 = pnand %p5800_p3, %p7357_p0 }
 0x1a7   : > { %p5803_p10 = pneg %p5802_p11 }
 0x1a9   : > { %p5808_p8 = pnand %p5806_p2, %p5803_p10 }
 0x1ab   : > { %5811 = shalt.err (!%p5808_p8)
}
 0x1ac   : > { %s5812_s4 = scalar_lea.vmem %s969_s9, 16  ;;  %s5819_s17 = scalar_lea.vmem %s969_s9, 32 }
 0x1ad   : > { %p5813_p1 = scmp.ne.s32.totalorder %s969_s9, %s5812_s4  ;;  %p5820_p9 = scmp.lt.s32.totalorder %s969_s9, %s969_s9 }
 0x1ae   : > { %p5821_p12 = scmp.lt.s32.totalorder %s5819_s17, %s5812_s4 }
 0x1af   : > { %p5815_p6 = pnand %p5813_p1, %p7357_p0 }
 0x1b0   : > { %p5822_p5 = por %p5821_p12, %p5820_p9 }
 0x1b1   : > { %p5816_p13 = pneg %p5815_p6 }
 0x1b3   : > { %p5823_p7 = pnand %p5822_p5, %p5816_p13 }
 0x1b5   : > { %5826 = shalt.err (!%p5823_p7)
}
 0x1b6   : > { %5019 = dma.hbm_to_vmem [thread:$0]  (!%p7361_p4), %s7364_s3, 16, %s969_s9, [#allocation17]  }
 0x1b7   : > { %s1173_s11 = scalar_lea.vmem [#allocation26], %s6489_s26  ;;  %s6188_s5 = smov [#allocation19]  }
 0x1b8   : > { %s1180_s20 = sshll.u32 %s1173_s11, 4  ;;  %s979_s18 = sshll.u32 %s6188_s5, 4  ;;  %s6712_s20 = int_to_ptr.vmem [resolvable:$true] %s1180_s20  ;;  %s980_s18 = int_to_ptr.vmem [resolvable:$true] %s979_s18 }
 0x1b9   : > { %s5827_s4 = scalar_lea.hbm %s6699_s0, 16  ;;  %p7365_p11 = scmp.ne.s32.totalorder %s7352_s6, 0 }
 0x1ba   : > { %p5828_p3 = scmp.ne.s32.totalorder %s6699_s0, %s5827_s4  ;;  %s5832_s17 = scalar_lea.hbm %s7362_s16, 32 }
 0x1bb   : > { %p5833_p8 = scmp.lt.u32.totalorder %s6699_s0, %s7362_s16  ;;  %p5834_p1 = scmp.lt.u32.totalorder %s5832_s17, %s5827_s4 }
 0x1bc   : > { %p5830_p10 = pnand %p5828_p3, %p7365_p11  ;;  %p5836_p13 = scmp.lt.u32.totalorder %s5827_s4, %s6699_s0 }
 0x1bd   : > { %p5835_p6 = por %p5834_p1, %p5833_p8 }
 0x1be   : > { %p5831_p2 = pneg %p5830_p10 }
 0x1bf   : > { %p5837_p9 = por %p5836_p13, %p5835_p6 }
 0x1c1   : > { %p5838_p12 = pnand %p5837_p9, %p5831_p2 }
 0x1c3   : > { %5841 = shalt.err (!%p5838_p12)
}
 0x1c4   : > { %s5842_s9 = scalar_lea.vmem %s6712_s20, 16  ;;  %s6189_s11 = smov [#allocation26]  }
 0x1c5   : > { %p5843_p5 = scmp.ne.s32.totalorder %s6712_s20, %s5842_s9  ;;  %s5847_s5 = sshll.u32 %s6189_s11, 4  ;;  %s5848_s5 = int_to_ptr.vmem [resolvable:$false] %s5847_s5 }
 0x1c6   : > { %s5849_s3 = scalar_lea.vmem %s5848_s5, 32  ;;  %p5850_p3 = scmp.lt.s32.totalorder %s6712_s20, %s5848_s5 }
 0x1c7   : > { %p5845_p7 = pnand %p5843_p5, %p7365_p11  ;;  %p5851_p10 = scmp.lt.s32.totalorder %s5849_s3, %s5842_s9 }
 0x1c9   : > { %p5846_p4 = pneg %p5845_p7  ;;  %p5852_p8 = por %p5851_p10, %p5850_p3 }
 0x1cb   : > { %p5853_p1 = pnand %p5852_p8, %p5846_p4 }
 0x1cd   : > { %5856 = shalt.err (!%p5853_p1)
}
 0x1ce   : > { %p7366_p2 = scmp.ne.s32.totalorder %s7351_s7, 0  ;;  %s7367_s4 = sld [smem:[#allocation54_spill]] }
 0x1d0   : > { %5053 = dma.hbm_to_vmem [thread:$0]  (!%p7366_p2), %s6699_s0, 16, %s6712_s20, %s6511_s15  }
 0x1d4   : > { %s5857_s17 = scalar_lea.hbm %s7367_s4, 16 }
 0x1d5   : > { %p5858_p6 = scmp.ne.s32.totalorder %s7367_s4, %s5857_s17  ;;  %p5864_p12 = scmp.lt.u32.totalorder %s5857_s17, %s7367_s4 }
 0x1d7   : > { %p5860_p13 = pnand %p5858_p6, %p7357_p0 }
 0x1d9   : > { %p5861_p9 = pneg %p5860_p13 }
 0x1db   : > { %p5866_p5 = pnand %p5864_p12, %p5861_p9 }
 0x1dd   : > { %5869 = shalt.err (!%p5866_p5)
}
 0x1de   : > { %s5870_s3 = scalar_lea.vmem %s980_s18, 16  ;;  %s5877_s9 = scalar_lea.vmem %s980_s18, 32 }
 0x1df   : > { %p5871_p4 = scmp.ne.s32.totalorder %s980_s18, %s5870_s3  ;;  %p5878_p10 = scmp.lt.s32.totalorder %s980_s18, %s980_s18 }
 0x1e0   : > { %p5879_p8 = scmp.lt.s32.totalorder %s5877_s9, %s5870_s3 }
 0x1e1   : > { %p5873_p7 = pnand %p5871_p4, %p7357_p0 }
 0x1e2   : > { %p5880_p1 = por %p5879_p8, %p5878_p10 }
 0x1e3   : > { %p5874_p3 = pneg %p5873_p7 }
 0x1e5   : > { %p5881_p2 = pnand %p5880_p1, %p5874_p3 }
 0x1e7   : > { %5884 = shalt.err (!%p5881_p2)
}
 0x1e8   : > { %p7368_p11 = scmp.ne.s32.totalorder %s7342_s2, 0  ;;  %s7369_s0 = sld [smem:[#allocation65_spill]] }
 0x1e9   : > { %s6190_s20 = smov [#allocation28]   ;;  %s6191_s5 = smov [#allocation29]  }
 0x1ea   : > { %5022 = dma.hbm_to_vmem [thread:$0]  (!%p7368_p11), %s7367_s4, 16, %s980_s18, [#allocation20]  }
 0x1eb   : > { %s990_s11 = sshll.u32 %s6190_s20, 4  ;;  %s1001_s17 = sshll.u32 %s6191_s5, 4  ;;  %s991_s11 = int_to_ptr.vmem [resolvable:$true] %s990_s11  ;;  %s1002_s17 = int_to_ptr.vmem [resolvable:$true] %s1001_s17 }
 0x1ee   : > { %s7370_s8 = smov %s7369_s0  ;;  %s5885_s12 = scalar_lea.hbm %s7369_s0, 16 }
 0x1ef   : > { %p5886_p6 = scmp.ne.s32.totalorder %s7370_s8, %s5885_s12  ;;  %p5892_p12 = scmp.lt.u32.totalorder %s5885_s12, %s7370_s8 }
 0x1f1   : > { %p5888_p13 = pnand %p5886_p6, %p7357_p0 }
 0x1f3   : > { %p5889_p9 = pneg %p5888_p13 }
 0x1f5   : > { %p5894_p2 = pnand %p5892_p12, %p5889_p9 }
 0x1f7   : > { %5897 = shalt.err (!%p5894_p2)
}
 0x1f8   : > { %s5898_s3 = scalar_lea.vmem %s991_s11, 16  ;;  %s5905_s18 = scalar_lea.vmem %s991_s11, 32 }
 0x1f9   : > { %p5899_p5 = scmp.ne.s32.totalorder %s991_s11, %s5898_s3  ;;  %p5906_p3 = scmp.lt.s32.totalorder %s991_s11, %s991_s11 }
 0x1fa   : > { %p5907_p10 = scmp.lt.s32.totalorder %s5905_s18, %s5898_s3 }
 0x1fb   : > { %p5901_p4 = pnand %p5899_p5, %p7357_p0 }
 0x1fc   : > { %p5908_p8 = por %p5907_p10, %p5906_p3 }
 0x1fd   : > { %p5902_p7 = pneg %p5901_p4 }
 0x1ff   : > { %p5909_p1 = pnand %p5908_p8, %p5902_p7 }
 0x201   : > { %5912 = shalt.err (!%p5909_p1)
}
 0x202   : > { %s7371_s9 = sld [smem:[#allocation66_spill]] }
 0x203   : > { %5025 = dma.hbm_to_vmem [thread:$0]  (!%p7368_p11), %s7370_s8, 16, %s991_s11, [#allocation8]  }
 0x208   : > { %s7372_s4 = smov %s7371_s9  ;;  %s5913_s12 = scalar_lea.hbm %s7371_s9, 16 }
 0x209   : > { %p5914_p6 = scmp.ne.s32.totalorder %s7372_s4, %s5913_s12  ;;  %p5920_p12 = scmp.lt.u32.totalorder %s5913_s12, %s7372_s4 }
 0x20b   : > { %p5916_p13 = pnand %p5914_p6, %p7357_p0 }
 0x20d   : > { %p5917_p9 = pneg %p5916_p13 }
 0x20f   : > { %p5922_p2 = pnand %p5920_p12, %p5917_p9 }
 0x211   : > { %5925 = shalt.err (!%p5922_p2)
}
 0x212   : > { %s5926_s0 = scalar_lea.vmem %s1002_s17, 16  ;;  %s5933_s20 = scalar_lea.vmem %s1002_s17, 32 }
 0x213   : > { %p5927_p5 = scmp.ne.s32.totalorder %s1002_s17, %s5926_s0  ;;  %p5934_p3 = scmp.lt.s32.totalorder %s1002_s17, %s1002_s17 }
 0x214   : > { %p5935_p10 = scmp.lt.s32.totalorder %s5933_s20, %s5926_s0 }
 0x215   : > { %p5929_p4 = pnand %p5927_p5, %p7357_p0 }
 0x216   : > { %p5936_p8 = por %p5935_p10, %p5934_p3 }
 0x217   : > { %p5930_p7 = pneg %p5929_p4 }
 0x219   : > { %p5937_p1 = pnand %p5936_p8, %p5930_p7 }
 0x21b   : > { %5940 = shalt.err (!%p5937_p1)
}
 0x21c   : > { %5028 = dma.hbm_to_vmem [thread:$0]  (!%p7368_p11), %s7372_s4, 16, %s1002_s17, [#allocation11]  }
 0x21d   : > { %s6192_s11 = smov [#allocation30]   ;;  %s6193_s3 = smov [#allocation31]  }
 0x21e   : > { %s1011_s5 = sshll.u32 %s6192_s11, 4  ;;  %s1025_s18 = sshll.u32 %s6193_s3, 4  ;;  %s1012_s5 = int_to_ptr.vmem [resolvable:$true] %s1011_s5  ;;  %s1026_s18 = int_to_ptr.vmem [resolvable:$true] %s1025_s18 }
 0x21f   : > { %s5941_s9 = scalar_lea.hbm %s7326_s10, 1024 }
 0x220   : > { %p5942_p6 = scmp.ne.s32.totalorder %s7326_s10, %s5941_s9  ;;  %p5948_p12 = scmp.lt.u32.totalorder %s5941_s9, %s7326_s10 }
 0x222   : > { %p5944_p13 = pnand %p5942_p6, %p7357_p0 }
 0x224   : > { %p5945_p9 = pneg %p5944_p13 }
 0x226   : > { %p5950_p2 = pnand %p5948_p12, %p5945_p9 }
 0x228   : > { %5953 = shalt.err (!%p5950_p2)
}
 0x229   : > { %s5954_s12 = scalar_lea.vmem %s1012_s5, 1024  ;;  %p5962_p3 = scmp.lt.s32.totalorder %s1012_s5, %s1012_s5 }
 0x22a   : > { %p5955_p5 = scmp.ne.s32.totalorder %s1012_s5, %s5954_s12  ;;  %p5963_p10 = scmp.lt.s32.totalorder %s5954_s12, %s5954_s12 }
 0x22c   : > { %p5957_p4 = pnand %p5955_p5, %p7357_p0  ;;  %p5964_p8 = por %p5963_p10, %p5962_p3 }
 0x22e   : > { %p5958_p7 = pneg %p5957_p4 }
 0x230   : > { %p5965_p1 = pnand %p5964_p8, %p5958_p7 }
 0x232   : > { %5968 = shalt.err (!%p5965_p1)
}
 0x233   : > { %s7373_s17 = sld [smem:[#allocation68_spill]] }
 0x234   : > { %5031 = dma.hbm_to_vmem [thread:$0]  (!%p7368_p11), %s7326_s10, 1024, %s1012_s5, [#allocation14], %s7354_s28, %s7354_s28, %s7353_s27  }
 0x239   : > { %s5969_s0 = scalar_lea.hbm %s7373_s17, 16 }
 0x23a   : > { %p5970_p6 = scmp.ne.s32.totalorder %s7373_s17, %s5969_s0  ;;  %p5976_p12 = scmp.lt.u32.totalorder %s5969_s0, %s7373_s17 }
 0x23c   : > { %p5972_p13 = pnand %p5970_p6, %p7357_p0 }
 0x23e   : > { %p5973_p9 = pneg %p5972_p13 }
 0x240   : > { %p5978_p2 = pnand %p5976_p12, %p5973_p9 }
 0x242   : > { %5981 = shalt.err (!%p5978_p2)
}
 0x243   : > { %s5982_s20 = scalar_lea.vmem %s1026_s18, 16  ;;  %s5989_s11 = scalar_lea.vmem %s1026_s18, 32 }
 0x244   : > { %p5983_p5 = scmp.ne.s32.totalorder %s1026_s18, %s5982_s20  ;;  %p5990_p3 = scmp.lt.s32.totalorder %s1026_s18, %s1026_s18 }
 0x245   : > { %p5991_p10 = scmp.lt.s32.totalorder %s5989_s11, %s5982_s20 }
 0x246   : > { %p5985_p4 = pnand %p5983_p5, %p7357_p0 }
 0x247   : > { %p5992_p8 = por %p5991_p10, %p5990_p3 }
 0x248   : > { %p5986_p7 = pneg %p5985_p4 }
 0x24a   : > { %p5993_p1 = pnand %p5992_p8, %p5986_p7 }
 0x24c   : > { %5996 = shalt.err (!%p5993_p1)
}
 0x24d   : > { %s7374_s27 = sld [smem:[#allocation64_spill]]  ;;  %s1190_s1 = scalar_lea.vmem [#allocation27], %s6489_s26 }
 0x24e   : > { %5034 = dma.hbm_to_vmem [thread:$0]  (!%p7368_p11), %s7373_s17, 16, %s1026_s18, [#allocation17]  }
 0x24f   : > { %s1197_s5 = sshll.u32 %s1190_s1, 4  ;;  %p7375_p6 = scmp.ne.s32.totalorder %s7352_s6, 0  ;;  %s1198_s5 = int_to_ptr.vmem [resolvable:$true] %s1197_s5 }
 0x253   : > { %s6787_s28 = scalar_lea.hbm %s7374_s27, %s6505_s23  ;;  %s6002_s2 = scalar_lea.hbm %s7374_s27, 32 }
 0x254   : > { %s5997_s3 = scalar_lea.hbm %s6787_s28, 16  ;;  %p6003_p12 = scmp.lt.u32.totalorder %s6787_s28, %s7374_s27 }
 0x255   : > { %p5998_p0 = scmp.ne.s32.totalorder %s6787_s28, %s5997_s3  ;;  %p6004_p2 = scmp.lt.u32.totalorder %s6002_s2, %s5997_s3 }
 0x256   : > { %p6006_p4 = scmp.lt.u32.totalorder %s5997_s3, %s6787_s28 }
 0x257   : > { %p6000_p13 = pnand %p5998_p0, %p7375_p6  ;;  %p6005_p5 = por %p6004_p2, %p6003_p12 }
 0x259   : > { %p6001_p9 = pneg %p6000_p13  ;;  %p6007_p11 = por %p6006_p4, %p6005_p5 }
 0x25b   : > { %p6008_p7 = pnand %p6007_p11, %p6001_p9 }
 0x25d   : > { %6011 = shalt.err (!%p6008_p7)
}
 0x25e   : > { %s6012_s23 = scalar_lea.vmem %s1198_s5, 16  ;;  %s6194_s26 = smov [#allocation27]  }
 0x25f   : > { %p6013_p3 = scmp.ne.s32.totalorder %s1198_s5, %s6012_s23  ;;  %s6017_s18 = sshll.u32 %s6194_s26, 4  ;;  %s6018_s18 = int_to_ptr.vmem [resolvable:$false] %s6017_s18 }
 0x260   : > { %s6019_s9 = scalar_lea.vmem %s6018_s18, 32  ;;  %p6020_p1 = scmp.lt.s32.totalorder %s1198_s5, %s6018_s18 }
 0x261   : > { %p6015_p10 = pnand %p6013_p3, %p7375_p6  ;;  %p6021_p0 = scmp.lt.s32.totalorder %s6019_s9, %s6012_s23 }
 0x263   : > { %p6016_p8 = pneg %p6015_p10  ;;  %p6022_p13 = por %p6021_p0, %p6020_p1 }
 0x265   : > { %p6023_p2 = pnand %p6022_p13, %p6016_p8 }
 0x267   : > { %6026 = shalt.err (!%p6023_p2)
}
 0x268   : > { %p7376_p12 = scmp.ne.s32.totalorder %s7351_s7, 0  ;;  %s7377_s12 = sld [smem:[#allocation78_spill]] }
 0x26a   : > { %5056 = dma.hbm_to_vmem [thread:$0]  (!%p7376_p12), %s6787_s28, 16, %s1198_s5, %s6511_s15  }
 0x26e   : > { %p7378_p9 = scmp.ne.s32.totalorder %s7377_s12, 0 }
 0x26f   : > { %p7379_p6 = scmp.ne.s32.totalorder (!%p7378_p9), %s7339_s22, 0 }
 0x270   : > { %1206 = sbr.rel (%p7378_p9) target bundleno = 7331 (0x1ca3), region = 140 }
 0x277   : > { %6062 = dma.done.wait (%p7379_p6), [#allocation6], 1024  }
 0x278   : > { %6064 = vsyncadd (%p7379_p6), [#allocation6], 4294966272 }
 0x279   : > { %6066 = dma.done.wait (%p7379_p6), [#allocation8], 2064  }
 0x27a   : > { %6068 = vsyncadd (%p7379_p6), [#allocation8], 4294965232 }
 0x27b   : > { %6070 = dma.done.wait (%p7379_p6), [#allocation11], 1040  }
 0x27c   : > { %6072 = vsyncadd (%p7379_p6), [#allocation11], 4294966256 }
 0x27d   : > { %6074 = dma.done.wait (%p7379_p6), [#allocation14], 32  }
 0x27e   : > { %6076 = vsyncadd (%p7379_p6), [#allocation14], 4294967264 }
 0x27f   : > { %6078 = dma.done.wait (%p7379_p6), [#allocation17], 32  }
 0x280   : > { %6080 = vsyncadd (%p7379_p6), [#allocation17], 4294967264 }
 0x281   : > { %6082 = dma.done.wait (%p7379_p6), [#allocation20], 16  }
 0x282   : > { %6084 = vsyncadd (%p7379_p6), [#allocation20], 4294967280  ;;  %s7380_s7 = sld [smem:[#allocation77_spill]]  ;;  %s7382_s6 = sld [smem:[#allocation71_spill]] }
 0x283   : > { %s7383_s0 = sld [smem:[#allocation82_spill]] }
 0x288   : > { %s7381_s15 = sadd.s32 4294967295, %s7380_s7   ;;  %s6833_s11 = sand.u32 1, %s7382_s6  }
 0x289   : > { %s1248_s20 = sand.u32 1, %s7381_s15   ;;  %s4424_s28 = sshll.u32 %s6833_s11, 6 }
 0x28a   : > { %s1249_s1 = scalar_lea.sflag [#allocation6], %s1248_s20  ;;  %s6836_s5 = scalar_lea.vmem [#allocation21], %s4424_s28 }
 0x28b   : > { %p7384_p5 = scmp.ne.s32.totalorder %s7383_s0, 0 }
 0x28d   : > { %6086 = dma.done.wait (%p7384_p5), %s1249_s1, 1120  }
 0x28e   : > { %6088 = vsyncadd (%p7384_p5), %s1249_s1, 4294966176 }
 0x28f   : > { %6090 = dma.done.wait (%p7379_p6), [#allocation8], 16  }
 0x290   : > { %6092 = vsyncadd (%p7379_p6), [#allocation8], 4294967280 }
 0x291   : > { %6094 = dma.done.wait (%p7379_p6), [#allocation11], 16  }
 0x292   : > { %6096 = vsyncadd (%p7379_p6), [#allocation11], 4294967280 }
 0x293   : > { %6098 = dma.done.wait (%p7379_p6), [#allocation14], 1024  }
 0x294   : > { %6100 = vsyncadd (%p7379_p6), [#allocation14], 4294966272 }
 0x295   : > { %6102 = dma.done.wait (%p7379_p6), [#allocation17], 16  }
 0x296   : > { %6104 = vsyncadd (%p7379_p6), [#allocation17], 4294967280  ;;  %s7385_s12 = sld [smem:[#allocation74_spill]]  ;;  %s7386_s7 = sld [smem:[#allocation73_spill]]  ;;  %v1486_v0 = vlaneseq  ;;  %v6195_v3 = vmov -1e+09  }
 0x297   : > { %s7387_s15 = sld [smem:[#allocation44_spill]]  ;;  %s7388_s6 = sld [smem:[#allocation55_spill]] }
 0x298   : > { %s7389_s0 = sld [smem:[#allocation59_spill]]  ;;  %s7390_s20 = sld [smem:[#allocation56_spill]]  ;;  %v1487_v1 = vand.u32 127, %v1486_v0 }
 0x299   : > { %s7391_s1 = sld [smem:[#allocation60_spill]]  ;;  %s7392_s9 = sld [smem:[#allocation61_spill]] }
 0x29a   : > { %s7393_s18 = sld [smem:[#allocation69_spill]]  ;;  %s7394_s23 = sld [smem:[#allocation70_spill]] }
 0x29c   : > { %p1449_p4 = scmp.lt.s32.totalorder %s7385_s12, 1  ;;  %p1453_p11 = scmp.lt.s32.totalorder %s7386_s7, 1 }
 0x29d   : > { %s6867_s28 = sld [smem:[#allocation4 + %s7385_s12]]  ;;  %p4438_p7 = scmp.ne.s32.totalorder %s7386_s7, 0 }
 0x29e   : > { %s7422_s12 = smov (!%p1449_p4, %s7385_s12), 1  ;;  %v5213_v5 = vld [vmem:[#allocation9 + $0x4] ss:$8 sps:$4 sm:$0xff] (!%p4438_p7)   ;;  %v5215_v6 = vld [vmem:[#allocation9] ss:$8 sps:$4 sm:$0xff] (!%p4438_p7)   ;;  %v6196_v7 = vmov (!%p4438_p7), 0.0  }
 0x29f   : > { %s1454_s22 = scalar_select %p1453_p11, %s7386_s7, 1 }
 0x2a0   : > { %s6872_s26 = sshll.u32 %s7422_s12, 3  ;;  %1494 = sbr.rel (%p4438_p7) target bundleno = 2768 (0xad0), region = 228  ;;  %4748 = vmatprep.subr.bf16.mxu0 (!%p4438_p7), %v6196_v7  ;;  %v6197_v8 = vmov (!%p4438_p7), 0   ;;  %1719 = vmatprep.subr.bf16.mxu1 (!%p4438_p7), %v5213_v5  ;;  %v5216_v9 = vld [vmem:[#allocation9 + $0x14] ss:$8 sps:$4 sm:$0xff] (!%p4438_p7)   ;;  %vm6198_vm1 = vmmov (!%p4438_p7), 0  }
 0x2a1   : > { %s6876_s2 = scalar_lea.vmem %s7387_s15, %s6872_s26  ;;  %s4920_s3 = smul.u32 192, %s1454_s22  ;;  %1751 = vmatprep.mubr.bf16.mxu1 (!%p4438_p7), %v6197_v8  ;;  %v5218_v10 = vld [vmem:[#allocation9 + $0x10] ss:$8 sps:$4 sm:$0xff] (!%p4438_p7)   ;;  %4764 = vmatprep.mubr.msk.bf16.mxu0 (!%p4438_p7), %vm6198_vm1, %v6196_v7  ;;  %v5219_v11 = vld [vmem:[#allocation5] sm:$0xff] (!%p4438_p7)   ;;  %v5223_v13 = vld [vmem:[#allocation5 + $0x8] sm:$0xff] (!%p4438_p7)   ;;  %v6923_v36 = vshrl.u32 (!%p4438_p7), %v1486_v0, 7 }
 0x2a2   : > { %s4921_s4 = smul.u32 3, %s1454_s22  ;;  %s4612_s8 = sshll.u32 %s1454_s22, 7  ;;  %1720 = vmatpush1.bf16.msra.mxu1 (!%p4438_p7), %v5215_v6  ;;  %v5220_v12 = vld [vmem:[#allocation9 + $0x24] ss:$8 sps:$4 sm:$0xff] (!%p4438_p7)   ;;  %4749 = vmatpush3.bf16.msra.mxu0 (!%p4438_p7), %v5219_v11  ;;  %v5222_v14 = vld [vmem:[#allocation9 + $0x20] ss:$8 sps:$4 sm:$0xff] (!%p4438_p7)  }
 0x2a3   : > { %v1488_v2 = vstv %s6867_s28  ;;  %s6880_s10 = scalar_lea.vmem %s7388_s6, %s4920_s3  ;;  %s6883_s13 = scalar_lea.vmem %s7389_s0, %s4612_s8  ;;  %1721 = vmatprep.subr.bf16.mxu1 (!%p4438_p7), %v5216_v9  ;;  %4750 = vmatprep.subr.bf16.mxu0 (!%p4438_p7), %v6196_v7  ;;  %v5224_v15 = vld [vmem:[#allocation9 + $0x34] ss:$8 sps:$4 sm:$0xff] (!%p4438_p7)   ;;  %v5226_v17 = vld [vmem:[#allocation9 + $0x30] ss:$8 sps:$4 sm:$0xff] (!%p4438_p7)   ;;  %v5228_v18 = vld [vmem:[#allocation9 + $0x44] ss:$8 sps:$4 sm:$0xff] (!%p4438_p7)  }
 0x2a4   : > { %vm1489_vm0 = vcmp.lt.s32.totalorder %v1487_v1, %v1488_v2  ;;  %s6888_s14 = scalar_lea.vmem %s7390_s20, %s4921_s4  ;;  %s4433_s12 = sshll.u32 %s1454_s22, 1  ;;  %v5227_v16 = vld [vmem:[#allocation5 + $0x10] sm:$0xff] (!%p4438_p7)   ;;  %v5231_v19 = vld [vmem:[#allocation5 + $0x18] sm:$0xff] (!%p4438_p7)   ;;  %v5230_v20 = vld [vmem:[#allocation9 + $0x40] ss:$8 sps:$4 sm:$0xff] (!%p4438_p7)   ;;  %v1631_v37 = vsub.s32 (!%p4438_p7), 0, %v6923_v36  ;;  %vm2004_vm3 = vcmp.lt.s32.totalorder (!%p4438_p7), %v6923_v36, %v1488_v2 }
 0x2a5   : > { %v6890_v4 = vsel %vm1489_vm0, 0.0, %v6195_v3  ;;  %s6893_s16 = scalar_lea.vmem %s7391_s1, %s4433_s12  ;;  %s6896_s15 = scalar_lea.vmem %s7392_s9, %s4612_s8  ;;  %v5232_v21 = vld [vmem:[#allocation9 + $0x54] ss:$8 sps:$4 sm:$0xff] (!%p4438_p7)   ;;  %v5234_v23 = vld [vmem:[#allocation9 + $0x50] ss:$8 sps:$4 sm:$0xff] (!%p4438_p7)   ;;  %v5239_v25 = vld [vmem:[#allocation5 + $0x28] sm:$0xff] (!%p4438_p7)  }
 0x2a6   : > { %s1479_s17 = scalar_lea.vmem %s7393_s18, %s6872_s26  ;;  %s1483_s19 = scalar_lea.vmem %s7394_s23, %s6872_s26  ;;  %1722 = vmatpush1.bf16.msra.mxu1 (!%p4438_p7), %v5218_v10  ;;  %4751 = vmatpush3.bf16.msra.mxu0 (!%p4438_p7), %v5223_v13  ;;  %v5235_v22 = vld [vmem:[#allocation5 + $0x20] sm:$0xff] (!%p4438_p7)   ;;  %v5243_v28 = vld [vmem:[#allocation5 + $0x30] sm:$0xff] (!%p4438_p7)   ;;  %v5244_v32 = vld [vmem:[#allocation5 + $0x38] sm:$0xff] (!%p4438_p7)   ;;  %v1635_v39 = vsub.s32 (!%p4438_p7), 1, %v6923_v36  ;;  %vm1805_vm2 = vcmask (!%p4438_p7), 130048   ;;  %vm2015_vm4 = vcmp.ge.s32.totalorder (!%p4438_p7), %v6923_v36, 1 }
 0x2a7   : > { %1723 = vmatprep.subr.bf16.mxu1 %v5220_v12  ;;  %4752 = vmatprep.subr.bf16.mxu0 %v6196_v7  ;;  %s7395_s8 = sld [smem:[#allocation45_spill]]  ;;  %v5236_v24 = vld [vmem:[#allocation9 + $0x64] ss:$8 sps:$4 sm:$0xff]   ;;  %v5238_v26 = vld [vmem:[#allocation9 + $0x60] ss:$8 sps:$4 sm:$0xff]   ;;  %v1495_v33 = vld [vmem:[%s6876_s2] sm:$0xff] }
 0x2a8   : > { %v5240_v27 = vld [vmem:[#allocation9 + $0x74] ss:$8 sps:$4 sm:$0xff]   ;;  %v5242_v29 = vld [vmem:[#allocation9 + $0x70] ss:$8 sps:$4 sm:$0xff]   ;;  %s7396_s4 = sld [smem:[#allocation47_spill]]  ;;  %v1514_v35 = vpack.c.bf16 %v1495_v33, %v1495_v33  ;;  %v5245_v10 = vld [vmem:[#allocation10] sm:$0xff]  }
 0x2a9   : > { %v4439_v49 = vld [vmem:[#allocation7] ss:$0 sm:$0xff]  ;;  %v5246_v11 = vld [vmem:[#allocation10 + $0x8] sm:$0xff]   ;;  %v5247_v12 = vld [vmem:[#allocation10 + $0x10] sm:$0xff]   ;;  %s7397_s3 = sld [smem:[#allocation52_spill]]  ;;  %vm2029_vm5 = vcmp.lt.s32.totalorder %v6923_v36, 7 }
 0x2aa   : > { %1724 = vmatpush1.bf16.msra.mxu1 %v5222_v14  ;;  %4753 = vmatpush3.bf16.msra.mxu0 %v5227_v16  ;;  %v5248_v13 = vld [vmem:[#allocation10 + $0x18] sm:$0xff]   ;;  %v5249_v14 = vld [vmem:[#allocation10 + $0x20] sm:$0xff]   ;;  %v5251_v16 = vld [vmem:[#allocation10 + $0x30] sm:$0xff]   ;;  %vm2008_vm6 = vcmp.ge.s32.totalorder %v6923_v36, 2 }
 0x2ab   : > { %1725 = vmatprep.subr.bf16.mxu1 %v5224_v15  ;;  %4754 = vmatprep.subr.bf16.mxu0 %v6196_v7  ;;  %v5250_v15 = vld [vmem:[#allocation10 + $0x28] sm:$0xff]   ;;  %v4477_v2 = vsel %vm2008_vm6, 1.0, %v6196_v7 }
 0x2ad   : > { %v1496_v30 = vld [vmem:[%s7395_s8] sm:$0xff]  ;;  %v1497_v31 = vld [vmem:[%s7395_s8 + $0x8] sm:$0xff] }
 0x2ae   : > { %1726 = vmatpush1.bf16.msra.mxu1 %v5226_v17  ;;  %4755 = vmatpush3.bf16.msra.mxu0 %v5231_v19  ;;  %v1626_v34 = vpack.c.bf16 %v1497_v31, %v1496_v30  ;;  %v1627_v38 = vld [vmem:[%s7396_s4] sm:$0x3] }
 0x2af   : > { %1727 = vmatprep.subr.bf16.mxu1 %v5228_v18  ;;  %4756 = vmatprep.subr.bf16.mxu0 %v6196_v7  ;;  %v1632_v40 = vrot.slane %v1627_v38, %v1631_v37  ;;  %v1636_v42 = vrot.slane %v1627_v38, %v1635_v39  ;;  %v5253_v33 = vld [vmem:[%s7397_s3 + $0x40] sm:$0xff]  }
 0x2b0   : > { %v5256_v37 = vld [vmem:[%s7397_s3 + $0x80] sm:$0xff]  }
 0x2b2   : > { %1728 = vmatpush1.bf16.msra.mxu1 %v5230_v20  ;;  %4757 = vmatpush3.bf16.msra.mxu0 %v5235_v22 }
 0x2b3   : > { %1729 = vmatprep.subr.bf16.mxu1 %v5232_v21  ;;  %4758 = vmatprep.subr.bf16.mxu0 %v6196_v7  ;;  %v5252_v21 = vld [vmem:[#allocation10 + $0x38] sm:$0xff]  }
 0x2b6   : > { %1730 = vmatpush1.bf16.msra.mxu1 %v5234_v23  ;;  %4759 = vmatpush3.bf16.msra.mxu0 %v5239_v25 }
 0x2b7   : > { %1731 = vmatprep.subr.bf16.mxu1 %v5236_v24  ;;  %4760 = vmatprep.subr.bf16.mxu0 %v6196_v7 }
 0x2ba   : > { %1732 = vmatpush1.bf16.msra.mxu1 %v5238_v26  ;;  %4761 = vmatpush3.bf16.msra.mxu0 %v5243_v28 }
 0x2bb   : > { %1733 = vmatprep.subr.bf16.mxu1 %v5240_v27  ;;  %4762 = vmatprep.subr.bf16.mxu0 %v6196_v7  ;;  %v4465_v27 = vld [vmem:[#allocation12] ss:$0 sm:$0xff] }
 0x2be   : > { %1734 = vmatpush1.bf16.msra.mxu1 %v5242_v29  ;;  %4763 = vmatpush3.bf16.msra.mxu0 %v5244_v32 }
 0x2bf   : > { %4768 = vmatprep.subr.bf16.mxu1 %v6196_v7  ;;  %4780 = vmatprep.subr.bf16.mxu0 %v6196_v7 }
 0x2c1   : > { %1752 = vmatmul.mubr.bf16.vlgmr.msra.gmra.mrb[0].mxu1 %v1626_v34  ;;  %4765 = vmatmul.mubr.bf16.vlgmr.msra.gmra.mrb[0].mxu0 %v1514_v35  ;;  %v5254_v34 = vld [vmem:[%s7397_s3 + $0xc0] sm:$0xff]  }
 0x2c2   : > { %4770 = vmatprep.mubr.msk.bf16.mxu1 %vm6198_vm1, %v6196_v7  ;;  %4796 = vmatprep.mubr.msk.bf16.mxu0 %vm6198_vm1, %v6196_v7  ;;  %v5255_v35 = vld [vmem:[%s7397_s3] sm:$0xff]  }
 0x2c3   : > { %4781 = vmatpush3.bf16.msra.mxu0 %v5245_v10 }
 0x2c4   : > { %4782 = vmatprep.subr.bf16.mxu0 %v6196_v7 }
 0x2c7   : > { %4783 = vmatpush3.bf16.msra.mxu0 %v5246_v11 }
 0x2c8   : > { %4784 = vmatprep.subr.bf16.mxu0 %v6196_v7 }
 0x2cb   : > { %4785 = vmatpush3.bf16.msra.mxu0 %v5247_v12 }
 0x2cc   : > { %4786 = vmatprep.subr.bf16.mxu0 %v6196_v7 }
 0x2cf   : > { %4787 = vmatpush3.bf16.msra.mxu0 %v5248_v13 }
 0x2d0   : > { %4788 = vmatprep.subr.bf16.mxu0 %v6196_v7 }
 0x2d3   : > { %4789 = vmatpush3.bf16.msra.mxu0 %v5249_v14  ;;  %v4474_v14 = vld [vmem:[#allocation13] ss:$0 sm:$0xff] }
 0x2d4   : > { %4790 = vmatprep.subr.bf16.mxu0 %v6196_v7 }
 0x2d7   : > { %4791 = vmatpush3.bf16.msra.mxu0 %v5250_v15 }
 0x2d8   : > { %4792 = vmatprep.subr.bf16.mxu0 %v6196_v7 }
 0x2db   : > { %4793 = vmatpush3.bf16.msra.mxu0 %v5251_v16  ;;  %v4475_v16 = vld [vmem:[#allocation15] ss:$0 sm:$0xff] }
 0x2dc   : > { %4794 = vmatprep.subr.bf16.mxu0 %v6196_v7 }
 0x2df   : > { %4795 = vmatpush3.bf16.msra.mxu0 %v5252_v21  ;;  %v4478_v21 = vsel %vm2015_vm4, 1.0, %v6196_v7 }
 0x2e0   : > { %4658 = vmatprep.subr.bf16.mxu0 %v5254_v34  ;;  %v4480_v34 = vld [vmem:[#allocation16] ss:$0 sm:$0xff] }
 0x394   : > { %v1753_v41 = vpop.f32.mrb[0].mxu1  ;;  %v1604_v45 = vpop.f32.mrb[0].mxu0 }
 0x395   : > { %v1755_v43 = vpop.f32.mrb[1].mxu1  ;;  %v1754_v46 = vadd.f32 %v1753_v41, %v1632_v40  ;;  %v4766_v50 = vpop.f32.mrb[1].mxu0  ;;  %v1605_v57 = vadd.f32 %v4439_v49, %v1604_v45  ;;  %v5260_v45 = vld [vmem:[%s7397_s3 + $0x88] sm:$0xff]   ;;  %v5264_v49 = vld [vmem:[%s7397_s3 + $0x90] sm:$0xff]  }
 0x396   : > { %v1757_v44 = vpop.f32.mrb[2].mxu1  ;;  %v1756_v51 = vadd.f32 %v1755_v43, %v1636_v42  ;;  %v1607_v53 = vpop.f32.mrb[2].mxu0  ;;  %v5258_v43 = vld [vmem:[%s7397_s3 + $0xc8] sm:$0xff]   ;;  %v5265_v50 = vld [vmem:[%s7397_s3 + $0x58] sm:$0xff]  }
 0x397   : > { %v1758_v47 = vadd.f32 %v1757_v44, %v1632_v40  ;;  %v1759_v48 = vpop.f32.mrb[3].mxu1  ;;  %v4767_v55 = vpop.f32.mrb[3].mxu0  ;;  %v1762_v58 = vpack.c.bf16 %v1605_v57, %v1605_v57  ;;  %v5259_v44 = vld [vmem:[%s7397_s3 + $0x8] sm:$0xff]   ;;  %v5268_v53 = vld [vmem:[%s7397_s3 + $0x98] sm:$0xff]   ;;  %v5272_v57 = vld [vmem:[%s7397_s3 + $0xa0] sm:$0xff]  }
 0x398   : > { %v1760_v52 = vadd.f32 %v1759_v48, %v1636_v42  ;;  %v5257_v42 = vld [vmem:[%s7397_s3 + $0x48] sm:$0xff]   ;;  %v5263_v48 = vld [vmem:[%s7397_s3 + $0x10] sm:$0xff]   ;;  %v5270_v55 = vld [vmem:[%s7397_s3 + $0xe0] sm:$0xff]  }
 0x399   : > { %v1763_v54 = vpack.c.bf16 %v1758_v47, %v1754_v46  ;;  %v5261_v46 = vld [vmem:[%s7397_s3 + $0x50] sm:$0xff]  }
 0x39a   : > { %v1818_v56 = vpack.c.bf16 %v1760_v52, %v1756_v51  ;;  %v5262_v47 = vld [vmem:[%s7397_s3 + $0xd0] sm:$0xff]   ;;  %v5266_v51 = vld [vmem:[%s7397_s3 + $0xd8] sm:$0xff]  }
 0x39b   : > { %4769 = vmatpush3.bf16.xpose.msra.mxu1 %v1763_v54  ;;  %v5267_v52 = vld [vmem:[%s7397_s3 + $0x18] sm:$0xff]   ;;  %v5269_v54 = vld [vmem:[%s7397_s3 + $0x60] sm:$0xff]  }
 0x39c   : > { %4774 = vmatprep.subr.bf16.mxu1 %v6196_v7 }
 0x3a2   : > { %4771 = vmatmul.mubr.bf16.vlgmr.msra.gmra.mrb[4].mxu1 %v1762_v58  ;;  %v5273_v58 = vld [vmem:[%s7397_s3 + $0x68] sm:$0xff]  }
 0x3a3   : > { %4775 = vmatpush3.bf16.msra.mxu1 %v1818_v56  ;;  %4776 = vmatprep.mubr.msk.bf16.mxu1 %vm6198_vm1, %v6196_v7  ;;  %v5271_v56 = vld [vmem:[%s7397_s3 + $0x20] sm:$0xff]  }
 0x3a4   : > { %4636 = vmatprep.subr.bf16.mxu1 %v5253_v33 }
 0x475   : > { %v1798_v59 = vpop.f32.mrb[4].mxu1 }
 0x476   : > { %v1804_v60 = vmul.f32 0.088388346, %v1798_v59  ;;  %v4772_v61 = vpop.f32.mrb[5].mxu1  ;;  %v5274_v59 = vld [vmem:[%s7397_s3 + $0xe8] sm:$0xff]  }
 0x477   : > { %v1801_v62 = vpop.f32.mrb[6].mxu1  ;;  %v5276_v61 = vld [vmem:[%s7397_s3 + $0xa8] sm:$0xff]  }
 0x478   : > { %v4773_v63 = vpop.f32.mrb[7].mxu1  ;;  %v1806_v1 = vsel %vm1805_vm2, %v1804_v60, -inf  ;;  %v5277_v62 = vld [vmem:[%s7397_s3 + $0x70] sm:$0xff]  }
 0x479   : > { %1807 = vmax.xlane.f32.xlu0 %v1806_v1  ;;  %v5278_v63 = vld [vmem:[%s7397_s3 + $0xf0] sm:$0xff]  }
 0x47a   : > { %v5279_v1 = vld [vmem:[%s7397_s3 + $0x30] sm:$0xff]  }
 0x506   : > { %v1808_v3 = vpop.xlane.xlu0 %1807 }
 0x507   : > { %v1809_v5 = vsub.f32 %v1804_v60, %v1808_v3  ;;  %v5275_v60 = vld [vmem:[%s7397_s3 + $0x28] sm:$0xff]   ;;  %v5280_v3 = vld [vmem:[%s7397_s3 + $0xb0] sm:$0xff]  }
 0x509   : > { %v1810_v6 = vmul.f32 1.442695, %v1809_v5  ;;  %v5281_v5 = vld [vmem:[%s7397_s3 + $0x78] sm:$0xff]  }
 0x50b   : > { %5285 = vpow2.f32 %v1810_v6  ;;  %v5282_v6 = vld [vmem:[%s7397_s3 + $0xf8] sm:$0xff]  }
 0x515   : > { %v5286_v8 = vpop.eup %5285 }
 0x516   : > { %v1812_v9 = vsel %vm1805_vm2, %v5286_v8, 0.0 }
 0x517   : > { %1813 = vadd.xlane.f32.xlu0 %v1812_v9  ;;  %v5284_v9 = vld [vmem:[%s7397_s3 + $0xb8] sm:$0xff]  }
 0x5a4   : > { %v1814_v17 = vpop.xlane.xlu0 %1813 }
 0x5a5   : > { %5287 = vrcp.f32 %v1814_v17 }
 0x5af   : > { %v5288_v18 = vpop.eup %5287 }
 0x5b0   : > { %v1816_v19 = vmul.f32 %v5288_v18, %v5286_v8  ;;  %v5283_v8 = vld [vmem:[%s7397_s3 + $0x38] sm:$0xff]   ;;  %v4476_v18 = vsel %vm2004_vm3, 1.0, %v6196_v7 }
 0x5b2   : > { %v1817_v20 = vpack.c.bf16 %v1816_v19, %v1816_v19 }
 0x5b4   : > { %4777 = vmatmul.mubr.msk.bf16.vlgmr.msra.gmra.mrb[8].mxu1 %vm1805_vm2, %v1817_v20 }
 0x5b5   : > { %4637 = vmatpush3.bf16.msra.mxu1 %v5255_v35 }
 0x5b6   : > { %4638 = vmatprep.subr.bf16.mxu1 %v5257_v42 }
 0x5b9   : > { %4639 = vmatpush3.bf16.msra.mxu1 %v5259_v44 }
 0x5ba   : > { %4640 = vmatprep.subr.bf16.mxu1 %v5261_v46 }
 0x5bd   : > { %4641 = vmatpush3.bf16.msra.mxu1 %v5263_v48 }
 0x5be   : > { %4642 = vmatprep.subr.bf16.mxu1 %v5265_v50 }
 0x5c1   : > { %4643 = vmatpush3.bf16.msra.mxu1 %v5267_v52 }
 0x5c2   : > { %4644 = vmatprep.subr.bf16.mxu1 %v5269_v54 }
 0x5c5   : > { %4645 = vmatpush3.bf16.msra.mxu1 %v5271_v56 }
 0x5c6   : > { %4646 = vmatprep.subr.bf16.mxu1 %v5273_v58 }
 0x5c9   : > { %4647 = vmatpush3.bf16.msra.mxu1 %v5275_v60 }
 0x5ca   : > { %4648 = vmatprep.subr.bf16.mxu1 %v5277_v62 }
 0x5cd   : > { %4649 = vmatpush3.bf16.msra.mxu1 %v5279_v1 }
 0x5ce   : > { %4650 = vmatprep.subr.bf16.mxu1 %v5281_v5 }
 0x5d1   : > { %4651 = vmatpush3.bf16.msra.mxu1 %v5283_v8 }
 0x687   : > { %v1856_v22 = vpop.f32.mrb[8].mxu1 }
 0x688   : > { %v1878_v23 = vpack.c.bf16 %v1856_v22, %v1856_v22  ;;  %v4778_v24 = vpop.f32.mrb[9].mxu1  ;;  %v4479_v22 = vsel %vm2029_vm5, 1.0, %v6196_v7 }
 0x689   : > { %v1859_v25 = vpop.f32.mrb[10].mxu1 }
 0x68a   : > { %v4779_v26 = vpop.f32.mrb[11].mxu1  ;;  %4797 = vmatmul.mubr.bf16.vlgmr.msra.gmra.mrb[4].mxu0 %v1878_v23 }
 0x68b   : > { %4659 = vmatpush3.bf16.msra.mxu0 %v5256_v37 }
 0x68c   : > { %4660 = vmatprep.subr.bf16.mxu0 %v5258_v43 }
 0x68f   : > { %4661 = vmatpush3.bf16.msra.mxu0 %v5260_v45 }
 0x690   : > { %4662 = vmatprep.subr.bf16.mxu0 %v5262_v47 }
 0x693   : > { %4663 = vmatpush3.bf16.msra.mxu0 %v5264_v49 }
 0x694   : > { %4664 = vmatprep.subr.bf16.mxu0 %v5266_v51 }
 0x697   : > { %4665 = vmatpush3.bf16.msra.mxu0 %v5268_v53 }
 0x698   : > { %4666 = vmatprep.subr.bf16.mxu0 %v5270_v55 }
 0x69b   : > { %4667 = vmatpush3.bf16.msra.mxu0 %v5272_v57 }
 0x69c   : > { %4668 = vmatprep.subr.bf16.mxu0 %v5274_v59 }
 0x69f   : > { %4669 = vmatpush3.bf16.msra.mxu0 %v5276_v61 }
 0x6a0   : > { %4670 = vmatprep.subr.bf16.mxu0 %v5278_v63  ;;  %v4513_v63 = vld [vmem:[#allocation18] ss:$0 sm:$0xff] }
 0x6a3   : > { %4671 = vmatpush3.bf16.msra.mxu0 %v5280_v3  ;;  %v4514_v3 = vld [vmem:[#allocation19] ss:$0 sm:$0xff] }
 0x6a4   : > { %4672 = vmatprep.subr.bf16.mxu0 %v5282_v6 }
 0x6a7   : > { %4673 = vmatpush3.bf16.msra.mxu0 %v5284_v9 }
 0x75d   : > { %v1968_v28 = vpop.f32.mrb[4].mxu0 }
 0x75e   : > { %v1969_v29 = vadd.f32 %v4465_v27, %v1968_v28  ;;  %v4798_v30 = vpop.f32.mrb[5].mxu0 }
 0x75f   : > { %v1971_v31 = vpop.f32.mrb[6].mxu0 }
 0x760   : > { %1976 = vadd.xlane.f32.xlu1 %v1969_v29  ;;  %v4799_v32 = vpop.f32.mrb[7].mxu0 }
 0x7ed   : > { %v1977_v38 = vpop.xlane.xlu1 %1976 }
 0x7ee   : > { %v1979_v39 = vmul.f32 0.0078125, %v1977_v38 }
 0x7f0   : > { %v6945_v40 = vsub.f32 %v1969_v29, %v1979_v39 }
 0x7f2   : > { %v1981_v41 = vmul.f32 %v6945_v40, %v6945_v40 }
 0x7f4   : > { %1982 = vadd.xlane.f32.xlu1 %v1981_v41 }
 0x881   : > { %v1983_v10 = vpop.xlane.xlu1 %1982 }
 0x882   : > { %v1984_v11 = vmul.f32 0.0078125, %v1983_v10 }
 0x884   : > { %v1985_v12 = vadd.f32 1e-05, %v1984_v11 }
 0x886   : > { %5289 = vrsqrt.f32 %v1985_v12 }
 0x890   : > { %v5290_v13 = vpop.eup %5289 }
 0x891   : > { %v1987_v15 = vmul.f32 %v5290_v13, %v6945_v40 }
 0x893   : > { %v1994_v17 = vmul.f32 %v4474_v14, %v1987_v15 }
 0x895   : > { %v2001_v19 = vadd.f32 %v4475_v16, %v1994_v17 }
 0x897   : > { %v2007_v20 = vmul.f32 %v4476_v18, %v2001_v19 }
 0x899   : > { %v2020_v23 = vrot.slane %v2007_v20, 7  ;;  %v2033_v24 = vrot.slane %v2007_v20, 1  ;;  %v2013_v25 = vrot.slane %v2007_v20, 6  ;;  %v2101_v32 = vpack.c.bf16 %v2007_v20, %v2007_v20 }
 0x89b   : > { %v2021_v26 = vmul.f32 %v4478_v21, %v2020_v23  ;;  %v2034_v27 = vmul.f32 %v4479_v22, %v2033_v24  ;;  %v2014_v28 = vmul.f32 %v4477_v2, %v2013_v25 }
 0x89d   : > { %v2100_v29 = vpack.c.bf16 %v2021_v26, %v2021_v26  ;;  %v2102_v30 = vpack.c.bf16 %v2034_v27, %v2034_v27  ;;  %v2099_v31 = vpack.c.bf16 %v2014_v28, %v2014_v28 }
 0x89f   : > { %2334 = vmatprep.mubr.bf16.mxu1 %v2100_v29  ;;  %2374 = vmatprep.mubr.bf16.mxu0 %v2102_v30 }
 0x8a0   : > { %2335 = vmatmul.mubr.bf16.vlgmr.msra.gmra.mrb[12].mxu1 %v2099_v31  ;;  %2375 = vmatmul.mubr.bf16.vlgmr.msra.gmra.mrb[8].mxu0 %v2101_v32 }
 0x973   : > { %v4652_v36 = vpop.f32.mrb[12].mxu1  ;;  %v4674_v33 = vpop.f32.mrb[8].mxu0 }
 0x974   : > { %v4653_v35 = vpop.f32.mrb[13].mxu1  ;;  %v4675_v37 = vpop.f32.mrb[9].mxu0 }
 0x975   : > { %v4654_v7 = vadd.f32 %v4653_v35, %v4652_v36  ;;  %v4676_v38 = vadd.f32 %v4675_v37, %v4674_v33  ;;  %v4655_v39 = vpop.f32.mrb[14].mxu1  ;;  %v4677_v40 = vpop.f32.mrb[10].mxu0 }
 0x976   : > { %v4656_v41 = vpop.f32.mrb[15].mxu1  ;;  %v4678_v42 = vpop.f32.mrb[11].mxu0 }
 0x977   : > { %v2337_v43 = vadd.f32 %v4654_v7, %v4480_v34 }
 0x979   : > { %v2377_v44 = vadd.f32 %v4676_v38, %v2337_v43 }
 0x97b   : > { %v2382_v45 = vmul.f32 %v2377_v44, %v2377_v44 }
 0x97d   : > { %v2383_v46 = vmul.f32 %v2382_v45, %v2377_v44 }
 0x97f   : > { %v2384_v47 = vmul.f32 0.044715, %v2383_v46 }
 0x981   : > { %v2385_v48 = vadd.f32 %v2384_v47, %v2377_v44 }
 0x983   : > { %v2386_v49 = vmul.f32 0.7978846, %v2385_v48 }
 0x985   : > { %5291 = vtanh.f32 %v2386_v49 }
 0x98f   : > { %v5292_v50 = vpop.eup %5291 }
 0x990   : > { %v2388_v51 = vadd.f32 1.0, %v5292_v50 }
 0x992   : > { %v2389_v52 = vmul.f32 0.5, %v2388_v51 }
 0x994   : > { %v2390_v53 = vmul.f32 %v2389_v52, %v2377_v44 }
 0x996   : > { %v2391_v54 = vadd.f32 %v2390_v53, %v2007_v20 }
 0x998   : > { %2394 = vadd.xlane.f32.xlu0 %v2391_v54 }
 0xa25   : > { %v2395_v55 = vpop.xlane.xlu0 %2394 }
 0xa26   : > { %v2396_v56 = vmul.f32 0.0078125, %v2395_v55 }
 0xa28   : > { %v2397_v57 = vsub.f32 %v2391_v54, %v2396_v56 }
 0xa2a   : > { %v2398_v58 = vmul.f32 %v2397_v57, %v2397_v57 }
 0xa2c   : > { %2399 = vadd.xlane.f32.xlu1 %v2398_v58 }
 0xab9   : > { %v2400_v59 = vpop.xlane.xlu1 %2399 }
 0xaba   : > { %v2401_v60 = vmul.f32 0.0078125, %v2400_v59 }
 0xabc   : > { %v2402_v61 = vadd.f32 1e-05, %v2401_v60 }
 0xabe   : > { %5293 = vrsqrt.f32 %v2402_v61 }
 0xac8   : > { %v5294_v62 = vpop.eup %5293 }
 0xac9   : > { %v2404_v1 = vmul.f32 %v5294_v62, %v2397_v57 }
 0xacb   : > { %v2411_v5 = vmul.f32 %v4513_v63, %v2404_v1 }
 0xacd   : > { %v2418_v6 = vadd.f32 %v4514_v3, %v2411_v5 }
 0xacf   : > { %2419 = vst [vmem:[#allocation2] sm:$0xff] %v2418_v6 }
 0xad0 PF: > { %v5295_v8 = vld [vmem:[%s6880_s10 + $0x4] ss:$12 sps:$4 sm:$0xff]   ;;  %v5297_v9 = vld [vmem:[%s6880_s10] ss:$12 sps:$4 sm:$0xff]   ;;  %v6199_v10 = vmov 0   ;;  %v6200_v26 = vmov 0.0  }
 0xad1   : > { %2631 = vmatprep.mubr.bf16.mxu0 %v6199_v10  ;;  %2599 = vmatprep.subr.bf16.mxu0 %v5295_v8  ;;  %v5298_v11 = vld [vmem:[%s6880_s10 + $0x1c] ss:$12 sps:$4 sm:$0xff]   ;;  %v5300_v12 = vld [vmem:[%s6880_s10 + $0x18] ss:$12 sps:$4 sm:$0xff]   ;;  %v5301_v13 = vld [vmem:[%s6880_s10 + $0x34] ss:$12 sps:$4 sm:$0xff]  }
 0xad2   : > { %2600 = vmatpush1.bf16.msra.mxu0 %v5297_v9  ;;  %v5303_v14 = vld [vmem:[%s6880_s10 + $0x30] ss:$12 sps:$4 sm:$0xff]   ;;  %v5304_v15 = vld [vmem:[%s6880_s10 + $0x4c] ss:$12 sps:$4 sm:$0xff]   ;;  %v5306_v16 = vld [vmem:[%s6880_s10 + $0x48] ss:$12 sps:$4 sm:$0xff]   ;;  %4800 = vmatprep.subr.bf16.mxu1 %v6200_v26 }
 0xad3   : > { %2601 = vmatprep.subr.bf16.mxu0 %v5298_v11  ;;  %v5307_v17 = vld [vmem:[%s6880_s10 + $0x64] ss:$12 sps:$4 sm:$0xff]   ;;  %v5309_v18 = vld [vmem:[%s6880_s10 + $0x60] ss:$12 sps:$4 sm:$0xff]   ;;  %v5310_v19 = vld [vmem:[%s6880_s10 + $0x7c] ss:$12 sps:$4 sm:$0xff]  }
 0xad4   : > { %v5312_v20 = vld [vmem:[%s6880_s10 + $0x78] ss:$12 sps:$4 sm:$0xff]   ;;  %v5313_v21 = vld [vmem:[%s6880_s10 + $0x94] ss:$12 sps:$4 sm:$0xff]   ;;  %v5315_v22 = vld [vmem:[%s6880_s10 + $0x90] ss:$12 sps:$4 sm:$0xff]  }
 0xad5   : > { %v5316_v2 = vld [vmem:[%s6880_s10 + $0xac] ss:$12 sps:$4 sm:$0xff]   ;;  %v5318_v23 = vld [vmem:[%s6880_s10 + $0xa8] ss:$12 sps:$4 sm:$0xff]   ;;  %vm6201_vm7 = vmmov 0   ;;  %v7016_v27 = vshrl.u32 %v1486_v0, 7 }
 0xad6   : > { %2602 = vmatpush1.bf16.msra.mxu0 %v5300_v12  ;;  %v7005_v24 = vld [vmem:[#allocation2] sm:$0xff]  ;;  %4816 = vmatprep.mubr.msk.bf16.mxu1 %vm6201_vm7, %v6200_v26  ;;  %vm2698_vm8 = vcmask 261120   ;;  %v5319_v40 = vld [vmem:[%s6880_s10 + $0x8] ss:$12 sps:$4 sm:$0xff]   ;;  %v5322_v43 = vld [vmem:[%s6880_s10 + $0x50] ss:$12 sps:$4 sm:$0xff]  }
 0xad7   : > { %2603 = vmatprep.subr.bf16.mxu0 %v5301_v13  ;;  %v2453_v25 = vpack.c.bf16 %v7005_v24, %v7005_v24  ;;  %v2462_v28 = vsub.s32 1, %v7016_v27  ;;  %v7020_v29 = vld [vmem:[%s6888_s14] sm:$0x7]  ;;  %v2458_v30 = vsub.s32 0, %v7016_v27  ;;  %s6202_s14 = smov 96   ;;  %4801 = vmatpush3.bf16.msra.mxu1 %v5319_v40  ;;  %vm2747_vm9 = vcmask 64512  }
 0xad8   : > { %v5320_v41 = vld [vmem:[%s6880_s10 + $0x20] ss:$12 sps:$4 sm:$0xff]   ;;  %4802 = vmatprep.subr.bf16.mxu1 %v6200_v26  ;;  %v5321_v42 = vld [vmem:[%s6880_s10 + $0x38] ss:$12 sps:$4 sm:$0xff]   ;;  %v5323_v44 = vld [vmem:[%s6880_s10 + $0x68] ss:$12 sps:$4 sm:$0xff]  }
 0xad9   : > { %v2463_v31 = vrot.slane %v7020_v29, %v2462_v28  ;;  %v2459_v32 = vrot.slane %v7020_v29, %v2458_v30  ;;  %v5324_v47 = vld [vmem:[%s6880_s10 + $0x80] ss:$12 sps:$4 sm:$0xff]   ;;  %v5325_v48 = vld [vmem:[%s6880_s10 + $0x98] ss:$12 sps:$4 sm:$0xff]   ;;  %v5326_v50 = vld [vmem:[%s6880_s10 + $0xb0] ss:$12 sps:$4 sm:$0xff]  }
 0xada   : > { %2604 = vmatpush1.bf16.msra.mxu0 %v5303_v14  ;;  %s6203_s10 = smov 64   ;;  %vm2764_vm10 = vcmask 1043456   ;;  %v5327_v40 = vld [vmem:[%s6836_s5] sm:$0xff]   ;;  %s6204_s23 = smov 32  }
 0xadb   : > { %2605 = vmatprep.subr.bf16.mxu0 %v5304_v15  ;;  %4803 = vmatpush3.bf16.msra.mxu1 %v5320_v41  ;;  %v2466_v15 = vsub.s32 2, %v7016_v27  ;;  %s7398_s18 = scalar_lea.vmem [#allocation22], %s6833_s11  ;;  %s7400_s9 = scalar_lea.vmem [#allocation24], %s6833_s11 }
 0xadc   : > { %4804 = vmatprep.subr.bf16.mxu1 %v6200_v26  ;;  %s7403_s7 = scalar_lea.vmem [#allocation27], %s6833_s11  ;;  %s7404_s6 = sld [smem:[#allocation73_spill]] }
 0xade   : > { %2606 = vmatpush1.bf16.msra.mxu0 %v5306_v16  ;;  %v2467_v16 = vrot.slane %v7020_v29, %v2466_v15 }
 0xadf   : > { %2607 = vmatprep.subr.bf16.mxu0 %v5307_v17  ;;  %4805 = vmatpush3.bf16.msra.mxu1 %v5321_v42  ;;  %v5328_v42 = vld [vmem:[%s6836_s5 + $0x8] sm:$0xff]  }
 0xae0   : > { %4806 = vmatprep.subr.bf16.mxu1 %v6200_v26 }
 0xae2   : > { %2608 = vmatpush1.bf16.msra.mxu0 %v5309_v18  ;;  %p4597_p3 = scmp.ne.s32.totalorder %s7404_s6, 1 }
 0xae3   : > { %2609 = vmatprep.subr.bf16.mxu0 %v5310_v19  ;;  %4807 = vmatpush3.bf16.msra.mxu1 %v5322_v43  ;;  %vm6206_vm11 = vmmov (!%p4597_p3), 0  }
 0xae4   : > { %4808 = vmatprep.subr.bf16.mxu1 %v6200_v26 }
 0xae6   : > { %2610 = vmatpush1.bf16.msra.mxu0 %v5312_v20 }
 0xae7   : > { %2611 = vmatprep.subr.bf16.mxu0 %v5313_v21  ;;  %4809 = vmatpush3.bf16.msra.mxu1 %v5323_v44 }
 0xae8   : > { %4810 = vmatprep.subr.bf16.mxu1 %v6200_v26 }
 0xaea   : > { %2612 = vmatpush1.bf16.msra.mxu0 %v5315_v22 }
 0xaeb   : > { %2613 = vmatprep.subr.bf16.mxu0 %v5316_v2  ;;  %4811 = vmatpush3.bf16.msra.mxu1 %v5324_v47 }
 0xaec   : > { %4812 = vmatprep.subr.bf16.mxu1 %v6200_v26 }
 0xaee   : > { %2614 = vmatpush1.bf16.msra.mxu0 %v5318_v23 }
 0xaef   : > { %4820 = vmatprep.subr.bf16.mxu0 %v6200_v26  ;;  %4813 = vmatpush3.bf16.msra.mxu1 %v5325_v48 }
 0xaf0   : > { %4814 = vmatprep.subr.bf16.mxu1 %v6200_v26 }
 0xaf1   : > { %2632 = vmatmul.mubr.bf16.vlgmr.msra.gmra.mrb[0].mxu0 %v2453_v25 }
 0xaf2   : > { %4822 = vmatprep.mubr.msk.bf16.mxu0 %vm6201_vm7, %v6200_v26 }
 0xaf3   : > { %4815 = vmatpush3.bf16.msra.mxu1 %v5326_v50 }
 0xaf4   : > { %4826 = vmatprep.subr.bf16.mxu1 %v6200_v26 }
 0xaf6   : > { %4817 = vmatmul.mubr.bf16.vlgmr.msra.gmra.mrb[0].mxu1 %v2453_v25 }
 0xaf7   : > { %4828 = vmatprep.mubr.msk.bf16.mxu1 %vm6201_vm7, %v6200_v26 }
 0xbc4   : > { %v2633_v36 = vpop.f32.mrb[0].mxu0 }
 0xbc5   : > { %v2635_v33 = vpop.f32.mrb[1].mxu0  ;;  %v2634_v37 = vadd.f32 %v2633_v36, %v2459_v32  ;;  %v5329_v36 = vld [vmem:[%s6836_s5 + $0x10] sm:$0xff]  }
 0xbc6   : > { %v2636_v34 = vadd.f32 %v2635_v33, %v2463_v31  ;;  %v2637_v0 = vpop.f32.mrb[2].mxu0  ;;  %v5330_v33 = vld [vmem:[%s6836_s5 + $0x18] sm:$0xff]  }
 0xbc7   : > { %v2638_v35 = vpop.f32.mrb[3].mxu0  ;;  %v7035_v39 = vpack.c.bf16 %v2634_v37, %v2634_v37 }
 0xbc8   : > { %v7029_v7 = vpack.c.bf16 %v2636_v34, %v2636_v34 }
 0xbc9   : > { %v2674_v8 = vpop.f32.mrb[0].mxu1 }
 0xbca   : > { %2813 = vrot.lane.b32.xlu0 %v7029_v7, %s6202_s14  ;;  %v2703_v38 = vsel %vm2698_vm8, %v7029_v7, 0  ;;  %v4818_v9 = vpop.f32.mrb[1].mxu1  ;;  %v2675_v17 = vadd.f32 %v2674_v8, %v2467_v16 }
 0xbcb   : > { %4821 = vmatpush3.bf16.xpose.msra.mxu0 %v2703_v38  ;;  %v2677_v11 = vpop.f32.mrb[2].mxu1 }
 0xbcc   : > { %4832 = vmatprep.subr.bf16.mxu0 %v6200_v26  ;;  %v4819_v12 = vpop.f32.mrb[3].mxu1  ;;  %v7074_v18 = vpack.c.bf16 %v2675_v17, %v2675_v17 }
 0xbce   : > { %2810 = vrot.lane.b32.xlu0 %v7035_v39, %s6202_s14  ;;  %v2766_v19 = vsel %vm2764_vm10, %v7074_v18, 0 }
 0xbcf   : > { %4827 = vmatpush3.bf16.msra.mxu1 %v2766_v19 }
 0xbd0   : > { %4838 = vmatprep.subr.bf16.mxu1 %v6200_v26 }
 0xbd2   : > { %4823 = vmatmul.mubr.msk.bf16.vlgmr.msra.gmra.mrb[4].mxu0 %vm2698_vm8, %v7035_v39 }
 0xbd3   : > { %4834 = vmatprep.mubr.msk.bf16.mxu0 %vm6201_vm7, %v6200_v26 }
 0xc3c   : > { %v2814_v45 = vpop.permute.xlu0 %2813 }
 0xc3d   : > { %v2819_v46 = vsel %vm2698_vm8, %v2814_v45, 0 }
 0xc3e   : > { %4833 = vmatpush3.bf16.xpose.msra.mxu0 %v2819_v46 }
 0xc3f   : > { %4844 = vmatprep.subr.bf16.mxu0 %v6200_v26 }
 0xc40   : > { %v2811_v49 = vpop.permute.xlu0 %2810 }
 0xc45   : > { %4835 = vmatmul.mubr.msk.bf16.vlgmr.msra.gmra.mrb[8].mxu0 %vm2698_vm8, %v2811_v49 }
 0xc46   : > { %4848 = vmatprep.mubr.msk.bf16.mxu0 %vm6201_vm7, %v6200_v26  ;;  %4845 = vmatpush3.bf16.msra.mxu0 %v5329_v36 }
 0xc47   : > { %4846 = vmatprep.subr.bf16.mxu0 %v6200_v26 }
 0xc4a   : > { %4847 = vmatpush3.bf16.msra.mxu0 %v5330_v33 }
 0xc4b   : > { %4860 = vmatprep.subr.bf16.mxu0 %v6200_v26 }
 0xca5   : > { %v2739_v51 = vpop.f32.mrb[4].mxu0 }
 0xca6   : > { %v2745_v52 = vmul.f32 0.17677669, %v2739_v51  ;;  %v4824_v53 = vpop.f32.mrb[5].mxu0 }
 0xca7   : > { %v2742_v54 = vpop.f32.mrb[6].mxu0 }
 0xca8   : > { %v2746_v55 = vadd.f32 %v2745_v52, %v6890_v4  ;;  %v4825_v56 = vpop.f32.mrb[7].mxu0 }
 0xcaa   : > { %v2748_v57 = vsel %vm2747_vm9, %v2746_v55, -inf }
 0xcab   : > { %2749 = vmax.xlane.f32.xlu1 %v2748_v57 }
 0xd18   : > { %v2855_v58 = vpop.f32.mrb[8].mxu0 }
 0xd19   : > { %v2861_v59 = vmul.f32 0.17677669, %v2855_v58  ;;  %v4836_v60 = vpop.f32.mrb[9].mxu0 }
 0xd1a   : > { %v2858_v61 = vpop.f32.mrb[10].mxu0 }
 0xd1b   : > { %v2862_v62 = vadd.f32 %v2861_v59, %v6890_v4  ;;  %v4837_v63 = vpop.f32.mrb[11].mxu0 }
 0xd1d   : > { %v2863_v1 = vsel %vm2747_vm9, %v2862_v62, -inf }
 0xd1e   : > { %2864 = vmax.xlane.f32.xlu1 %v2863_v1 }
 0xd38   : > { %v2750_v3 = vpop.xlane.xlu1 %2749 }
 0xd39   : > { %v2751_v5 = vsub.f32 %v2746_v55, %v2750_v3 }
 0xd3b   : > { %v2752_v6 = vmul.f32 1.442695, %v2751_v5 }
 0xd3d   : > { %5375 = vpow2.f32 %v2752_v6 }
 0xd47   : > { %v5376_v13 = vpop.eup %5375 }
 0xd48   : > { %v2754_v14 = vsel %vm2747_vm9, %v5376_v13, 0.0 }
 0xd49   : > { %2755 = vadd.xlane.f32.xlu0 %v2754_v14 }
 0xd5f   : > { %3099 = vrot.lane.b32.xlu0 %v7074_v18, %s6203_s10 }
 0xdab   : > { %v2865_v20 = vpop.xlane.xlu1 %2864 }
 0xdac   : > { %v2866_v21 = vsub.f32 %v2862_v62, %v2865_v20 }
 0xdae   : > { %v2867_v22 = vmul.f32 1.442695, %v2866_v21  ;;  %v5331_v21 = vld [vmem:[%s6836_s5 + $0x20] sm:$0xff]  }
 0xdb0   : > { %5377 = vpow2.f32 %v2867_v22 }
 0xdba   : > { %v5378_v2 = vpop.eup %5377 }
 0xdbb   : > { %v2869_v23 = vsel %vm2747_vm9, %v5378_v2, 0.0 }
 0xdbc   : > { %2870 = vadd.xlane.f32.xlu1 %v2869_v23 }
 0xdcd   : > { %2876 = vrot.lane.b32.xlu1 %v7074_v18, %s6202_s14 }
 0xdd1   : > { %3037 = vrot.lane.b32.xlu1 %v7029_v7, %s6203_s10 }
 0xdd5   : > { %3035 = vrot.lane.b32.xlu1 %v7035_v39, %s6203_s10 }
 0xdd6   : > { %v2756_v25 = vpop.xlane.xlu0 %2755 }
 0xdd7   : > { %5379 = vrcp.f32 %v2756_v25 }
 0xdda   : > { %v3100_v43 = vpop.permute.xlu0 %3099 }
 0xddb   : > { %v3105_v48 = vsel %vm2764_vm10, %v3100_v43, 0 }
 0xde1   : > { %v5380_v29 = vpop.eup %5379 }
 0xde2   : > { %v2758_v31 = vmul.f32 %v5380_v29, %v5376_v13 }
 0xde4   : > { %v2759_v32 = vpack.c.bf16 %v2758_v31, %v2758_v31 }
 0xde6   : > { %4829 = vmatmul.mubr.msk.bf16.vlgmr.msra.gmra.mrb[4].mxu1 %vm2747_vm9, %v2759_v32 }
 0xde7   : > { %4840 = vmatprep.mubr.msk.bf16.mxu1 %vm6201_vm7, %v6200_v26 }
 0xe49   : > { %v2871_v34 = vpop.xlane.xlu1 %2870 }
 0xe4a   : > { %5381 = vrcp.f32 %v2871_v34 }
 0xe4d   : > { %v2877_v0 = vpop.permute.xlu1 %2876 }
 0xe4e   : > { %v2882_v35 = vsel %vm2764_vm10, %v2877_v0, 0 }
 0xe4f   : > { %4839 = vmatpush3.bf16.msra.mxu1 %v2882_v35 }
 0xe50   : > { %4852 = vmatprep.subr.bf16.mxu1 %v6200_v26 }
 0xe51   : > { %v3038_v50 = vpop.permute.xlu1 %3037 }
 0xe52   : > { %v3043_v55 = vsel %vm2698_vm8, %v3038_v50, 0 }
 0xe54   : > { %v5382_v37 = vpop.eup %5381 }
 0xe55   : > { %v2873_v38 = vmul.f32 %v5382_v37, %v5378_v2  ;;  %v3036_v57 = vpop.permute.xlu1 %3035 }
 0xe57   : > { %v2874_v41 = vpack.c.bf16 %v2873_v38, %v2873_v38 }
 0xe59   : > { %4841 = vmatmul.mubr.msk.bf16.vlgmr.msra.gmra.mrb[8].mxu1 %vm2747_vm9, %v2874_v41 }
 0xe5a   : > { %4853 = vmatpush3.bf16.msra.mxu1 %v5327_v40  ;;  %4856 = vmatprep.mubr.msk.bf16.mxu1 %vm6201_vm7, %v6200_v26 }
 0xe5b   : > { %4854 = vmatprep.subr.bf16.mxu1 %v6200_v26 }
 0xe5e   : > { %4855 = vmatpush3.bf16.msra.mxu1 %v5328_v42 }
 0xe5f   : > { %4866 = vmatprep.subr.bf16.mxu1 %v6200_v26 }
 0xeb9   : > { %v2802_v44 = vpop.f32.mrb[4].mxu1 }
 0xeba   : > { %v2808_v45 = vpack.c.bf16 %v2802_v44, %v2802_v44  ;;  %v4830_v46 = vpop.f32.mrb[5].mxu1 }
 0xebb   : > { %v2805_v47 = vpop.f32.mrb[6].mxu1 }
 0xebc   : > { %v4831_v49 = vpop.f32.mrb[7].mxu1  ;;  %4857 = vmatmul.mubr.msk.bf16.vlgmr.msra.gmra.mrb[12].mxu1 %vm2698_vm8, %v2808_v45 }
 0xebd   : > { %4867 = vmatpush3.bf16.msra.mxu1 %v3105_v48  ;;  %4868 = vmatprep.mubr.msk.bf16.mxu1 %vm6201_vm7, %v6200_v26  ;;  %v5333_v49 = vld [vmem:[%s6836_s5 + $0x30] sm:$0xff]  }
 0xebe   : > { %4880 = vmatprep.subr.bf16.mxu1 %v6200_v26 }
 0xf2c   : > { %v2918_v51 = vpop.f32.mrb[8].mxu1 }
 0xf2d   : > { %v2924_v52 = vpack.c.bf16 %v2918_v51, %v2918_v51  ;;  %v4842_v53 = vpop.f32.mrb[9].mxu1 }
 0xf2e   : > { %v2921_v54 = vpop.f32.mrb[10].mxu1 }
 0xf2f   : > { %v4843_v56 = vpop.f32.mrb[11].mxu1  ;;  %4849 = vmatmul.mubr.msk.bf16.vlgmr.msra.gmra.mrb[12].mxu0 %vm2698_vm8, %v2924_v52 }
 0xf30   : > { %4861 = vmatpush3.bf16.xpose.msra.mxu0 %v3043_v55  ;;  %4862 = vmatprep.mubr.msk.bf16.mxu0 %vm6201_vm7, %v6200_v26 }
 0xf31   : > { %4872 = vmatprep.subr.bf16.mxu0 %v6200_v26 }
 0xf37   : > { %4863 = vmatmul.mubr.msk.bf16.vlgmr.msra.gmra.mrb[16].mxu0 %vm2698_vm8, %v3036_v57 }
 0xf38   : > { %4876 = vmatprep.mubr.msk.bf16.mxu0 %vm6201_vm7, %v6200_v26  ;;  %4873 = vmatpush3.bf16.msra.mxu0 %v5331_v21 }
 0xf39   : > { %4874 = vmatprep.subr.bf16.mxu0 %v6200_v26 }
 0xf8f   : > { %v3029_v58 = vpop.f32.mrb[12].mxu1 }
 0xf90   : > { %v4858_v59 = vpop.f32.mrb[13].mxu1 }
 0xf91   : > { %v3032_v60 = vpop.f32.mrb[14].mxu1 }
 0xf92   : > { %v4859_v61 = vpop.f32.mrb[15].mxu1 }
0x1002   : > { %v2974_v62 = vpop.f32.mrb[12].mxu0 }
0x1003   : > { %v7114_v63 = vadd.f32 %v3029_v58, %v2974_v62  ;;  %v4850_v1 = vpop.f32.mrb[13].mxu0 }
0x1004   : > { %v2977_v3 = vpop.f32.mrb[14].mxu0 }
0x1005   : > { %v4851_v5 = vpop.f32.mrb[15].mxu0 }
0x100a   : > { %v3079_v6 = vpop.f32.mrb[16].mxu0 }
0x100b   : > { %v3085_v8 = vmul.f32 0.17677669, %v3079_v6  ;;  %v4864_v9 = vpop.f32.mrb[17].mxu0 }
0x100c   : > { %v3082_v11 = vpop.f32.mrb[18].mxu0 }
0x100d   : > { %v3086_v12 = vadd.f32 %v3085_v8, %v6890_v4  ;;  %v4865_v13 = vpop.f32.mrb[19].mxu0 }
0x100e   : > { %v5337_v13 = vld [vmem:[%s6883_s13 + $0x4] ss:$8 sps:$4 sm:$0xff]  }
0x100f   : > { %v3087_v14 = vsel %vm2747_vm9, %v3086_v12, -inf }
0x1010   : > { %3088 = vmax.xlane.f32.xlu1 %v3087_v14  ;;  %v5340_v14 = vld [vmem:[%s6883_s13 + $0x14] ss:$8 sps:$4 sm:$0xff]  }
0x109d   : > { %v3089_v15 = vpop.xlane.xlu1 %3088 }
0x109e   : > { %v3090_v16 = vsub.f32 %v3086_v12, %v3089_v15  ;;  %v5335_v12 = vld [vmem:[%s6883_s13] ss:$8 sps:$4 sm:$0xff]   ;;  %v5338_v15 = vld [vmem:[%s6883_s13 + $0x10] ss:$8 sps:$4 sm:$0xff]  }
0x10a0   : > { %v3091_v17 = vmul.f32 1.442695, %v3090_v16  ;;  %v5343_v16 = vld [vmem:[%s6883_s13 + $0x24] ss:$8 sps:$4 sm:$0xff]  }
0x10a2   : > { %5383 = vpow2.f32 %v3091_v17  ;;  %v5341_v17 = vld [vmem:[%s6883_s13 + $0x20] ss:$8 sps:$4 sm:$0xff]  }
0x10ac   : > { %v5384_v19 = vpop.eup %5383 }
0x10ad   : > { %v3093_v20 = vsel %vm2747_vm9, %v5384_v19, 0.0 }
0x10ae   : > { %3094 = vadd.xlane.f32.xlu0 %v3093_v20 }
0x10c4   : > { %3206 = vrot.lane.b32.xlu0 %v7029_v7, %s6204_s23 }
0x10c8   : > { %3204 = vrot.lane.b32.xlu0 %v7035_v39, %s6204_s23  ;;  %v5332_v39 = vld [vmem:[%s6836_s5 + $0x28] sm:$0xff]  }
0x10c9   : > { %4875 = vmatpush3.bf16.msra.mxu0 %v5332_v39  ;;  %v5353_v39 = vld [vmem:[%s6883_s13 + $0x60] ss:$8 sps:$4 sm:$0xff]  }
0x10ca   : > { %4886 = vmatprep.subr.bf16.mxu0 %v6200_v26 }
0x113b   : > { %v3095_v22 = vpop.xlane.xlu0 %3094 }
0x113c   : > { %5385 = vrcp.f32 %v3095_v22  ;;  %v5346_v22 = vld [vmem:[%s6883_s13 + $0x34] ss:$8 sps:$4 sm:$0xff]  }
0x113f   : > { %v3207_v25 = vpop.permute.xlu0 %3206 }
0x1140   : > { %v3212_v31 = vsel %vm2698_vm8, %v3207_v25, 0  ;;  %v5347_v25 = vld [vmem:[%s6883_s13 + $0x40] ss:$8 sps:$4 sm:$0xff]  }
0x1143   : > { %v3205_v7 = vpop.permute.xlu0 %3204 }
0x1146   : > { %v5386_v2 = vpop.eup %5385 }
0x1147   : > { %v3097_v23 = vmul.f32 %v5386_v2, %v5384_v19  ;;  %v5344_v2 = vld [vmem:[%s6883_s13 + $0x30] ss:$8 sps:$4 sm:$0xff]  }
0x1149   : > { %v3098_v29 = vpack.c.bf16 %v3097_v23, %v3097_v23  ;;  %v5349_v23 = vld [vmem:[%s6883_s13 + $0x44] ss:$8 sps:$4 sm:$0xff]  }
0x114b   : > { %4869 = vmatmul.mubr.msk.bf16.vlgmr.msra.gmra.mrb[16].mxu1 %vm2747_vm9, %v3098_v29  ;;  %v5352_v29 = vld [vmem:[%s6883_s13 + $0x54] ss:$8 sps:$4 sm:$0xff]  }
0x114c   : > { %4881 = vmatpush3.bf16.xpose.msra.mxu1 %v3212_v31  ;;  %4882 = vmatprep.mubr.msk.bf16.mxu1 %vm6201_vm7, %v6200_v26  ;;  %v5350_v31 = vld [vmem:[%s6883_s13 + $0x50] ss:$8 sps:$4 sm:$0xff]  }
0x114d   : > { %4892 = vmatprep.subr.bf16.mxu1 %v6200_v26 }
0x1153   : > { %4883 = vmatmul.mubr.msk.bf16.vlgmr.msra.gmra.mrb[20].mxu1 %vm2698_vm8, %v3205_v7  ;;  %v5355_v7 = vld [vmem:[%s6883_s13 + $0x64] ss:$8 sps:$4 sm:$0xff]  }
0x1154   : > { %4896 = vmatprep.mubr.msk.bf16.mxu1 %vm6201_vm7, %v6200_v26  ;;  %4893 = vmatpush3.bf16.msra.mxu1 %v5333_v49  ;;  %v5364_v49 = vld [vmem:[%s6896_s15 + $0x10] sm:$0xff]  }
0x1155   : > { %4894 = vmatprep.subr.bf16.mxu1 %v6200_v26 }
0x121e   : > { %v3141_v32 = vpop.f32.mrb[16].mxu1 }
0x121f   : > { %v3147_v36 = vpack.c.bf16 %v3141_v32, %v3141_v32  ;;  %v4870_v33 = vpop.f32.mrb[17].mxu1  ;;  %v5358_v32 = vld [vmem:[%s6883_s13 + $0x74] ss:$8 sps:$4 sm:$0xff]  }
0x1220   : > { %v3144_v34 = vpop.f32.mrb[18].mxu1 }
0x1221   : > { %v4871_v0 = vpop.f32.mrb[19].mxu1  ;;  %4877 = vmatmul.mubr.msk.bf16.vlgmr.msra.gmra.mrb[20].mxu0 %vm2698_vm8, %v3147_v36  ;;  %v5356_v36 = vld [vmem:[%s6883_s13 + $0x70] ss:$8 sps:$4 sm:$0xff]   ;;  %s7401_s13 = scalar_lea.vmem [#allocation25], %s6833_s11 }
0x1222   : > { %4888 = vmatprep.mubr.msk.bf16.mxu0 %vm6201_vm7, %v6200_v26  ;;  %v5334_v26 = vld [vmem:[%s6836_s5 + $0x38] sm:$0xff]   ;;  %s7399_s5 = scalar_lea.vmem [#allocation23], %s6833_s11 }
0x1223   : > { %4895 = vmatpush3.bf16.msra.mxu1 %v5334_v26 }
0x1226   : > { %v3248_v35 = vpop.f32.mrb[20].mxu1 }
0x1227   : > { %v3254_v37 = vmul.f32 0.17677669, %v3248_v35  ;;  %v4884_v38 = vpop.f32.mrb[21].mxu1 }
0x1228   : > { %v3251_v40 = vpop.f32.mrb[22].mxu1 }
0x1229   : > { %v3255_v41 = vadd.f32 %v3254_v37, %v6890_v4  ;;  %v4885_v42 = vpop.f32.mrb[23].mxu1  ;;  %v4560_v37 = vld [vmem:[%s7399_s5] ss:$0 sm:$0xff] }
0x122a   : > { %v4561_v40 = vld [vmem:[%s7400_s9] ss:$0 sm:$0xff] }
0x122b   : > { %v3256_v43 = vsel %vm2747_vm9, %v3255_v41, -inf }
0x122c   : > { %3257 = vmax.xlane.f32.xlu0 %v3256_v43 }
0x12b9   : > { %v3258_v44 = vpop.xlane.xlu0 %3257 }
0x12ba   : > { %v3259_v45 = vsub.f32 %v3255_v41, %v3258_v44  ;;  %v5359_v44 = vld [vmem:[%s6896_s15 + $0x40] sm:$0xff]  }
0x12bb   : > { %4717 = vmatprep.subr.bf16.mxu1 %v5359_v44  ;;  %v4596_v44 = vld [vmem:[%s7403_s7] ss:$0 sm:$0xff] }
0x12bc   : > { %v3260_v46 = vmul.f32 1.442695, %v3259_v45  ;;  %v5360_v45 = vld [vmem:[%s6896_s15] sm:$0xff]  }
0x12be   : > { %5387 = vpow2.f32 %v3260_v46  ;;  %v5361_v46 = vld [vmem:[%s6896_s15 + $0x48] sm:$0xff]  }
0x12c8   : > { %v5388_v47 = vpop.eup %5387 }
0x12c9   : > { %v3262_v48 = vsel %vm2747_vm9, %v5388_v47, 0.0 }
0x12ca   : > { %3263 = vadd.xlane.f32.xlu1 %v3262_v48  ;;  %v5363_v48 = vld [vmem:[%s6896_s15 + $0x50] sm:$0xff]  }
0x12db   : > { %3268 = vrot.lane.b32.xlu1 %v7074_v18, %s6204_s23 }
0x12f4   : > { %v3197_v4 = vpop.f32.mrb[20].mxu0 }
0x12f5   : > { %v3203_v50 = vadd.f32 %v3197_v4, %v7114_v63  ;;  %v4878_v51 = vpop.f32.mrb[21].mxu0  ;;  %v5365_v4 = vld [vmem:[%s6896_s15 + $0x58] sm:$0xff]  }
0x12f6   : > { %v3200_v52 = vpop.f32.mrb[22].mxu0  ;;  %v5367_v51 = vld [vmem:[%s6896_s15 + $0x60] sm:$0xff]  }
0x12f7   : > { %v4879_v53 = vpop.f32.mrb[23].mxu0  ;;  %v5368_v52 = vld [vmem:[%s6896_s15 + $0x20] sm:$0xff]  }
0x12f8   : > { %v5369_v53 = vld [vmem:[%s6896_s15 + $0x68] sm:$0xff]  }
0x1357   : > { %v3264_v54 = vpop.xlane.xlu1 %3263 }
0x1358   : > { %5389 = vrcp.f32 %v3264_v54  ;;  %v5370_v54 = vld [vmem:[%s6896_s15 + $0x28] sm:$0xff]  }
0x135b   : > { %v3269_v55 = vpop.permute.xlu1 %3268 }
0x135c   : > { %v3274_v56 = vsel %vm2764_vm10, %v3269_v55, 0  ;;  %v5371_v55 = vld [vmem:[%s6896_s15 + $0x70] sm:$0xff]  }
0x135d   : > { %4887 = vmatpush3.bf16.msra.mxu0 %v3274_v56  ;;  %v5372_v56 = vld [vmem:[%s6896_s15 + $0x30] sm:$0xff]  }
0x135e   : > { %3519 = vmatprep.subr.bf16.mxu0 %v5337_v13 }
0x1362   : > { %v5390_v57 = vpop.eup %5389 }
0x1363   : > { %v3266_v58 = vmul.f32 %v5390_v57, %v5388_v47  ;;  %v5362_v47 = vld [vmem:[%s6896_s15 + $0x8] sm:$0xff]   ;;  %v5373_v57 = vld [vmem:[%s6896_s15 + $0x78] sm:$0xff]  }
0x1365   : > { %v3267_v18 = vpack.c.bf16 %v3266_v58, %v3266_v58  ;;  %v5374_v58 = vld [vmem:[%s6896_s15 + $0x38] sm:$0xff]  }
0x1367   : > { %4889 = vmatmul.mubr.msk.bf16.vlgmr.msra.gmra.mrb[24].mxu0 %vm2747_vm9, %v3267_v18  ;;  %v3427_v18 = vld [vmem:[%s6893_s16] sm:$0x3]  ;;  %s7402_s16 = scalar_lea.vmem [#allocation26], %s6833_s11 }
0x1368   : > { %3551 = vmatprep.mubr.bf16.mxu0 %v6199_v10  ;;  %v4559_v10 = vld [vmem:[%s7398_s18] ss:$0 sm:$0xff]  ;;  %3520 = vmatpush1.bf16.msra.mxu0 %v5335_v12  ;;  %v3432_v26 = vrot.slane %v3427_v18, %v2458_v30 }
0x1369   : > { %3521 = vmatprep.subr.bf16.mxu0 %v5340_v14 }
0x136c   : > { %3522 = vmatpush1.bf16.msra.mxu0 %v5338_v15 }
0x136d   : > { %3523 = vmatprep.subr.bf16.mxu0 %v5343_v16 }
0x1370   : > { %3524 = vmatpush1.bf16.msra.mxu0 %v5341_v17 }
0x1371   : > { %3525 = vmatprep.subr.bf16.mxu0 %v5346_v22 }
0x1374   : > { %3526 = vmatpush1.bf16.msra.mxu0 %v5344_v2 }
0x1375   : > { %3527 = vmatprep.subr.bf16.mxu0 %v5349_v23 }
0x1378   : > { %3528 = vmatpush1.bf16.msra.mxu0 %v5347_v25 }
0x1379   : > { %3529 = vmatprep.subr.bf16.mxu0 %v5352_v29 }
0x137c   : > { %3530 = vmatpush1.bf16.msra.mxu0 %v5350_v31 }
0x137d   : > { %3531 = vmatprep.subr.bf16.mxu0 %v5355_v7  ;;  %v4594_v7 = vld [vmem:[%s7401_s13] ss:$0 sm:$0xff] }
0x1380   : > { %3532 = vmatpush1.bf16.msra.mxu0 %v5353_v39 }
0x1381   : > { %3533 = vmatprep.subr.bf16.mxu0 %v5358_v32 }
0x1384   : > { %3534 = vmatpush1.bf16.msra.mxu0 %v5356_v36 }
0x143a   : > { %v3310_v59 = vpop.f32.mrb[24].mxu0 }
0x143b   : > { %v3316_v60 = vpack.c.bf16 %v3310_v59, %v3310_v59  ;;  %v4890_v61 = vpop.f32.mrb[25].mxu0  ;;  %v3436_v59 = vrot.slane %v3427_v18, %v2462_v28  ;;  %v5406_v18 = vld [vmem:[#allocation30 + $0x38] sm:$0xff] (!%p4597_p3)  }
0x143c   : > { %v3313_v62 = vpop.f32.mrb[26].mxu0 }
0x143d   : > { %v4891_v63 = vpop.f32.mrb[27].mxu0  ;;  %4897 = vmatmul.mubr.msk.bf16.vlgmr.msra.gmra.mrb[24].mxu1 %vm2698_vm8, %v3316_v60 }
0x143e   : > { %4718 = vmatpush3.bf16.msra.mxu1 %v5360_v45 }
0x143f   : > { %4719 = vmatprep.subr.bf16.mxu1 %v5361_v46 }
0x1442   : > { %4720 = vmatpush3.bf16.msra.mxu1 %v5362_v47 }
0x1443   : > { %4721 = vmatprep.subr.bf16.mxu1 %v5363_v48  ;;  %v5399_v48 = vld [vmem:[#allocation30] sm:$0xff] (!%p4597_p3)  }
0x1446   : > { %4722 = vmatpush3.bf16.msra.mxu1 %v5364_v49  ;;  %v6205_v49 = vmov (!%p4597_p3), 0.0  }
0x1447   : > { %4723 = vmatprep.subr.bf16.mxu1 %v5365_v4  ;;  %4900 = vmatprep.subr.bf16.mxu0 (!%p4597_p3), %v6205_v49  ;;  %v5400_v4 = vld [vmem:[#allocation30 + $0x8] sm:$0xff] (!%p4597_p3)  }
0x1510   : > { %v3366_v1 = vpop.f32.mrb[24].mxu1 }
0x1511   : > { %v3372_v3 = vadd.f32 %v3366_v1, %v3203_v50  ;;  %v4898_v5 = vpop.f32.mrb[25].mxu1  ;;  %v5366_v50 = vld [vmem:[%s6896_s15 + $0x18] sm:$0xff]  }
0x1512   : > { %v3369_v6 = vpop.f32.mrb[26].mxu1  ;;  %4724 = vmatpush3.bf16.msra.mxu1 %v5366_v50 }
0x1513   : > { %v3373_v8 = vadd.f32 %v3372_v3, %v7005_v24  ;;  %v4899_v9 = vpop.f32.mrb[27].mxu1  ;;  %4725 = vmatprep.subr.bf16.mxu1 %v5367_v51 }
0x1515   : > { %v3381_v11 = vadd.f32 %v4559_v10, %v3373_v8 }
0x1516   : > { %4726 = vmatpush3.bf16.msra.mxu1 %v5368_v52 }
0x1517   : > { %3384 = vadd.xlane.f32.xlu1 %v3381_v11  ;;  %4727 = vmatprep.subr.bf16.mxu1 %v5369_v53 }
0x151a   : > { %4728 = vmatpush3.bf16.msra.mxu1 %v5370_v54  ;;  %v5401_v54 = vld [vmem:[#allocation30 + $0x10] sm:$0xff] (!%p4597_p3)  }
0x151b   : > { %4729 = vmatprep.subr.bf16.mxu1 %v5371_v55  ;;  %v5402_v55 = vld [vmem:[#allocation30 + $0x18] sm:$0xff] (!%p4597_p3)  }
0x151e   : > { %4730 = vmatpush3.bf16.msra.mxu1 %v5372_v56  ;;  %v5403_v56 = vld [vmem:[#allocation30 + $0x20] sm:$0xff] (!%p4597_p3)  }
0x151f   : > { %4731 = vmatprep.subr.bf16.mxu1 %v5373_v57  ;;  %v5404_v57 = vld [vmem:[#allocation30 + $0x28] sm:$0xff] (!%p4597_p3)  }
0x1522   : > { %4732 = vmatpush3.bf16.msra.mxu1 %v5374_v58  ;;  %v5405_v58 = vld [vmem:[#allocation30 + $0x30] sm:$0xff] (!%p4597_p3)  }
0x15a4   : > { %v3385_v24 = vpop.xlane.xlu1 %3384 }
0x15a5   : > { %v3387_v19 = vmul.f32 0.0078125, %v3385_v24 }
0x15a7   : > { %v3388_v20 = vsub.f32 %v3381_v11, %v3387_v19 }
0x15a9   : > { %v3389_v21 = vmul.f32 %v3388_v20, %v3388_v20 }
0x15ab   : > { %3390 = vadd.xlane.f32.xlu0 %v3389_v21 }
0x1638   : > { %v3391_v33 = vpop.xlane.xlu0 %3390 }
0x1639   : > { %v3392_v34 = vmul.f32 0.0078125, %v3391_v33 }
0x163b   : > { %v3393_v0 = vadd.f32 1e-05, %v3392_v34 }
0x163d   : > { %5391 = vrsqrt.f32 %v3393_v0 }
0x1647   : > { %v5392_v35 = vpop.eup %5391 }
0x1648   : > { %v3395_v38 = vmul.f32 %v5392_v35, %v3388_v20 }
0x164a   : > { %v3402_v41 = vmul.f32 %v4560_v37, %v3395_v38 }
0x164c   : > { %v7174_v42 = vadd.f32 %v4561_v40, %v3402_v41  ;;  %v4595_v41 = vld [vmem:[%s7402_s16] ss:$0 sm:$0xff] }
0x164e   : > { %v3426_v43 = vpack.c.bf16 %v7174_v42, %v7174_v42 }
0x1650   : > { %3552 = vmatmul.mubr.bf16.vlgmr.msra.gmra.mrb[28].mxu0 %v3426_v43 }
0x1651   : > { %4901 = vmatpush3.bf16.msra.mxu0 (!%p4597_p3), %v5399_v48  ;;  %4916 = vmatprep.mubr.msk.bf16.mxu0 (!%p4597_p3), %vm6206_vm11, %v6205_v49 }
0x1652   : > { %4902 = vmatprep.subr.bf16.mxu0 (!%p4597_p3), %v6205_v49 }
0x1655   : > { %4903 = vmatpush3.bf16.msra.mxu0 (!%p4597_p3), %v5400_v4 }
0x1656   : > { %4904 = vmatprep.subr.bf16.mxu0 (!%p4597_p3), %v6205_v49 }
0x1659   : > { %4905 = vmatpush3.bf16.msra.mxu0 (!%p4597_p3), %v5401_v54 }
0x165a   : > { %4906 = vmatprep.subr.bf16.mxu0 (!%p4597_p3), %v6205_v49 }
0x165d   : > { %4907 = vmatpush3.bf16.msra.mxu0 (!%p4597_p3), %v5402_v55 }
0x165e   : > { %4908 = vmatprep.subr.bf16.mxu0 (!%p4597_p3), %v6205_v49 }
0x1661   : > { %4909 = vmatpush3.bf16.msra.mxu0 (!%p4597_p3), %v5403_v56 }
0x1662   : > { %4910 = vmatprep.subr.bf16.mxu0 (!%p4597_p3), %v6205_v49 }
0x1665   : > { %4911 = vmatpush3.bf16.msra.mxu0 (!%p4597_p3), %v5404_v57 }
0x1666   : > { %4912 = vmatprep.subr.bf16.mxu0 (!%p4597_p3), %v6205_v49 }
0x1669   : > { %4913 = vmatpush3.bf16.msra.mxu0 (!%p4597_p3), %v5405_v58 }
0x166a   : > { %4914 = vmatprep.subr.bf16.mxu0 (!%p4597_p3), %v6205_v49 }
0x166d   : > { %4915 = vmatpush3.bf16.msra.mxu0 (!%p4597_p3), %v5406_v18 }
0x1723   : > { %v3553_v60 = vpop.f32.mrb[28].mxu0 }
0x1724   : > { %v3554_v61 = vadd.f32 %v3553_v60, %v3432_v26  ;;  %v3555_v62 = vpop.f32.mrb[29].mxu0 }
0x1725   : > { %v3556_v63 = vadd.f32 %v3555_v62, %v3436_v59  ;;  %v3557_v1 = vpop.f32.mrb[30].mxu0  ;;  %v4598_v62 = vld [vmem:[#allocation28] ss:$0 sm:$0xff] (!%p4597_p3) }
0x1726   : > { %v3560_v3 = vmul.f32 %v3554_v61, %v3554_v61  ;;  %v3558_v5 = vpop.f32.mrb[31].mxu0  ;;  %v4599_v1 = vld [vmem:[#allocation29] ss:$0 sm:$0xff] (!%p4597_p3) }
0x1727   : > { %v3561_v6 = vmul.f32 %v3556_v63, %v3556_v63 }
0x1728   : > { %v3562_v10 = vmul.f32 %v3560_v3, %v3554_v61 }
0x1729   : > { %v3563_v8 = vmul.f32 %v3561_v6, %v3556_v63 }
0x172a   : > { %v3564_v9 = vmul.f32 0.044715, %v3562_v10  ;;  %v4600_v10 = vld [vmem:[#allocation31] ss:$0 sm:$0xff] (!%p4597_p3) }
0x172b   : > { %v3565_v11 = vmul.f32 0.044715, %v3563_v8 }
0x172c   : > { %v3566_v12 = vadd.f32 %v3564_v9, %v3554_v61 }
0x172d   : > { %v3567_v13 = vadd.f32 %v3565_v11, %v3556_v63 }
0x172e   : > { %v3568_v14 = vmul.f32 0.7978846, %v3566_v12 }
0x172f   : > { %v3569_v15 = vmul.f32 0.7978846, %v3567_v13 }
0x1730   : > { %5393 = vtanh.f32 %v3568_v14 }
0x1731   : > { %5395 = vtanh.f32 %v3569_v15 }
0x173a   : > { %v5394_v27 = vpop.eup %5393 }
0x173b   : > { %v5396_v28 = vpop.eup %5395  ;;  %v3572_v30 = vadd.f32 1.0, %v5394_v27 }
0x173c   : > { %v3573_v16 = vadd.f32 1.0, %v5396_v28 }
0x173d   : > { %v3574_v17 = vmul.f32 0.5, %v3572_v30 }
0x173e   : > { %v3575_v24 = vmul.f32 0.5, %v3573_v16 }
0x173f   : > { %v3576_v19 = vmul.f32 %v3574_v17, %v3554_v61 }
0x1740   : > { %v3577_v20 = vmul.f32 %v3575_v24, %v3556_v63 }
0x1741   : > { %v3610_v22 = vpack.c.bf16 %v3576_v19, %v3576_v19 }
0x1742   : > { %v3611_v21 = vpack.c.bf16 %v3577_v20, %v3577_v20 }
0x1744   : > { %3740 = vmatprep.mubr.bf16.mxu1 %v3611_v21 }
0x1745   : > { %3741 = vmatmul.mubr.bf16.vlgmr.msra.gmra.mrb[28].mxu1 %v3610_v22 }
0x1818   : > { %v4733_v2 = vpop.f32.mrb[28].mxu1 }
0x1819   : > { %v4734_v23 = vpop.f32.mrb[29].mxu1 }
0x181a   : > { %v4735_v25 = vadd.f32 %v4734_v23, %v4733_v2  ;;  %v4736_v29 = vpop.f32.mrb[30].mxu1 }
0x181b   : > { %v4737_v31 = vpop.f32.mrb[31].mxu1 }
0x181c   : > { %v3748_v39 = vadd.f32 %v4735_v25, %v7174_v42  ;;  %v3789_v42 = vld [vmem:[%s6876_s2] sm:$0xff] (!%p4597_p3) }
0x181e   : > { %v3756_v32 = vadd.f32 %v4594_v7, %v3748_v39 }
0x1820   : > { %3759 = vadd.xlane.f32.xlu0 %v3756_v32 }
0x18ad   : > { %v3760_v36 = vpop.xlane.xlu0 %3759 }
0x18ae   : > { %v3761_v33 = vmul.f32 0.0078125, %v3760_v36 }
0x18b0   : > { %v3762_v34 = vsub.f32 %v3756_v32, %v3761_v33 }
0x18b2   : > { %v3763_v0 = vmul.f32 %v3762_v34, %v3762_v34 }
0x18b4   : > { %3764 = vadd.xlane.f32.xlu0 %v3763_v0 }
0x1941   : > { %v3765_v35 = vpop.xlane.xlu0 %3764 }
0x1942   : > { %v3766_v37 = vmul.f32 0.0078125, %v3765_v35 }
0x1944   : > { %v3767_v38 = vadd.f32 1e-05, %v3766_v37 }
0x1946   : > { %5397 = vrsqrt.f32 %v3767_v38 }
0x1950   : > { %v5398_v40 = vpop.eup %5397 }
0x1951   : > { %v3769_v43 = vmul.f32 %v5398_v40, %v3762_v34  ;;  %3788 = sbr.rel (%p4597_p3) target bundleno = 7331 (0x1ca3), region = 232 }
0x1953   : > { %v3776_v45 = vmul.f32 %v4595_v41, %v3769_v43 }
0x1955   : > { %v3783_v46 = vadd.f32 %v4596_v44, %v3776_v45 }
0x1957   : > { %3784 = vst [vmem:[#allocation2] sm:$0xff] %v3783_v46  ;;  %v3790_v47 = vadd.f32 (!%p4597_p3), %v3789_v42, %v3783_v46 }
0x1959   : > { %3793 = vadd.xlane.f32.xlu0 %v3790_v47 }
0x19e6   : > { %v3794_v50 = vpop.xlane.xlu0 %3793 }
0x19e7   : > { %v3795_v51 = vmul.f32 0.0078125, %v3794_v50 }
0x19e9   : > { %v3796_v52 = vsub.f32 %v3790_v47, %v3795_v51 }
0x19eb   : > { %v3797_v53 = vmul.f32 %v3796_v52, %v3796_v52 }
0x19ed   : > { %3798 = vadd.xlane.f32.xlu0 %v3797_v53 }
0x1a7a   : > { %v3799_v26 = vpop.xlane.xlu0 %3798 }
0x1a7b   : > { %v3800_v59 = vmul.f32 0.0078125, %v3799_v26 }
0x1a7d   : > { %v3801_v60 = vadd.f32 1e-05, %v3800_v59 }
0x1a7f   : > { %5407 = vrsqrt.f32 %v3801_v60 }
0x1a89   : > { %v5408_v61 = vpop.eup %5407 }
0x1a8a   : > { %v3803_v63 = vmul.f32 %v5408_v61, %v3796_v52 }
0x1a8c   : > { %v3810_v3 = vmul.f32 %v4598_v62, %v3803_v63 }
0x1a8e   : > { %v3817_v5 = vadd.f32 %v4599_v1, %v3810_v3 }
0x1a90   : > { %3818 = vst [vmem:[%s1479_s17] sm:$0xff] %v3817_v5  ;;  %v3835_v6 = vpack.c.bf16 %v3817_v5, %v3817_v5 }
0x1a92   : > { %4917 = vmatmul.mubr.bf16.vlgmr.msra.gmra.mrb[0].mxu0 %v3835_v6 }
0x1b65   : > { %v3925_v8 = vpop.f32.mrb[0].mxu0 }
0x1b66   : > { %v3926_v9 = vadd.f32 %v4600_v10, %v3925_v8  ;;  %v4918_v11 = vpop.f32.mrb[1].mxu0 }
0x1b67   : > { %v3928_v12 = vpop.f32.mrb[2].mxu0 }
0x1b68   : > { %3931 = vmax.xlane.f32.xlu1 %v3926_v9  ;;  %v4919_v13 = vpop.f32.mrb[3].mxu0 }
0x1bf5   : > { %v3932_v14 = vpop.xlane.xlu1 %3931 }
0x1bf6   : > { %v3933_v15 = vsub.f32 %v3926_v9, %v3932_v14 }
0x1bf8   : > { %v3934_v27 = vmul.f32 1.442695, %v3933_v15 }
0x1bfa   : > { %5409 = vpow2.f32 %v3934_v27 }
0x1c04   : > { %v5410_v28 = vpop.eup %5409 }
0x1c05   : > { %3936 = vadd.xlane.f32.xlu1 %v5410_v28 }
0x1c92   : > { %v3937_v30 = vpop.xlane.xlu1 %3936 }
0x1c93   : > { %5411 = vlog2.f32 %v3937_v30 }
0x1c9d   : > { %v5412_v16 = vpop.eup %5411 }
0x1c9e   : > { %v3939_v17 = vmul.f32 0.6931472, %v5412_v16 }
0x1ca0   : > { %v3940_v24 = vsub.f32 %v3933_v15, %v3939_v17 }
0x1ca2   : > { %3941 = vst [vmem:[%s1483_s19] sm:$0xff] %v3940_v24 }
0x1ca3 PF: > { %s7407_s17 = sld [smem:[#allocation77_spill]]  ;;  %s7408_s0 = sld [smem:[#allocation71_spill]] }
0x1ca4   : > { %s7409_s5 = sld [smem:[#allocation72_spill]]  ;;  %s7410_s20 = sld [smem:[#allocation81_spill]] }
0x1ca5   : > { %s7411_s7 = sld [smem:[#allocation75_spill]]  ;;  %s7412_s11 = sld [smem:[#allocation76_spill]] }
0x1ca6   : > { %s7413_s9 = sld [smem:[#allocation79_spill]]  ;;  %s7414_s15 = sld [smem:[#allocation80_spill]] }
0x1ca9   : > { %s88_s18 = sadd.s32 1, %s7407_s17  }
0x1caa   : > { %p85_p10 = scmp.ge.s32.totalorder %s88_s18, 6  }
0x1cac   :  { %87 = sbr.rel (!%p85_p10) target bundleno = 81 (0x51), region = 371 }
0x1cb3   :  { %3975 = vsyncpa [#allocation6], 1 }
0x1cb4   :  { %3977 = vsyncpa [#allocation6 + $0x1], 1 }
0x1cb5   :  { %3978 = vsyncpa [#allocation8], 1 }
0x1cb6   :  { %3979 = vsyncpa [#allocation11], 1 }
0x1cb7   :  { %3980 = vsyncpa [#allocation14], 1 }
0x1cb8   :  { %3981 = vsyncpa [#allocation17], 1 }
0x1cb9   :  { %3982 = vsyncpa [#allocation20], 1 }

// kernel: forward.5
= control target key start
LH: loop header
LB: loop body
LE: loop exit
PB: predicated region body
PF: predicated region fallthrough
CT: control target
= control target key end

     0   :  { %s5584_s0 = inlined_call_operand.vmem [shape: s32[2], index: 0, kind: input, shape index: {}]   ;;  %s5585_s1 = inlined_call_operand.vmem [shape: f32[2,6,128], index: 1, kind: input, shape index: {}]   ;;  %s5586_s2 = inlined_call_operand.vmem [shape: f32[2,8,128], index: 2, kind: input, shape index: {}]   ;;  %s5587_s3 = inlined_call_operand.vmem [shape: f32[2,6,6], index: 3, kind: input, shape index: {}]   ;;  %s5588_s4 = inlined_call_operand.vmem [shape: f32[2,1,128], index: 4, kind: input, shape index: {}]   ;;  %s5589_s5 = inlined_call_operand.vmem [shape: f32[2,1,128], index: 5, kind: input, shape index: {}]   ;;  %s5590_s6 = inlined_call_operand.vmem [shape: bf16[2,128,384], index: 6, kind: input, shape index: {}]   ;;  %s5591_s7 = inlined_call_operand.vmem [shape: f32[2,1,384], index: 7, kind: input, shape index: {}]   ;;  %s5592_s8 = inlined_call_operand.vmem [shape: bf16[2,128,128], index: 8, kind: input, shape index: {}]   ;;  %s5593_s9 = inlined_call_operand.vmem [shape: f32[2,1,128], index: 9, kind: input, shape index: {}]   ;;  %s5594_s10 = inlined_call_operand.vmem [shape: f32[2,1,128], index: 10, kind: input, shape index: {}]   ;;  %s5595_s11 = inlined_call_operand.vmem [shape: f32[2,1,128], index: 11, kind: input, shape index: {}]   ;;  %s5596_s12 = inlined_call_operand.vmem [shape: bf16[2,128,128], index: 12, kind: input, shape index: {}]   ;;  %s5597_s13 = inlined_call_operand.vmem [shape: f32[2,1,128], index: 13, kind: input, shape index: {}]   ;;  %s5598_s14 = inlined_call_operand.vmem [shape: bf16[2,128,256], index: 14, kind: input, shape index: {}]   ;;  %s5599_s15 = inlined_call_operand.vmem [shape: f32[2,1,256], index: 15, kind: input, shape index: {}]   ;;  %s5600_s16 = inlined_call_operand.vmem [shape: bf16[2,128,128], index: 16, kind: input, shape index: {}]   ;;  %s5601_s17 = inlined_call_operand.vmem [shape: f32[2,1,128], index: 17, kind: input, shape index: {}]   ;;  %s5602_s18 = inlined_call_operand.vmem [shape: f32[2,1,128], index: 18, kind: input, shape index: {}]   ;;  %s5603_s19 = inlined_call_operand.vmem [shape: f32[2,1,128], index: 19, kind: input, shape index: {}]   ;;  %s5604_s20 = inlined_call_operand.vmem [shape: bf16[2,128,256], index: 20, kind: input, shape index: {}]   ;;  %s5605_s21 = inlined_call_operand.vmem [shape: f32[2,1,256], index: 21, kind: input, shape index: {}]   ;;  %s5606_s22 = inlined_call_operand.vmem [shape: bf16[2,256,128], index: 22, kind: input, shape index: {}]   ;;  %s5607_s23 = inlined_call_operand.vmem [shape: f32[2,1,128], index: 23, kind: input, shape index: {}]   ;;  %s5608_s24 = inlined_call_operand.vmem [shape: f32[1,128], index: 24, kind: input, shape index: {}]   ;;  %s5609_s25 = inlined_call_operand.vmem [shape: f32[1,128], index: 25, kind: input, shape index: {}]   ;;  %s5610_s26 = inlined_call_operand.vmem [shape: bf16[128,128], index: 26, kind: input, shape index: {}]   ;;  %s5611_s27 = inlined_call_operand.vmem [shape: f32[1,128], index: 27, kind: input, shape index: {}]   ;;  %s5612_s28 = inlined_call_operand.vmem [shape: f32[2,6,128], index: 28, kind: output, shape index: {}]  }
   0x1   :  { %5620 = sst [smem:[#allocation14_spill]] %s5584_s0 }
   0x2   :  { %5621 = sst [smem:[#allocation15_spill]] %s5585_s1 }
   0x3   :  { %5622 = sst [smem:[#allocation16_spill]] %s5586_s2 }
   0x4   :  { %5623 = sst [smem:[#allocation17_spill]] %s5587_s3 }
   0x5   :  { %5624 = sst [smem:[#allocation18_spill]] %s5588_s4 }
   0x6   :  { %5625 = sst [smem:[#allocation19_spill]] %s5589_s5 }
   0x7   :  { %5626 = sst [smem:[#allocation20_spill]] %s5590_s6 }
   0x8   :  { %5627 = sst [smem:[#allocation21_spill]] %s5591_s7 }
   0x9   :  { %5628 = sst [smem:[#allocation22_spill]] %s5592_s8 }
   0xa   :  { %5629 = sst [smem:[#allocation23_spill]] %s5593_s9  ;;  %s5646_s9 = sld [smem:[#allocation14_spill]] }
   0xb   :  { %5630 = sst [smem:[#allocation24_spill]] %s5594_s10 }
   0xc   :  { %5631 = sst [smem:[#allocation25_spill]] %s5595_s11 }
   0xd   :  { %5632 = sst [smem:[#allocation26_spill]] %s5596_s12 }
   0xe   :  { %5633 = sst [smem:[#allocation27_spill]] %s5598_s14 }
   0xf   :  { %5634 = sst [smem:[#allocation28_spill]] %s5599_s15 }
  0x10   :  { %5635 = sst [smem:[#allocation29_spill]] %s5600_s16 }
  0x11   :  { %5636 = sst [smem:[#allocation30_spill]] %s5603_s19 }
  0x12   :  { %5637 = sst [smem:[#allocation31_spill]] %s5604_s20 }
  0x13   :  { %5638 = sst [smem:[#allocation32_spill]] %s5605_s21 }
  0x14   :  { %5639 = sst [smem:[#allocation33_spill]] %s5606_s22  ;;  %s33_s22 = sshll.u32 %s5646_s9, 4  ;;  %s34_s22 = int_to_ptr.vmem [resolvable:$true] %s33_s22 }
  0x15   :  { %5640 = sst [smem:[#allocation34_spill]] %s5607_s23  ;;  %s4741_s30 = scalar_lea.vmem %s34_s22, 16 }
  0x16   :  { %5641 = sst [smem:[#allocation35_spill]] %s5608_s24  ;;  %p4742_p0 = scmp.ne.s32.totalorder %s34_s22, %s4741_s30 }
  0x17   :  { %5642 = sst [smem:[#allocation36_spill]] %s5609_s25  ;;  %p4746_p1 = scmp.lt.s32.totalorder %s34_s22, %s34_s22 }
  0x18   :  { %5643 = sst [smem:[#allocation37_spill]] %s5610_s26  ;;  %p4747_p2 = scmp.lt.s32.totalorder %s4741_s30, %s4741_s30 }
  0x19   :  { %5644 = sst [smem:[#allocation38_spill]] %s5611_s27 }
  0x1a   :  { %5645 = sst [smem:[#allocation39_spill]] %s5612_s28  ;;  %p4748_p3 = por %p4747_p2, %p4746_p1 }
  0x1c   :  { %p4749_p4 = pnand %p4748_p3, %p4742_p0 }
  0x1e   :  { %4752 = shalt.err (!%p4749_p4)  }
  0x1f   :  { %s4795_s3 = smov [#allocation4]  }
  0x20   :  { %36 = dma.vmem_to_smem %s34_s22, 16, %s4795_s3, [#allocation3] }
  0x21   :  { %4773 = dma.done.wait [#allocation3], 16 }
  0x22   :  { %4774 = vsyncadd [#allocation3], 4294967280 }
  0x23   :  { %38 = sfence }
  0x24   :  { %s4953_s6 = smov 0   ;;  %s4955_s10 = smov 0  }
  0x25   :  { %s4957_s0 = smov 0   ;;  %s4959_s11 = smov 0  }
  0x26   :  { %s4961_s29 = smov 0  }
  0x27 LB: > { %5647 = sst [smem:[#allocation6_spill]] %s4777_s6  ;;  %s53_s22 = sadd.s32 1, %s4785_s0  ;;  %s4793_s29 = sphi %s4961_s29, %s44_s29   ;;  %s4789_s11 = sphi %s4959_s11, %s5709_s11   ;;  %s4785_s0 = sphi %s4957_s0, %s5708_s0   ;;  %s4781_s10 = sphi %s4955_s10, %s5707_s10   ;;  %s4777_s6 = sphi %s4953_s6, %s5706_s6  }
  0x28   : > { %5648 = sst [smem:[#allocation7_spill]] %s4785_s0  ;;  %s56_s2 = sadd.s32 1, %s4789_s11 }
  0x29   : > { %5649 = sst [smem:[#allocation8_spill]] %s4789_s11  ;;  %p54_p5 = scmp.ge.s32.totalorder %s53_s22, 2 }
  0x2a   : > { %5650 = sst [smem:[#allocation9_spill]] %s4793_s29  ;;  %p4021_p6 = scmp.ge.s32.totalorder %s4793_s29, 1 }
  0x2b   : > { %p950_p7 = scmp.lt.s32.totalorder %s4793_s29, 5  ;;  %s5711_s22 = smov (%p54_p5, %s53_s22), 0 }
  0x2c   : > { %5651 = sst [smem:[#allocation10_spill]] %s5711_s22  ;;  %s5713_s2 = smov (!%p54_p5, %s56_s2), %s4789_s11 }
  0x2d   : > { %p951_p8 = pnand %p4021_p6, %p950_p7  ;;  %p58_p9 = scmp.ge.s32.totalorder %s5713_s2, 2 }
  0x2f   : > { %s5715_s2 = smov (%p58_p9, %s5713_s2), 0  ;;  %954 = sbr.rel (%p951_p8) target bundleno = 7512 (0x1d58), region = 128 }
  0x30   : > { %5652 = sst [smem:[#allocation11_spill]] %s5715_s2 }
  0x36   : > { %p1105_p10 = scmp.lt.s32.totalorder %s4781_s10, 1  ;;  %p1117_p11 = scmp.lt.s32.totalorder %s4777_s6, 1  ;;  %v1200_v0 = vlaneseq  ;;  %v4796_v4 = vmov -1e+09  }
  0x37   : > { %s1199_s7 = sld [smem:[#allocation4 + %s4781_s10]] }
  0x38   : > { %s5717_s10 = smov (!%p1105_p10, %s4781_s10), 1  ;;  %v1201_v1 = vand.u32 127, %v1200_v0  ;;  %s5655_s29 = sld [smem:[#allocation17_spill]] }
  0x39   : > { %s4987_s12 = scalar_select %p1117_p11, %s4777_s6, 1 }
  0x3a   : > { %s4989_s1 = sshll.u32 %s5717_s10, 3  ;;  %s5658_s5 = sld [smem:[#allocation20_spill]] }
  0x3b   : > { %s4517_s8 = smul.u32 192, %s4987_s12  ;;  %s4186_s0 = sshll.u32 %s4987_s12, 6 }
  0x3c   : > { %s4518_s2 = smul.u32 3, %s4987_s12  ;;  %s5660_s28 = sld [smem:[#allocation22_spill]] }
  0x3d   : > { %v1202_v2 = vstv %s1199_s7  ;;  %s5662_s30 = sld [smem:[#allocation21_spill]]  ;;  %s5666_s21 = sld [smem:[#allocation26_spill]] }
  0x3e   : > { %s1116_s10 = scalar_lea.vmem %s5655_s29, %s4989_s1  ;;  %vm1203_vm0 = vcmp.lt.s32.totalorder %v1201_v1, %v1202_v2  ;;  %s4032_s11 = sshll.u32 %s4987_s12, 1 }
  0x3f   : > { %v5013_v3 = vld [vmem:[%s1116_s10] sm:$0x3f]  ;;  %v5027_v5 = vsel %vm1203_vm0, 0.0, %v4796_v4  ;;  %s4188_s10 = sshll.u32 %s4987_s12, 7  ;;  %s5667_s14 = sld [smem:[#allocation27_spill]] }
  0x40   : > { %s5020_s25 = scalar_lea.vmem %s5658_s5, %s4517_s8  ;;  %s5668_s15 = sld [smem:[#allocation28_spill]] }
  0x41   : > { %5659 = sst [smem:[#allocation12_spill]] %s5020_s25  ;;  %s5669_s16 = sld [smem:[#allocation29_spill]] }
  0x42   : > { %s5025_s23 = scalar_lea.vmem %s5660_s28, %s4186_s0  ;;  %s5671_s20 = sld [smem:[#allocation31_spill]] }
  0x43   : > { %5661 = sst [smem:[#allocation13_spill]] %s5025_s23  ;;  %s5032_s3 = scalar_lea.vmem %s5662_s30, %s4518_s2 }
  0x44   : > { %s5049_s6 = scalar_lea.vmem %s5666_s21, %s4186_s0  ;;  %s5672_s25 = sld [smem:[#allocation32_spill]] }
  0x45   : > { %s5060_s4 = scalar_lea.vmem %s5667_s14, %s4188_s10  ;;  %s5673_s7 = sld [smem:[#allocation33_spill]] }
  0x46   : > { %s5065_s26 = scalar_lea.vmem %s5668_s15, %s4032_s11  ;;  %s5674_s29 = sld [smem:[#allocation34_spill]] }
  0x47   : > { %s5070_s21 = scalar_lea.vmem %s5669_s16, %s4186_s0  ;;  %s5675_s19 = sld [smem:[#allocation39_spill]] }
  0x48   : > { %s5087_s14 = scalar_lea.vmem %s5671_s20, %s4188_s10  ;;  %s5676_s27 = sld [smem:[#allocation6_spill]] }
  0x4a   : > { %s5092_s15 = scalar_lea.vmem %s5672_s25, %s4032_s11 }
  0x4b   : > { %s5097_s16 = scalar_lea.vmem %s5673_s7, %s4188_s10 }
  0x4c   : > { %s1193_s24 = scalar_lea.vmem %s5674_s29, %s4987_s12 }
  0x4d   : > { %s1197_s5 = scalar_lea.vmem %s5675_s19, %s4989_s1 }
  0x4e   : > { %p4041_p12 = scmp.ne.s32.totalorder %s5676_s27, 0 }
  0x4f   : > { %s5677_s11 = sld [smem:[#allocation15_spill]] (!%p4041_p12) }
  0x50   : > { %1209 = sbr.rel (%p4041_p12) target bundleno = 88 (0x58), region = 132 }
  0x55   : > { %s5678_s0 = scalar_lea.vmem (!%p4041_p12), %s5677_s11, %s4989_s1 }
  0x56   : > { %v1210_v6 = vld [vmem:[%s5678_s0] sm:$0x3f] (!%p4041_p12) }
  0x57   : > { %1211 = vst [vmem:[#allocation2] sm:$0x3f] %v1210_v6 }
  0x58 PF: > { %s5679_s10 = sld [smem:[#allocation12_spill]]  ;;  %vm1216_vm1 = vcmask 1045504   ;;  %v4797_v11 = vmov 0.0   ;;  %v4798_v34 = vmov 0   ;;  %vm4799_vm2 = vmmov 0   ;;  %s5680_s8 = sld [smem:[#allocation18_spill]] }
  0x59   : > { %4297 = vmatprep.subr.bf16.mxu1 %v4797_v11  ;;  %1455 = vmatprep.mubr.bf16.mxu0 %v4798_v34  ;;  %s5682_s23 = sld [smem:[#allocation19_spill]]  ;;  %v1281_v50 = vshrl.u32 %v1200_v0, 7  ;;  %v1278_v52 = vld [vmem:[%s5032_s3] sm:$0x7]  ;;  %vm1589_vm3 = vcmask 1042432   ;;  %vm1522_vm4 = vcmask 261120   ;;  %s5693_s28 = scalar_lea.vmem %s5597_s13, %s4987_s12 }
  0x5a   : > { %4313 = vmatprep.mubr.msk.bf16.mxu1 %vm4799_vm2, %v4797_v11  ;;  %s4800_s3 = smov 96   ;;  %vm1571_vm5 = vcmask 46080   ;;  %s4801_s9 = smov 64   ;;  %vm1585_vm6 = vcmask 48128   ;;  %vm2582_vm7 = vcmask 1043456   ;;  %vm2564_vm8 = vcmask 62464  }
  0x5b   : > { %v1290_v51 = vsub.s32 2, %v1281_v50  ;;  %v5172_v53 = vsub.s32 1, %v1281_v50  ;;  %v5174_v54 = vsub.s32 0, %v1281_v50  ;;  %s5684_s30 = sld [smem:[#allocation13_spill]]  ;;  %s4802_s22 = smov 32   ;;  %vm2578_vm9 = vcmask 64512  }
  0x5c   : > { %s5685_s11 = sld [smem:[#allocation23_spill]]  ;;  %s5687_s20 = sld [smem:[#allocation16_spill]] }
  0x5d   : > { %v1291_v55 = vrot.slane %v1278_v52, %v1290_v51  ;;  %v1287_v56 = vrot.slane %v1278_v52, %v5172_v53  ;;  %v1283_v57 = vrot.slane %v1278_v52, %v5174_v54  ;;  %s5689_s29 = sld [smem:[#allocation24_spill]]  ;;  %s5696_s19 = sld [smem:[#allocation30_spill]] }
  0x5e   : > { %v5113_v7 = vld [vmem:[#allocation2] sm:$0x3f]  ;;  %v4572_v12 = vld [vmem:[%s5679_s10 + $0x8] ss:$12 sps:$4 sm:$0xff]   ;;  %v4579_v22 = vld [vmem:[%s5679_s10 + $0x30] ss:$12 sps:$4 sm:$0xff]   ;;  %s5681_s7 = scalar_lea.vmem %s5680_s8, %s4987_s12 }
  0x5f   : > { %v1217_v8 = vsel %vm1216_vm1, %v5113_v7, 0.0  ;;  %v4569_v9 = vld [vmem:[%s5679_s10 + $0x4] ss:$12 sps:$4 sm:$0xff]   ;;  %v4571_v10 = vld [vmem:[%s5679_s10] ss:$12 sps:$4 sm:$0xff]   ;;  %4298 = vmatpush3.bf16.msra.mxu1 %v4572_v12  ;;  %s5683_s2 = scalar_lea.vmem %s5682_s23, %s4987_s12 }
  0x60   : > { %1218 = vadd.xlane.f32.xlu0 %v1217_v8  ;;  %v4573_v13 = vld [vmem:[%s5679_s10 + $0x1c] ss:$12 sps:$4 sm:$0xff]   ;;  %v4575_v14 = vld [vmem:[%s5679_s10 + $0x18] ss:$12 sps:$4 sm:$0xff]   ;;  %1423 = vmatprep.subr.bf16.mxu0 %v4569_v9  ;;  %v4576_v15 = vld [vmem:[%s5679_s10 + $0x20] ss:$12 sps:$4 sm:$0xff]  }
  0x61   : > { %v4577_v16 = vld [vmem:[%s5679_s10 + $0x34] ss:$12 sps:$4 sm:$0xff]   ;;  %1424 = vmatpush1.bf16.msra.mxu0 %v4571_v10  ;;  %4299 = vmatprep.subr.bf16.mxu1 %v4797_v11  ;;  %v4580_v23 = vld [vmem:[%s5679_s10 + $0x38] ss:$12 sps:$4 sm:$0xff]   ;;  %v4584_v26 = vld [vmem:[%s5679_s10 + $0x50] ss:$12 sps:$4 sm:$0xff]  }
  0x62   : > { %1425 = vmatprep.subr.bf16.mxu0 %v4573_v13  ;;  %v4581_v24 = vld [vmem:[%s5679_s10 + $0x4c] ss:$12 sps:$4 sm:$0xff]   ;;  %v4583_v25 = vld [vmem:[%s5679_s10 + $0x48] ss:$12 sps:$4 sm:$0xff]   ;;  %v4585_v27 = vld [vmem:[%s5679_s10 + $0x64] ss:$12 sps:$4 sm:$0xff]   ;;  %s5686_s0 = scalar_lea.vmem %s5685_s11, %s4987_s12  ;;  %s5688_s8 = scalar_lea.vmem %s5687_s20, %s4989_s1 }
  0x63   : > { %4300 = vmatpush3.bf16.msra.mxu1 %v4576_v15  ;;  %v4587_v28 = vld [vmem:[%s5679_s10 + $0x60] ss:$12 sps:$4 sm:$0xff]   ;;  %v4588_v29 = vld [vmem:[%s5679_s10 + $0x68] ss:$12 sps:$4 sm:$0xff]   ;;  %v4591_v31 = vld [vmem:[%s5679_s10 + $0x78] ss:$12 sps:$4 sm:$0xff]   ;;  %s5690_s25 = scalar_lea.vmem %s5689_s29, %s4987_s12  ;;  %s5695_s11 = scalar_lea.vmem %s5602_s18, %s4987_s12 }
  0x64   : > { %4301 = vmatprep.subr.bf16.mxu1 %v4797_v11  ;;  %v4589_v30 = vld [vmem:[%s5679_s10 + $0x7c] ss:$12 sps:$4 sm:$0xff]   ;;  %v4592_v32 = vld [vmem:[%s5679_s10 + $0x80] ss:$12 sps:$4 sm:$0xff]   ;;  %v4596_v36 = vld [vmem:[%s5679_s10 + $0x98] ss:$12 sps:$4 sm:$0xff]   ;;  %s5697_s20 = scalar_lea.vmem %s5696_s19, %s4987_s12 }
  0x65   : > { %1426 = vmatpush1.bf16.msra.mxu0 %v4575_v14  ;;  %v4593_v33 = vld [vmem:[%s5679_s10 + $0x94] ss:$12 sps:$4 sm:$0xff]   ;;  %v4595_v35 = vld [vmem:[%s5679_s10 + $0x90] ss:$12 sps:$4 sm:$0xff]   ;;  %v4597_v37 = vld [vmem:[%s5679_s10 + $0xac] ss:$12 sps:$4 sm:$0xff]  }
  0x66   : > { %1427 = vmatprep.subr.bf16.mxu0 %v4577_v16  ;;  %v4599_v38 = vld [vmem:[%s5679_s10 + $0xa8] ss:$12 sps:$4 sm:$0xff]   ;;  %v4600_v39 = vld [vmem:[%s5679_s10 + $0xb0] ss:$12 sps:$4 sm:$0xff]   ;;  %v4042_v44 = vld [vmem:[%s5681_s7] ss:$0 sm:$0xff] }
  0x67   : > { %4302 = vmatpush3.bf16.msra.mxu1 %v4580_v23  ;;  %v4043_v46 = vld [vmem:[%s5683_s2] ss:$0 sm:$0xff] }
  0x68   : > { %4303 = vmatprep.subr.bf16.mxu1 %v4797_v11 }
  0x69   : > { %1428 = vmatpush1.bf16.msra.mxu0 %v4579_v22 }
  0x6a   : > { %1429 = vmatprep.subr.bf16.mxu0 %v4581_v24 }
  0x6b   : > { %4304 = vmatpush3.bf16.msra.mxu1 %v4584_v26 }
  0x6c   : > { %4305 = vmatprep.subr.bf16.mxu1 %v4797_v11 }
  0x6d   : > { %1430 = vmatpush1.bf16.msra.mxu0 %v4583_v25 }
  0x6e   : > { %1431 = vmatprep.subr.bf16.mxu0 %v4585_v27 }
  0x6f   : > { %4306 = vmatpush3.bf16.msra.mxu1 %v4588_v29 }
  0x70   : > { %4307 = vmatprep.subr.bf16.mxu1 %v4797_v11 }
  0x71   : > { %1432 = vmatpush1.bf16.msra.mxu0 %v4587_v28 }
  0x72   : > { %1433 = vmatprep.subr.bf16.mxu0 %v4589_v30 }
  0x73   : > { %4308 = vmatpush3.bf16.msra.mxu1 %v4592_v32 }
  0x74   : > { %4309 = vmatprep.subr.bf16.mxu1 %v4797_v11 }
  0x75   : > { %1434 = vmatpush1.bf16.msra.mxu0 %v4591_v31 }
  0x76   : > { %1435 = vmatprep.subr.bf16.mxu0 %v4593_v33 }
  0x77   : > { %4310 = vmatpush3.bf16.msra.mxu1 %v4596_v36 }
  0x78   : > { %4311 = vmatprep.subr.bf16.mxu1 %v4797_v11 }
  0x79   : > { %1436 = vmatpush1.bf16.msra.mxu0 %v4595_v35 }
  0x7a   : > { %1437 = vmatprep.subr.bf16.mxu0 %v4597_v37 }
  0x7b   : > { %4312 = vmatpush3.bf16.msra.mxu1 %v4600_v39 }
  0x7c   : > { %4323 = vmatprep.subr.bf16.mxu1 %v4797_v11 }
  0x7d   : > { %1438 = vmatpush1.bf16.msra.mxu0 %v4599_v38 }
  0x7e   : > { %4317 = vmatprep.subr.bf16.mxu0 %v4797_v11 }
  0xed   : > { %v1219_v17 = vpop.xlane.xlu0 %1218 }
  0xee   : > { %v1221_v18 = vmul.f32 0.0078125, %v1219_v17 }
  0xf0   : > { %v1222_v19 = vsub.f32 %v5113_v7, %v1221_v18 }
  0xf2   : > { %v1223_v20 = vmul.f32 %v1222_v19, %v1222_v19 }
  0xf4   : > { %v1224_v21 = vsel %vm1216_vm1, %v1223_v20, 0.0 }
  0xf5   : > { %1225 = vadd.xlane.f32.xlu0 %v1224_v21 }
 0x182   : > { %v1226_v40 = vpop.xlane.xlu0 %1225 }
 0x183   : > { %v1227_v41 = vmul.f32 0.0078125, %v1226_v40 }
 0x185   : > { %v1228_v42 = vadd.f32 1e-05, %v1227_v41 }
 0x187   : > { %4689 = vrsqrt.f32 %v1228_v42 }
 0x191   : > { %v4690_v43 = vpop.eup %4689 }
 0x192   : > { %v1230_v45 = vmul.f32 %v4690_v43, %v1222_v19 }
 0x194   : > { %v1237_v47 = vmul.f32 %v4042_v44, %v1230_v45 }
 0x196   : > { %v1244_v48 = vadd.f32 %v4043_v46, %v1237_v47  ;;  %v4603_v46 = vld [vmem:[%s5684_s30 + $0x10] sm:$0xff]   ;;  %v4604_v47 = vld [vmem:[%s5684_s30 + $0x18] sm:$0xff]  }
 0x198   : > { %v1277_v49 = vpack.c.bf16 %v1244_v48, %v1244_v48 }
 0x19a   : > { %1456 = vmatmul.mubr.bf16.vlgmr.msra.gmra.mrb[0].mxu0 %v1277_v49  ;;  %4314 = vmatmul.mubr.bf16.vlgmr.msra.gmra.mrb[0].mxu1 %v1277_v49 }
 0x19b   : > { %4319 = vmatprep.mubr.msk.bf16.mxu0 %vm4799_vm2, %v4797_v11  ;;  %4325 = vmatprep.mubr.msk.bf16.mxu1 %vm4799_vm2, %v4797_v11 }
 0x26d   : > { %v1457_v58 = vpop.f32.mrb[0].mxu0  ;;  %v1498_v59 = vpop.f32.mrb[0].mxu1 }
 0x26e   : > { %v1499_v60 = vadd.f32 %v1498_v59, %v1291_v55  ;;  %v1459_v61 = vpop.f32.mrb[1].mxu0  ;;  %v4315_v62 = vpop.f32.mrb[1].mxu1  ;;  %v1458_v8 = vadd.f32 %v1457_v58, %v1283_v57  ;;  %v4601_v55 = vld [vmem:[%s5684_s30] sm:$0xff]   ;;  %v4602_v57 = vld [vmem:[%s5684_s30 + $0x8] sm:$0xff]  }
 0x26f   : > { %v1460_v63 = vadd.f32 %v1459_v61, %v1287_v56  ;;  %v1461_v1 = vpop.f32.mrb[2].mxu0  ;;  %v1501_v2 = vpop.f32.mrb[2].mxu1 }
 0x270   : > { %v5178_v0 = vpack.c.bf16 %v1499_v60, %v1499_v60  ;;  %v1462_v4 = vpop.f32.mrb[3].mxu0  ;;  %v4316_v6 = vpop.f32.mrb[3].mxu1  ;;  %v5189_v13 = vpack.c.bf16 %v1458_v8, %v1458_v8 }
 0x271   : > { %v5180_v9 = vpack.c.bf16 %v1460_v63, %v1460_v63 }
 0x272   : > { %v1591_v10 = vsel %vm1589_vm3, %v5178_v0, 0 }
 0x273   : > { %4324 = vmatpush3.bf16.msra.mxu1 %v1591_v10  ;;  %1638 = vrot.lane.b32.xlu1 %v5180_v9, %s4800_s3  ;;  %v1527_v12 = vsel %vm1522_vm4, %v5180_v9, 0 }
 0x274   : > { %4318 = vmatpush3.bf16.xpose.msra.mxu0 %v1527_v12  ;;  %4335 = vmatprep.subr.bf16.mxu1 %v4797_v11 }
 0x275   : > { %4329 = vmatprep.subr.bf16.mxu0 %v4797_v11 }
 0x277   : > { %1635 = vrot.lane.b32.xlu1 %v5189_v13, %s4800_s3 }
 0x27b   : > { %4320 = vmatmul.mubr.msk.bf16.vlgmr.msra.gmra.mrb[4].mxu0 %vm1522_vm4, %v5189_v13 }
 0x27c   : > { %4331 = vmatprep.mubr.msk.bf16.mxu0 %vm4799_vm2, %v4797_v11 }
 0x2e5   : > { %v1639_v14 = vpop.permute.xlu1 %1638 }
 0x2e6   : > { %v1644_v15 = vsel %vm1522_vm4, %v1639_v14, 0 }
 0x2e7   : > { %4330 = vmatpush3.bf16.xpose.msra.mxu0 %v1644_v15 }
 0x2e8   : > { %4341 = vmatprep.subr.bf16.mxu0 %v4797_v11 }
 0x2e9   : > { %v1636_v16 = vpop.permute.xlu1 %1635 }
 0x2ee   : > { %4332 = vmatmul.mubr.msk.bf16.vlgmr.msra.gmra.mrb[8].mxu0 %vm1522_vm4, %v1636_v16 }
 0x2ef   : > { %4345 = vmatprep.mubr.msk.bf16.mxu0 %vm4799_vm2, %v4797_v11  ;;  %4342 = vmatpush3.bf16.msra.mxu0 %v4603_v46 }
 0x2f0   : > { %4343 = vmatprep.subr.bf16.mxu0 %v4797_v11 }
 0x2f3   : > { %4344 = vmatpush3.bf16.msra.mxu0 %v4604_v47 }
 0x2f4   : > { %4357 = vmatprep.subr.bf16.mxu0 %v4797_v11 }
 0x34e   : > { %v1563_v17 = vpop.f32.mrb[4].mxu0 }
 0x34f   : > { %v1569_v18 = vmul.f32 0.17677669, %v1563_v17  ;;  %v4321_v19 = vpop.f32.mrb[5].mxu0 }
 0x350   : > { %v1566_v20 = vpop.f32.mrb[6].mxu0 }
 0x351   : > { %v1570_v21 = vadd.f32 %v1569_v18, %v5013_v3  ;;  %v4322_v22 = vpop.f32.mrb[7].mxu0 }
 0x353   : > { %v1572_v23 = vsel %vm1571_vm5, %v1570_v21, -inf }
 0x354   : > { %1573 = vmax.xlane.f32.xlu0 %v1572_v23 }
 0x3c1   : > { %v1680_v24 = vpop.f32.mrb[8].mxu0 }
 0x3c2   : > { %v1686_v25 = vmul.f32 0.17677669, %v1680_v24  ;;  %v4333_v26 = vpop.f32.mrb[9].mxu0 }
 0x3c3   : > { %v1683_v27 = vpop.f32.mrb[10].mxu0 }
 0x3c4   : > { %v1687_v28 = vadd.f32 %v1686_v25, %v5013_v3  ;;  %v4334_v29 = vpop.f32.mrb[11].mxu0 }
 0x3c6   : > { %v1688_v30 = vsel %vm1571_vm5, %v1687_v28, -inf }
 0x3c7   : > { %1689 = vmax.xlane.f32.xlu1 %v1688_v30 }
 0x3d8   : > { %1860 = vrot.lane.b32.xlu1 %v5189_v13, %s4801_s9 }
 0x3e1   : > { %v1574_v31 = vpop.xlane.xlu0 %1573 }
 0x3e2   : > { %v1575_v32 = vsub.f32 %v1570_v21, %v1574_v31 }
 0x3e4   : > { %v1576_v33 = vmul.f32 1.442695, %v1575_v32 }
 0x3e6   : > { %4691 = vpow2.f32 %v1576_v33 }
 0x3f0   : > { %v4692_v35 = vpop.eup %4691 }
 0x3f1   : > { %v1578_v36 = vsel %vm1571_vm5, %v4692_v35, 0.0 }
 0x3f2   : > { %1579 = vadd.xlane.f32.xlu0 %v1578_v36 }
 0x454   : > { %v1690_v37 = vpop.xlane.xlu1 %1689 }
 0x455   : > { %v1691_v38 = vsub.f32 %v1687_v28, %v1690_v37 }
 0x457   : > { %v1692_v39 = vmul.f32 1.442695, %v1691_v38  ;;  %v4605_v38 = vld [vmem:[%s5684_s30 + $0x20] sm:$0xff]  }
 0x458   : > { %v1861_v12 = vpop.permute.xlu1 %1860 }
 0x459   : > { %4693 = vpow2.f32 %v1692_v39 }
 0x463   : > { %v4694_v40 = vpop.eup %4693 }
 0x464   : > { %v1694_v41 = vsel %vm1571_vm5, %v4694_v40, 0.0 }
 0x465   : > { %1695 = vadd.xlane.f32.xlu0 %v1694_v41 }
 0x47b   : > { %1701 = vrot.lane.b32.xlu0 %v5178_v0, %s4800_s3 }
 0x47f   : > { %v1580_v42 = vpop.xlane.xlu0 %1579  ;;  %1862 = vrot.lane.b32.xlu0 %v5180_v9, %s4801_s9 }
 0x480   : > { %4695 = vrcp.f32 %v1580_v42 }
 0x48a   : > { %v4696_v43 = vpop.eup %4695 }
 0x48b   : > { %v1582_v44 = vmul.f32 %v4696_v43, %v4692_v35 }
 0x48d   : > { %v1583_v45 = vpack.c.bf16 %v1582_v44, %v1582_v44  ;;  %v4606_v44 = vld [vmem:[%s5684_s30 + $0x28] sm:$0xff]  }
 0x48f   : > { %4326 = vmatmul.mubr.msk.bf16.vlgmr.msra.gmra.mrb[4].mxu1 %vm1585_vm6, %v1583_v45 }
 0x490   : > { %4337 = vmatprep.mubr.msk.bf16.mxu1 %vm4799_vm2, %v4797_v11 }
 0x4f2   : > { %v1696_v48 = vpop.xlane.xlu0 %1695 }
 0x4f3   : > { %4697 = vrcp.f32 %v1696_v48 }
 0x4f6   : > { %v1702_v49 = vpop.permute.xlu0 %1701 }
 0x4f7   : > { %v1707_v50 = vsel %vm1589_vm3, %v1702_v49, 0 }
 0x4f8   : > { %4336 = vmatpush3.bf16.msra.mxu1 %v1707_v50 }
 0x4f9   : > { %4349 = vmatprep.subr.bf16.mxu1 %v4797_v11 }
 0x4fa   : > { %v1863_v63 = vpop.permute.xlu0 %1862 }
 0x4fb   : > { %v1868_v8 = vsel %vm1522_vm4, %v1863_v63, 0 }
 0x4fd   : > { %v4698_v51 = vpop.eup %4697 }
 0x4fe   : > { %v1698_v52 = vmul.f32 %v4698_v51, %v4694_v40 }
 0x500   : > { %v1699_v56 = vpack.c.bf16 %v1698_v52, %v1698_v52 }
 0x502   : > { %4338 = vmatmul.mubr.msk.bf16.vlgmr.msra.gmra.mrb[8].mxu1 %vm1585_vm6, %v1699_v56 }
 0x503   : > { %4350 = vmatpush3.bf16.msra.mxu1 %v4601_v55  ;;  %4353 = vmatprep.mubr.msk.bf16.mxu1 %vm4799_vm2, %v4797_v11 }
 0x504   : > { %4351 = vmatprep.subr.bf16.mxu1 %v4797_v11 }
 0x507   : > { %4352 = vmatpush3.bf16.msra.mxu1 %v4602_v57 }
 0x508   : > { %4363 = vmatprep.subr.bf16.mxu1 %v4797_v11 }
 0x562   : > { %v1627_v58 = vpop.f32.mrb[4].mxu1 }
 0x563   : > { %v1633_v59 = vpack.c.bf16 %v1627_v58, %v1627_v58  ;;  %v4327_v60 = vpop.f32.mrb[5].mxu1 }
 0x564   : > { %v1630_v61 = vpop.f32.mrb[6].mxu1 }
 0x565   : > { %v4328_v62 = vpop.f32.mrb[7].mxu1  ;;  %4354 = vmatmul.mubr.msk.bf16.vlgmr.msra.gmra.mrb[12].mxu1 %vm1522_vm4, %v1633_v59 }
 0x566   : > { %4365 = vmatprep.mubr.msk.bf16.mxu1 %vm4799_vm2, %v4797_v11 }
 0x5d5   : > { %v1743_v1 = vpop.f32.mrb[8].mxu1 }
 0x5d6   : > { %v1749_v2 = vpack.c.bf16 %v1743_v1, %v1743_v1  ;;  %v4339_v4 = vpop.f32.mrb[9].mxu1 }
 0x5d7   : > { %v1746_v6 = vpop.f32.mrb[10].mxu1 }
 0x5d8   : > { %v4340_v10 = vpop.f32.mrb[11].mxu1  ;;  %4346 = vmatmul.mubr.msk.bf16.vlgmr.msra.gmra.mrb[12].mxu0 %vm1522_vm4, %v1749_v2  ;;  %v4607_v2 = vld [vmem:[%s5684_s30 + $0x30] sm:$0xff]  }
 0x5d9   : > { %4358 = vmatpush3.bf16.xpose.msra.mxu0 %v1868_v8  ;;  %4359 = vmatprep.mubr.msk.bf16.mxu0 %vm4799_vm2, %v4797_v11 }
 0x5da   : > { %4369 = vmatprep.subr.bf16.mxu0 %v4797_v11 }
 0x5e0   : > { %4360 = vmatmul.mubr.msk.bf16.vlgmr.msra.gmra.mrb[16].mxu0 %vm1522_vm4, %v1861_v12 }
 0x5e1   : > { %4373 = vmatprep.mubr.msk.bf16.mxu0 %vm4799_vm2, %v4797_v11  ;;  %4370 = vmatpush3.bf16.msra.mxu0 %v4605_v38  ;;  %v4622_v38 = vld [vmem:[%s5049_s6 + $0x8] sm:$0xff]  }
 0x5e2   : > { %4371 = vmatprep.subr.bf16.mxu0 %v4797_v11 }
 0x5e5   : > { %4372 = vmatpush3.bf16.msra.mxu0 %v4606_v44 }
 0x5e6   : > { %4383 = vmatprep.subr.bf16.mxu0 %v4797_v11 }
 0x638   : > { %v1854_v14 = vpop.f32.mrb[12].mxu1 }
 0x639   : > { %v4355_v15 = vpop.f32.mrb[13].mxu1 }
 0x63a   : > { %v1857_v16 = vpop.f32.mrb[14].mxu1 }
 0x63b   : > { %v4356_v17 = vpop.f32.mrb[15].mxu1 }
 0x63c   : > { %v4608_v17 = vld [vmem:[%s5684_s30 + $0x38] sm:$0xff]  }
 0x6ab   : > { %v1799_v18 = vpop.f32.mrb[12].mxu0 }
 0x6ac   : > { %v5242_v19 = vadd.f32 %v1854_v14, %v1799_v18  ;;  %v4347_v20 = vpop.f32.mrb[13].mxu0 }
 0x6ad   : > { %v1802_v21 = vpop.f32.mrb[14].mxu0 }
 0x6ae   : > { %v4348_v22 = vpop.f32.mrb[15].mxu0 }
 0x6b3   : > { %v1904_v23 = vpop.f32.mrb[16].mxu0 }
 0x6b4   : > { %v1910_v24 = vmul.f32 0.17677669, %v1904_v23  ;;  %v4361_v25 = vpop.f32.mrb[17].mxu0 }
 0x6b5   : > { %v1907_v26 = vpop.f32.mrb[18].mxu0 }
 0x6b6   : > { %v1911_v27 = vadd.f32 %v1910_v24, %v5013_v3  ;;  %v4362_v28 = vpop.f32.mrb[19].mxu0  ;;  %v4088_v26 = vld [vmem:[%s5686_s0] ss:$0 sm:$0xff] }
 0x6b8   : > { %v1912_v29 = vsel %vm1571_vm5, %v1911_v27, -inf }
 0x6b9   : > { %1913 = vmax.xlane.f32.xlu0 %v1912_v29 }
 0x6cf   : > { %1924 = vrot.lane.b32.xlu0 %v5178_v0, %s4801_s9 }
 0x6d3   : > { %2029 = vrot.lane.b32.xlu0 %v5189_v13, %s4802_s22 }
 0x746   : > { %v1914_v30 = vpop.xlane.xlu0 %1913 }
 0x747   : > { %v1915_v31 = vsub.f32 %v1911_v27, %v1914_v30 }
 0x749   : > { %v1916_v32 = vmul.f32 1.442695, %v1915_v31 }
 0x74a   : > { %v1925_v33 = vpop.permute.xlu0 %1924 }
 0x74b   : > { %4699 = vpow2.f32 %v1916_v32  ;;  %v1930_v35 = vsel %vm1589_vm3, %v1925_v33, 0  ;;  %v4609_v32 = vld [vmem:[%s5060_s4] ss:$8 sps:$4 sm:$0xff]   ;;  %v4611_v33 = vld [vmem:[%s5060_s4 + $0x4] ss:$8 sps:$4 sm:$0xff]  }
 0x74c   : > { %4364 = vmatpush3.bf16.msra.mxu1 %v1930_v35  ;;  %v4614_v35 = vld [vmem:[%s5060_s4 + $0x14] ss:$8 sps:$4 sm:$0xff]  }
 0x74d   : > { %4377 = vmatprep.subr.bf16.mxu1 %v4797_v11 }
 0x755   : > { %v4700_v36 = vpop.eup %4699 }
 0x756   : > { %v1918_v37 = vsel %vm1571_vm5, %v4700_v36, 0.0 }
 0x757   : > { %1919 = vadd.xlane.f32.xlu1 %v1918_v37  ;;  %v4612_v37 = vld [vmem:[%s5060_s4 + $0x10] ss:$8 sps:$4 sm:$0xff]  }
 0x768   : > { %2031 = vrot.lane.b32.xlu1 %v5180_v9, %s4802_s22  ;;  %v2030_v9 = vpop.permute.xlu0 %2029 }
 0x7e4   : > { %v1920_v13 = vpop.xlane.xlu1 %1919 }
 0x7e5   : > { %4701 = vrcp.f32 %v1920_v13  ;;  %v4615_v13 = vld [vmem:[%s5060_s4 + $0x20] ss:$8 sps:$4 sm:$0xff]  }
 0x7e8   : > { %v2032_v41 = vpop.permute.xlu1 %2031 }
 0x7e9   : > { %v2037_v43 = vsel %vm1522_vm4, %v2032_v41, 0  ;;  %v4625_v41 = vld [vmem:[%s5060_s4 + $0x44] ss:$8 sps:$4 sm:$0xff]  }
 0x7ef   : > { %v4702_v39 = vpop.eup %4701 }
 0x7f0   : > { %v1922_v40 = vmul.f32 %v4702_v39, %v4700_v36  ;;  %v4618_v36 = vld [vmem:[%s5049_s6] sm:$0xff]   ;;  %v4621_v39 = vld [vmem:[%s5060_s4 + $0x34] ss:$8 sps:$4 sm:$0xff]  }
 0x7f2   : > { %v1923_v42 = vpack.c.bf16 %v1922_v40, %v1922_v40  ;;  %v4619_v40 = vld [vmem:[%s5060_s4 + $0x30] ss:$8 sps:$4 sm:$0xff]  }
 0x7f4   : > { %4366 = vmatmul.mubr.msk.bf16.vlgmr.msra.gmra.mrb[16].mxu1 %vm1585_vm6, %v1923_v42  ;;  %v4623_v42 = vld [vmem:[%s5060_s4 + $0x40] ss:$8 sps:$4 sm:$0xff]  }
 0x7f5   : > { %4378 = vmatpush3.bf16.xpose.msra.mxu1 %v2037_v43  ;;  %4379 = vmatprep.mubr.msk.bf16.mxu1 %vm4799_vm2, %v4797_v11 }
 0x7f6   : > { %4389 = vmatprep.subr.bf16.mxu1 %v4797_v11 }
 0x7fc   : > { %4380 = vmatmul.mubr.msk.bf16.vlgmr.msra.gmra.mrb[20].mxu1 %vm1522_vm4, %v2030_v9 }
 0x7fd   : > { %4393 = vmatprep.mubr.msk.bf16.mxu1 %vm4799_vm2, %v4797_v11  ;;  %4390 = vmatpush3.bf16.msra.mxu1 %v4607_v2 }
 0x7fe   : > { %4391 = vmatprep.subr.bf16.mxu1 %v4797_v11 }
 0x801   : > { %4392 = vmatpush3.bf16.msra.mxu1 %v4608_v17 }
 0x802   : > { %2457 = vmatprep.subr.bf16.mxu1 %v4611_v33 }
 0x8c7   : > { %v1966_v45 = vpop.f32.mrb[16].mxu1 }
 0x8c8   : > { %v1972_v46 = vpack.c.bf16 %v1966_v45, %v1966_v45  ;;  %v4367_v47 = vpop.f32.mrb[17].mxu1 }
 0x8c9   : > { %v1969_v48 = vpop.f32.mrb[18].mxu1  ;;  %v4626_v47 = vld [vmem:[%s5049_s6 + $0x10] sm:$0xff]  }
 0x8ca   : > { %v4368_v49 = vpop.f32.mrb[19].mxu1  ;;  %4374 = vmatmul.mubr.msk.bf16.vlgmr.msra.gmra.mrb[20].mxu0 %vm1522_vm4, %v1972_v46  ;;  %v4629_v48 = vld [vmem:[%s5060_s4 + $0x54] ss:$8 sps:$4 sm:$0xff]  }
 0x8cb   : > { %4385 = vmatprep.mubr.msk.bf16.mxu0 %vm4799_vm2, %v4797_v11  ;;  %v4627_v49 = vld [vmem:[%s5060_s4 + $0x50] ss:$8 sps:$4 sm:$0xff]  }
 0x8cf   : > { %v2073_v50 = vpop.f32.mrb[20].mxu1 }
 0x8d0   : > { %v2079_v51 = vmul.f32 0.17677669, %v2073_v50  ;;  %v4381_v52 = vpop.f32.mrb[21].mxu1  ;;  %v4630_v50 = vld [vmem:[%s5049_s6 + $0x18] sm:$0xff]  }
 0x8d1   : > { %v2076_v55 = vpop.f32.mrb[22].mxu1  ;;  %v4631_v52 = vld [vmem:[%s5060_s4 + $0x60] ss:$8 sps:$4 sm:$0xff]  }
 0x8d2   : > { %v2080_v56 = vadd.f32 %v2079_v51, %v5013_v3  ;;  %v4382_v57 = vpop.f32.mrb[23].mxu1  ;;  %v4633_v51 = vld [vmem:[%s5060_s4 + $0x64] ss:$8 sps:$4 sm:$0xff]  }
 0x8d3   : > { %v4634_v55 = vld [vmem:[%s5049_s6 + $0x20] sm:$0xff]   ;;  %v4635_v57 = vld [vmem:[%s5060_s4 + $0x70] ss:$8 sps:$4 sm:$0xff]  }
 0x8d4   : > { %v2081_v58 = vsel %vm1571_vm5, %v2080_v56, -inf }
 0x8d5   : > { %2082 = vmax.xlane.f32.xlu0 %v2081_v58  ;;  %v1213_v58 = vld [vmem:[%s5688_s8] sm:$0xff] }
 0x8eb   : > { %2093 = vrot.lane.b32.xlu0 %v5178_v0, %s4802_s22 }
 0x962   : > { %v2083_v59 = vpop.xlane.xlu0 %2082 }
 0x963   : > { %v2084_v60 = vsub.f32 %v2080_v56, %v2083_v59  ;;  %v4637_v56 = vld [vmem:[%s5060_s4 + $0x74] ss:$8 sps:$4 sm:$0xff]   ;;  %v4638_v59 = vld [vmem:[%s5049_s6 + $0x28] sm:$0xff]  }
 0x965   : > { %v2085_v61 = vmul.f32 1.442695, %v2084_v60  ;;  %v2364_v60 = vpack.c.bf16 %v1213_v58, %v1213_v58 }
 0x966   : > { %v2094_v62 = vpop.permute.xlu0 %2093 }
 0x967   : > { %4703 = vpow2.f32 %v2085_v61  ;;  %v2099_v63 = vsel %vm1589_vm3, %v2094_v62, 0  ;;  %v4639_v61 = vld [vmem:[%s5049_s6 + $0x30] sm:$0xff]   ;;  %v4640_v62 = vld [vmem:[%s5049_s6 + $0x38] sm:$0xff]   ;;  %s5691_s6 = sld [smem:[#allocation25_spill]] }
 0x968   : > { %4384 = vmatpush3.bf16.msra.mxu0 %v2099_v63 }
 0x969   : > { %4397 = vmatprep.subr.bf16.mxu0 %v4797_v11 }
 0x96d   : > { %s5692_s30 = scalar_lea.vmem %s5691_s6, %s4987_s12 }
 0x971   : > { %v4704_v1 = vpop.eup %4703 }
 0x972   : > { %v2087_v3 = vsel %vm1571_vm5, %v4704_v1, 0.0 }
 0x973   : > { %2088 = vadd.xlane.f32.xlu1 %v2087_v3 }
 0x99d   : > { %v2022_v0 = vpop.f32.mrb[20].mxu0 }
 0x99e   : > { %v2028_v4 = vadd.f32 %v2022_v0, %v5242_v19  ;;  %v4375_v6 = vpop.f32.mrb[21].mxu0  ;;  %v4089_v0 = vld [vmem:[%s5690_s25] ss:$0 sm:$0xff] }
 0x99f   : > { %v2025_v8 = vpop.f32.mrb[22].mxu0  ;;  %v4090_v6 = vld [vmem:[%s5692_s30] ss:$0 sm:$0xff] }
 0x9a0   : > { %v4376_v10 = vpop.f32.mrb[23].mxu0 }
 0xa00   : > { %v2089_v12 = vpop.xlane.xlu1 %2088 }
 0xa01   : > { %4705 = vrcp.f32 %v2089_v12 }
 0xa0b   : > { %v4706_v14 = vpop.eup %4705 }
 0xa0c   : > { %v2091_v15 = vmul.f32 %v4706_v14, %v4704_v1  ;;  %v2365_v14 = vld [vmem:[%s5065_s26] sm:$0x3] }
 0xa0e   : > { %v2092_v16 = vpack.c.bf16 %v2091_v15, %v2091_v15  ;;  %v2370_v15 = vrot.slane %v2365_v14, %v5174_v54 }
 0xa10   : > { %4386 = vmatmul.mubr.msk.bf16.vlgmr.msra.gmra.mrb[24].mxu0 %vm1585_vm6, %v2092_v16  ;;  %v2374_v16 = vrot.slane %v2365_v14, %v5172_v53  ;;  %v4641_v14 = vld [vmem:[%s5070_s21] sm:$0xff]  }
 0xa11   : > { %4413 = vmatprep.mubr.msk.bf16.mxu0 %vm4799_vm2, %v4797_v11  ;;  %4398 = vmatpush3.bf16.msra.mxu0 %v4618_v36 }
 0xa12   : > { %4399 = vmatprep.subr.bf16.mxu0 %v4797_v11 }
 0xa15   : > { %4400 = vmatpush3.bf16.msra.mxu0 %v4622_v38 }
 0xa16   : > { %4401 = vmatprep.subr.bf16.mxu0 %v4797_v11 }
 0xa19   : > { %4402 = vmatpush3.bf16.msra.mxu0 %v4626_v47 }
 0xa1a   : > { %4403 = vmatprep.subr.bf16.mxu0 %v4797_v11 }
 0xa1d   : > { %4404 = vmatpush3.bf16.msra.mxu0 %v4630_v50 }
 0xa1e   : > { %4405 = vmatprep.subr.bf16.mxu0 %v4797_v11 }
 0xa21   : > { %4406 = vmatpush3.bf16.msra.mxu0 %v4634_v55 }
 0xa22   : > { %4407 = vmatprep.subr.bf16.mxu0 %v4797_v11 }
 0xa25   : > { %4408 = vmatpush3.bf16.msra.mxu0 %v4638_v59 }
 0xa26   : > { %4409 = vmatprep.subr.bf16.mxu0 %v4797_v11 }
 0xa29   : > { %4410 = vmatpush3.bf16.msra.mxu0 %v4639_v61 }
 0xa2a   : > { %4411 = vmatprep.subr.bf16.mxu0 %v4797_v11 }
 0xa2d   : > { %4412 = vmatpush3.bf16.msra.mxu0 %v4640_v62 }
 0xa2e   : > { %4417 = vmatprep.subr.bf16.mxu0 %v4797_v11 }
 0xae3   : > { %v2135_v18 = vpop.f32.mrb[24].mxu0 }
 0xae4   : > { %v2141_v20 = vpack.c.bf16 %v2135_v18, %v2135_v18  ;;  %v4387_v19 = vpop.f32.mrb[25].mxu0 }
 0xae5   : > { %v2138_v21 = vpop.f32.mrb[26].mxu0 }
 0xae6   : > { %v4388_v22 = vpop.f32.mrb[27].mxu0  ;;  %4394 = vmatmul.mubr.msk.bf16.vlgmr.msra.gmra.mrb[24].mxu1 %vm1522_vm4, %v2141_v20 }
 0xae7   : > { %2489 = vmatprep.mubr.bf16.mxu1 %v4798_v34  ;;  %2458 = vmatpush1.bf16.msra.mxu1 %v4609_v32 }
 0xae8   : > { %2459 = vmatprep.subr.bf16.mxu1 %v4614_v35 }
 0xaeb   : > { %2460 = vmatpush1.bf16.msra.mxu1 %v4612_v37 }
 0xbb9   : > { %v2191_v23 = vpop.f32.mrb[24].mxu1 }
 0xbba   : > { %v2197_v24 = vadd.f32 %v2191_v23, %v2028_v4  ;;  %v4395_v25 = vpop.f32.mrb[25].mxu1 }
 0xbbb   : > { %v2194_v27 = vpop.f32.mrb[26].mxu1 }
 0xbbc   : > { %v2198_v28 = vadd.f32 %v2197_v24, %v5113_v7  ;;  %v4396_v29 = vpop.f32.mrb[27].mxu1  ;;  %v4617_v7 = vld [vmem:[%s5060_s4 + $0x24] ss:$8 sps:$4 sm:$0xff]   ;;  %v4091_v27 = vld [vmem:[%s5693_s28] ss:$0 sm:$0xff]  ;;  %s5699_s4 = sld [smem:[#allocation6_spill]] }
 0xbbd   : > { %2461 = vmatprep.subr.bf16.mxu1 %v4617_v7 }
 0xbbe   : > { %v5292_v30 = vadd.f32 %v4088_v26, %v2198_v28  ;;  %2462 = vmatpush1.bf16.msra.mxu1 %v4615_v13 }
 0xbbf   : > { %2463 = vmatprep.subr.bf16.mxu1 %v4621_v39 }
 0xbc0   : > { %v2209_v31 = vsel %vm1216_vm1, %v5292_v30, 0.0 }
 0xbc1   : > { %2210 = vadd.xlane.f32.xlu1 %v2209_v31 }
 0xbc2   : > { %2464 = vmatpush1.bf16.msra.mxu1 %v4619_v40  ;;  %p4172_p13 = scmp.ne.s32.totalorder %s5699_s4, 1 }
 0xbc3   : > { %2465 = vmatprep.subr.bf16.mxu1 %v4625_v41  ;;  %s5700_s25 = sld [smem:[#allocation37_spill]] (!%p4172_p13)  ;;  %vm4804_vm10 = vmmov (!%p4172_p13), 0   ;;  %s5701_s10 = sld [smem:[#allocation35_spill]] (!%p4172_p13) }
 0xbc4   : > { %s5703_s4 = sld [smem:[#allocation38_spill]] (!%p4172_p13) }
 0xbc6   : > { %2466 = vmatpush1.bf16.msra.mxu1 %v4623_v42 }
 0xbc7   : > { %2467 = vmatprep.subr.bf16.mxu1 %v4629_v48 }
 0xbca   : > { %2468 = vmatpush1.bf16.msra.mxu1 %v4627_v49 }
 0xbcb   : > { %2469 = vmatprep.subr.bf16.mxu1 %v4633_v51 }
 0xbce   : > { %2470 = vmatpush1.bf16.msra.mxu1 %v4631_v52 }
 0xbcf   : > { %2471 = vmatprep.subr.bf16.mxu1 %v4637_v56 }
 0xbd2   : > { %2472 = vmatpush1.bf16.msra.mxu1 %v4635_v57 }
 0xbd3   : > { %4423 = vmatprep.subr.bf16.mxu1 %v4797_v11 }
 0xbd5   : > { %2490 = vmatmul.mubr.bf16.vlgmr.msra.gmra.mrb[28].mxu1 %v2364_v60 }
 0xbd6   : > { %4425 = vmatprep.mubr.msk.bf16.mxu1 %vm4799_vm2, %v4797_v11 }
 0xc4e   : > { %v2211_v43 = vpop.xlane.xlu1 %2210 }
 0xc4f   : > { %v2212_v9 = vmul.f32 0.0078125, %v2211_v43 }
 0xc51   : > { %v2213_v44 = vsub.f32 %v5292_v30, %v2212_v9 }
 0xc53   : > { %v2214_v45 = vmul.f32 %v2213_v44, %v2213_v44 }
 0xc55   : > { %v2215_v46 = vsel %vm1216_vm1, %v2214_v45, 0.0 }
 0xc56   : > { %2216 = vadd.xlane.f32.xlu1 %v2215_v46 }
 0xca8   : > { %v2491_v17 = vpop.f32.mrb[28].mxu1 }
 0xca9   : > { %v2492_v18 = vadd.f32 %v2491_v17, %v2370_v15  ;;  %v2493_v20 = vpop.f32.mrb[29].mxu1 }
 0xcaa   : > { %v2494_v19 = vadd.f32 %v2493_v20, %v2374_v16  ;;  %v2495_v21 = vpop.f32.mrb[30].mxu1  ;;  %v4642_v16 = vld [vmem:[%s5070_s21 + $0x8] sm:$0xff]  }
 0xcab   : > { %v5353_v22 = vpack.c.bf16 %v2492_v18, %v2492_v18  ;;  %v2496_v23 = vpop.f32.mrb[31].mxu1 }
 0xcac   : > { %v5355_v24 = vpack.c.bf16 %v2494_v19, %v2494_v19 }
 0xcad   : > { %2631 = vrot.lane.b32.xlu0 %v5353_v22, %s4800_s3  ;;  %v2520_v25 = vsel %vm1522_vm4, %v5353_v22, 0 }
 0xcae   : > { %v2584_v26 = vsel %vm2582_vm7, %v5355_v24, 0 }
 0xcaf   : > { %4424 = vmatpush3.bf16.msra.mxu1 %v2584_v26 }
 0xcb0   : > { %4435 = vmatprep.subr.bf16.mxu1 %v4797_v11 }
 0xce3   : > { %v2217_v63 = vpop.xlane.xlu1 %2216 }
 0xce4   : > { %v2218_v1 = vmul.f32 0.0078125, %v2217_v63 }
 0xce6   : > { %v2219_v3 = vadd.f32 1e-05, %v2218_v1 }
 0xce8   : > { %4707 = vrsqrt.f32 %v2219_v3 }
 0xcf2   : > { %v4708_v2 = vpop.eup %4707 }
 0xcf3   : > { %v2221_v4 = vmul.f32 %v4708_v2, %v2213_v44  ;;  %v4643_v2 = vld [vmem:[%s5070_s21 + $0x10] sm:$0xff]  }
 0xcf5   : > { %v2228_v8 = vmul.f32 %v4089_v0, %v2221_v4  ;;  %v4644_v0 = vld [vmem:[%s5070_s21 + $0x18] sm:$0xff]  }
 0xcf7   : > { %v2235_v10 = vadd.f32 %v4090_v6, %v2228_v8 }
 0xcf9   : > { %v2252_v12 = vpack.c.bf16 %v2235_v10, %v2235_v10 }
 0xcfb   : > { %4414 = vmatmul.mubr.bf16.vlgmr.msra.gmra.mrb[28].mxu0 %v2252_v12 }
 0xcfc   : > { %4419 = vmatprep.mubr.msk.bf16.mxu0 %vm4799_vm2, %v4797_v11  ;;  %4418 = vmatpush3.bf16.xpose.msra.mxu0 %v2520_v25 }
 0xcfd   : > { %4429 = vmatprep.subr.bf16.mxu0 %v4797_v11 }
 0xd1f   : > { %v2632_v29 = vpop.permute.xlu0 %2631 }
 0xd20   : > { %v2637_v37 = vsel %vm1522_vm4, %v2632_v29, 0 }
 0xdce   : > { %v2342_v28 = vpop.f32.mrb[28].mxu0 }
 0xdcf   : > { %v2343_v31 = vadd.f32 %v4091_v27, %v2342_v28  ;;  %v4415_v32 = vpop.f32.mrb[29].mxu0 }
 0xdd0   : > { %v2345_v33 = vpop.f32.mrb[30].mxu0 }
 0xdd1   : > { %v5370_v35 = vpack.c.bf16 %v2343_v31, %v2343_v31  ;;  %v4416_v36 = vpop.f32.mrb[31].mxu0 }
 0xdd3   : > { %2628 = vrot.lane.b32.xlu1 %v5370_v35, %s4800_s3  ;;  %4420 = vmatmul.mubr.msk.bf16.vlgmr.msra.gmra.mrb[32].mxu0 %vm1522_vm4, %v5370_v35 }
 0xdd4   : > { %4430 = vmatpush3.bf16.xpose.msra.mxu0 %v2637_v37  ;;  %4431 = vmatprep.mubr.msk.bf16.mxu0 %vm4799_vm2, %v4797_v11 }
 0xdd5   : > { %4441 = vmatprep.subr.bf16.mxu0 %v4797_v11 }
 0xe45   : > { %v2629_v7 = vpop.permute.xlu1 %2628 }
 0xe46   : > { %4432 = vmatmul.mubr.msk.bf16.vlgmr.msra.gmra.mrb[36].mxu0 %vm1522_vm4, %v2629_v7 }
 0xe47   : > { %4445 = vmatprep.mubr.msk.bf16.mxu0 %vm4799_vm2, %v4797_v11  ;;  %4442 = vmatpush3.bf16.msra.mxu0 %v4643_v2 }
 0xe48   : > { %4443 = vmatprep.subr.bf16.mxu0 %v4797_v11 }
 0xe4b   : > { %4444 = vmatpush3.bf16.msra.mxu0 %v4644_v0 }
 0xe4c   : > { %4457 = vmatprep.subr.bf16.mxu0 %v4797_v11 }
 0xea6   : > { %v2556_v38 = vpop.f32.mrb[32].mxu0 }
 0xea7   : > { %v2562_v13 = vmul.f32 0.17677669, %v2556_v38  ;;  %v4421_v39 = vpop.f32.mrb[33].mxu0 }
 0xea8   : > { %v2559_v40 = vpop.f32.mrb[34].mxu0 }
 0xea9   : > { %v2563_v41 = vadd.f32 %v2562_v13, %v5027_v5  ;;  %v4422_v42 = vpop.f32.mrb[35].mxu0 }
 0xeab   : > { %v2565_v43 = vsel %vm2564_vm8, %v2563_v41, -inf }
 0xeac   : > { %2566 = vmax.xlane.f32.xlu0 %v2565_v43 }
 0xf19   : > { %v2673_v9 = vpop.f32.mrb[36].mxu0 }
 0xf1a   : > { %v2679_v44 = vmul.f32 0.17677669, %v2673_v9  ;;  %v4433_v45 = vpop.f32.mrb[37].mxu0 }
 0xf1b   : > { %v2676_v46 = vpop.f32.mrb[38].mxu0 }
 0xf1c   : > { %v2680_v47 = vadd.f32 %v2679_v44, %v5027_v5  ;;  %v4434_v48 = vpop.f32.mrb[39].mxu0 }
 0xf1e   : > { %v2681_v49 = vsel %vm2564_vm8, %v2680_v47, -inf }
 0xf1f   : > { %2682 = vmax.xlane.f32.xlu1 %v2681_v49 }
 0xf30   : > { %2855 = vrot.lane.b32.xlu1 %v5353_v22, %s4801_s9 }
 0xf39   : > { %v2567_v50 = vpop.xlane.xlu0 %2566 }
 0xf3a   : > { %v2568_v51 = vsub.f32 %v2563_v41, %v2567_v50 }
 0xf3c   : > { %v2569_v52 = vmul.f32 1.442695, %v2568_v51 }
 0xf3e   : > { %4709 = vpow2.f32 %v2569_v52 }
 0xf48   : > { %v4710_v55 = vpop.eup %4709 }
 0xf49   : > { %v2571_v56 = vsel %vm2564_vm8, %v4710_v55, 0.0 }
 0xf4a   : > { %2572 = vadd.xlane.f32.xlu0 %v2571_v56 }
 0xfac   : > { %v2683_v57 = vpop.xlane.xlu1 %2682 }
 0xfad   : > { %v2684_v58 = vsub.f32 %v2680_v47, %v2683_v57  ;;  %v4645_v57 = vld [vmem:[%s5070_s21 + $0x20] sm:$0xff]  }
 0xfaf   : > { %v2685_v59 = vmul.f32 1.442695, %v2684_v58 }
 0xfb0   : > { %v2856_v23 = vpop.permute.xlu1 %2855 }
 0xfb1   : > { %4711 = vpow2.f32 %v2685_v59  ;;  %v2861_v29 = vsel %vm1522_vm4, %v2856_v23, 0  ;;  %v4647_v23 = vld [vmem:[%s5070_s21 + $0x30] sm:$0xff]  }
 0xfbb   : > { %v4712_v60 = vpop.eup %4711 }
 0xfbc   : > { %v2687_v61 = vsel %vm2564_vm8, %v4712_v60, 0.0 }
 0xfbd   : > { %2688 = vadd.xlane.f32.xlu0 %v2687_v61 }
 0xfd3   : > { %2694 = vrot.lane.b32.xlu0 %v5355_v24, %s4800_s3 }
 0xfd7   : > { %v2573_v62 = vpop.xlane.xlu0 %2572  ;;  %2853 = vrot.lane.b32.xlu0 %v5370_v35, %s4801_s9 }
 0xfd8   : > { %4713 = vrcp.f32 %v2573_v62 }
 0xfe2   : > { %v4714_v63 = vpop.eup %4713 }
 0xfe3   : > { %v2575_v1 = vmul.f32 %v4714_v63, %v4710_v55  ;;  %v4646_v63 = vld [vmem:[%s5070_s21 + $0x28] sm:$0xff]  }
 0xfe5   : > { %v2576_v3 = vpack.c.bf16 %v2575_v1, %v2575_v1 }
 0xfe7   : > { %4426 = vmatmul.mubr.msk.bf16.vlgmr.msra.gmra.mrb[32].mxu1 %vm2578_vm9, %v2576_v3 }
 0xfe8   : > { %4437 = vmatprep.mubr.msk.bf16.mxu1 %vm4799_vm2, %v4797_v11 }
0x104a   : > { %v2689_v4 = vpop.xlane.xlu0 %2688 }
0x104b   : > { %4715 = vrcp.f32 %v2689_v4 }
0x104e   : > { %v2695_v6 = vpop.permute.xlu0 %2694 }
0x104f   : > { %v2700_v8 = vsel %vm2582_vm7, %v2695_v6, 0 }
0x1050   : > { %4436 = vmatpush3.bf16.msra.mxu1 %v2700_v8 }
0x1051   : > { %4449 = vmatprep.subr.bf16.mxu1 %v4797_v11 }
0x1052   : > { %v2854_v32 = vpop.permute.xlu0 %2853 }
0x1055   : > { %v4716_v10 = vpop.eup %4715 }
0x1056   : > { %v2691_v12 = vmul.f32 %v4716_v10, %v4712_v60 }
0x1058   : > { %v2692_v15 = vpack.c.bf16 %v2691_v12, %v2691_v12 }
0x105a   : > { %4438 = vmatmul.mubr.msk.bf16.vlgmr.msra.gmra.mrb[36].mxu1 %vm2578_vm9, %v2692_v15 }
0x105b   : > { %4450 = vmatpush3.bf16.msra.mxu1 %v4641_v14  ;;  %4453 = vmatprep.mubr.msk.bf16.mxu1 %vm4799_vm2, %v4797_v11 }
0x105c   : > { %4451 = vmatprep.subr.bf16.mxu1 %v4797_v11 }
0x105f   : > { %4452 = vmatpush3.bf16.msra.mxu1 %v4642_v16 }
0x1060   : > { %4463 = vmatprep.subr.bf16.mxu1 %v4797_v11 }
0x10ba   : > { %v2620_v17 = vpop.f32.mrb[32].mxu1 }
0x10bb   : > { %v2626_v18 = vpack.c.bf16 %v2620_v17, %v2620_v17  ;;  %v4427_v20 = vpop.f32.mrb[33].mxu1 }
0x10bc   : > { %v2623_v19 = vpop.f32.mrb[34].mxu1 }
0x10bd   : > { %v4428_v21 = vpop.f32.mrb[35].mxu1  ;;  %4454 = vmatmul.mubr.msk.bf16.vlgmr.msra.gmra.mrb[40].mxu1 %vm1522_vm4, %v2626_v18 }
0x10be   : > { %4465 = vmatprep.mubr.msk.bf16.mxu1 %vm4799_vm2, %v4797_v11 }
0x112d   : > { %v2736_v25 = vpop.f32.mrb[36].mxu1 }
0x112e   : > { %v2742_v26 = vpack.c.bf16 %v2736_v25, %v2736_v25  ;;  %v4439_v27 = vpop.f32.mrb[37].mxu1 }
0x112f   : > { %v2739_v28 = vpop.f32.mrb[38].mxu1 }
0x1130   : > { %v4440_v31 = vpop.f32.mrb[39].mxu1  ;;  %4446 = vmatmul.mubr.msk.bf16.vlgmr.msra.gmra.mrb[40].mxu0 %vm1522_vm4, %v2742_v26 }
0x1131   : > { %4458 = vmatpush3.bf16.xpose.msra.mxu0 %v2861_v29  ;;  %4459 = vmatprep.mubr.msk.bf16.mxu0 %vm4799_vm2, %v4797_v11 }
0x1132   : > { %4469 = vmatprep.subr.bf16.mxu0 %v4797_v11 }
0x1138   : > { %4460 = vmatmul.mubr.msk.bf16.vlgmr.msra.gmra.mrb[44].mxu0 %vm1522_vm4, %v2854_v32 }
0x1139   : > { %4473 = vmatprep.mubr.msk.bf16.mxu0 %vm4799_vm2, %v4797_v11  ;;  %4470 = vmatpush3.bf16.msra.mxu0 %v4645_v57 }
0x113a   : > { %4471 = vmatprep.subr.bf16.mxu0 %v4797_v11 }
0x113d   : > { %4472 = vmatpush3.bf16.msra.mxu0 %v4646_v63  ;;  %v4669_v63 = vld [vmem:[%s5087_s14 + $0x64] ss:$8 sps:$4 sm:$0xff]  }
0x113e   : > { %4483 = vmatprep.subr.bf16.mxu0 %v4797_v11 }
0x1190   : > { %v2847_v33 = vpop.f32.mrb[40].mxu1 }
0x1191   : > { %v4455_v36 = vpop.f32.mrb[41].mxu1 }
0x1192   : > { %v2850_v37 = vpop.f32.mrb[42].mxu1 }
0x1193   : > { %v4456_v7 = vpop.f32.mrb[43].mxu1 }
0x1203   : > { %v2792_v38 = vpop.f32.mrb[40].mxu0 }
0x1204   : > { %v5422_v13 = vadd.f32 %v2847_v33, %v2792_v38  ;;  %v4447_v39 = vpop.f32.mrb[41].mxu0 }
0x1205   : > { %v2795_v40 = vpop.f32.mrb[42].mxu0 }
0x1206   : > { %v4448_v41 = vpop.f32.mrb[43].mxu0 }
0x120b   : > { %v2897_v42 = vpop.f32.mrb[44].mxu0 }
0x120c   : > { %v2903_v43 = vmul.f32 0.17677669, %v2897_v42  ;;  %v4461_v9 = vpop.f32.mrb[45].mxu0 }
0x120d   : > { %v2900_v44 = vpop.f32.mrb[46].mxu0 }
0x120e   : > { %v2904_v45 = vadd.f32 %v2903_v43, %v5027_v5  ;;  %v4462_v46 = vpop.f32.mrb[47].mxu0 }
0x1210   : > { %v2905_v47 = vsel %vm2564_vm8, %v2904_v45, -inf }
0x1211   : > { %2906 = vmax.xlane.f32.xlu0 %v2905_v47  ;;  %v4649_v47 = vld [vmem:[%s5087_s14] ss:$8 sps:$4 sm:$0xff]  }
0x1227   : > { %2917 = vrot.lane.b32.xlu0 %v5355_v24, %s4801_s9 }
0x122b   : > { %3022 = vrot.lane.b32.xlu0 %v5370_v35, %s4802_s22 }
0x129e   : > { %v2907_v48 = vpop.xlane.xlu0 %2906 }
0x129f   : > { %v2908_v49 = vsub.f32 %v2904_v45, %v2907_v48  ;;  %v4651_v48 = vld [vmem:[%s5087_s14 + $0x4] ss:$8 sps:$4 sm:$0xff]  }
0x12a1   : > { %v2909_v50 = vmul.f32 1.442695, %v2908_v49  ;;  %v4654_v49 = vld [vmem:[%s5087_s14 + $0x14] ss:$8 sps:$4 sm:$0xff]  }
0x12a2   : > { %v2918_v51 = vpop.permute.xlu0 %2917 }
0x12a3   : > { %4717 = vpow2.f32 %v2909_v50  ;;  %v2923_v52 = vsel %vm2582_vm7, %v2918_v51, 0  ;;  %v4652_v50 = vld [vmem:[%s5087_s14 + $0x10] ss:$8 sps:$4 sm:$0xff]   ;;  %v4657_v51 = vld [vmem:[%s5087_s14 + $0x24] ss:$8 sps:$4 sm:$0xff]  }
0x12a4   : > { %4464 = vmatpush3.bf16.msra.mxu1 %v2923_v52 }
0x12a5   : > { %4477 = vmatprep.subr.bf16.mxu1 %v4797_v11 }
0x12ad   : > { %v4718_v55 = vpop.eup %4717 }
0x12ae   : > { %v2911_v56 = vsel %vm2564_vm8, %v4718_v55, 0.0 }
0x12af   : > { %2912 = vadd.xlane.f32.xlu1 %v2911_v56 }
0x12c0   : > { %3024 = vrot.lane.b32.xlu1 %v5353_v22, %s4802_s22  ;;  %v3023_v22 = vpop.permute.xlu0 %3022 }
0x133c   : > { %v2913_v35 = vpop.xlane.xlu1 %2912 }
0x133d   : > { %4719 = vrcp.f32 %v2913_v35 }
0x1340   : > { %v3025_v60 = vpop.permute.xlu1 %3024 }
0x1341   : > { %v3030_v62 = vsel %vm1522_vm4, %v3025_v60, 0  ;;  %v4663_v60 = vld [vmem:[%s5087_s14 + $0x44] ss:$8 sps:$4 sm:$0xff]  }
0x1347   : > { %v4720_v58 = vpop.eup %4719 }
0x1348   : > { %v2915_v59 = vmul.f32 %v4720_v58, %v4718_v55  ;;  %v4660_v58 = vld [vmem:[%s5087_s14 + $0x34] ss:$8 sps:$4 sm:$0xff]  }
0x134a   : > { %v2916_v61 = vpack.c.bf16 %v2915_v59, %v2915_v59  ;;  %v4658_v59 = vld [vmem:[%s5087_s14 + $0x30] ss:$8 sps:$4 sm:$0xff]  }
0x134c   : > { %4466 = vmatmul.mubr.msk.bf16.vlgmr.msra.gmra.mrb[44].mxu1 %vm2578_vm9, %v2916_v61  ;;  %v4661_v61 = vld [vmem:[%s5087_s14 + $0x40] ss:$8 sps:$4 sm:$0xff]  }
0x134d   : > { %4478 = vmatpush3.bf16.xpose.msra.mxu1 %v3030_v62  ;;  %4479 = vmatprep.mubr.msk.bf16.mxu1 %vm4799_vm2, %v4797_v11  ;;  %v4666_v62 = vld [vmem:[%s5087_s14 + $0x54] ss:$8 sps:$4 sm:$0xff]  }
0x134e   : > { %4489 = vmatprep.subr.bf16.mxu1 %v4797_v11 }
0x1354   : > { %4480 = vmatmul.mubr.msk.bf16.vlgmr.msra.gmra.mrb[48].mxu1 %vm1522_vm4, %v3023_v22  ;;  %v4664_v22 = vld [vmem:[%s5087_s14 + $0x50] ss:$8 sps:$4 sm:$0xff]  }
0x1355   : > { %4493 = vmatprep.mubr.msk.bf16.mxu1 %vm4799_vm2, %v4797_v11  ;;  %4490 = vmatpush3.bf16.msra.mxu1 %v4647_v23 }
0x1356   : > { %4491 = vmatprep.subr.bf16.mxu1 %v4797_v11 }
0x141f   : > { %v2959_v1 = vpop.f32.mrb[44].mxu1 }
0x1420   : > { %v2965_v3 = vpack.c.bf16 %v2959_v1, %v2959_v1  ;;  %v4467_v2 = vpop.f32.mrb[45].mxu1  ;;  %v4667_v1 = vld [vmem:[%s5087_s14 + $0x60] ss:$8 sps:$4 sm:$0xff]  }
0x1421   : > { %v2962_v0 = vpop.f32.mrb[46].mxu1  ;;  %v4670_v2 = vld [vmem:[%s5087_s14 + $0x70] ss:$8 sps:$4 sm:$0xff]  }
0x1422   : > { %v4468_v4 = vpop.f32.mrb[47].mxu1  ;;  %4474 = vmatmul.mubr.msk.bf16.vlgmr.msra.gmra.mrb[48].mxu0 %vm1522_vm4, %v2965_v3  ;;  %v4672_v3 = vld [vmem:[%s5087_s14 + $0x74] ss:$8 sps:$4 sm:$0xff]   ;;  %v4673_v0 = vld [vmem:[%s5097_s16 + $0x40] sm:$0xff]  }
0x1423   : > { %4485 = vmatprep.mubr.msk.bf16.mxu0 %vm4799_vm2, %v4797_v11  ;;  %v4648_v11 = vld [vmem:[%s5070_s21 + $0x38] sm:$0xff]   ;;  %s5694_s21 = scalar_lea.vmem %s5601_s17, %s4987_s12  ;;  %v4674_v4 = vld [vmem:[%s5097_s16] sm:$0xff]  }
0x1424   : > { %4492 = vmatpush3.bf16.msra.mxu1 %v4648_v11  ;;  %v3246_v11 = vld [vmem:[%s5092_s15] sm:$0x3]  ;;  %s5702_s15 = sld [smem:[#allocation36_spill]] (!%p4172_p13) }
0x1425   : > { %4266 = vmatprep.subr.bf16.mxu1 %v4673_v0 }
0x1427   : > { %v3066_v6 = vpop.f32.mrb[48].mxu1 }
0x1428   : > { %v3072_v8 = vmul.f32 0.17677669, %v3066_v6  ;;  %v4481_v10 = vpop.f32.mrb[49].mxu1  ;;  %v4675_v6 = vld [vmem:[%s5097_s16 + $0x48] sm:$0xff]  }
0x1429   : > { %v3069_v12 = vpop.f32.mrb[50].mxu1  ;;  %v4677_v10 = vld [vmem:[%s5097_s16 + $0x50] sm:$0xff]  }
0x142a   : > { %v3073_v14 = vadd.f32 %v3072_v8, %v5027_v5  ;;  %v4482_v15 = vpop.f32.mrb[51].mxu1  ;;  %v4676_v8 = vld [vmem:[%s5097_s16 + $0x8] sm:$0xff]   ;;  %v4678_v12 = vld [vmem:[%s5097_s16 + $0x10] sm:$0xff]  }
0x142b   : > { %v4680_v15 = vld [vmem:[%s5097_s16 + $0x18] sm:$0xff]  }
0x142c   : > { %v3074_v16 = vsel %vm2564_vm8, %v3073_v14, -inf }
0x142d   : > { %3075 = vmax.xlane.f32.xlu1 %v3074_v16  ;;  %v4681_v16 = vld [vmem:[%s5097_s16 + $0x60] sm:$0xff]  }
0x14ba   : > { %v3076_v17 = vpop.xlane.xlu1 %3075 }
0x14bb   : > { %v3077_v18 = vsub.f32 %v3073_v14, %v3076_v17  ;;  %v4679_v14 = vld [vmem:[%s5097_s16 + $0x58] sm:$0xff]   ;;  %v4682_v17 = vld [vmem:[%s5097_s16 + $0x20] sm:$0xff]  }
0x14bd   : > { %v3078_v20 = vmul.f32 1.442695, %v3077_v18  ;;  %v4683_v18 = vld [vmem:[%s5097_s16 + $0x68] sm:$0xff]  }
0x14bf   : > { %4721 = vpow2.f32 %v3078_v20  ;;  %v4684_v20 = vld [vmem:[%s5097_s16 + $0x28] sm:$0xff]  }
0x14c9   : > { %v4722_v19 = vpop.eup %4721 }
0x14ca   : > { %v3080_v21 = vsel %vm2564_vm8, %v4722_v19, 0.0 }
0x14cb   : > { %3081 = vadd.xlane.f32.xlu0 %v3080_v21 }
0x14e1   : > { %3086 = vrot.lane.b32.xlu0 %v5355_v24, %s4802_s22 }
0x14f5   : > { %v3015_v5 = vpop.f32.mrb[48].mxu0 }
0x14f6   : > { %v3021_v25 = vadd.f32 %v3015_v5, %v5422_v13  ;;  %v4475_v26 = vpop.f32.mrb[49].mxu0 }
0x14f7   : > { %v3018_v27 = vpop.f32.mrb[50].mxu0 }
0x14f8   : > { %v4476_v28 = vpop.f32.mrb[51].mxu0  ;;  %v4138_v27 = vld [vmem:[%s5697_s20] ss:$0 sm:$0xff] }
0x1558   : > { %v3082_v29 = vpop.xlane.xlu0 %3081 }
0x1559   : > { %4723 = vrcp.f32 %v3082_v29 }
0x155c   : > { %v3087_v31 = vpop.permute.xlu0 %3086 }
0x155d   : > { %v3092_v32 = vsel %vm2582_vm7, %v3087_v31, 0 }
0x155e   : > { %4484 = vmatpush3.bf16.msra.mxu0 %v3092_v32  ;;  %v4685_v32 = vld [vmem:[%s5097_s16 + $0x70] sm:$0xff]  }
0x155f   : > { %3338 = vmatprep.subr.bf16.mxu0 %v4651_v48 }
0x1563   : > { %v4724_v33 = vpop.eup %4723 }
0x1564   : > { %v3084_v24 = vmul.f32 %v4724_v33, %v4722_v19  ;;  %v4686_v33 = vld [vmem:[%s5097_s16 + $0x30] sm:$0xff]  }
0x1566   : > { %v3085_v36 = vpack.c.bf16 %v3084_v24, %v3084_v24  ;;  %v4687_v24 = vld [vmem:[%s5097_s16 + $0x78] sm:$0xff]  }
0x1568   : > { %4486 = vmatmul.mubr.msk.bf16.vlgmr.msra.gmra.mrb[52].mxu0 %vm2578_vm9, %v3085_v36  ;;  %v4688_v36 = vld [vmem:[%s5097_s16 + $0x38] sm:$0xff]  }
0x1569   : > { %3370 = vmatprep.mubr.bf16.mxu0 %v4798_v34  ;;  %v4136_v34 = vld [vmem:[%s5694_s21] ss:$0 sm:$0xff]  ;;  %3339 = vmatpush1.bf16.msra.mxu0 %v4649_v47 }
0x156a   : > { %3340 = vmatprep.subr.bf16.mxu0 %v4654_v49 }
0x156d   : > { %3341 = vmatpush1.bf16.msra.mxu0 %v4652_v50 }
0x156e   : > { %3342 = vmatprep.subr.bf16.mxu0 %v4657_v51 }
0x163b   : > { %v3128_v37 = vpop.f32.mrb[52].mxu0 }
0x163c   : > { %v3134_v7 = vpack.c.bf16 %v3128_v37, %v3128_v37  ;;  %v4487_v38 = vpop.f32.mrb[53].mxu0  ;;  %v3251_v37 = vrot.slane %v3246_v11, %v5174_v54 }
0x163d   : > { %v3131_v13 = vpop.f32.mrb[54].mxu0 }
0x163e   : > { %v4488_v39 = vpop.f32.mrb[55].mxu0  ;;  %4494 = vmatmul.mubr.msk.bf16.vlgmr.msra.gmra.mrb[52].mxu1 %vm1522_vm4, %v3134_v7  ;;  %v3255_v7 = vrot.slane %v3246_v11, %v5172_v53  ;;  %v4171_v53 = vld [vmem:[%s1193_s24] ss:$0 sm:$0xff] }
0x163f   : > { %4267 = vmatpush3.bf16.msra.mxu1 %v4674_v4 }
0x1640   : > { %4268 = vmatprep.subr.bf16.mxu1 %v4675_v6  ;;  %v4173_v6 = vld [vmem:[%s5701_s10] ss:$0 sm:$0xff] (!%p4172_p13) }
0x1643   : > { %4269 = vmatpush3.bf16.msra.mxu1 %v4676_v8 }
0x1644   : > { %4270 = vmatprep.subr.bf16.mxu1 %v4677_v10  ;;  %v4174_v10 = vld [vmem:[%s5702_s15] ss:$0 sm:$0xff] (!%p4172_p13) }
0x1647   : > { %4271 = vmatpush3.bf16.msra.mxu1 %v4678_v12 }
0x1648   : > { %4272 = vmatprep.subr.bf16.mxu1 %v4679_v14 }
0x164b   : > { %4273 = vmatpush3.bf16.msra.mxu1 %v4680_v15 }
0x164c   : > { %4274 = vmatprep.subr.bf16.mxu1 %v4681_v16  ;;  %v4175_v16 = vld [vmem:[%s5703_s4] ss:$0 sm:$0xff] (!%p4172_p13) }
0x164f   : > { %4275 = vmatpush3.bf16.msra.mxu1 %v4682_v17 }
0x1650   : > { %4276 = vmatprep.subr.bf16.mxu1 %v4683_v18 }
0x1653   : > { %4277 = vmatpush3.bf16.msra.mxu1 %v4684_v20 }
0x1654   : > { %4278 = vmatprep.subr.bf16.mxu1 %v4685_v32 }
0x1657   : > { %4279 = vmatpush3.bf16.msra.mxu1 %v4686_v33 }
0x1658   : > { %4280 = vmatprep.subr.bf16.mxu1 %v4687_v24 }
0x165b   : > { %4281 = vmatpush3.bf16.msra.mxu1 %v4688_v36 }
0x1711   : > { %v3184_v40 = vpop.f32.mrb[52].mxu1 }
0x1712   : > { %v3190_v41 = vadd.f32 %v3184_v40, %v3021_v25  ;;  %v4495_v42 = vpop.f32.mrb[53].mxu1  ;;  %v4137_v25 = vld [vmem:[%s5695_s11] ss:$0 sm:$0xff] }
0x1713   : > { %v3187_v43 = vpop.f32.mrb[54].mxu1 }
0x1714   : > { %v3191_v9 = vadd.f32 %v3190_v41, %v5292_v30  ;;  %v4496_v44 = vpop.f32.mrb[55].mxu1  ;;  %v4655_v30 = vld [vmem:[%s5087_s14 + $0x20] ss:$8 sps:$4 sm:$0xff]  }
0x1715   : > { %3343 = vmatpush1.bf16.msra.mxu0 %v4655_v30 }
0x1716   : > { %v5469_v45 = vadd.f32 %v4136_v34, %v3191_v9  ;;  %3344 = vmatprep.subr.bf16.mxu0 %v4660_v58 }
0x1718   : > { %v3202_v46 = vsel %vm1216_vm1, %v5469_v45, 0.0 }
0x1719   : > { %3203 = vadd.xlane.f32.xlu1 %v3202_v46  ;;  %3345 = vmatpush1.bf16.msra.mxu0 %v4658_v59 }
0x171a   : > { %3346 = vmatprep.subr.bf16.mxu0 %v4663_v60  ;;  %v4729_v60 = vld [vmem:[%s5700_s25 + $0x10] sm:$0xff] (!%p4172_p13)  }
0x171d   : > { %3347 = vmatpush1.bf16.msra.mxu0 %v4661_v61  ;;  %v4730_v61 = vld [vmem:[%s5700_s25 + $0x18] sm:$0xff] (!%p4172_p13)  }
0x171e   : > { %3348 = vmatprep.subr.bf16.mxu0 %v4666_v62  ;;  %v4731_v62 = vld [vmem:[%s5700_s25 + $0x20] sm:$0xff] (!%p4172_p13)  }
0x1721   : > { %3349 = vmatpush1.bf16.msra.mxu0 %v4664_v22  ;;  %v4732_v22 = vld [vmem:[%s5700_s25 + $0x28] sm:$0xff] (!%p4172_p13)  }
0x1722   : > { %3350 = vmatprep.subr.bf16.mxu0 %v4669_v63  ;;  %v4733_v63 = vld [vmem:[%s5700_s25 + $0x30] sm:$0xff] (!%p4172_p13)  }
0x1725   : > { %3351 = vmatpush1.bf16.msra.mxu0 %v4667_v1  ;;  %v4734_v1 = vld [vmem:[%s5700_s25 + $0x38] sm:$0xff] (!%p4172_p13)  }
0x1726   : > { %3352 = vmatprep.subr.bf16.mxu0 %v4672_v3 }
0x1729   : > { %3353 = vmatpush1.bf16.msra.mxu0 %v4670_v2 }
0x17a6   : > { %v3204_v52 = vpop.xlane.xlu1 %3203 }
0x17a7   : > { %v3205_v55 = vmul.f32 0.0078125, %v3204_v52  ;;  %v4727_v52 = vld [vmem:[%s5700_s25] sm:$0xff] (!%p4172_p13)  }
0x17a9   : > { %v3206_v56 = vsub.f32 %v5469_v45, %v3205_v55  ;;  %v4803_v55 = vmov (!%p4172_p13), 0.0  }
0x17aa   : > { %4497 = vmatprep.subr.bf16.mxu0 (!%p4172_p13), %v4803_v55 }
0x17ab   : > { %v3207_v57 = vmul.f32 %v3206_v56, %v3206_v56 }
0x17ad   : > { %v3208_v35 = vsel %vm1216_vm1, %v3207_v57, 0.0 }
0x17ae   : > { %3209 = vadd.xlane.f32.xlu1 %v3208_v35 }
0x183b   : > { %v3210_v19 = vpop.xlane.xlu1 %3209 }
0x183c   : > { %v3211_v21 = vmul.f32 0.0078125, %v3210_v19 }
0x183e   : > { %v3212_v23 = vadd.f32 1e-05, %v3211_v21 }
0x1840   : > { %4725 = vrsqrt.f32 %v3212_v23 }
0x184a   : > { %v4726_v5 = vpop.eup %4725 }
0x184b   : > { %v3214_v26 = vmul.f32 %v4726_v5, %v3206_v56  ;;  %v4728_v56 = vld [vmem:[%s5700_s25 + $0x8] sm:$0xff] (!%p4172_p13)  }
0x184d   : > { %v3221_v28 = vmul.f32 %v4137_v25, %v3214_v26 }
0x184f   : > { %v3228_v29 = vadd.f32 %v4138_v27, %v3221_v28 }
0x1851   : > { %v3245_v31 = vpack.c.bf16 %v3228_v29, %v3228_v29 }
0x1853   : > { %3371 = vmatmul.mubr.bf16.vlgmr.msra.gmra.mrb[56].mxu0 %v3245_v31 }
0x1854   : > { %4498 = vmatpush3.bf16.msra.mxu0 (!%p4172_p13), %v4727_v52  ;;  %4513 = vmatprep.mubr.msk.bf16.mxu0 (!%p4172_p13), %vm4804_vm10, %v4803_v55 }
0x1855   : > { %4499 = vmatprep.subr.bf16.mxu0 (!%p4172_p13), %v4803_v55 }
0x1858   : > { %4500 = vmatpush3.bf16.msra.mxu0 (!%p4172_p13), %v4728_v56 }
0x1859   : > { %4501 = vmatprep.subr.bf16.mxu0 (!%p4172_p13), %v4803_v55 }
0x185c   : > { %4502 = vmatpush3.bf16.msra.mxu0 (!%p4172_p13), %v4729_v60 }
0x185d   : > { %4503 = vmatprep.subr.bf16.mxu0 (!%p4172_p13), %v4803_v55 }
0x1860   : > { %4504 = vmatpush3.bf16.msra.mxu0 (!%p4172_p13), %v4730_v61 }
0x1861   : > { %4505 = vmatprep.subr.bf16.mxu0 (!%p4172_p13), %v4803_v55 }
0x1864   : > { %4506 = vmatpush3.bf16.msra.mxu0 (!%p4172_p13), %v4731_v62 }
0x1865   : > { %4507 = vmatprep.subr.bf16.mxu0 (!%p4172_p13), %v4803_v55 }
0x1868   : > { %4508 = vmatpush3.bf16.msra.mxu0 (!%p4172_p13), %v4732_v22 }
0x1869   : > { %4509 = vmatprep.subr.bf16.mxu0 (!%p4172_p13), %v4803_v55 }
0x186c   : > { %4510 = vmatpush3.bf16.msra.mxu0 (!%p4172_p13), %v4733_v63 }
0x186d   : > { %4511 = vmatprep.subr.bf16.mxu0 (!%p4172_p13), %v4803_v55 }
0x1870   : > { %4512 = vmatpush3.bf16.msra.mxu0 (!%p4172_p13), %v4734_v1 }
0x1926   : > { %v3372_v38 = vpop.f32.mrb[56].mxu0 }
0x1927   : > { %v3373_v13 = vadd.f32 %v3372_v38, %v3251_v37  ;;  %v3374_v39 = vpop.f32.mrb[57].mxu0 }
0x1928   : > { %v3375_v40 = vadd.f32 %v3374_v39, %v3255_v7  ;;  %v3376_v41 = vpop.f32.mrb[58].mxu0 }
0x1929   : > { %v3379_v42 = vmax.f32 %v3373_v13, 0.0  ;;  %v3377_v34 = vpop.f32.mrb[59].mxu0 }
0x192a   : > { %v3380_v43 = vmax.f32 %v3375_v40, 0.0 }
0x192b   : > { %v3413_v44 = vpack.c.bf16 %v3379_v42, %v3379_v42 }
0x192c   : > { %v3414_v9 = vpack.c.bf16 %v3380_v43, %v3380_v43 }
0x192e   : > { %3543 = vmatprep.mubr.bf16.mxu1 %v3414_v9 }
0x192f   : > { %3544 = vmatmul.mubr.bf16.vlgmr.msra.gmra.mrb[56].mxu1 %v3413_v44 }
0x1a02   : > { %v4282_v46 = vpop.f32.mrb[56].mxu1 }
0x1a03   : > { %v4283_v47 = vpop.f32.mrb[57].mxu1 }
0x1a04   : > { %v4284_v48 = vadd.f32 %v4283_v47, %v4282_v46  ;;  %v4285_v49 = vpop.f32.mrb[58].mxu1  ;;  %3564 = sbr.rel (%p4172_p13) target bundleno = 7512 (0x1d58), region = 136 }
0x1a05   : > { %v4286_v54 = vpop.f32.mrb[59].mxu1 }
0x1a06   : > { %v3551_v50 = vadd.f32 %v4284_v48, %v5469_v45 }
0x1a08   : > { %v3559_v51 = vadd.f32 %v4171_v53, %v3551_v50 }
0x1a0a   : > { %3560 = vst [vmem:[#allocation2] sm:$0x3f] %v3559_v51  ;;  %v3567_v30 = vsel (!%p4172_p13), %vm1216_vm1, %v3559_v51, 0.0 }
0x1a0b   : > { %3568 = vadd.xlane.f32.xlu0 %v3567_v30 }
0x1a98   : > { %v3569_v45 = vpop.xlane.xlu0 %3568 }
0x1a99   : > { %v3570_v57 = vmul.f32 0.0078125, %v3569_v45 }
0x1a9b   : > { %v3571_v35 = vsub.f32 %v3559_v51, %v3570_v57 }
0x1a9d   : > { %v3572_v58 = vmul.f32 %v3571_v35, %v3571_v35 }
0x1a9f   : > { %v3573_v59 = vsel %vm1216_vm1, %v3572_v58, 0.0 }
0x1aa0   : > { %3574 = vadd.xlane.f32.xlu0 %v3573_v59 }
0x1b2d   : > { %v3575_v3 = vpop.xlane.xlu0 %3574 }
0x1b2e   : > { %v3576_v2 = vmul.f32 0.0078125, %v3575_v3 }
0x1b30   : > { %v3577_v0 = vadd.f32 1e-05, %v3576_v2 }
0x1b32   : > { %4735 = vrsqrt.f32 %v3577_v0 }
0x1b3c   : > { %v4736_v4 = vpop.eup %4735 }
0x1b3d   : > { %v3579_v8 = vmul.f32 %v4736_v4, %v3571_v35 }
0x1b3f   : > { %v3586_v12 = vmul.f32 %v4173_v6, %v3579_v8 }
0x1b41   : > { %v3593_v14 = vadd.f32 %v4174_v10, %v3586_v12 }
0x1b43   : > { %v3610_v15 = vpack.c.bf16 %v3593_v14, %v3593_v14 }
0x1b45   : > { %4514 = vmatmul.mubr.bf16.vlgmr.msra.gmra.mrb[0].mxu0 %v3610_v15 }
0x1c18   : > { %v3700_v17 = vpop.f32.mrb[0].mxu0 }
0x1c19   : > { %v3701_v18 = vadd.f32 %v4175_v16, %v3700_v17  ;;  %v4515_v20 = vpop.f32.mrb[1].mxu0 }
0x1c1a   : > { %v3703_v19 = vpop.f32.mrb[2].mxu0 }
0x1c1b   : > { %v4516_v21 = vpop.f32.mrb[3].mxu0  ;;  %v3706_v23 = vsel %vm1216_vm1, %v3701_v18, -inf }
0x1c1c   : > { %3707 = vmax.xlane.f32.xlu1 %v3706_v23 }
0x1ca9   : > { %v3708_v5 = vpop.xlane.xlu1 %3707 }
0x1caa   : > { %v3709_v25 = vsub.f32 %v3701_v18, %v3708_v5 }
0x1cac   : > { %v3710_v26 = vmul.f32 1.442695, %v3709_v25 }
0x1cae   : > { %4737 = vpow2.f32 %v3710_v26 }
0x1cb8   : > { %v4738_v27 = vpop.eup %4737 }
0x1cb9   : > { %v3712_v28 = vsel %vm1216_vm1, %v4738_v27, 0.0 }
0x1cba   : > { %3713 = vadd.xlane.f32.xlu1 %v3712_v28 }
0x1d47   : > { %v3714_v29 = vpop.xlane.xlu1 %3713 }
0x1d48   : > { %4739 = vlog2.f32 %v3714_v29 }
0x1d52   : > { %v4740_v31 = vpop.eup %4739 }
0x1d53   : > { %v3716_v32 = vmul.f32 0.6931472, %v4740_v31 }
0x1d55   : > { %v3717_v33 = vsub.f32 %v3709_v25, %v3716_v32 }
0x1d57   : > { %3718 = vst [vmem:[%s1197_s5] sm:$0x3f] %v3717_v33 }
0x1d58 PF: > { %s5705_s24 = sld [smem:[#allocation9_spill]]  ;;  %s5706_s6 = sld [smem:[#allocation7_spill]] }
0x1d59   : > { %s5707_s10 = sld [smem:[#allocation8_spill]]  ;;  %s5708_s0 = sld [smem:[#allocation10_spill]] }
0x1d5a   : > { %s5709_s11 = sld [smem:[#allocation11_spill]] }
0x1d5e   : > { %s44_s29 = sadd.s32 1, %s5705_s24  }
0x1d5f   : > { %p41_p0 = scmp.ge.s32.totalorder %s44_s29, 6  }
0x1d61   :  { %43 = sbr.rel (!%p41_p0) target bundleno = 39 (0x27), region = 232 }

</bundles_post_ra>
